<compile_context>
chip_gen: v6e
topology: v6e:2x2x1
jax: 0.10.0
libtpu: 0.0.40
codegen_flags: <defaults>
</compile_context>

<pallas_src>
import functools

import jax
import jax.numpy as jnp
from jax import lax
from jax.experimental import pallas as pl
from jax.experimental.pallas import tpu as pltpu

BN_EPS = 1e-5
C_PAD = 64  # every layer's channel count (3..64) is zero-padded to this width


# ----------------------------------------------------------------------------
# Fused per-stage kernel: L x [3x3 "same" conv + per-channel affine + ReLU]
# on one image, activations kept flat as (H*W, C_PAD) the whole time.
# ----------------------------------------------------------------------------
def _stage_kernel(x_ref, w_ref, s_ref, b_ref, o_ref, buf_ref, *, W, base):
    # x_ref:   (1, H*W, C)      flattened activation, one batch element
    # w_ref:   (L, 9, C, C)     taps, tap index = dy*3 + dx (zero-padded)
    # s_ref:   (L, 1, C)        folded BN scale (ones for deconv blocks)
    # b_ref:   (L, 1, C)        folded conv-bias + BN shift
    # o_ref:   (1, H*W, C)
    # buf_ref: (2*base + H*W, C) flat scratch with zero halo rows; `base` is a
    #          multiple of 8 with base >= W+1 so all stores are tile-aligned.
    HW = x_ref.shape[1]
    C = x_ref.shape[2]
    L = w_ref.shape[0]

    # Column masks: a left/right tap (dx = 0 / 2) is invalid on the first /
    # last image column.  Row out-of-range taps are handled automatically by
    # the zero halo rows of buf_ref.  W is a power of two, so `& (W-1)` == %W.
    col = lax.broadcasted_iota(jnp.int32, (HW, C), 0) & (W - 1)
    m_left = (col != 0).astype(jnp.float32)
    m_right = (col != W - 1).astype(jnp.float32)

    buf_ref[...] = jnp.zeros_like(buf_ref)       # zero halos once per image
    act = x_ref[0]                               # (HW, C)

    for l in range(L):
        # Aligned store of the current activation into the haloed scratch.
        buf_ref[base:base + HW, :] = act
        acc = jnp.zeros((HW, C), jnp.float32)
        for dx in range(3):
            part = jnp.zeros((HW, C), jnp.float32)
            for dy in range(3):
                shift = (dy - 1) * W + (dx - 1)
                patch = buf_ref[base + shift:base + shift + HW, :]   # (HW, C)
                part = part + jnp.dot(patch, w_ref[l, dy * 3 + dx],
                                      preferred_element_type=jnp.float32)
            # Post-matmul masking is exact: each output row only ever uses the
            # matching patch row, so zeroing rows commutes with the matmul.
            if dx == 0:
                part = part * m_left
            elif dx == 2:
                part = part * m_right
            acc = acc + part
        y = acc * s_ref[l] + b_ref[l]            # folded bias / BatchNorm
        act = jnp.maximum(y, 0.0)                # ReLU (dropout = identity)
    o_ref[0] = act.astype(o_ref.dtype)


def _run_stage(x_nhwc, stage_params):
    """Apply one fused stage to an (N, H, W, C_PAD) activation."""
    w, s, b = stage_params                       # (L,9,C,C), (L,1,C), (L,1,C)
    N, H, W, C = x_nhwc.shape
    HW = H * W
    L = w.shape[0]
    base = ((W + 1 + 7) // 8) * 8                # >= W+1 and sublane aligned
    xf = x_nhwc.reshape(N, HW, C)
    kernel = functools.partial(_stage_kernel, W=W, base=base)
    out = pl.pallas_call(
        kernel,
        out_shape=jax.ShapeDtypeStruct((N, HW, C), jnp.float32),
        grid=(N,),
        in_specs=[
            pl.BlockSpec((1, HW, C), lambda n: (n, 0, 0)),
            pl.BlockSpec((L, 9, C, C), lambda n: (0, 0, 0, 0)),
            pl.BlockSpec((L, 1, C), lambda n: (0, 0, 0)),
            pl.BlockSpec((L, 1, C), lambda n: (0, 0, 0)),
        ],
        out_specs=pl.BlockSpec((1, HW, C), lambda n: (n, 0, 0)),
        scratch_shapes=[pltpu.VMEM((2 * base + HW, C), jnp.float32)],
        compiler_params=pltpu.CompilerParams(
            dimension_semantics=("parallel",)),   # v7x: batch across 2 TCs
    )(xf, w, s, b)
    return out.reshape(N, H, W, C)


# ----------------------------------------------------------------------------
# Tiny XLA glue between stages (trivial vs. the fused conv stages).
# ----------------------------------------------------------------------------
def maxpool2x2(x):
    N, H, W, C = x.shape
    return jnp.max(x.reshape(N, H // 2, 2, W // 2, 2, C), axis=(2, 4))


def upsample2x(x):
    # nn.Upsample(scale_factor=2), default mode='nearest'
    return jnp.repeat(jnp.repeat(x, 2, axis=1), 2, axis=2)


# ----------------------------------------------------------------------------
# Parameter construction (PyTorch-shaped init, converted to (9, Cin, Cout)
# taps, BN folded, zero-padded to C_PAD and stacked per stage).
# ----------------------------------------------------------------------------
def _conv_taps(w):
    # Conv2d weight (Cout, Cin, 3, 3) -> (9, Cin, Cout); cross-correlation.
    cout, cin = w.shape[0], w.shape[1]
    return jnp.transpose(w, (2, 3, 1, 0)).reshape(9, cin, cout)


def _deconv_taps(w):
    # ConvTranspose2d weight (Cin, Cout, 3, 3); stride=1, padding=1 is a conv
    # with the spatially flipped kernel and padding = k-1-p = 1.
    cin, cout = w.shape[0], w.shape[1]
    wf = w[:, :, ::-1, ::-1]
    return jnp.transpose(wf, (2, 3, 0, 1)).reshape(9, cin, cout)


def _pad_layer(taps, scale, bias):
    cin, cout = taps.shape[1], taps.shape[2]
    taps_p = jnp.zeros((9, C_PAD, C_PAD), jnp.float32).at[:, :cin, :cout].set(taps)
    scale_p = jnp.ones((C_PAD,), jnp.float32).at[:cout].set(scale)
    bias_p = jnp.zeros((C_PAD,), jnp.float32).at[:cout].set(bias)
    return taps_p, scale_p, bias_p   # padded out-channels stay exactly 0


def _stack_stage(layers):
    taps = jnp.stack([t for t, _, _ in layers])                       # (L,9,C,C)
    scales = jnp.stack([s for _, s, _ in layers]).reshape(-1, 1, C_PAD)
    biases = jnp.stack([b for _, _, b in layers]).reshape(-1, 1, C_PAD)
    return taps, scales, biases


def _init_wb(key, w_shape, cout, std=0.1):
    kw, kb = jax.random.split(key)
    w = jax.random.normal(kw, w_shape, jnp.float32) * std
    b = jax.random.normal(kb, (cout,), jnp.float32) * std
    return w, b


_CONV_STAGES = [
    [("conv1", 3, 8), ("conv2", 8, 16)],                            # 16x16
    [("conv3", 16, 16), ("conv4", 16, 32)],                         # 8x8
    [("conv5", 32, 32), ("conv6", 32, 64), ("conv7", 64, 64)],      # 4x4
]
_DECONV_STAGES = [
    [("deconv3", 64, 64), ("deconv4", 64, 32), ("deconv5", 32, 32)],  # 4x4
    [("deconv6", 32, 16), ("deconv7", 16, 16)],                       # 8x8
    [("deconv8", 16, 8), ("output", 8, 1)],                           # 16x16
]


def make_params(key):
    n_layers = sum(len(s) for s in _CONV_STAGES) + sum(len(s) for s in _DECONV_STAGES)
    keys = jax.random.split(key, n_layers)
    ki = 0
    stages = []
    for stage in _CONV_STAGES:
        layers = []
        for _, cin, cout in stage:
            w, bconv = _init_wb(keys[ki], (cout, cin, 3, 3), cout)
            ki += 1
            # BatchNorm2d(cout) eval-mode defaults: gamma=1 beta=0 mean=0 var=1
            gamma = jnp.ones((cout,), jnp.float32)
            beta = jnp.zeros((cout,), jnp.float32)
            mean = jnp.zeros((cout,), jnp.float32)
            var = jnp.ones((cout,), jnp.float32)
            scale = gamma / jnp.sqrt(var + BN_EPS)
            bias = (bconv - mean) * scale + beta
            layers.append(_pad_layer(_conv_taps(w), scale, bias))
        stages.append(_stack_stage(layers))
    for stage in _DECONV_STAGES:
        layers = []
        for _, cin, cout in stage:
            w, bdec = _init_wb(keys[ki], (cin, cout, 3, 3), cout)
            ki += 1
            layers.append(_pad_layer(_deconv_taps(w),
                                     jnp.ones((cout,), jnp.float32), bdec))
        stages.append(_stack_stage(layers))
    # Leading BatchNorm2d(3) (eval mode) = per-input-channel affine.
    g = jnp.ones((3,), jnp.float32)
    be = jnp.zeros((3,), jnp.float32)
    m = jnp.zeros((3,), jnp.float32)
    v = jnp.ones((3,), jnp.float32)
    s0 = g / jnp.sqrt(v + BN_EPS)
    return {"bn0": (s0, be - m * s0), "stages": stages}


# ----------------------------------------------------------------------------
# Full forward pass (mirrors model.forward).
# ----------------------------------------------------------------------------
def model_forward(params, x_nchw):
    x = jnp.transpose(x_nchw, (0, 2, 3, 1)).astype(jnp.float32)  # NCHW -> NHWC
    s0, b0 = params["bn0"]
    x = x * s0 + b0                                  # self.batchNorm (eval)
    x = jnp.pad(x, ((0, 0), (0, 0), (0, 0), (0, C_PAD - x.shape[-1])))
    st = params["stages"]
    x = _run_stage(x, st[0])      # conv1, conv2              @ 16x16
    x = maxpool2x2(x)
    x = _run_stage(x, st[1])      # conv3, conv4              @ 8x8
    x = maxpool2x2(x)
    x = _run_stage(x, st[2])      # conv5, conv6, conv7       @ 4x4
    x = maxpool2x2(x)
    x = upsample2x(x)
    x = _run_stage(x, st[3])      # deconv3..5 (dropout=id)   @ 4x4
    x = upsample2x(x)
    x = _run_stage(x, st[4])      # deconv6, deconv7          @ 8x8
    x = upsample2x(x)
    x = _run_stage(x, st[5])      # deconv8, output           @ 16x16
    y = x[..., :1]                # real output channel (rest is zero padding)
    return jnp.transpose(y, (0, 3, 1, 2))            # NHWC -> NCHW


if __name__ == "__main__":
    key = jax.random.PRNGKey(0)
    pkey, xkey = jax.random.split(key)
    params = make_params(pkey)
    # PyTorch-style NCHW input: batch=2, channels=3, 16x16 spatial.
    x = jax.random.normal(xkey, (2, 3, 16, 16), jnp.float32)
    fwd = jax.jit(model_forward)
    y = fwd(params, x)
    jax.block_until_ready(y)
    assert y.shape == (2, 1, 16, 16), y.shape
    assert bool(jnp.all(jnp.isfinite(y)))
    assert bool(jnp.all(y >= 0.0))  # final layer ends in ReLU
    print("KERNEL_OK")
</pallas_src>

<mosaic_0001>
module attributes {stable_mosaic.version = 11 : i64} {
  func.func @_stage_kernel(%arg0: i32, %arg1: memref<1x256x64xf32, #tpu.memory_space<vmem>>, %arg2: memref<2x9x64x64xf32, #tpu.memory_space<vmem>>, %arg3: memref<2x1x64xf32, #tpu.memory_space<vmem>>, %arg4: memref<2x1x64xf32, #tpu.memory_space<vmem>>, %arg5: memref<1x256x64xf32, #tpu.memory_space<vmem>>, %arg6: memref<304x64xf32, #tpu.memory_space<vmem>>) attributes {dimension_semantics = [#tpu.dimension_semantics<parallel>], iteration_bounds = array<i64: 2>, scalar_prefetch = 0 : i64, scratch_operands = 1 : i64, tpu.core_type = #tpu.core_type<tc>, window_params = [{transform_indices = @transform_0, window_bounds = array<i64: 1, 256, 64>}, {pipeline_mode = #tpu.pipeline_mode<synchronous>, transform_indices = @transform_1, window_bounds = array<i64: 2, 9, 64, 64>}, {pipeline_mode = #tpu.pipeline_mode<synchronous>, transform_indices = @transform_2, window_bounds = array<i64: 2, 1, 64>}, {pipeline_mode = #tpu.pipeline_mode<synchronous>, transform_indices = @transform_3, window_bounds = array<i64: 2, 1, 64>}, {transform_indices = @transform_4, window_bounds = array<i64: 1, 256, 64>}]} {
    %0 = tpu.iota {dimensions = array<i32: 0>} : vector<256x64xi32>
    %c15_i32 = arith.constant 15 : i32
    %1 = vector.broadcast %c15_i32 : i32 to vector<256x64xi32>
    %2 = arith.andi %0, %1 : vector<256x64xi32>
    %c0_i32 = arith.constant 0 : i32
    %3 = vector.broadcast %c0_i32 : i32 to vector<256x64xi32>
    %4 = arith.cmpi ne, %2, %3 : vector<256x64xi32>
    %5 = arith.extui %4 : vector<256x64xi1> to vector<256x64xi32>
    %6 = arith.sitofp %5 : vector<256x64xi32> to vector<256x64xf32>
    %c15_i32_0 = arith.constant 15 : i32
    %7 = vector.broadcast %c15_i32_0 : i32 to vector<256x64xi32>
    %8 = arith.cmpi ne, %2, %7 : vector<256x64xi32>
    %9 = arith.extui %8 : vector<256x64xi1> to vector<256x64xi32>
    %10 = arith.sitofp %9 : vector<256x64xi32> to vector<256x64xf32>
    %cst = arith.constant 0.000000e+00 : f32
    %11 = vector.broadcast %cst : f32 to vector<304x64xf32>
    %c0 = arith.constant 0 : index
    %c0_1 = arith.constant 0 : index
    %12 = vector.load %arg6[%c0, %c0_1] : memref<304x64xf32, #tpu.memory_space<vmem>>, vector<304x64xf32>
    tpu.vector_store %arg6[%c0, %c0_1], %11 {strides = array<i32>} : memref<304x64xf32, #tpu.memory_space<vmem>>, vector<304x64xf32>,
    %c0_2 = arith.constant 0 : index
    %c0_3 = arith.constant 0 : index
    %c0_4 = arith.constant 0 : index
    %13 = vector.load %arg1[%c0_2, %c0_3, %c0_4] : memref<1x256x64xf32, #tpu.memory_space<vmem>>, vector<1x256x64xf32>
    %14 = vector.shape_cast %13 : vector<1x256x64xf32> to vector<256x64xf32>
    %c24 = arith.constant 24 : index
    %c0_5 = arith.constant 0 : index
    %15 = vector.load %arg6[%c24, %c0_5] : memref<304x64xf32, #tpu.memory_space<vmem>>, vector<256x64xf32>
    tpu.vector_store %arg6[%c24, %c0_5], %14 {strides = array<i32>} : memref<304x64xf32, #tpu.memory_space<vmem>>, vector<256x64xf32>,
    %cst_6 = arith.constant 0.000000e+00 : f32
    %16 = vector.broadcast %cst_6 : f32 to vector<256x64xf32>
    %cst_7 = arith.constant 0.000000e+00 : f32
    %17 = vector.broadcast %cst_7 : f32 to vector<256x64xf32>
    %c7 = arith.constant 7 : index
    %c0_8 = arith.constant 0 : index
    %18 = vector.load %arg6[%c7, %c0_8] : memref<304x64xf32, #tpu.memory_space<vmem>>, vector<256x64xf32>
    %c0_9 = arith.constant 0 : index
    %c0_10 = arith.constant 0 : index
    %c0_11 = arith.constant 0 : index
    %c0_12 = arith.constant 0 : index
    %19 = vector.load %arg2[%c0_9, %c0_10, %c0_11, %c0_12] : memref<2x9x64x64xf32, #tpu.memory_space<vmem>>, vector<1x1x64x64xf32>
    %20 = vector.shape_cast %19 : vector<1x1x64x64xf32> to vector<64x64xf32>
    %cst_13 = arith.constant dense<0.000000e+00> : vector<256x64xf32>
    %21 = tpu.matmul %18, %20, %cst_13 {dimension_numbers = #tpu.dot_dimension_numbers<[1], [0], [0], [1], [0, 0, 1, 1], [], []>} : vector<256x64xf32>, vector<64x64xf32>, vector<256x64xf32> -> vector<256x64xf32>
    %22 = arith.addf %17, %21 : vector<256x64xf32>
    %c23 = arith.constant 23 : index
    %c0_14 = arith.constant 0 : index
    %23 = vector.load %arg6[%c23, %c0_14] : memref<304x64xf32, #tpu.memory_space<vmem>>, vector<256x64xf32>
    %c0_15 = arith.constant 0 : index
    %c3 = arith.constant 3 : index
    %c0_16 = arith.constant 0 : index
    %c0_17 = arith.constant 0 : index
    %24 = vector.load %arg2[%c0_15, %c3, %c0_16, %c0_17] : memref<2x9x64x64xf32, #tpu.memory_space<vmem>>, vector<1x1x64x64xf32>
    %25 = vector.shape_cast %24 : vector<1x1x64x64xf32> to vector<64x64xf32>
    %cst_18 = arith.constant dense<0.000000e+00> : vector<256x64xf32>
    %26 = tpu.matmul %23, %25, %cst_18 {dimension_numbers = #tpu.dot_dimension_numbers<[1], [0], [0], [1], [0, 0, 1, 1], [], []>} : vector<256x64xf32>, vector<64x64xf32>, vector<256x64xf32> -> vector<256x64xf32>
    %27 = arith.addf %22, %26 : vector<256x64xf32>
    %c39 = arith.constant 39 : index
    %c0_19 = arith.constant 0 : index
    %28 = vector.load %arg6[%c39, %c0_19] : memref<304x64xf32, #tpu.memory_space<vmem>>, vector<256x64xf32>
    %c0_20 = arith.constant 0 : index
    %c6 = arith.constant 6 : index
    %c0_21 = arith.constant 0 : index
    %c0_22 = arith.constant 0 : index
    %29 = vector.load %arg2[%c0_20, %c6, %c0_21, %c0_22] : memref<2x9x64x64xf32, #tpu.memory_space<vmem>>, vector<1x1x64x64xf32>
    %30 = vector.shape_cast %29 : vector<1x1x64x64xf32> to vector<64x64xf32>
    %cst_23 = arith.constant dense<0.000000e+00> : vector<256x64xf32>
    %31 = tpu.matmul %28, %30, %cst_23 {dimension_numbers = #tpu.dot_dimension_numbers<[1], [0], [0], [1], [0, 0, 1, 1], [], []>} : vector<256x64xf32>, vector<64x64xf32>, vector<256x64xf32> -> vector<256x64xf32>
    %32 = arith.addf %27, %31 : vector<256x64xf32>
    %33 = arith.mulf %32, %6 : vector<256x64xf32>
    %34 = arith.addf %16, %33 : vector<256x64xf32>
    %cst_24 = arith.constant 0.000000e+00 : f32
    %35 = vector.broadcast %cst_24 : f32 to vector<256x64xf32>
    %c8 = arith.constant 8 : index
    %c0_25 = arith.constant 0 : index
    %36 = vector.load %arg6[%c8, %c0_25] : memref<304x64xf32, #tpu.memory_space<vmem>>, vector<256x64xf32>
    %c0_26 = arith.constant 0 : index
    %c1 = arith.constant 1 : index
    %c0_27 = arith.constant 0 : index
    %c0_28 = arith.constant 0 : index
    %37 = vector.load %arg2[%c0_26, %c1, %c0_27, %c0_28] : memref<2x9x64x64xf32, #tpu.memory_space<vmem>>, vector<1x1x64x64xf32>
    %38 = vector.shape_cast %37 : vector<1x1x64x64xf32> to vector<64x64xf32>
    %cst_29 = arith.constant dense<0.000000e+00> : vector<256x64xf32>
    %39 = tpu.matmul %36, %38, %cst_29 {dimension_numbers = #tpu.dot_dimension_numbers<[1], [0], [0], [1], [0, 0, 1, 1], [], []>} : vector<256x64xf32>, vector<64x64xf32>, vector<256x64xf32> -> vector<256x64xf32>
    %40 = arith.addf %35, %39 : vector<256x64xf32>
    %c24_30 = arith.constant 24 : index
    %c0_31 = arith.constant 0 : index
    %41 = vector.load %arg6[%c24_30, %c0_31] : memref<304x64xf32, #tpu.memory_space<vmem>>, vector<256x64xf32>
    %c0_32 = arith.constant 0 : index
    %c4 = arith.constant 4 : index
    %c0_33 = arith.constant 0 : index
    %c0_34 = arith.constant 0 : index
    %42 = vector.load %arg2[%c0_32, %c4, %c0_33, %c0_34] : memref<2x9x64x64xf32, #tpu.memory_space<vmem>>, vector<1x1x64x64xf32>
    %43 = vector.shape_cast %42 : vector<1x1x64x64xf32> to vector<64x64xf32>
    %cst_35 = arith.constant dense<0.000000e+00> : vector<256x64xf32>
    %44 = tpu.matmul %41, %43, %cst_35 {dimension_numbers = #tpu.dot_dimension_numbers<[1], [0], [0], [1], [0, 0, 1, 1], [], []>} : vector<256x64xf32>, vector<64x64xf32>, vector<256x64xf32> -> vector<256x64xf32>
    %45 = arith.addf %40, %44 : vector<256x64xf32>
    %c40 = arith.constant 40 : index
    %c0_36 = arith.constant 0 : index
    %46 = vector.load %arg6[%c40, %c0_36] : memref<304x64xf32, #tpu.memory_space<vmem>>, vector<256x64xf32>
    %c0_37 = arith.constant 0 : index
    %c7_38 = arith.constant 7 : index
    %c0_39 = arith.constant 0 : index
    %c0_40 = arith.constant 0 : index
    %47 = vector.load %arg2[%c0_37, %c7_38, %c0_39, %c0_40] : memref<2x9x64x64xf32, #tpu.memory_space<vmem>>, vector<1x1x64x64xf32>
    %48 = vector.shape_cast %47 : vector<1x1x64x64xf32> to vector<64x64xf32>
    %cst_41 = arith.constant dense<0.000000e+00> : vector<256x64xf32>
    %49 = tpu.matmul %46, %48, %cst_41 {dimension_numbers = #tpu.dot_dimension_numbers<[1], [0], [0], [1], [0, 0, 1, 1], [], []>} : vector<256x64xf32>, vector<64x64xf32>, vector<256x64xf32> -> vector<256x64xf32>
    %50 = arith.addf %45, %49 : vector<256x64xf32>
    %51 = arith.addf %34, %50 : vector<256x64xf32>
    %cst_42 = arith.constant 0.000000e+00 : f32
    %52 = vector.broadcast %cst_42 : f32 to vector<256x64xf32>
    %c9 = arith.constant 9 : index
    %c0_43 = arith.constant 0 : index
    %53 = vector.load %arg6[%c9, %c0_43] : memref<304x64xf32, #tpu.memory_space<vmem>>, vector<256x64xf32>
    %c0_44 = arith.constant 0 : index
    %c2 = arith.constant 2 : index
    %c0_45 = arith.constant 0 : index
    %c0_46 = arith.constant 0 : index
    %54 = vector.load %arg2[%c0_44, %c2, %c0_45, %c0_46] : memref<2x9x64x64xf32, #tpu.memory_space<vmem>>, vector<1x1x64x64xf32>
    %55 = vector.shape_cast %54 : vector<1x1x64x64xf32> to vector<64x64xf32>
    %cst_47 = arith.constant dense<0.000000e+00> : vector<256x64xf32>
    %56 = tpu.matmul %53, %55, %cst_47 {dimension_numbers = #tpu.dot_dimension_numbers<[1], [0], [0], [1], [0, 0, 1, 1], [], []>} : vector<256x64xf32>, vector<64x64xf32>, vector<256x64xf32> -> vector<256x64xf32>
    %57 = arith.addf %52, %56 : vector<256x64xf32>
    %c25 = arith.constant 25 : index
    %c0_48 = arith.constant 0 : index
    %58 = vector.load %arg6[%c25, %c0_48] : memref<304x64xf32, #tpu.memory_space<vmem>>, vector<256x64xf32>
    %c0_49 = arith.constant 0 : index
    %c5 = arith.constant 5 : index
    %c0_50 = arith.constant 0 : index
    %c0_51 = arith.constant 0 : index
    %59 = vector.load %arg2[%c0_49, %c5, %c0_50, %c0_51] : memref<2x9x64x64xf32, #tpu.memory_space<vmem>>, vector<1x1x64x64xf32>
    %60 = vector.shape_cast %59 : vector<1x1x64x64xf32> to vector<64x64xf32>
    %cst_52 = arith.constant dense<0.000000e+00> : vector<256x64xf32>
    %61 = tpu.matmul %58, %60, %cst_52 {dimension_numbers = #tpu.dot_dimension_numbers<[1], [0], [0], [1], [0, 0, 1, 1], [], []>} : vector<256x64xf32>, vector<64x64xf32>, vector<256x64xf32> -> vector<256x64xf32>
    %62 = arith.addf %57, %61 : vector<256x64xf32>
    %c41 = arith.constant 41 : index
    %c0_53 = arith.constant 0 : index
    %63 = vector.load %arg6[%c41, %c0_53] : memref<304x64xf32, #tpu.memory_space<vmem>>, vector<256x64xf32>
    %c0_54 = arith.constant 0 : index
    %c8_55 = arith.constant 8 : index
    %c0_56 = arith.constant 0 : index
    %c0_57 = arith.constant 0 : index
    %64 = vector.load %arg2[%c0_54, %c8_55, %c0_56, %c0_57] : memref<2x9x64x64xf32, #tpu.memory_space<vmem>>, vector<1x1x64x64xf32>
    %65 = vector.shape_cast %64 : vector<1x1x64x64xf32> to vector<64x64xf32>
    %cst_58 = arith.constant dense<0.000000e+00> : vector<256x64xf32>
    %66 = tpu.matmul %63, %65, %cst_58 {dimension_numbers = #tpu.dot_dimension_numbers<[1], [0], [0], [1], [0, 0, 1, 1], [], []>} : vector<256x64xf32>, vector<64x64xf32>, vector<256x64xf32> -> vector<256x64xf32>
    %67 = arith.addf %62, %66 : vector<256x64xf32>
    %68 = arith.mulf %67, %10 : vector<256x64xf32>
    %69 = arith.addf %51, %68 : vector<256x64xf32>
    %c0_59 = arith.constant 0 : index
    %c0_60 = arith.constant 0 : index
    %c0_61 = arith.constant 0 : index
    %70 = vector.load %arg3[%c0_59, %c0_60, %c0_61] : memref<2x1x64xf32, #tpu.memory_space<vmem>>, vector<1x1x64xf32>
    %71 = vector.shape_cast %70 : vector<1x1x64xf32> to vector<1x64xf32>
    %72 = vector.broadcast %71 : vector<1x64xf32> to vector<256x64xf32>
    %73 = arith.mulf %69, %72 : vector<256x64xf32>
    %c0_62 = arith.constant 0 : index
    %c0_63 = arith.constant 0 : index
    %c0_64 = arith.constant 0 : index
    %74 = vector.load %arg4[%c0_62, %c0_63, %c0_64] : memref<2x1x64xf32, #tpu.memory_space<vmem>>, vector<1x1x64xf32>
    %75 = vector.shape_cast %74 : vector<1x1x64xf32> to vector<1x64xf32>
    %76 = vector.broadcast %75 : vector<1x64xf32> to vector<256x64xf32>
    %77 = arith.addf %73, %76 : vector<256x64xf32>
    %cst_65 = arith.constant 0.000000e+00 : f32
    %78 = vector.broadcast %cst_65 : f32 to vector<256x64xf32>
    %79 = arith.maximumf %77, %78 : vector<256x64xf32>
    %c24_66 = arith.constant 24 : index
    %c0_67 = arith.constant 0 : index
    %80 = vector.load %arg6[%c24_66, %c0_67] : memref<304x64xf32, #tpu.memory_space<vmem>>, vector<256x64xf32>
    tpu.vector_store %arg6[%c24_66, %c0_67], %79 {strides = array<i32>} : memref<304x64xf32, #tpu.memory_space<vmem>>, vector<256x64xf32>,
    %cst_68 = arith.constant 0.000000e+00 : f32
    %81 = vector.broadcast %cst_68 : f32 to vector<256x64xf32>
    %cst_69 = arith.constant 0.000000e+00 : f32
    %82 = vector.broadcast %cst_69 : f32 to vector<256x64xf32>
    %c7_70 = arith.constant 7 : index
    %c0_71 = arith.constant 0 : index
    %83 = vector.load %arg6[%c7_70, %c0_71] : memref<304x64xf32, #tpu.memory_space<vmem>>, vector<256x64xf32>
    %c1_72 = arith.constant 1 : index
    %c0_73 = arith.constant 0 : index
    %c0_74 = arith.constant 0 : index
    %c0_75 = arith.constant 0 : index
    %84 = vector.load %arg2[%c1_72, %c0_73, %c0_74, %c0_75] : memref<2x9x64x64xf32, #tpu.memory_space<vmem>>, vector<1x1x64x64xf32>
    %85 = vector.shape_cast %84 : vector<1x1x64x64xf32> to vector<64x64xf32>
    %cst_76 = arith.constant dense<0.000000e+00> : vector<256x64xf32>
    %86 = tpu.matmul %83, %85, %cst_76 {dimension_numbers = #tpu.dot_dimension_numbers<[1], [0], [0], [1], [0, 0, 1, 1], [], []>} : vector<256x64xf32>, vector<64x64xf32>, vector<256x64xf32> -> vector<256x64xf32>
    %87 = arith.addf %82, %86 : vector<256x64xf32>
    %c23_77 = arith.constant 23 : index
    %c0_78 = arith.constant 0 : index
    %88 = vector.load %arg6[%c23_77, %c0_78] : memref<304x64xf32, #tpu.memory_space<vmem>>, vector<256x64xf32>
    %c1_79 = arith.constant 1 : index
    %c3_80 = arith.constant 3 : index
    %c0_81 = arith.constant 0 : index
    %c0_82 = arith.constant 0 : index
    %89 = vector.load %arg2[%c1_79, %c3_80, %c0_81, %c0_82] : memref<2x9x64x64xf32, #tpu.memory_space<vmem>>, vector<1x1x64x64xf32>
    %90 = vector.shape_cast %89 : vector<1x1x64x64xf32> to vector<64x64xf32>
    %cst_83 = arith.constant dense<0.000000e+00> : vector<256x64xf32>
    %91 = tpu.matmul %88, %90, %cst_83 {dimension_numbers = #tpu.dot_dimension_numbers<[1], [0], [0], [1], [0, 0, 1, 1], [], []>} : vector<256x64xf32>, vector<64x64xf32>, vector<256x64xf32> -> vector<256x64xf32>
    %92 = arith.addf %87, %91 : vector<256x64xf32>
    %c39_84 = arith.constant 39 : index
    %c0_85 = arith.constant 0 : index
    %93 = vector.load %arg6[%c39_84, %c0_85] : memref<304x64xf32, #tpu.memory_space<vmem>>, vector<256x64xf32>
    %c1_86 = arith.constant 1 : index
    %c6_87 = arith.constant 6 : index
    %c0_88 = arith.constant 0 : index
    %c0_89 = arith.constant 0 : index
    %94 = vector.load %arg2[%c1_86, %c6_87, %c0_88, %c0_89] : memref<2x9x64x64xf32, #tpu.memory_space<vmem>>, vector<1x1x64x64xf32>
    %95 = vector.shape_cast %94 : vector<1x1x64x64xf32> to vector<64x64xf32>
    %cst_90 = arith.constant dense<0.000000e+00> : vector<256x64xf32>
    %96 = tpu.matmul %93, %95, %cst_90 {dimension_numbers = #tpu.dot_dimension_numbers<[1], [0], [0], [1], [0, 0, 1, 1], [], []>} : vector<256x64xf32>, vector<64x64xf32>, vector<256x64xf32> -> vector<256x64xf32>
    %97 = arith.addf %92, %96 : vector<256x64xf32>
    %98 = arith.mulf %97, %6 : vector<256x64xf32>
    %99 = arith.addf %81, %98 : vector<256x64xf32>
    %cst_91 = arith.constant 0.000000e+00 : f32
    %100 = vector.broadcast %cst_91 : f32 to vector<256x64xf32>
    %c8_92 = arith.constant 8 : index
    %c0_93 = arith.constant 0 : index
    %101 = vector.load %arg6[%c8_92, %c0_93] : memref<304x64xf32, #tpu.memory_space<vmem>>, vector<256x64xf32>
    %c1_94 = arith.constant 1 : index
    %c1_95 = arith.constant 1 : index
    %c0_96 = arith.constant 0 : index
    %c0_97 = arith.constant 0 : index
    %102 = vector.load %arg2[%c1_94, %c1_95, %c0_96, %c0_97] : memref<2x9x64x64xf32, #tpu.memory_space<vmem>>, vector<1x1x64x64xf32>
    %103 = vector.shape_cast %102 : vector<1x1x64x64xf32> to vector<64x64xf32>
    %cst_98 = arith.constant dense<0.000000e+00> : vector<256x64xf32>
    %104 = tpu.matmul %101, %103, %cst_98 {dimension_numbers = #tpu.dot_dimension_numbers<[1], [0], [0], [1], [0, 0, 1, 1], [], []>} : vector<256x64xf32>, vector<64x64xf32>, vector<256x64xf32> -> vector<256x64xf32>
    %105 = arith.addf %100, %104 : vector<256x64xf32>
    %c24_99 = arith.constant 24 : index
    %c0_100 = arith.constant 0 : index
    %106 = vector.load %arg6[%c24_99, %c0_100] : memref<304x64xf32, #tpu.memory_space<vmem>>, vector<256x64xf32>
    %c1_101 = arith.constant 1 : index
    %c4_102 = arith.constant 4 : index
    %c0_103 = arith.constant 0 : index
    %c0_104 = arith.constant 0 : index
    %107 = vector.load %arg2[%c1_101, %c4_102, %c0_103, %c0_104] : memref<2x9x64x64xf32, #tpu.memory_space<vmem>>, vector<1x1x64x64xf32>
    %108 = vector.shape_cast %107 : vector<1x1x64x64xf32> to vector<64x64xf32>
    %cst_105 = arith.constant dense<0.000000e+00> : vector<256x64xf32>
    %109 = tpu.matmul %106, %108, %cst_105 {dimension_numbers = #tpu.dot_dimension_numbers<[1], [0], [0], [1], [0, 0, 1, 1], [], []>} : vector<256x64xf32>, vector<64x64xf32>, vector<256x64xf32> -> vector<256x64xf32>
    %110 = arith.addf %105, %109 : vector<256x64xf32>
    %c40_106 = arith.constant 40 : index
    %c0_107 = arith.constant 0 : index
    %111 = vector.load %arg6[%c40_106, %c0_107] : memref<304x64xf32, #tpu.memory_space<vmem>>, vector<256x64xf32>
    %c1_108 = arith.constant 1 : index
    %c7_109 = arith.constant 7 : index
    %c0_110 = arith.constant 0 : index
    %c0_111 = arith.constant 0 : index
    %112 = vector.load %arg2[%c1_108, %c7_109, %c0_110, %c0_111] : memref<2x9x64x64xf32, #tpu.memory_space<vmem>>, vector<1x1x64x64xf32>
    %113 = vector.shape_cast %112 : vector<1x1x64x64xf32> to vector<64x64xf32>
    %cst_112 = arith.constant dense<0.000000e+00> : vector<256x64xf32>
    %114 = tpu.matmul %111, %113, %cst_112 {dimension_numbers = #tpu.dot_dimension_numbers<[1], [0], [0], [1], [0, 0, 1, 1], [], []>} : vector<256x64xf32>, vector<64x64xf32>, vector<256x64xf32> -> vector<256x64xf32>
    %115 = arith.addf %110, %114 : vector<256x64xf32>
    %116 = arith.addf %99, %115 : vector<256x64xf32>
    %cst_113 = arith.constant 0.000000e+00 : f32
    %117 = vector.broadcast %cst_113 : f32 to vector<256x64xf32>
    %c9_114 = arith.constant 9 : index
    %c0_115 = arith.constant 0 : index
    %118 = vector.load %arg6[%c9_114, %c0_115] : memref<304x64xf32, #tpu.memory_space<vmem>>, vector<256x64xf32>
    %c1_116 = arith.constant 1 : index
    %c2_117 = arith.constant 2 : index
    %c0_118 = arith.constant 0 : index
    %c0_119 = arith.constant 0 : index
    %119 = vector.load %arg2[%c1_116, %c2_117, %c0_118, %c0_119] : memref<2x9x64x64xf32, #tpu.memory_space<vmem>>, vector<1x1x64x64xf32>
    %120 = vector.shape_cast %119 : vector<1x1x64x64xf32> to vector<64x64xf32>
    %cst_120 = arith.constant dense<0.000000e+00> : vector<256x64xf32>
    %121 = tpu.matmul %118, %120, %cst_120 {dimension_numbers = #tpu.dot_dimension_numbers<[1], [0], [0], [1], [0, 0, 1, 1], [], []>} : vector<256x64xf32>, vector<64x64xf32>, vector<256x64xf32> -> vector<256x64xf32>
    %122 = arith.addf %117, %121 : vector<256x64xf32>
    %c25_121 = arith.constant 25 : index
    %c0_122 = arith.constant 0 : index
    %123 = vector.load %arg6[%c25_121, %c0_122] : memref<304x64xf32, #tpu.memory_space<vmem>>, vector<256x64xf32>
    %c1_123 = arith.constant 1 : index
    %c5_124 = arith.constant 5 : index
    %c0_125 = arith.constant 0 : index
    %c0_126 = arith.constant 0 : index
    %124 = vector.load %arg2[%c1_123, %c5_124, %c0_125, %c0_126] : memref<2x9x64x64xf32, #tpu.memory_space<vmem>>, vector<1x1x64x64xf32>
    %125 = vector.shape_cast %124 : vector<1x1x64x64xf32> to vector<64x64xf32>
    %cst_127 = arith.constant dense<0.000000e+00> : vector<256x64xf32>
    %126 = tpu.matmul %123, %125, %cst_127 {dimension_numbers = #tpu.dot_dimension_numbers<[1], [0], [0], [1], [0, 0, 1, 1], [], []>} : vector<256x64xf32>, vector<64x64xf32>, vector<256x64xf32> -> vector<256x64xf32>
    %127 = arith.addf %122, %126 : vector<256x64xf32>
    %c41_128 = arith.constant 41 : index
    %c0_129 = arith.constant 0 : index
    %128 = vector.load %arg6[%c41_128, %c0_129] : memref<304x64xf32, #tpu.memory_space<vmem>>, vector<256x64xf32>
    %c1_130 = arith.constant 1 : index
    %c8_131 = arith.constant 8 : index
    %c0_132 = arith.constant 0 : index
    %c0_133 = arith.constant 0 : index
    %129 = vector.load %arg2[%c1_130, %c8_131, %c0_132, %c0_133] : memref<2x9x64x64xf32, #tpu.memory_space<vmem>>, vector<1x1x64x64xf32>
    %130 = vector.shape_cast %129 : vector<1x1x64x64xf32> to vector<64x64xf32>
    %cst_134 = arith.constant dense<0.000000e+00> : vector<256x64xf32>
    %131 = tpu.matmul %128, %130, %cst_134 {dimension_numbers = #tpu.dot_dimension_numbers<[1], [0], [0], [1], [0, 0, 1, 1], [], []>} : vector<256x64xf32>, vector<64x64xf32>, vector<256x64xf32> -> vector<256x64xf32>
    %132 = arith.addf %127, %131 : vector<256x64xf32>
    %133 = arith.mulf %132, %10 : vector<256x64xf32>
    %134 = arith.addf %116, %133 : vector<256x64xf32>
    %c1_135 = arith.constant 1 : index
    %c0_136 = arith.constant 0 : index
    %c0_137 = arith.constant 0 : index
    %135 = vector.load %arg3[%c1_135, %c0_136, %c0_137] : memref<2x1x64xf32, #tpu.memory_space<vmem>>, vector<1x1x64xf32>
    %136 = vector.shape_cast %135 : vector<1x1x64xf32> to vector<1x64xf32>
    %137 = vector.broadcast %136 : vector<1x64xf32> to vector<256x64xf32>
    %138 = arith.mulf %134, %137 : vector<256x64xf32>
    %c1_138 = arith.constant 1 : index
    %c0_139 = arith.constant 0 : index
    %c0_140 = arith.constant 0 : index
    %139 = vector.load %arg4[%c1_138, %c0_139, %c0_140] : memref<2x1x64xf32, #tpu.memory_space<vmem>>, vector<1x1x64xf32>
    %140 = vector.shape_cast %139 : vector<1x1x64xf32> to vector<1x64xf32>
    %141 = vector.broadcast %140 : vector<1x64xf32> to vector<256x64xf32>
    %142 = arith.addf %138, %141 : vector<256x64xf32>
    %cst_141 = arith.constant 0.000000e+00 : f32
    %143 = vector.broadcast %cst_141 : f32 to vector<256x64xf32>
    %144 = arith.maximumf %142, %143 : vector<256x64xf32>
    %c0_142 = arith.constant 0 : index
    %c0_143 = arith.constant 0 : index
    %c0_144 = arith.constant 0 : index
    %145 = vector.load %arg5[%c0_142, %c0_143, %c0_144] : memref<1x256x64xf32, #tpu.memory_space<vmem>>, vector<1x256x64xf32>
    %146 = vector.shape_cast %145 : vector<1x256x64xf32> to vector<256x64xf32>
    %147 = vector.shape_cast %144 : vector<256x64xf32> to vector<1x256x64xf32>
    tpu.vector_store %arg5[%c0_142, %c0_143, %c0_144], %147 {strides = array<i32>} : memref<1x256x64xf32, #tpu.memory_space<vmem>>, vector<1x256x64xf32>,
    return
  }
  func.func @transform_0(%arg0: i32) -> (i32, i32, i32) {
    %c0_i32 = arith.constant 0 : i32
    %c0_i32_0 = arith.constant 0 : i32
    %c0_i32_1 = arith.constant 0 : i32
    return %arg0, %c0_i32, %c0_i32_0 : i32, i32, i32
  }
  func.func @transform_1(%arg0: i32) -> (i32, i32, i32, i32) {
    %c0_i32 = arith.constant 0 : i32
    %c0_i32_0 = arith.constant 0 : i32
    %c0_i32_1 = arith.constant 0 : i32
    %c0_i32_2 = arith.constant 0 : i32
    %c0_i32_3 = arith.constant 0 : i32
    return %c0_i32, %c0_i32_0, %c0_i32_1, %c0_i32_2 : i32, i32, i32, i32
  }
  func.func @transform_2(%arg0: i32) -> (i32, i32, i32) {
    %c0_i32 = arith.constant 0 : i32
    %c0_i32_0 = arith.constant 0 : i32
    %c0_i32_1 = arith.constant 0 : i32
    %c0_i32_2 = arith.constant 0 : i32
    return %c0_i32, %c0_i32_0, %c0_i32_1 : i32, i32, i32
  }
  func.func @transform_3(%arg0: i32) -> (i32, i32, i32) {
    %c0_i32 = arith.constant 0 : i32
    %c0_i32_0 = arith.constant 0 : i32
    %c0_i32_1 = arith.constant 0 : i32
    %c0_i32_2 = arith.constant 0 : i32
    return %c0_i32, %c0_i32_0, %c0_i32_1 : i32, i32, i32
  }
  func.func @transform_4(%arg0: i32) -> (i32, i32, i32) {
    %c0_i32 = arith.constant 0 : i32
    %c0_i32_0 = arith.constant 0 : i32
    %c0_i32_1 = arith.constant 0 : i32
    return %arg0, %c0_i32, %c0_i32_0 : i32, i32, i32
  }
}

module attributes {stable_mosaic.version = 11 : i64} {
  func.func @_stage_kernel(%arg0: i32, %arg1: memref<1x64x64xf32, #tpu.memory_space<vmem>>, %arg2: memref<2x9x64x64xf32, #tpu.memory_space<vmem>>, %arg3: memref<2x1x64xf32, #tpu.memory_space<vmem>>, %arg4: memref<2x1x64xf32, #tpu.memory_space<vmem>>, %arg5: memref<1x64x64xf32, #tpu.memory_space<vmem>>, %arg6: memref<96x64xf32, #tpu.memory_space<vmem>>) attributes {dimension_semantics = [#tpu.dimension_semantics<parallel>], iteration_bounds = array<i64: 2>, scalar_prefetch = 0 : i64, scratch_operands = 1 : i64, tpu.core_type = #tpu.core_type<tc>, window_params = [{transform_indices = @transform_0, window_bounds = array<i64: 1, 64, 64>}, {pipeline_mode = #tpu.pipeline_mode<synchronous>, transform_indices = @transform_1, window_bounds = array<i64: 2, 9, 64, 64>}, {pipeline_mode = #tpu.pipeline_mode<synchronous>, transform_indices = @transform_2, window_bounds = array<i64: 2, 1, 64>}, {pipeline_mode = #tpu.pipeline_mode<synchronous>, transform_indices = @transform_3, window_bounds = array<i64: 2, 1, 64>}, {transform_indices = @transform_4, window_bounds = array<i64: 1, 64, 64>}]} {
    %0 = tpu.iota {dimensions = array<i32: 0>} : vector<64x64xi32>
    %c7_i32 = arith.constant 7 : i32
    %1 = vector.broadcast %c7_i32 : i32 to vector<64x64xi32>
    %2 = arith.andi %0, %1 : vector<64x64xi32>
    %c0_i32 = arith.constant 0 : i32
    %3 = vector.broadcast %c0_i32 : i32 to vector<64x64xi32>
    %4 = arith.cmpi ne, %2, %3 : vector<64x64xi32>
    %5 = arith.extui %4 : vector<64x64xi1> to vector<64x64xi32>
    %6 = arith.sitofp %5 : vector<64x64xi32> to vector<64x64xf32>
    %c7_i32_0 = arith.constant 7 : i32
    %7 = vector.broadcast %c7_i32_0 : i32 to vector<64x64xi32>
    %8 = arith.cmpi ne, %2, %7 : vector<64x64xi32>
    %9 = arith.extui %8 : vector<64x64xi1> to vector<64x64xi32>
    %10 = arith.sitofp %9 : vector<64x64xi32> to vector<64x64xf32>
    %cst = arith.constant 0.000000e+00 : f32
    %11 = vector.broadcast %cst : f32 to vector<96x64xf32>
    %c0 = arith.constant 0 : index
    %c0_1 = arith.constant 0 : index
    %12 = vector.load %arg6[%c0, %c0_1] : memref<96x64xf32, #tpu.memory_space<vmem>>, vector<96x64xf32>
    tpu.vector_store %arg6[%c0, %c0_1], %11 {strides = array<i32>} : memref<96x64xf32, #tpu.memory_space<vmem>>, vector<96x64xf32>,
    %c0_2 = arith.constant 0 : index
    %c0_3 = arith.constant 0 : index
    %c0_4 = arith.constant 0 : index
    %13 = vector.load %arg1[%c0_2, %c0_3, %c0_4] : memref<1x64x64xf32, #tpu.memory_space<vmem>>, vector<1x64x64xf32>
    %14 = vector.shape_cast %13 : vector<1x64x64xf32> to vector<64x64xf32>
    %c16 = arith.constant 16 : index
    %c0_5 = arith.constant 0 : index
    %15 = vector.load %arg6[%c16, %c0_5] : memref<96x64xf32, #tpu.memory_space<vmem>>, vector<64x64xf32>
    tpu.vector_store %arg6[%c16, %c0_5], %14 {strides = array<i32>} : memref<96x64xf32, #tpu.memory_space<vmem>>, vector<64x64xf32>,
    %cst_6 = arith.constant 0.000000e+00 : f32
    %16 = vector.broadcast %cst_6 : f32 to vector<64x64xf32>
    %cst_7 = arith.constant 0.000000e+00 : f32
    %17 = vector.broadcast %cst_7 : f32 to vector<64x64xf32>
    %c7 = arith.constant 7 : index
    %c0_8 = arith.constant 0 : index
    %18 = vector.load %arg6[%c7, %c0_8] : memref<96x64xf32, #tpu.memory_space<vmem>>, vector<64x64xf32>
    %c0_9 = arith.constant 0 : index
    %c0_10 = arith.constant 0 : index
    %c0_11 = arith.constant 0 : index
    %c0_12 = arith.constant 0 : index
    %19 = vector.load %arg2[%c0_9, %c0_10, %c0_11, %c0_12] : memref<2x9x64x64xf32, #tpu.memory_space<vmem>>, vector<1x1x64x64xf32>
    %20 = vector.shape_cast %19 : vector<1x1x64x64xf32> to vector<64x64xf32>
    %cst_13 = arith.constant dense<0.000000e+00> : vector<64x64xf32>
    %21 = tpu.matmul %18, %20, %cst_13 {dimension_numbers = #tpu.dot_dimension_numbers<[1], [0], [0], [1], [0, 0, 1, 1], [], []>} : vector<64x64xf32>, vector<64x64xf32>, vector<64x64xf32> -> vector<64x64xf32>
    %22 = arith.addf %17, %21 : vector<64x64xf32>
    %c15 = arith.constant 15 : index
    %c0_14 = arith.constant 0 : index
    %23 = vector.load %arg6[%c15, %c0_14] : memref<96x64xf32, #tpu.memory_space<vmem>>, vector<64x64xf32>
    %c0_15 = arith.constant 0 : index
    %c3 = arith.constant 3 : index
    %c0_16 = arith.constant 0 : index
    %c0_17 = arith.constant 0 : index
    %24 = vector.load %arg2[%c0_15, %c3, %c0_16, %c0_17] : memref<2x9x64x64xf32, #tpu.memory_space<vmem>>, vector<1x1x64x64xf32>
    %25 = vector.shape_cast %24 : vector<1x1x64x64xf32> to vector<64x64xf32>
    %cst_18 = arith.constant dense<0.000000e+00> : vector<64x64xf32>
    %26 = tpu.matmul %23, %25, %cst_18 {dimension_numbers = #tpu.dot_dimension_numbers<[1], [0], [0], [1], [0, 0, 1, 1], [], []>} : vector<64x64xf32>, vector<64x64xf32>, vector<64x64xf32> -> vector<64x64xf32>
    %27 = arith.addf %22, %26 : vector<64x64xf32>
    %c23 = arith.constant 23 : index
    %c0_19 = arith.constant 0 : index
    %28 = vector.load %arg6[%c23, %c0_19] : memref<96x64xf32, #tpu.memory_space<vmem>>, vector<64x64xf32>
    %c0_20 = arith.constant 0 : index
    %c6 = arith.constant 6 : index
    %c0_21 = arith.constant 0 : index
    %c0_22 = arith.constant 0 : index
    %29 = vector.load %arg2[%c0_20, %c6, %c0_21, %c0_22] : memref<2x9x64x64xf32, #tpu.memory_space<vmem>>, vector<1x1x64x64xf32>
    %30 = vector.shape_cast %29 : vector<1x1x64x64xf32> to vector<64x64xf32>
    %cst_23 = arith.constant dense<0.000000e+00> : vector<64x64xf32>
    %31 = tpu.matmul %28, %30, %cst_23 {dimension_numbers = #tpu.dot_dimension_numbers<[1], [0], [0], [1], [0, 0, 1, 1], [], []>} : vector<64x64xf32>, vector<64x64xf32>, vector<64x64xf32> -> vector<64x64xf32>
    %32 = arith.addf %27, %31 : vector<64x64xf32>
    %33 = arith.mulf %32, %6 : vector<64x64xf32>
    %34 = arith.addf %16, %33 : vector<64x64xf32>
    %cst_24 = arith.constant 0.000000e+00 : f32
    %35 = vector.broadcast %cst_24 : f32 to vector<64x64xf32>
    %c8 = arith.constant 8 : index
    %c0_25 = arith.constant 0 : index
    %36 = vector.load %arg6[%c8, %c0_25] : memref<96x64xf32, #tpu.memory_space<vmem>>, vector<64x64xf32>
    %c0_26 = arith.constant 0 : index
    %c1 = arith.constant 1 : index
    %c0_27 = arith.constant 0 : index
    %c0_28 = arith.constant 0 : index
    %37 = vector.load %arg2[%c0_26, %c1, %c0_27, %c0_28] : memref<2x9x64x64xf32, #tpu.memory_space<vmem>>, vector<1x1x64x64xf32>
    %38 = vector.shape_cast %37 : vector<1x1x64x64xf32> to vector<64x64xf32>
    %cst_29 = arith.constant dense<0.000000e+00> : vector<64x64xf32>
    %39 = tpu.matmul %36, %38, %cst_29 {dimension_numbers = #tpu.dot_dimension_numbers<[1], [0], [0], [1], [0, 0, 1, 1], [], []>} : vector<64x64xf32>, vector<64x64xf32>, vector<64x64xf32> -> vector<64x64xf32>
    %40 = arith.addf %35, %39 : vector<64x64xf32>
    %c16_30 = arith.constant 16 : index
    %c0_31 = arith.constant 0 : index
    %41 = vector.load %arg6[%c16_30, %c0_31] : memref<96x64xf32, #tpu.memory_space<vmem>>, vector<64x64xf32>
    %c0_32 = arith.constant 0 : index
    %c4 = arith.constant 4 : index
    %c0_33 = arith.constant 0 : index
    %c0_34 = arith.constant 0 : index
    %42 = vector.load %arg2[%c0_32, %c4, %c0_33, %c0_34] : memref<2x9x64x64xf32, #tpu.memory_space<vmem>>, vector<1x1x64x64xf32>
    %43 = vector.shape_cast %42 : vector<1x1x64x64xf32> to vector<64x64xf32>
    %cst_35 = arith.constant dense<0.000000e+00> : vector<64x64xf32>
    %44 = tpu.matmul %41, %43, %cst_35 {dimension_numbers = #tpu.dot_dimension_numbers<[1], [0], [0], [1], [0, 0, 1, 1], [], []>} : vector<64x64xf32>, vector<64x64xf32>, vector<64x64xf32> -> vector<64x64xf32>
    %45 = arith.addf %40, %44 : vector<64x64xf32>
    %c24 = arith.constant 24 : index
    %c0_36 = arith.constant 0 : index
    %46 = vector.load %arg6[%c24, %c0_36] : memref<96x64xf32, #tpu.memory_space<vmem>>, vector<64x64xf32>
    %c0_37 = arith.constant 0 : index
    %c7_38 = arith.constant 7 : index
    %c0_39 = arith.constant 0 : index
    %c0_40 = arith.constant 0 : index
    %47 = vector.load %arg2[%c0_37, %c7_38, %c0_39, %c0_40] : memref<2x9x64x64xf32, #tpu.memory_space<vmem>>, vector<1x1x64x64xf32>
    %48 = vector.shape_cast %47 : vector<1x1x64x64xf32> to vector<64x64xf32>
    %cst_41 = arith.constant dense<0.000000e+00> : vector<64x64xf32>
    %49 = tpu.matmul %46, %48, %cst_41 {dimension_numbers = #tpu.dot_dimension_numbers<[1], [0], [0], [1], [0, 0, 1, 1], [], []>} : vector<64x64xf32>, vector<64x64xf32>, vector<64x64xf32> -> vector<64x64xf32>
    %50 = arith.addf %45, %49 : vector<64x64xf32>
    %51 = arith.addf %34, %50 : vector<64x64xf32>
    %cst_42 = arith.constant 0.000000e+00 : f32
    %52 = vector.broadcast %cst_42 : f32 to vector<64x64xf32>
    %c9 = arith.constant 9 : index
    %c0_43 = arith.constant 0 : index
    %53 = vector.load %arg6[%c9, %c0_43] : memref<96x64xf32, #tpu.memory_space<vmem>>, vector<64x64xf32>
    %c0_44 = arith.constant 0 : index
    %c2 = arith.constant 2 : index
    %c0_45 = arith.constant 0 : index
    %c0_46 = arith.constant 0 : index
    %54 = vector.load %arg2[%c0_44, %c2, %c0_45, %c0_46] : memref<2x9x64x64xf32, #tpu.memory_space<vmem>>, vector<1x1x64x64xf32>
    %55 = vector.shape_cast %54 : vector<1x1x64x64xf32> to vector<64x64xf32>
    %cst_47 = arith.constant dense<0.000000e+00> : vector<64x64xf32>
    %56 = tpu.matmul %53, %55, %cst_47 {dimension_numbers = #tpu.dot_dimension_numbers<[1], [0], [0], [1], [0, 0, 1, 1], [], []>} : vector<64x64xf32>, vector<64x64xf32>, vector<64x64xf32> -> vector<64x64xf32>
    %57 = arith.addf %52, %56 : vector<64x64xf32>
    %c17 = arith.constant 17 : index
    %c0_48 = arith.constant 0 : index
    %58 = vector.load %arg6[%c17, %c0_48] : memref<96x64xf32, #tpu.memory_space<vmem>>, vector<64x64xf32>
    %c0_49 = arith.constant 0 : index
    %c5 = arith.constant 5 : index
    %c0_50 = arith.constant 0 : index
    %c0_51 = arith.constant 0 : index
    %59 = vector.load %arg2[%c0_49, %c5, %c0_50, %c0_51] : memref<2x9x64x64xf32, #tpu.memory_space<vmem>>, vector<1x1x64x64xf32>
    %60 = vector.shape_cast %59 : vector<1x1x64x64xf32> to vector<64x64xf32>
    %cst_52 = arith.constant dense<0.000000e+00> : vector<64x64xf32>
    %61 = tpu.matmul %58, %60, %cst_52 {dimension_numbers = #tpu.dot_dimension_numbers<[1], [0], [0], [1], [0, 0, 1, 1], [], []>} : vector<64x64xf32>, vector<64x64xf32>, vector<64x64xf32> -> vector<64x64xf32>
    %62 = arith.addf %57, %61 : vector<64x64xf32>
    %c25 = arith.constant 25 : index
    %c0_53 = arith.constant 0 : index
    %63 = vector.load %arg6[%c25, %c0_53] : memref<96x64xf32, #tpu.memory_space<vmem>>, vector<64x64xf32>
    %c0_54 = arith.constant 0 : index
    %c8_55 = arith.constant 8 : index
    %c0_56 = arith.constant 0 : index
    %c0_57 = arith.constant 0 : index
    %64 = vector.load %arg2[%c0_54, %c8_55, %c0_56, %c0_57] : memref<2x9x64x64xf32, #tpu.memory_space<vmem>>, vector<1x1x64x64xf32>
    %65 = vector.shape_cast %64 : vector<1x1x64x64xf32> to vector<64x64xf32>
    %cst_58 = arith.constant dense<0.000000e+00> : vector<64x64xf32>
    %66 = tpu.matmul %63, %65, %cst_58 {dimension_numbers = #tpu.dot_dimension_numbers<[1], [0], [0], [1], [0, 0, 1, 1], [], []>} : vector<64x64xf32>, vector<64x64xf32>, vector<64x64xf32> -> vector<64x64xf32>
    %67 = arith.addf %62, %66 : vector<64x64xf32>
    %68 = arith.mulf %67, %10 : vector<64x64xf32>
    %69 = arith.addf %51, %68 : vector<64x64xf32>
    %c0_59 = arith.constant 0 : index
    %c0_60 = arith.constant 0 : index
    %c0_61 = arith.constant 0 : index
    %70 = vector.load %arg3[%c0_59, %c0_60, %c0_61] : memref<2x1x64xf32, #tpu.memory_space<vmem>>, vector<1x1x64xf32>
    %71 = vector.shape_cast %70 : vector<1x1x64xf32> to vector<1x64xf32>
    %72 = vector.broadcast %71 : vector<1x64xf32> to vector<64x64xf32>
    %73 = arith.mulf %69, %72 : vector<64x64xf32>
    %c0_62 = arith.constant 0 : index
    %c0_63 = arith.constant 0 : index
    %c0_64 = arith.constant 0 : index
    %74 = vector.load %arg4[%c0_62, %c0_63, %c0_64] : memref<2x1x64xf32, #tpu.memory_space<vmem>>, vector<1x1x64xf32>
    %75 = vector.shape_cast %74 : vector<1x1x64xf32> to vector<1x64xf32>
    %76 = vector.broadcast %75 : vector<1x64xf32> to vector<64x64xf32>
    %77 = arith.addf %73, %76 : vector<64x64xf32>
    %cst_65 = arith.constant 0.000000e+00 : f32
    %78 = vector.broadcast %cst_65 : f32 to vector<64x64xf32>
    %79 = arith.maximumf %77, %78 : vector<64x64xf32>
    %c16_66 = arith.constant 16 : index
    %c0_67 = arith.constant 0 : index
    %80 = vector.load %arg6[%c16_66, %c0_67] : memref<96x64xf32, #tpu.memory_space<vmem>>, vector<64x64xf32>
    tpu.vector_store %arg6[%c16_66, %c0_67], %79 {strides = array<i32>} : memref<96x64xf32, #tpu.memory_space<vmem>>, vector<64x64xf32>,
    %cst_68 = arith.constant 0.000000e+00 : f32
    %81 = vector.broadcast %cst_68 : f32 to vector<64x64xf32>
    %cst_69 = arith.constant 0.000000e+00 : f32
    %82 = vector.broadcast %cst_69 : f32 to vector<64x64xf32>
    %c7_70 = arith.constant 7 : index
    %c0_71 = arith.constant 0 : index
    %83 = vector.load %arg6[%c7_70, %c0_71] : memref<96x64xf32, #tpu.memory_space<vmem>>, vector<64x64xf32>
    %c1_72 = arith.constant 1 : index
    %c0_73 = arith.constant 0 : index
    %c0_74 = arith.constant 0 : index
    %c0_75 = arith.constant 0 : index
    %84 = vector.load %arg2[%c1_72, %c0_73, %c0_74, %c0_75] : memref<2x9x64x64xf32, #tpu.memory_space<vmem>>, vector<1x1x64x64xf32>
    %85 = vector.shape_cast %84 : vector<1x1x64x64xf32> to vector<64x64xf32>
    %cst_76 = arith.constant dense<0.000000e+00> : vector<64x64xf32>
    %86 = tpu.matmul %83, %85, %cst_76 {dimension_numbers = #tpu.dot_dimension_numbers<[1], [0], [0], [1], [0, 0, 1, 1], [], []>} : vector<64x64xf32>, vector<64x64xf32>, vector<64x64xf32> -> vector<64x64xf32>
    %87 = arith.addf %82, %86 : vector<64x64xf32>
    %c15_77 = arith.constant 15 : index
    %c0_78 = arith.constant 0 : index
    %88 = vector.load %arg6[%c15_77, %c0_78] : memref<96x64xf32, #tpu.memory_space<vmem>>, vector<64x64xf32>
    %c1_79 = arith.constant 1 : index
    %c3_80 = arith.constant 3 : index
    %c0_81 = arith.constant 0 : index
    %c0_82 = arith.constant 0 : index
    %89 = vector.load %arg2[%c1_79, %c3_80, %c0_81, %c0_82] : memref<2x9x64x64xf32, #tpu.memory_space<vmem>>, vector<1x1x64x64xf32>
    %90 = vector.shape_cast %89 : vector<1x1x64x64xf32> to vector<64x64xf32>
    %cst_83 = arith.constant dense<0.000000e+00> : vector<64x64xf32>
    %91 = tpu.matmul %88, %90, %cst_83 {dimension_numbers = #tpu.dot_dimension_numbers<[1], [0], [0], [1], [0, 0, 1, 1], [], []>} : vector<64x64xf32>, vector<64x64xf32>, vector<64x64xf32> -> vector<64x64xf32>
    %92 = arith.addf %87, %91 : vector<64x64xf32>
    %c23_84 = arith.constant 23 : index
    %c0_85 = arith.constant 0 : index
    %93 = vector.load %arg6[%c23_84, %c0_85] : memref<96x64xf32, #tpu.memory_space<vmem>>, vector<64x64xf32>
    %c1_86 = arith.constant 1 : index
    %c6_87 = arith.constant 6 : index
    %c0_88 = arith.constant 0 : index
    %c0_89 = arith.constant 0 : index
    %94 = vector.load %arg2[%c1_86, %c6_87, %c0_88, %c0_89] : memref<2x9x64x64xf32, #tpu.memory_space<vmem>>, vector<1x1x64x64xf32>
    %95 = vector.shape_cast %94 : vector<1x1x64x64xf32> to vector<64x64xf32>
    %cst_90 = arith.constant dense<0.000000e+00> : vector<64x64xf32>
    %96 = tpu.matmul %93, %95, %cst_90 {dimension_numbers = #tpu.dot_dimension_numbers<[1], [0], [0], [1], [0, 0, 1, 1], [], []>} : vector<64x64xf32>, vector<64x64xf32>, vector<64x64xf32> -> vector<64x64xf32>
    %97 = arith.addf %92, %96 : vector<64x64xf32>
    %98 = arith.mulf %97, %6 : vector<64x64xf32>
    %99 = arith.addf %81, %98 : vector<64x64xf32>
    %cst_91 = arith.constant 0.000000e+00 : f32
    %100 = vector.broadcast %cst_91 : f32 to vector<64x64xf32>
    %c8_92 = arith.constant 8 : index
    %c0_93 = arith.constant 0 : index
    %101 = vector.load %arg6[%c8_92, %c0_93] : memref<96x64xf32, #tpu.memory_space<vmem>>, vector<64x64xf32>
    %c1_94 = arith.constant 1 : index
    %c1_95 = arith.constant 1 : index
    %c0_96 = arith.constant 0 : index
    %c0_97 = arith.constant 0 : index
    %102 = vector.load %arg2[%c1_94, %c1_95, %c0_96, %c0_97] : memref<2x9x64x64xf32, #tpu.memory_space<vmem>>, vector<1x1x64x64xf32>
    %103 = vector.shape_cast %102 : vector<1x1x64x64xf32> to vector<64x64xf32>
    %cst_98 = arith.constant dense<0.000000e+00> : vector<64x64xf32>
    %104 = tpu.matmul %101, %103, %cst_98 {dimension_numbers = #tpu.dot_dimension_numbers<[1], [0], [0], [1], [0, 0, 1, 1], [], []>} : vector<64x64xf32>, vector<64x64xf32>, vector<64x64xf32> -> vector<64x64xf32>
    %105 = arith.addf %100, %104 : vector<64x64xf32>
    %c16_99 = arith.constant 16 : index
    %c0_100 = arith.constant 0 : index
    %106 = vector.load %arg6[%c16_99, %c0_100] : memref<96x64xf32, #tpu.memory_space<vmem>>, vector<64x64xf32>
    %c1_101 = arith.constant 1 : index
    %c4_102 = arith.constant 4 : index
    %c0_103 = arith.constant 0 : index
    %c0_104 = arith.constant 0 : index
    %107 = vector.load %arg2[%c1_101, %c4_102, %c0_103, %c0_104] : memref<2x9x64x64xf32, #tpu.memory_space<vmem>>, vector<1x1x64x64xf32>
    %108 = vector.shape_cast %107 : vector<1x1x64x64xf32> to vector<64x64xf32>
    %cst_105 = arith.constant dense<0.000000e+00> : vector<64x64xf32>
    %109 = tpu.matmul %106, %108, %cst_105 {dimension_numbers = #tpu.dot_dimension_numbers<[1], [0], [0], [1], [0, 0, 1, 1], [], []>} : vector<64x64xf32>, vector<64x64xf32>, vector<64x64xf32> -> vector<64x64xf32>
    %110 = arith.addf %105, %109 : vector<64x64xf32>
    %c24_106 = arith.constant 24 : index
    %c0_107 = arith.constant 0 : index
    %111 = vector.load %arg6[%c24_106, %c0_107] : memref<96x64xf32, #tpu.memory_space<vmem>>, vector<64x64xf32>
    %c1_108 = arith.constant 1 : index
    %c7_109 = arith.constant 7 : index
    %c0_110 = arith.constant 0 : index
    %c0_111 = arith.constant 0 : index
    %112 = vector.load %arg2[%c1_108, %c7_109, %c0_110, %c0_111] : memref<2x9x64x64xf32, #tpu.memory_space<vmem>>, vector<1x1x64x64xf32>
    %113 = vector.shape_cast %112 : vector<1x1x64x64xf32> to vector<64x64xf32>
    %cst_112 = arith.constant dense<0.000000e+00> : vector<64x64xf32>
    %114 = tpu.matmul %111, %113, %cst_112 {dimension_numbers = #tpu.dot_dimension_numbers<[1], [0], [0], [1], [0, 0, 1, 1], [], []>} : vector<64x64xf32>, vector<64x64xf32>, vector<64x64xf32> -> vector<64x64xf32>
    %115 = arith.addf %110, %114 : vector<64x64xf32>
    %116 = arith.addf %99, %115 : vector<64x64xf32>
    %cst_113 = arith.constant 0.000000e+00 : f32
    %117 = vector.broadcast %cst_113 : f32 to vector<64x64xf32>
    %c9_114 = arith.constant 9 : index
    %c0_115 = arith.constant 0 : index
    %118 = vector.load %arg6[%c9_114, %c0_115] : memref<96x64xf32, #tpu.memory_space<vmem>>, vector<64x64xf32>
    %c1_116 = arith.constant 1 : index
    %c2_117 = arith.constant 2 : index
    %c0_118 = arith.constant 0 : index
    %c0_119 = arith.constant 0 : index
    %119 = vector.load %arg2[%c1_116, %c2_117, %c0_118, %c0_119] : memref<2x9x64x64xf32, #tpu.memory_space<vmem>>, vector<1x1x64x64xf32>
    %120 = vector.shape_cast %119 : vector<1x1x64x64xf32> to vector<64x64xf32>
    %cst_120 = arith.constant dense<0.000000e+00> : vector<64x64xf32>
    %121 = tpu.matmul %118, %120, %cst_120 {dimension_numbers = #tpu.dot_dimension_numbers<[1], [0], [0], [1], [0, 0, 1, 1], [], []>} : vector<64x64xf32>, vector<64x64xf32>, vector<64x64xf32> -> vector<64x64xf32>
    %122 = arith.addf %117, %121 : vector<64x64xf32>
    %c17_121 = arith.constant 17 : index
    %c0_122 = arith.constant 0 : index
    %123 = vector.load %arg6[%c17_121, %c0_122] : memref<96x64xf32, #tpu.memory_space<vmem>>, vector<64x64xf32>
    %c1_123 = arith.constant 1 : index
    %c5_124 = arith.constant 5 : index
    %c0_125 = arith.constant 0 : index
    %c0_126 = arith.constant 0 : index
    %124 = vector.load %arg2[%c1_123, %c5_124, %c0_125, %c0_126] : memref<2x9x64x64xf32, #tpu.memory_space<vmem>>, vector<1x1x64x64xf32>
    %125 = vector.shape_cast %124 : vector<1x1x64x64xf32> to vector<64x64xf32>
    %cst_127 = arith.constant dense<0.000000e+00> : vector<64x64xf32>
    %126 = tpu.matmul %123, %125, %cst_127 {dimension_numbers = #tpu.dot_dimension_numbers<[1], [0], [0], [1], [0, 0, 1, 1], [], []>} : vector<64x64xf32>, vector<64x64xf32>, vector<64x64xf32> -> vector<64x64xf32>
    %127 = arith.addf %122, %126 : vector<64x64xf32>
    %c25_128 = arith.constant 25 : index
    %c0_129 = arith.constant 0 : index
    %128 = vector.load %arg6[%c25_128, %c0_129] : memref<96x64xf32, #tpu.memory_space<vmem>>, vector<64x64xf32>
    %c1_130 = arith.constant 1 : index
    %c8_131 = arith.constant 8 : index
    %c0_132 = arith.constant 0 : index
    %c0_133 = arith.constant 0 : index
    %129 = vector.load %arg2[%c1_130, %c8_131, %c0_132, %c0_133] : memref<2x9x64x64xf32, #tpu.memory_space<vmem>>, vector<1x1x64x64xf32>
    %130 = vector.shape_cast %129 : vector<1x1x64x64xf32> to vector<64x64xf32>
    %cst_134 = arith.constant dense<0.000000e+00> : vector<64x64xf32>
    %131 = tpu.matmul %128, %130, %cst_134 {dimension_numbers = #tpu.dot_dimension_numbers<[1], [0], [0], [1], [0, 0, 1, 1], [], []>} : vector<64x64xf32>, vector<64x64xf32>, vector<64x64xf32> -> vector<64x64xf32>
    %132 = arith.addf %127, %131 : vector<64x64xf32>
    %133 = arith.mulf %132, %10 : vector<64x64xf32>
    %134 = arith.addf %116, %133 : vector<64x64xf32>
    %c1_135 = arith.constant 1 : index
    %c0_136 = arith.constant 0 : index
    %c0_137 = arith.constant 0 : index
    %135 = vector.load %arg3[%c1_135, %c0_136, %c0_137] : memref<2x1x64xf32, #tpu.memory_space<vmem>>, vector<1x1x64xf32>
    %136 = vector.shape_cast %135 : vector<1x1x64xf32> to vector<1x64xf32>
    %137 = vector.broadcast %136 : vector<1x64xf32> to vector<64x64xf32>
    %138 = arith.mulf %134, %137 : vector<64x64xf32>
    %c1_138 = arith.constant 1 : index
    %c0_139 = arith.constant 0 : index
    %c0_140 = arith.constant 0 : index
    %139 = vector.load %arg4[%c1_138, %c0_139, %c0_140] : memref<2x1x64xf32, #tpu.memory_space<vmem>>, vector<1x1x64xf32>
    %140 = vector.shape_cast %139 : vector<1x1x64xf32> to vector<1x64xf32>
    %141 = vector.broadcast %140 : vector<1x64xf32> to vector<64x64xf32>
    %142 = arith.addf %138, %141 : vector<64x64xf32>
    %cst_141 = arith.constant 0.000000e+00 : f32
    %143 = vector.broadcast %cst_141 : f32 to vector<64x64xf32>
    %144 = arith.maximumf %142, %143 : vector<64x64xf32>
    %c0_142 = arith.constant 0 : index
    %c0_143 = arith.constant 0 : index
    %c0_144 = arith.constant 0 : index
    %145 = vector.load %arg5[%c0_142, %c0_143, %c0_144] : memref<1x64x64xf32, #tpu.memory_space<vmem>>, vector<1x64x64xf32>
    %146 = vector.shape_cast %145 : vector<1x64x64xf32> to vector<64x64xf32>
    %147 = vector.shape_cast %144 : vector<64x64xf32> to vector<1x64x64xf32>
    tpu.vector_store %arg5[%c0_142, %c0_143, %c0_144], %147 {strides = array<i32>} : memref<1x64x64xf32, #tpu.memory_space<vmem>>, vector<1x64x64xf32>,
    return
  }
  func.func @transform_0(%arg0: i32) -> (i32, i32, i32) {
    %c0_i32 = arith.constant 0 : i32
    %c0_i32_0 = arith.constant 0 : i32
    %c0_i32_1 = arith.constant 0 : i32
    return %arg0, %c0_i32, %c0_i32_0 : i32, i32, i32
  }
  func.func @transform_1(%arg0: i32) -> (i32, i32, i32, i32) {
    %c0_i32 = arith.constant 0 : i32
    %c0_i32_0 = arith.constant 0 : i32
    %c0_i32_1 = arith.constant 0 : i32
    %c0_i32_2 = arith.constant 0 : i32
    %c0_i32_3 = arith.constant 0 : i32
    return %c0_i32, %c0_i32_0, %c0_i32_1, %c0_i32_2 : i32, i32, i32, i32
  }
  func.func @transform_2(%arg0: i32) -> (i32, i32, i32) {
    %c0_i32 = arith.constant 0 : i32
    %c0_i32_0 = arith.constant 0 : i32
    %c0_i32_1 = arith.constant 0 : i32
    %c0_i32_2 = arith.constant 0 : i32
    return %c0_i32, %c0_i32_0, %c0_i32_1 : i32, i32, i32
  }
  func.func @transform_3(%arg0: i32) -> (i32, i32, i32) {
    %c0_i32 = arith.constant 0 : i32
    %c0_i32_0 = arith.constant 0 : i32
    %c0_i32_1 = arith.constant 0 : i32
    %c0_i32_2 = arith.constant 0 : i32
    return %c0_i32, %c0_i32_0, %c0_i32_1 : i32, i32, i32
  }
  func.func @transform_4(%arg0: i32) -> (i32, i32, i32) {
    %c0_i32 = arith.constant 0 : i32
    %c0_i32_0 = arith.constant 0 : i32
    %c0_i32_1 = arith.constant 0 : i32
    return %arg0, %c0_i32, %c0_i32_0 : i32, i32, i32
  }
}

module attributes {stable_mosaic.version = 11 : i64} {
  func.func @_stage_kernel(%arg0: i32, %arg1: memref<1x16x64xf32, #tpu.memory_space<vmem>>, %arg2: memref<3x9x64x64xf32, #tpu.memory_space<vmem>>, %arg3: memref<3x1x64xf32, #tpu.memory_space<vmem>>, %arg4: memref<3x1x64xf32, #tpu.memory_space<vmem>>, %arg5: memref<1x16x64xf32, #tpu.memory_space<vmem>>, %arg6: memref<32x64xf32, #tpu.memory_space<vmem>>) attributes {dimension_semantics = [#tpu.dimension_semantics<parallel>], iteration_bounds = array<i64: 2>, scalar_prefetch = 0 : i64, scratch_operands = 1 : i64, tpu.core_type = #tpu.core_type<tc>, window_params = [{transform_indices = @transform_0, window_bounds = array<i64: 1, 16, 64>}, {pipeline_mode = #tpu.pipeline_mode<synchronous>, transform_indices = @transform_1, window_bounds = array<i64: 3, 9, 64, 64>}, {pipeline_mode = #tpu.pipeline_mode<synchronous>, transform_indices = @transform_2, window_bounds = array<i64: 3, 1, 64>}, {pipeline_mode = #tpu.pipeline_mode<synchronous>, transform_indices = @transform_3, window_bounds = array<i64: 3, 1, 64>}, {transform_indices = @transform_4, window_bounds = array<i64: 1, 16, 64>}]} {
    %0 = tpu.iota {dimensions = array<i32: 0>} : vector<16x64xi32>
    %c3_i32 = arith.constant 3 : i32
    %1 = vector.broadcast %c3_i32 : i32 to vector<16x64xi32>
    %2 = arith.andi %0, %1 : vector<16x64xi32>
    %c0_i32 = arith.constant 0 : i32
    %3 = vector.broadcast %c0_i32 : i32 to vector<16x64xi32>
    %4 = arith.cmpi ne, %2, %3 : vector<16x64xi32>
    %5 = arith.extui %4 : vector<16x64xi1> to vector<16x64xi32>
    %6 = arith.sitofp %5 : vector<16x64xi32> to vector<16x64xf32>
    %c3_i32_0 = arith.constant 3 : i32
    %7 = vector.broadcast %c3_i32_0 : i32 to vector<16x64xi32>
    %8 = arith.cmpi ne, %2, %7 : vector<16x64xi32>
    %9 = arith.extui %8 : vector<16x64xi1> to vector<16x64xi32>
    %10 = arith.sitofp %9 : vector<16x64xi32> to vector<16x64xf32>
    %cst = arith.constant 0.000000e+00 : f32
    %11 = vector.broadcast %cst : f32 to vector<32x64xf32>
    %c0 = arith.constant 0 : index
    %c0_1 = arith.constant 0 : index
    %12 = vector.load %arg6[%c0, %c0_1] : memref<32x64xf32, #tpu.memory_space<vmem>>, vector<32x64xf32>
    tpu.vector_store %arg6[%c0, %c0_1], %11 {strides = array<i32>} : memref<32x64xf32, #tpu.memory_space<vmem>>, vector<32x64xf32>,
    %c0_2 = arith.constant 0 : index
    %c0_3 = arith.constant 0 : index
    %c0_4 = arith.constant 0 : index
    %13 = vector.load %arg1[%c0_2, %c0_3, %c0_4] : memref<1x16x64xf32, #tpu.memory_space<vmem>>, vector<1x16x64xf32>
    %14 = vector.shape_cast %13 : vector<1x16x64xf32> to vector<16x64xf32>
    %c8 = arith.constant 8 : index
    %c0_5 = arith.constant 0 : index
    %15 = vector.load %arg6[%c8, %c0_5] : memref<32x64xf32, #tpu.memory_space<vmem>>, vector<16x64xf32>
    tpu.vector_store %arg6[%c8, %c0_5], %14 {strides = array<i32>} : memref<32x64xf32, #tpu.memory_space<vmem>>, vector<16x64xf32>,
    %cst_6 = arith.constant 0.000000e+00 : f32
    %16 = vector.broadcast %cst_6 : f32 to vector<16x64xf32>
    %cst_7 = arith.constant 0.000000e+00 : f32
    %17 = vector.broadcast %cst_7 : f32 to vector<16x64xf32>
    %c3 = arith.constant 3 : index
    %c0_8 = arith.constant 0 : index
    %18 = vector.load %arg6[%c3, %c0_8] : memref<32x64xf32, #tpu.memory_space<vmem>>, vector<16x64xf32>
    %c0_9 = arith.constant 0 : index
    %c0_10 = arith.constant 0 : index
    %c0_11 = arith.constant 0 : index
    %c0_12 = arith.constant 0 : index
    %19 = vector.load %arg2[%c0_9, %c0_10, %c0_11, %c0_12] : memref<3x9x64x64xf32, #tpu.memory_space<vmem>>, vector<1x1x64x64xf32>
    %20 = vector.shape_cast %19 : vector<1x1x64x64xf32> to vector<64x64xf32>
    %cst_13 = arith.constant dense<0.000000e+00> : vector<16x64xf32>
    %21 = tpu.matmul %18, %20, %cst_13 {dimension_numbers = #tpu.dot_dimension_numbers<[1], [0], [0], [1], [0, 0, 1, 1], [], []>} : vector<16x64xf32>, vector<64x64xf32>, vector<16x64xf32> -> vector<16x64xf32>
    %22 = arith.addf %17, %21 : vector<16x64xf32>
    %c7 = arith.constant 7 : index
    %c0_14 = arith.constant 0 : index
    %23 = vector.load %arg6[%c7, %c0_14] : memref<32x64xf32, #tpu.memory_space<vmem>>, vector<16x64xf32>
    %c0_15 = arith.constant 0 : index
    %c3_16 = arith.constant 3 : index
    %c0_17 = arith.constant 0 : index
    %c0_18 = arith.constant 0 : index
    %24 = vector.load %arg2[%c0_15, %c3_16, %c0_17, %c0_18] : memref<3x9x64x64xf32, #tpu.memory_space<vmem>>, vector<1x1x64x64xf32>
    %25 = vector.shape_cast %24 : vector<1x1x64x64xf32> to vector<64x64xf32>
    %cst_19 = arith.constant dense<0.000000e+00> : vector<16x64xf32>
    %26 = tpu.matmul %23, %25, %cst_19 {dimension_numbers = #tpu.dot_dimension_numbers<[1], [0], [0], [1], [0, 0, 1, 1], [], []>} : vector<16x64xf32>, vector<64x64xf32>, vector<16x64xf32> -> vector<16x64xf32>
    %27 = arith.addf %22, %26 : vector<16x64xf32>
    %c11 = arith.constant 11 : index
    %c0_20 = arith.constant 0 : index
    %28 = vector.load %arg6[%c11, %c0_20] : memref<32x64xf32, #tpu.memory_space<vmem>>, vector<16x64xf32>
    %c0_21 = arith.constant 0 : index
    %c6 = arith.constant 6 : index
    %c0_22 = arith.constant 0 : index
    %c0_23 = arith.constant 0 : index
    %29 = vector.load %arg2[%c0_21, %c6, %c0_22, %c0_23] : memref<3x9x64x64xf32, #tpu.memory_space<vmem>>, vector<1x1x64x64xf32>
    %30 = vector.shape_cast %29 : vector<1x1x64x64xf32> to vector<64x64xf32>
    %cst_24 = arith.constant dense<0.000000e+00> : vector<16x64xf32>
    %31 = tpu.matmul %28, %30, %cst_24 {dimension_numbers = #tpu.dot_dimension_numbers<[1], [0], [0], [1], [0, 0, 1, 1], [], []>} : vector<16x64xf32>, vector<64x64xf32>, vector<16x64xf32> -> vector<16x64xf32>
    %32 = arith.addf %27, %31 : vector<16x64xf32>
    %33 = arith.mulf %32, %6 : vector<16x64xf32>
    %34 = arith.addf %16, %33 : vector<16x64xf32>
    %cst_25 = arith.constant 0.000000e+00 : f32
    %35 = vector.broadcast %cst_25 : f32 to vector<16x64xf32>
    %c4 = arith.constant 4 : index
    %c0_26 = arith.constant 0 : index
    %36 = vector.load %arg6[%c4, %c0_26] : memref<32x64xf32, #tpu.memory_space<vmem>>, vector<16x64xf32>
    %c0_27 = arith.constant 0 : index
    %c1 = arith.constant 1 : index
    %c0_28 = arith.constant 0 : index
    %c0_29 = arith.constant 0 : index
    %37 = vector.load %arg2[%c0_27, %c1, %c0_28, %c0_29] : memref<3x9x64x64xf32, #tpu.memory_space<vmem>>, vector<1x1x64x64xf32>
    %38 = vector.shape_cast %37 : vector<1x1x64x64xf32> to vector<64x64xf32>
    %cst_30 = arith.constant dense<0.000000e+00> : vector<16x64xf32>
    %39 = tpu.matmul %36, %38, %cst_30 {dimension_numbers = #tpu.dot_dimension_numbers<[1], [0], [0], [1], [0, 0, 1, 1], [], []>} : vector<16x64xf32>, vector<64x64xf32>, vector<16x64xf32> -> vector<16x64xf32>
    %40 = arith.addf %35, %39 : vector<16x64xf32>
    %c8_31 = arith.constant 8 : index
    %c0_32 = arith.constant 0 : index
    %41 = vector.load %arg6[%c8_31, %c0_32] : memref<32x64xf32, #tpu.memory_space<vmem>>, vector<16x64xf32>
    %c0_33 = arith.constant 0 : index
    %c4_34 = arith.constant 4 : index
    %c0_35 = arith.constant 0 : index
    %c0_36 = arith.constant 0 : index
    %42 = vector.load %arg2[%c0_33, %c4_34, %c0_35, %c0_36] : memref<3x9x64x64xf32, #tpu.memory_space<vmem>>, vector<1x1x64x64xf32>
    %43 = vector.shape_cast %42 : vector<1x1x64x64xf32> to vector<64x64xf32>
    %cst_37 = arith.constant dense<0.000000e+00> : vector<16x64xf32>
    %44 = tpu.matmul %41, %43, %cst_37 {dimension_numbers = #tpu.dot_dimension_numbers<[1], [0], [0], [1], [0, 0, 1, 1], [], []>} : vector<16x64xf32>, vector<64x64xf32>, vector<16x64xf32> -> vector<16x64xf32>
    %45 = arith.addf %40, %44 : vector<16x64xf32>
    %c12 = arith.constant 12 : index
    %c0_38 = arith.constant 0 : index
    %46 = vector.load %arg6[%c12, %c0_38] : memref<32x64xf32, #tpu.memory_space<vmem>>, vector<16x64xf32>
    %c0_39 = arith.constant 0 : index
    %c7_40 = arith.constant 7 : index
    %c0_41 = arith.constant 0 : index
    %c0_42 = arith.constant 0 : index
    %47 = vector.load %arg2[%c0_39, %c7_40, %c0_41, %c0_42] : memref<3x9x64x64xf32, #tpu.memory_space<vmem>>, vector<1x1x64x64xf32>
    %48 = vector.shape_cast %47 : vector<1x1x64x64xf32> to vector<64x64xf32>
    %cst_43 = arith.constant dense<0.000000e+00> : vector<16x64xf32>
    %49 = tpu.matmul %46, %48, %cst_43 {dimension_numbers = #tpu.dot_dimension_numbers<[1], [0], [0], [1], [0, 0, 1, 1], [], []>} : vector<16x64xf32>, vector<64x64xf32>, vector<16x64xf32> -> vector<16x64xf32>
    %50 = arith.addf %45, %49 : vector<16x64xf32>
    %51 = arith.addf %34, %50 : vector<16x64xf32>
    %cst_44 = arith.constant 0.000000e+00 : f32
    %52 = vector.broadcast %cst_44 : f32 to vector<16x64xf32>
    %c5 = arith.constant 5 : index
    %c0_45 = arith.constant 0 : index
    %53 = vector.load %arg6[%c5, %c0_45] : memref<32x64xf32, #tpu.memory_space<vmem>>, vector<16x64xf32>
    %c0_46 = arith.constant 0 : index
    %c2 = arith.constant 2 : index
    %c0_47 = arith.constant 0 : index
    %c0_48 = arith.constant 0 : index
    %54 = vector.load %arg2[%c0_46, %c2, %c0_47, %c0_48] : memref<3x9x64x64xf32, #tpu.memory_space<vmem>>, vector<1x1x64x64xf32>
    %55 = vector.shape_cast %54 : vector<1x1x64x64xf32> to vector<64x64xf32>
    %cst_49 = arith.constant dense<0.000000e+00> : vector<16x64xf32>
    %56 = tpu.matmul %53, %55, %cst_49 {dimension_numbers = #tpu.dot_dimension_numbers<[1], [0], [0], [1], [0, 0, 1, 1], [], []>} : vector<16x64xf32>, vector<64x64xf32>, vector<16x64xf32> -> vector<16x64xf32>
    %57 = arith.addf %52, %56 : vector<16x64xf32>
    %c9 = arith.constant 9 : index
    %c0_50 = arith.constant 0 : index
    %58 = vector.load %arg6[%c9, %c0_50] : memref<32x64xf32, #tpu.memory_space<vmem>>, vector<16x64xf32>
    %c0_51 = arith.constant 0 : index
    %c5_52 = arith.constant 5 : index
    %c0_53 = arith.constant 0 : index
    %c0_54 = arith.constant 0 : index
    %59 = vector.load %arg2[%c0_51, %c5_52, %c0_53, %c0_54] : memref<3x9x64x64xf32, #tpu.memory_space<vmem>>, vector<1x1x64x64xf32>
    %60 = vector.shape_cast %59 : vector<1x1x64x64xf32> to vector<64x64xf32>
    %cst_55 = arith.constant dense<0.000000e+00> : vector<16x64xf32>
    %61 = tpu.matmul %58, %60, %cst_55 {dimension_numbers = #tpu.dot_dimension_numbers<[1], [0], [0], [1], [0, 0, 1, 1], [], []>} : vector<16x64xf32>, vector<64x64xf32>, vector<16x64xf32> -> vector<16x64xf32>
    %62 = arith.addf %57, %61 : vector<16x64xf32>
    %c13 = arith.constant 13 : index
    %c0_56 = arith.constant 0 : index
    %63 = vector.load %arg6[%c13, %c0_56] : memref<32x64xf32, #tpu.memory_space<vmem>>, vector<16x64xf32>
    %c0_57 = arith.constant 0 : index
    %c8_58 = arith.constant 8 : index
    %c0_59 = arith.constant 0 : index
    %c0_60 = arith.constant 0 : index
    %64 = vector.load %arg2[%c0_57, %c8_58, %c0_59, %c0_60] : memref<3x9x64x64xf32, #tpu.memory_space<vmem>>, vector<1x1x64x64xf32>
    %65 = vector.shape_cast %64 : vector<1x1x64x64xf32> to vector<64x64xf32>
    %cst_61 = arith.constant dense<0.000000e+00> : vector<16x64xf32>
    %66 = tpu.matmul %63, %65, %cst_61 {dimension_numbers = #tpu.dot_dimension_numbers<[1], [0], [0], [1], [0, 0, 1, 1], [], []>} : vector<16x64xf32>, vector<64x64xf32>, vector<16x64xf32> -> vector<16x64xf32>
    %67 = arith.addf %62, %66 : vector<16x64xf32>
    %68 = arith.mulf %67, %10 : vector<16x64xf32>
    %69 = arith.addf %51, %68 : vector<16x64xf32>
    %c0_62 = arith.constant 0 : index
    %c0_63 = arith.constant 0 : index
    %c0_64 = arith.constant 0 : index
    %70 = vector.load %arg3[%c0_62, %c0_63, %c0_64] : memref<3x1x64xf32, #tpu.memory_space<vmem>>, vector<1x1x64xf32>
    %71 = vector.shape_cast %70 : vector<1x1x64xf32> to vector<1x64xf32>
    %72 = vector.broadcast %71 : vector<1x64xf32> to vector<16x64xf32>
    %73 = arith.mulf %69, %72 : vector<16x64xf32>
    %c0_65 = arith.constant 0 : index
    %c0_66 = arith.constant 0 : index
    %c0_67 = arith.constant 0 : index
    %74 = vector.load %arg4[%c0_65, %c0_66, %c0_67] : memref<3x1x64xf32, #tpu.memory_space<vmem>>, vector<1x1x64xf32>
    %75 = vector.shape_cast %74 : vector<1x1x64xf32> to vector<1x64xf32>
    %76 = vector.broadcast %75 : vector<1x64xf32> to vector<16x64xf32>
    %77 = arith.addf %73, %76 : vector<16x64xf32>
    %cst_68 = arith.constant 0.000000e+00 : f32
    %78 = vector.broadcast %cst_68 : f32 to vector<16x64xf32>
    %79 = arith.maximumf %77, %78 : vector<16x64xf32>
    %c8_69 = arith.constant 8 : index
    %c0_70 = arith.constant 0 : index
    %80 = vector.load %arg6[%c8_69, %c0_70] : memref<32x64xf32, #tpu.memory_space<vmem>>, vector<16x64xf32>
    tpu.vector_store %arg6[%c8_69, %c0_70], %79 {strides = array<i32>} : memref<32x64xf32, #tpu.memory_space<vmem>>, vector<16x64xf32>,
    %cst_71 = arith.constant 0.000000e+00 : f32
    %81 = vector.broadcast %cst_71 : f32 to vector<16x64xf32>
    %cst_72 = arith.constant 0.000000e+00 : f32
    %82 = vector.broadcast %cst_72 : f32 to vector<16x64xf32>
    %c3_73 = arith.constant 3 : index
    %c0_74 = arith.constant 0 : index
    %83 = vector.load %arg6[%c3_73, %c0_74] : memref<32x64xf32, #tpu.memory_space<vmem>>, vector<16x64xf32>
    %c1_75 = arith.constant 1 : index
    %c0_76 = arith.constant 0 : index
    %c0_77 = arith.constant 0 : index
    %c0_78 = arith.constant 0 : index
    %84 = vector.load %arg2[%c1_75, %c0_76, %c0_77, %c0_78] : memref<3x9x64x64xf32, #tpu.memory_space<vmem>>, vector<1x1x64x64xf32>
    %85 = vector.shape_cast %84 : vector<1x1x64x64xf32> to vector<64x64xf32>
    %cst_79 = arith.constant dense<0.000000e+00> : vector<16x64xf32>
    %86 = tpu.matmul %83, %85, %cst_79 {dimension_numbers = #tpu.dot_dimension_numbers<[1], [0], [0], [1], [0, 0, 1, 1], [], []>} : vector<16x64xf32>, vector<64x64xf32>, vector<16x64xf32> -> vector<16x64xf32>
    %87 = arith.addf %82, %86 : vector<16x64xf32>
    %c7_80 = arith.constant 7 : index
    %c0_81 = arith.constant 0 : index
    %88 = vector.load %arg6[%c7_80, %c0_81] : memref<32x64xf32, #tpu.memory_space<vmem>>, vector<16x64xf32>
    %c1_82 = arith.constant 1 : index
    %c3_83 = arith.constant 3 : index
    %c0_84 = arith.constant 0 : index
    %c0_85 = arith.constant 0 : index
    %89 = vector.load %arg2[%c1_82, %c3_83, %c0_84, %c0_85] : memref<3x9x64x64xf32, #tpu.memory_space<vmem>>, vector<1x1x64x64xf32>
    %90 = vector.shape_cast %89 : vector<1x1x64x64xf32> to vector<64x64xf32>
    %cst_86 = arith.constant dense<0.000000e+00> : vector<16x64xf32>
    %91 = tpu.matmul %88, %90, %cst_86 {dimension_numbers = #tpu.dot_dimension_numbers<[1], [0], [0], [1], [0, 0, 1, 1], [], []>} : vector<16x64xf32>, vector<64x64xf32>, vector<16x64xf32> -> vector<16x64xf32>
    %92 = arith.addf %87, %91 : vector<16x64xf32>
    %c11_87 = arith.constant 11 : index
    %c0_88 = arith.constant 0 : index
    %93 = vector.load %arg6[%c11_87, %c0_88] : memref<32x64xf32, #tpu.memory_space<vmem>>, vector<16x64xf32>
    %c1_89 = arith.constant 1 : index
    %c6_90 = arith.constant 6 : index
    %c0_91 = arith.constant 0 : index
    %c0_92 = arith.constant 0 : index
    %94 = vector.load %arg2[%c1_89, %c6_90, %c0_91, %c0_92] : memref<3x9x64x64xf32, #tpu.memory_space<vmem>>, vector<1x1x64x64xf32>
    %95 = vector.shape_cast %94 : vector<1x1x64x64xf32> to vector<64x64xf32>
    %cst_93 = arith.constant dense<0.000000e+00> : vector<16x64xf32>
    %96 = tpu.matmul %93, %95, %cst_93 {dimension_numbers = #tpu.dot_dimension_numbers<[1], [0], [0], [1], [0, 0, 1, 1], [], []>} : vector<16x64xf32>, vector<64x64xf32>, vector<16x64xf32> -> vector<16x64xf32>
    %97 = arith.addf %92, %96 : vector<16x64xf32>
    %98 = arith.mulf %97, %6 : vector<16x64xf32>
    %99 = arith.addf %81, %98 : vector<16x64xf32>
    %cst_94 = arith.constant 0.000000e+00 : f32
    %100 = vector.broadcast %cst_94 : f32 to vector<16x64xf32>
    %c4_95 = arith.constant 4 : index
    %c0_96 = arith.constant 0 : index
    %101 = vector.load %arg6[%c4_95, %c0_96] : memref<32x64xf32, #tpu.memory_space<vmem>>, vector<16x64xf32>
    %c1_97 = arith.constant 1 : index
    %c1_98 = arith.constant 1 : index
    %c0_99 = arith.constant 0 : index
    %c0_100 = arith.constant 0 : index
    %102 = vector.load %arg2[%c1_97, %c1_98, %c0_99, %c0_100] : memref<3x9x64x64xf32, #tpu.memory_space<vmem>>, vector<1x1x64x64xf32>
    %103 = vector.shape_cast %102 : vector<1x1x64x64xf32> to vector<64x64xf32>
    %cst_101 = arith.constant dense<0.000000e+00> : vector<16x64xf32>
    %104 = tpu.matmul %101, %103, %cst_101 {dimension_numbers = #tpu.dot_dimension_numbers<[1], [0], [0], [1], [0, 0, 1, 1], [], []>} : vector<16x64xf32>, vector<64x64xf32>, vector<16x64xf32> -> vector<16x64xf32>
    %105 = arith.addf %100, %104 : vector<16x64xf32>
    %c8_102 = arith.constant 8 : index
    %c0_103 = arith.constant 0 : index
    %106 = vector.load %arg6[%c8_102, %c0_103] : memref<32x64xf32, #tpu.memory_space<vmem>>, vector<16x64xf32>
    %c1_104 = arith.constant 1 : index
    %c4_105 = arith.constant 4 : index
    %c0_106 = arith.constant 0 : index
    %c0_107 = arith.constant 0 : index
    %107 = vector.load %arg2[%c1_104, %c4_105, %c0_106, %c0_107] : memref<3x9x64x64xf32, #tpu.memory_space<vmem>>, vector<1x1x64x64xf32>
    %108 = vector.shape_cast %107 : vector<1x1x64x64xf32> to vector<64x64xf32>
    %cst_108 = arith.constant dense<0.000000e+00> : vector<16x64xf32>
    %109 = tpu.matmul %106, %108, %cst_108 {dimension_numbers = #tpu.dot_dimension_numbers<[1], [0], [0], [1], [0, 0, 1, 1], [], []>} : vector<16x64xf32>, vector<64x64xf32>, vector<16x64xf32> -> vector<16x64xf32>
    %110 = arith.addf %105, %109 : vector<16x64xf32>
    %c12_109 = arith.constant 12 : index
    %c0_110 = arith.constant 0 : index
    %111 = vector.load %arg6[%c12_109, %c0_110] : memref<32x64xf32, #tpu.memory_space<vmem>>, vector<16x64xf32>
    %c1_111 = arith.constant 1 : index
    %c7_112 = arith.constant 7 : index
    %c0_113 = arith.constant 0 : index
    %c0_114 = arith.constant 0 : index
    %112 = vector.load %arg2[%c1_111, %c7_112, %c0_113, %c0_114] : memref<3x9x64x64xf32, #tpu.memory_space<vmem>>, vector<1x1x64x64xf32>
    %113 = vector.shape_cast %112 : vector<1x1x64x64xf32> to vector<64x64xf32>
    %cst_115 = arith.constant dense<0.000000e+00> : vector<16x64xf32>
    %114 = tpu.matmul %111, %113, %cst_115 {dimension_numbers = #tpu.dot_dimension_numbers<[1], [0], [0], [1], [0, 0, 1, 1], [], []>} : vector<16x64xf32>, vector<64x64xf32>, vector<16x64xf32> -> vector<16x64xf32>
    %115 = arith.addf %110, %114 : vector<16x64xf32>
    %116 = arith.addf %99, %115 : vector<16x64xf32>
    %cst_116 = arith.constant 0.000000e+00 : f32
    %117 = vector.broadcast %cst_116 : f32 to vector<16x64xf32>
    %c5_117 = arith.constant 5 : index
    %c0_118 = arith.constant 0 : index
    %118 = vector.load %arg6[%c5_117, %c0_118] : memref<32x64xf32, #tpu.memory_space<vmem>>, vector<16x64xf32>
    %c1_119 = arith.constant 1 : index
    %c2_120 = arith.constant 2 : index
    %c0_121 = arith.constant 0 : index
    %c0_122 = arith.constant 0 : index
    %119 = vector.load %arg2[%c1_119, %c2_120, %c0_121, %c0_122] : memref<3x9x64x64xf32, #tpu.memory_space<vmem>>, vector<1x1x64x64xf32>
    %120 = vector.shape_cast %119 : vector<1x1x64x64xf32> to vector<64x64xf32>
    %cst_123 = arith.constant dense<0.000000e+00> : vector<16x64xf32>
    %121 = tpu.matmul %118, %120, %cst_123 {dimension_numbers = #tpu.dot_dimension_numbers<[1], [0], [0], [1], [0, 0, 1, 1], [], []>} : vector<16x64xf32>, vector<64x64xf32>, vector<16x64xf32> -> vector<16x64xf32>
    %122 = arith.addf %117, %121 : vector<16x64xf32>
    %c9_124 = arith.constant 9 : index
    %c0_125 = arith.constant 0 : index
    %123 = vector.load %arg6[%c9_124, %c0_125] : memref<32x64xf32, #tpu.memory_space<vmem>>, vector<16x64xf32>
    %c1_126 = arith.constant 1 : index
    %c5_127 = arith.constant 5 : index
    %c0_128 = arith.constant 0 : index
    %c0_129 = arith.constant 0 : index
    %124 = vector.load %arg2[%c1_126, %c5_127, %c0_128, %c0_129] : memref<3x9x64x64xf32, #tpu.memory_space<vmem>>, vector<1x1x64x64xf32>
    %125 = vector.shape_cast %124 : vector<1x1x64x64xf32> to vector<64x64xf32>
    %cst_130 = arith.constant dense<0.000000e+00> : vector<16x64xf32>
    %126 = tpu.matmul %123, %125, %cst_130 {dimension_numbers = #tpu.dot_dimension_numbers<[1], [0], [0], [1], [0, 0, 1, 1], [], []>} : vector<16x64xf32>, vector<64x64xf32>, vector<16x64xf32> -> vector<16x64xf32>
    %127 = arith.addf %122, %126 : vector<16x64xf32>
    %c13_131 = arith.constant 13 : index
    %c0_132 = arith.constant 0 : index
    %128 = vector.load %arg6[%c13_131, %c0_132] : memref<32x64xf32, #tpu.memory_space<vmem>>, vector<16x64xf32>
    %c1_133 = arith.constant 1 : index
    %c8_134 = arith.constant 8 : index
    %c0_135 = arith.constant 0 : index
    %c0_136 = arith.constant 0 : index
    %129 = vector.load %arg2[%c1_133, %c8_134, %c0_135, %c0_136] : memref<3x9x64x64xf32, #tpu.memory_space<vmem>>, vector<1x1x64x64xf32>
    %130 = vector.shape_cast %129 : vector<1x1x64x64xf32> to vector<64x64xf32>
    %cst_137 = arith.constant dense<0.000000e+00> : vector<16x64xf32>
    %131 = tpu.matmul %128, %130, %cst_137 {dimension_numbers = #tpu.dot_dimension_numbers<[1], [0], [0], [1], [0, 0, 1, 1], [], []>} : vector<16x64xf32>, vector<64x64xf32>, vector<16x64xf32> -> vector<16x64xf32>
    %132 = arith.addf %127, %131 : vector<16x64xf32>
    %133 = arith.mulf %132, %10 : vector<16x64xf32>
    %134 = arith.addf %116, %133 : vector<16x64xf32>
    %c1_138 = arith.constant 1 : index
    %c0_139 = arith.constant 0 : index
    %c0_140 = arith.constant 0 : index
    %135 = vector.load %arg3[%c1_138, %c0_139, %c0_140] : memref<3x1x64xf32, #tpu.memory_space<vmem>>, vector<1x1x64xf32>
    %136 = vector.shape_cast %135 : vector<1x1x64xf32> to vector<1x64xf32>
    %137 = vector.broadcast %136 : vector<1x64xf32> to vector<16x64xf32>
    %138 = arith.mulf %134, %137 : vector<16x64xf32>
    %c1_141 = arith.constant 1 : index
    %c0_142 = arith.constant 0 : index
    %c0_143 = arith.constant 0 : index
    %139 = vector.load %arg4[%c1_141, %c0_142, %c0_143] : memref<3x1x64xf32, #tpu.memory_space<vmem>>, vector<1x1x64xf32>
    %140 = vector.shape_cast %139 : vector<1x1x64xf32> to vector<1x64xf32>
    %141 = vector.broadcast %140 : vector<1x64xf32> to vector<16x64xf32>
    %142 = arith.addf %138, %141 : vector<16x64xf32>
    %cst_144 = arith.constant 0.000000e+00 : f32
    %143 = vector.broadcast %cst_144 : f32 to vector<16x64xf32>
    %144 = arith.maximumf %142, %143 : vector<16x64xf32>
    %c8_145 = arith.constant 8 : index
    %c0_146 = arith.constant 0 : index
    %145 = vector.load %arg6[%c8_145, %c0_146] : memref<32x64xf32, #tpu.memory_space<vmem>>, vector<16x64xf32>
    tpu.vector_store %arg6[%c8_145, %c0_146], %144 {strides = array<i32>} : memref<32x64xf32, #tpu.memory_space<vmem>>, vector<16x64xf32>,
    %cst_147 = arith.constant 0.000000e+00 : f32
    %146 = vector.broadcast %cst_147 : f32 to vector<16x64xf32>
    %cst_148 = arith.constant 0.000000e+00 : f32
    %147 = vector.broadcast %cst_148 : f32 to vector<16x64xf32>
    %c3_149 = arith.constant 3 : index
    %c0_150 = arith.constant 0 : index
    %148 = vector.load %arg6[%c3_149, %c0_150] : memref<32x64xf32, #tpu.memory_space<vmem>>, vector<16x64xf32>
    %c2_151 = arith.constant 2 : index
    %c0_152 = arith.constant 0 : index
    %c0_153 = arith.constant 0 : index
    %c0_154 = arith.constant 0 : index
    %149 = vector.load %arg2[%c2_151, %c0_152, %c0_153, %c0_154] : memref<3x9x64x64xf32, #tpu.memory_space<vmem>>, vector<1x1x64x64xf32>
    %150 = vector.shape_cast %149 : vector<1x1x64x64xf32> to vector<64x64xf32>
    %cst_155 = arith.constant dense<0.000000e+00> : vector<16x64xf32>
    %151 = tpu.matmul %148, %150, %cst_155 {dimension_numbers = #tpu.dot_dimension_numbers<[1], [0], [0], [1], [0, 0, 1, 1], [], []>} : vector<16x64xf32>, vector<64x64xf32>, vector<16x64xf32> -> vector<16x64xf32>
    %152 = arith.addf %147, %151 : vector<16x64xf32>
    %c7_156 = arith.constant 7 : index
    %c0_157 = arith.constant 0 : index
    %153 = vector.load %arg6[%c7_156, %c0_157] : memref<32x64xf32, #tpu.memory_space<vmem>>, vector<16x64xf32>
    %c2_158 = arith.constant 2 : index
    %c3_159 = arith.constant 3 : index
    %c0_160 = arith.constant 0 : index
    %c0_161 = arith.constant 0 : index
    %154 = vector.load %arg2[%c2_158, %c3_159, %c0_160, %c0_161] : memref<3x9x64x64xf32, #tpu.memory_space<vmem>>, vector<1x1x64x64xf32>
    %155 = vector.shape_cast %154 : vector<1x1x64x64xf32> to vector<64x64xf32>
    %cst_162 = arith.constant dense<0.000000e+00> : vector<16x64xf32>
    %156 = tpu.matmul %153, %155, %cst_162 {dimension_numbers = #tpu.dot_dimension_numbers<[1], [0], [0], [1], [0, 0, 1, 1], [], []>} : vector<16x64xf32>, vector<64x64xf32>, vector<16x64xf32> -> vector<16x64xf32>
    %157 = arith.addf %152, %156 : vector<16x64xf32>
    %c11_163 = arith.constant 11 : index
    %c0_164 = arith.constant 0 : index
    %158 = vector.load %arg6[%c11_163, %c0_164] : memref<32x64xf32, #tpu.memory_space<vmem>>, vector<16x64xf32>
    %c2_165 = arith.constant 2 : index
    %c6_166 = arith.constant 6 : index
    %c0_167 = arith.constant 0 : index
    %c0_168 = arith.constant 0 : index
    %159 = vector.load %arg2[%c2_165, %c6_166, %c0_167, %c0_168] : memref<3x9x64x64xf32, #tpu.memory_space<vmem>>, vector<1x1x64x64xf32>
    %160 = vector.shape_cast %159 : vector<1x1x64x64xf32> to vector<64x64xf32>
    %cst_169 = arith.constant dense<0.000000e+00> : vector<16x64xf32>
    %161 = tpu.matmul %158, %160, %cst_169 {dimension_numbers = #tpu.dot_dimension_numbers<[1], [0], [0], [1], [0, 0, 1, 1], [], []>} : vector<16x64xf32>, vector<64x64xf32>, vector<16x64xf32> -> vector<16x64xf32>
    %162 = arith.addf %157, %161 : vector<16x64xf32>
    %163 = arith.mulf %162, %6 : vector<16x64xf32>
    %164 = arith.addf %146, %163 : vector<16x64xf32>
    %cst_170 = arith.constant 0.000000e+00 : f32
    %165 = vector.broadcast %cst_170 : f32 to vector<16x64xf32>
    %c4_171 = arith.constant 4 : index
    %c0_172 = arith.constant 0 : index
    %166 = vector.load %arg6[%c4_171, %c0_172] : memref<32x64xf32, #tpu.memory_space<vmem>>, vector<16x64xf32>
    %c2_173 = arith.constant 2 : index
    %c1_174 = arith.constant 1 : index
    %c0_175 = arith.constant 0 : index
    %c0_176 = arith.constant 0 : index
    %167 = vector.load %arg2[%c2_173, %c1_174, %c0_175, %c0_176] : memref<3x9x64x64xf32, #tpu.memory_space<vmem>>, vector<1x1x64x64xf32>
    %168 = vector.shape_cast %167 : vector<1x1x64x64xf32> to vector<64x64xf32>
    %cst_177 = arith.constant dense<0.000000e+00> : vector<16x64xf32>
    %169 = tpu.matmul %166, %168, %cst_177 {dimension_numbers = #tpu.dot_dimension_numbers<[1], [0], [0], [1], [0, 0, 1, 1], [], []>} : vector<16x64xf32>, vector<64x64xf32>, vector<16x64xf32> -> vector<16x64xf32>
    %170 = arith.addf %165, %169 : vector<16x64xf32>
    %c8_178 = arith.constant 8 : index
    %c0_179 = arith.constant 0 : index
    %171 = vector.load %arg6[%c8_178, %c0_179] : memref<32x64xf32, #tpu.memory_space<vmem>>, vector<16x64xf32>
    %c2_180 = arith.constant 2 : index
    %c4_181 = arith.constant 4 : index
    %c0_182 = arith.constant 0 : index
    %c0_183 = arith.constant 0 : index
    %172 = vector.load %arg2[%c2_180, %c4_181, %c0_182, %c0_183] : memref<3x9x64x64xf32, #tpu.memory_space<vmem>>, vector<1x1x64x64xf32>
    %173 = vector.shape_cast %172 : vector<1x1x64x64xf32> to vector<64x64xf32>
    %cst_184 = arith.constant dense<0.000000e+00> : vector<16x64xf32>
    %174 = tpu.matmul %171, %173, %cst_184 {dimension_numbers = #tpu.dot_dimension_numbers<[1], [0], [0], [1], [0, 0, 1, 1], [], []>} : vector<16x64xf32>, vector<64x64xf32>, vector<16x64xf32> -> vector<16x64xf32>
    %175 = arith.addf %170, %174 : vector<16x64xf32>
    %c12_185 = arith.constant 12 : index
    %c0_186 = arith.constant 0 : index
    %176 = vector.load %arg6[%c12_185, %c0_186] : memref<32x64xf32, #tpu.memory_space<vmem>>, vector<16x64xf32>
    %c2_187 = arith.constant 2 : index
    %c7_188 = arith.constant 7 : index
    %c0_189 = arith.constant 0 : index
    %c0_190 = arith.constant 0 : index
    %177 = vector.load %arg2[%c2_187, %c7_188, %c0_189, %c0_190] : memref<3x9x64x64xf32, #tpu.memory_space<vmem>>, vector<1x1x64x64xf32>
    %178 = vector.shape_cast %177 : vector<1x1x64x64xf32> to vector<64x64xf32>
    %cst_191 = arith.constant dense<0.000000e+00> : vector<16x64xf32>
    %179 = tpu.matmul %176, %178, %cst_191 {dimension_numbers = #tpu.dot_dimension_numbers<[1], [0], [0], [1], [0, 0, 1, 1], [], []>} : vector<16x64xf32>, vector<64x64xf32>, vector<16x64xf32> -> vector<16x64xf32>
    %180 = arith.addf %175, %179 : vector<16x64xf32>
    %181 = arith.addf %164, %180 : vector<16x64xf32>
    %cst_192 = arith.constant 0.000000e+00 : f32
    %182 = vector.broadcast %cst_192 : f32 to vector<16x64xf32>
    %c5_193 = arith.constant 5 : index
    %c0_194 = arith.constant 0 : index
    %183 = vector.load %arg6[%c5_193, %c0_194] : memref<32x64xf32, #tpu.memory_space<vmem>>, vector<16x64xf32>
    %c2_195 = arith.constant 2 : index
    %c2_196 = arith.constant 2 : index
    %c0_197 = arith.constant 0 : index
    %c0_198 = arith.constant 0 : index
    %184 = vector.load %arg2[%c2_195, %c2_196, %c0_197, %c0_198] : memref<3x9x64x64xf32, #tpu.memory_space<vmem>>, vector<1x1x64x64xf32>
    %185 = vector.shape_cast %184 : vector<1x1x64x64xf32> to vector<64x64xf32>
    %cst_199 = arith.constant dense<0.000000e+00> : vector<16x64xf32>
    %186 = tpu.matmul %183, %185, %cst_199 {dimension_numbers = #tpu.dot_dimension_numbers<[1], [0], [0], [1], [0, 0, 1, 1], [], []>} : vector<16x64xf32>, vector<64x64xf32>, vector<16x64xf32> -> vector<16x64xf32>
    %187 = arith.addf %182, %186 : vector<16x64xf32>
    %c9_200 = arith.constant 9 : index
    %c0_201 = arith.constant 0 : index
    %188 = vector.load %arg6[%c9_200, %c0_201] : memref<32x64xf32, #tpu.memory_space<vmem>>, vector<16x64xf32>
    %c2_202 = arith.constant 2 : index
    %c5_203 = arith.constant 5 : index
    %c0_204 = arith.constant 0 : index
    %c0_205 = arith.constant 0 : index
    %189 = vector.load %arg2[%c2_202, %c5_203, %c0_204, %c0_205] : memref<3x9x64x64xf32, #tpu.memory_space<vmem>>, vector<1x1x64x64xf32>
    %190 = vector.shape_cast %189 : vector<1x1x64x64xf32> to vector<64x64xf32>
    %cst_206 = arith.constant dense<0.000000e+00> : vector<16x64xf32>
    %191 = tpu.matmul %188, %190, %cst_206 {dimension_numbers = #tpu.dot_dimension_numbers<[1], [0], [0], [1], [0, 0, 1, 1], [], []>} : vector<16x64xf32>, vector<64x64xf32>, vector<16x64xf32> -> vector<16x64xf32>
    %192 = arith.addf %187, %191 : vector<16x64xf32>
    %c13_207 = arith.constant 13 : index
    %c0_208 = arith.constant 0 : index
    %193 = vector.load %arg6[%c13_207, %c0_208] : memref<32x64xf32, #tpu.memory_space<vmem>>, vector<16x64xf32>
    %c2_209 = arith.constant 2 : index
    %c8_210 = arith.constant 8 : index
    %c0_211 = arith.constant 0 : index
    %c0_212 = arith.constant 0 : index
    %194 = vector.load %arg2[%c2_209, %c8_210, %c0_211, %c0_212] : memref<3x9x64x64xf32, #tpu.memory_space<vmem>>, vector<1x1x64x64xf32>
    %195 = vector.shape_cast %194 : vector<1x1x64x64xf32> to vector<64x64xf32>
    %cst_213 = arith.constant dense<0.000000e+00> : vector<16x64xf32>
    %196 = tpu.matmul %193, %195, %cst_213 {dimension_numbers = #tpu.dot_dimension_numbers<[1], [0], [0], [1], [0, 0, 1, 1], [], []>} : vector<16x64xf32>, vector<64x64xf32>, vector<16x64xf32> -> vector<16x64xf32>
    %197 = arith.addf %192, %196 : vector<16x64xf32>
    %198 = arith.mulf %197, %10 : vector<16x64xf32>
    %199 = arith.addf %181, %198 : vector<16x64xf32>
    %c2_214 = arith.constant 2 : index
    %c0_215 = arith.constant 0 : index
    %c0_216 = arith.constant 0 : index
    %200 = vector.load %arg3[%c2_214, %c0_215, %c0_216] : memref<3x1x64xf32, #tpu.memory_space<vmem>>, vector<1x1x64xf32>
    %201 = vector.shape_cast %200 : vector<1x1x64xf32> to vector<1x64xf32>
    %202 = vector.broadcast %201 : vector<1x64xf32> to vector<16x64xf32>
    %203 = arith.mulf %199, %202 : vector<16x64xf32>
    %c2_217 = arith.constant 2 : index
    %c0_218 = arith.constant 0 : index
    %c0_219 = arith.constant 0 : index
    %204 = vector.load %arg4[%c2_217, %c0_218, %c0_219] : memref<3x1x64xf32, #tpu.memory_space<vmem>>, vector<1x1x64xf32>
    %205 = vector.shape_cast %204 : vector<1x1x64xf32> to vector<1x64xf32>
    %206 = vector.broadcast %205 : vector<1x64xf32> to vector<16x64xf32>
    %207 = arith.addf %203, %206 : vector<16x64xf32>
    %cst_220 = arith.constant 0.000000e+00 : f32
    %208 = vector.broadcast %cst_220 : f32 to vector<16x64xf32>
    %209 = arith.maximumf %207, %208 : vector<16x64xf32>
    %c0_221 = arith.constant 0 : index
    %c0_222 = arith.constant 0 : index
    %c0_223 = arith.constant 0 : index
    %210 = vector.load %arg5[%c0_221, %c0_222, %c0_223] : memref<1x16x64xf32, #tpu.memory_space<vmem>>, vector<1x16x64xf32>
    %211 = vector.shape_cast %210 : vector<1x16x64xf32> to vector<16x64xf32>
    %212 = vector.shape_cast %209 : vector<16x64xf32> to vector<1x16x64xf32>
    tpu.vector_store %arg5[%c0_221, %c0_222, %c0_223], %212 {strides = array<i32>} : memref<1x16x64xf32, #tpu.memory_space<vmem>>, vector<1x16x64xf32>,
    return
  }
  func.func @transform_0(%arg0: i32) -> (i32, i32, i32) {
    %c0_i32 = arith.constant 0 : i32
    %c0_i32_0 = arith.constant 0 : i32
    %c0_i32_1 = arith.constant 0 : i32
    return %arg0, %c0_i32, %c0_i32_0 : i32, i32, i32
  }
  func.func @transform_1(%arg0: i32) -> (i32, i32, i32, i32) {
    %c0_i32 = arith.constant 0 : i32
    %c0_i32_0 = arith.constant 0 : i32
    %c0_i32_1 = arith.constant 0 : i32
    %c0_i32_2 = arith.constant 0 : i32
    %c0_i32_3 = arith.constant 0 : i32
    return %c0_i32, %c0_i32_0, %c0_i32_1, %c0_i32_2 : i32, i32, i32, i32
  }
  func.func @transform_2(%arg0: i32) -> (i32, i32, i32) {
    %c0_i32 = arith.constant 0 : i32
    %c0_i32_0 = arith.constant 0 : i32
    %c0_i32_1 = arith.constant 0 : i32
    %c0_i32_2 = arith.constant 0 : i32
    return %c0_i32, %c0_i32_0, %c0_i32_1 : i32, i32, i32
  }
  func.func @transform_3(%arg0: i32) -> (i32, i32, i32) {
    %c0_i32 = arith.constant 0 : i32
    %c0_i32_0 = arith.constant 0 : i32
    %c0_i32_1 = arith.constant 0 : i32
    %c0_i32_2 = arith.constant 0 : i32
    return %c0_i32, %c0_i32_0, %c0_i32_1 : i32, i32, i32
  }
  func.func @transform_4(%arg0: i32) -> (i32, i32, i32) {
    %c0_i32 = arith.constant 0 : i32
    %c0_i32_0 = arith.constant 0 : i32
    %c0_i32_1 = arith.constant 0 : i32
    return %arg0, %c0_i32, %c0_i32_0 : i32, i32, i32
  }
}

</mosaic_0001>

<bundles_post_ra>
// kernel: model_forward.7
= control target key start
LH: loop header
LB: loop body
LE: loop exit
PB: predicated region body
PF: predicated region fallthrough
CT: control target
= control target key end

     0   :  { %s4178_s15 = smov 0   ;;  %s5355_s0 = inlined_call_operand.vmem [shape: f32[2,64,64], index: 0, kind: input, shape index: {}]   ;;  %s5356_s1 = inlined_call_operand.vmem [shape: f32[2,9,64,64], index: 1, kind: input, shape index: {}]   ;;  %s5357_s2 = inlined_call_operand.vmem [shape: f32[2,1,64], index: 2, kind: input, shape index: {}]   ;;  %s5358_s3 = inlined_call_operand.vmem [shape: f32[2,1,64], index: 3, kind: input, shape index: {}]   ;;  %s5359_s4 = inlined_call_operand.vmem [shape: f32[2,64,64], index: 4, kind: output, shape index: {}]  }
   0x1 LB: > { %s3028_s16 = sadd.s32 4294967295, %s4150_s15   ;;  %p3032_p0 = scmp.ge.s32.totalorder %s4150_s15, 1  ;;  %s4150_s15 = sphi %s4178_s15, %s14_s15  }
   0x2   : > { %p162_p1 = scmp.lt.s32.totalorder %s4150_s15, 3 }
   0x4   : > { %p163_p2 = pnand %p3032_p0, %p162_p1 }
   0x6   : > { %166 = sbr.rel (%p163_p2) target bundleno = 643 (0x283), region = 36 }
   0xb   : > { %v3060_v0 = vld [vmem:[%s5356_s1 + $0xf8] sm:$0xff]  ;;  %v3059_v2 = vld [vmem:[%s5356_s1 + $0xf0] sm:$0xff]  ;;  %p4197_p3 = scmp.lt.s32.totalorder %s3028_s16, 1  ;;  %vm263_vm0 = vcmask 523264   ;;  %v5360_v4 = vmov 0.0   ;;  %v3058_v5 = vld [vmem:[%s5356_s1 + $0xe8] sm:$0xff] }
   0xc   : > { %v307_v1 = vld [vmem:[%s5356_s1 + $0x38] sm:$0xff]  ;;  %3631 = vmatprep.subr.mxu0 %v3060_v0  ;;  %v306_v3 = vld [vmem:[%s5356_s1 + $0x30] sm:$0xff]  ;;  %265 = vst.msk [vmem:[#allocation2 + $0x8] sm:$0xff] %vm263_vm0, %v5360_v4  ;;  %266 = vst.msk [vmem:[#allocation2 + $0x10] sm:$0xff] %vm263_vm0, %v5360_v4 }
   0xd   : > { %3659 = vmatprep.subr.mxu1 %v307_v1  ;;  %264 = vst.msk [vmem:[#allocation2] sm:$0xff] %vm263_vm0, %v5360_v4  ;;  %267 = vst.msk [vmem:[#allocation2 + $0x18] sm:$0xff] %vm263_vm0, %v5360_v4  ;;  %3632 = vmatpush3.msra.mxu0 %v3060_v0  ;;  %v305_v6 = vld [vmem:[%s5356_s1 + $0x28] sm:$0xff]  ;;  %s5464_s16 = smov (!%p4197_p3, %s3028_s16), 1  ;;  %v3057_v7 = vld [vmem:[%s5356_s1 + $0xe0] sm:$0xff] }
   0xe   : > { %268 = vst.msk [vmem:[#allocation2 + $0x20] sm:$0xff] %vm263_vm0, %v5360_v4  ;;  %269 = vst.msk [vmem:[#allocation2 + $0x28] sm:$0xff] %vm263_vm0, %v5360_v4  ;;  %3660 = vmatpush3.msra.mxu1 %v307_v1  ;;  %3633 = vmatprep.subr.mxu0 %v3059_v2  ;;  %v304_v8 = vld [vmem:[%s5356_s1 + $0x20] sm:$0xff]  ;;  %s3341_s8 = sshll.u32 %s5464_s16, 6  ;;  %v3056_v9 = vld [vmem:[%s5356_s1 + $0xd8] sm:$0xff] }
   0xf   : > { %270 = vst.msk [vmem:[#allocation2 + $0x30] sm:$0xff] %vm263_vm0, %v5360_v4  ;;  %271 = vst.msk [vmem:[#allocation2 + $0x38] sm:$0xff] %vm263_vm0, %v5360_v4  ;;  %3661 = vmatprep.subr.mxu1 %v306_v3  ;;  %3634 = vmatpush3.msra.mxu0 %v3059_v2  ;;  %s4255_s13 = scalar_lea.vmem %s5355_s0, %s3341_s8  ;;  %v303_v10 = vld [vmem:[%s5356_s1 + $0x18] sm:$0xff]  ;;  %v3055_v15 = vld [vmem:[%s5356_s1 + $0xd0] sm:$0xff]  ;;  %s5315_s20 = scalar_lea.vmem %s5359_s4, %s3341_s8 }
  0x10   : > { %272 = vst.msk [vmem:[#allocation2 + $0x40] sm:$0xff] %vm263_vm0, %v5360_v4  ;;  %273 = vst.msk [vmem:[#allocation2 + $0x48] sm:$0xff] %vm263_vm0, %v5360_v4  ;;  %3662 = vmatpush3.msra.mxu1 %v306_v3  ;;  %3635 = vmatprep.subr.mxu0 %v3058_v5  ;;  %v276_v11 = vld [vmem:[%s4255_s13] sm:$0xff]  ;;  %v277_v12 = vld [vmem:[%s4255_s13 + $0x8] sm:$0xff] }
  0x11   : > { %274 = vst.msk [vmem:[#allocation2 + $0x50] sm:$0xff] %vm263_vm0, %v5360_v4  ;;  %275 = vst.msk [vmem:[#allocation2 + $0x58] sm:$0xff] %vm263_vm0, %v5360_v4  ;;  %3663 = vmatprep.subr.mxu1 %v305_v6  ;;  %3636 = vmatpush3.msra.mxu0 %v3058_v5  ;;  %v278_v13 = vld [vmem:[%s4255_s13 + $0x10] sm:$0xff]  ;;  %v279_v14 = vld [vmem:[%s4255_s13 + $0x18] sm:$0xff] }
  0x12   : > { %3664 = vmatpush3.msra.mxu1 %v305_v6  ;;  %3637 = vmatprep.subr.mxu0 %v3057_v7  ;;  %284 = vst.msk [vmem:[#allocation2 + $0x10] sm:$0xff] %vm263_vm0, %v276_v11  ;;  %285 = vst.msk [vmem:[#allocation2 + $0x18] sm:$0xff] %vm263_vm0, %v277_v12  ;;  %v302_v16 = vld [vmem:[%s5356_s1 + $0x10] sm:$0xff]  ;;  %v280_v17 = vld [vmem:[%s4255_s13 + $0x20] sm:$0xff] }
  0x13   : > { %3665 = vmatprep.subr.mxu1 %v304_v8  ;;  %3638 = vmatpush3.msra.mxu0 %v3057_v7  ;;  %286 = vst.msk [vmem:[#allocation2 + $0x20] sm:$0xff] %vm263_vm0, %v278_v13  ;;  %287 = vst.msk [vmem:[#allocation2 + $0x28] sm:$0xff] %vm263_vm0, %v279_v14  ;;  %v3054_v18 = vld [vmem:[%s5356_s1 + $0xc8] sm:$0xff]  ;;  %v282_v21 = vld [vmem:[%s4255_s13 + $0x30] sm:$0xff] }
  0x14   : > { %3666 = vmatpush3.msra.mxu1 %v304_v8  ;;  %3639 = vmatprep.subr.mxu0 %v3056_v9  ;;  %v301_v19 = vld [vmem:[%s5356_s1 + $0x8] sm:$0xff]  ;;  %288 = vst.msk [vmem:[#allocation2 + $0x30] sm:$0xff] %vm263_vm0, %v280_v17  ;;  %v3053_v22 = vld [vmem:[%s5356_s1 + $0xc0] sm:$0xff]  ;;  %290 = vst.msk [vmem:[#allocation2 + $0x40] sm:$0xff] %vm263_vm0, %v282_v21 }
  0x15   : > { %3667 = vmatprep.subr.mxu1 %v303_v10  ;;  %3640 = vmatpush3.msra.mxu0 %v3056_v9  ;;  %v281_v20 = vld [vmem:[%s4255_s13 + $0x28] sm:$0xff]  ;;  %v300_v23 = vld [vmem:[%s5356_s1] sm:$0xff]  ;;  %v283_v24 = vld [vmem:[%s4255_s13 + $0x38] sm:$0xff] }
  0x16   : > { %3668 = vmatpush3.msra.mxu1 %v303_v10  ;;  %3641 = vmatprep.subr.mxu0 %v3055_v15  ;;  %289 = vst.msk [vmem:[#allocation2 + $0x38] sm:$0xff] %vm263_vm0, %v281_v20  ;;  %291 = vst.msk [vmem:[#allocation2 + $0x48] sm:$0xff] %vm263_vm0, %v283_v24  ;;  %v292_v26 = vld [vmem:[#allocation2 + $0x7] sm:$0xff]  ;;  %v3084_v28 = vld [vmem:[%s5356_s1 + $0x1b8] sm:$0xff] }
  0x17   : > { %3669 = vmatprep.subr.mxu1 %v302_v16  ;;  %3642 = vmatpush3.msra.mxu0 %v3055_v15  ;;  %v3108_v29 = vld [vmem:[%s5356_s1 + $0x138] sm:$0xff]  ;;  %v3083_v30 = vld [vmem:[%s5356_s1 + $0x1b0] sm:$0xff]  ;;  %v3082_v34 = vld [vmem:[%s5356_s1 + $0x1a8] sm:$0xff] }
  0x18   : > { %3670 = vmatpush3.msra.mxu1 %v302_v16  ;;  %3643 = vmatprep.subr.mxu0 %v3054_v18  ;;  %v3107_v31 = vld [vmem:[%s5356_s1 + $0x130] sm:$0xff]  ;;  %v3106_v35 = vld [vmem:[%s5356_s1 + $0x128] sm:$0xff]  ;;  %v3081_v36 = vld [vmem:[%s5356_s1 + $0x1a0] sm:$0xff] }
  0x19   : > { %3671 = vmatprep.subr.mxu1 %v301_v19  ;;  %3644 = vmatpush3.msra.mxu0 %v3054_v18  ;;  %v293_v25 = vld [vmem:[#allocation2 + $0xf] sm:$0xff]  ;;  %v4294_v27 = vld [vmem:[#allocation2 + $0x17] sm:$0xff]  ;;  %v3105_v37 = vld [vmem:[%s5356_s1 + $0x120] sm:$0xff] }
  0x1a   : > { %3672 = vmatpush3.msra.mxu1 %v301_v19  ;;  %3645 = vmatprep.subr.mxu0 %v3053_v22  ;;  %v4313_v32 = vld [vmem:[#allocation2 + $0x1f] sm:$0xff]  ;;  %v4315_v33 = vld [vmem:[#allocation2 + $0x27] sm:$0xff]  ;;  %v3079_v42 = vld [vmem:[%s5356_s1 + $0x190] sm:$0xff] }
  0x1b   : > { %3673 = vmatprep.subr.mxu1 %v300_v23  ;;  %3646 = vmatpush3.msra.mxu0 %v3053_v22  ;;  %v4337_v38 = vld [vmem:[#allocation2 + $0x2f] sm:$0xff]  ;;  %v3080_v40 = vld [vmem:[%s5356_s1 + $0x198] sm:$0xff]  ;;  %v3077_v48 = vld [vmem:[%s5356_s1 + $0x180] sm:$0xff] }
  0x1c   : > { %3647 = vmatprep.mubr.msk.f32.mxu0 %vm263_vm0, %v293_v25  ;;  %3674 = vmatpush3.msra.mxu1 %v300_v23  ;;  %v3104_v41 = vld [vmem:[%s5356_s1 + $0x118] sm:$0xff]  ;;  %v3103_v43 = vld [vmem:[%s5356_s1 + $0x110] sm:$0xff]  ;;  %v3078_v46 = vld [vmem:[%s5356_s1 + $0x188] sm:$0xff] }
  0x1d   : > { %3675 = vmatprep.mubr.msk.f32.mxu1 %vm263_vm0, %v292_v26  ;;  %3648 = vmatmul.mubr.msk.f32.vlgmr.msra.gmra.mxu0 %vm263_vm0, %v4294_v27  ;;  %v4339_v39 = vld [vmem:[#allocation2 + $0x37] sm:$0xff]  ;;  %v4361_v44 = vld [vmem:[#allocation2 + $0x3f] sm:$0xff]  ;;  %v4363_v45 = vld [vmem:[#allocation2 + $0x47] sm:$0xff] }
  0x1e   : > { %3676 = vmatmul.mubr.msk.f32.vlgmr.msra.gmra.mxu1 %vm263_vm0, %v293_v25  ;;  %3687 = vmatprep.subr.mxu0 %v3084_v28  ;;  %v3102_v47 = vld [vmem:[%s5356_s1 + $0x108] sm:$0xff]  ;;  %v3101_v49 = vld [vmem:[%s5356_s1 + $0x100] sm:$0xff]  ;;  %v4385_v50 = vld [vmem:[#allocation2 + $0x10] sm:$0xff] }
  0x1f   : > { %3715 = vmatprep.subr.mxu1 %v3108_v29  ;;  %3688 = vmatpush3.msra.mxu0 %v3084_v28  ;;  %v4387_v51 = vld [vmem:[#allocation2 + $0x18] sm:$0xff]  ;;  %v3099_v54 = vld [vmem:[%s5356_s1 + $0x70] sm:$0xff]  ;;  %v4409_v56 = vld [vmem:[#allocation2 + $0x20] sm:$0xff] }
  0x20   : > { %3716 = vmatpush3.msra.mxu1 %v3108_v29  ;;  %3689 = vmatprep.subr.mxu0 %v3083_v30  ;;  %v3100_v52 = vld [vmem:[%s5356_s1 + $0x78] sm:$0xff]  ;;  %v3131_v55 = vld [vmem:[%s5356_s1 + $0x1f0] sm:$0xff]  ;;  %v4411_v57 = vld [vmem:[#allocation2 + $0x28] sm:$0xff] }
  0x21   : > { %3717 = vmatprep.subr.mxu1 %v3107_v31  ;;  %3650 = vmatprep.mubr.msk.f32.mxu0 %vm263_vm0, %v4313_v32  ;;  %v3132_v53 = vld [vmem:[%s5356_s1 + $0x1f8] sm:$0xff]  ;;  %v3098_v58 = vld [vmem:[%s5356_s1 + $0x68] sm:$0xff]  ;;  %v3097_v60 = vld [vmem:[%s5356_s1 + $0x60] sm:$0xff] }
  0x22   : > { %3678 = vmatprep.mubr.msk.f32.mxu1 %vm263_vm0, %v4294_v27  ;;  %3690 = vmatpush3.msra.mxu0 %v3083_v30  ;;  %v3130_v59 = vld [vmem:[%s5356_s1 + $0x1e8] sm:$0xff]  ;;  %v3129_v61 = vld [vmem:[%s5356_s1 + $0x1e0] sm:$0xff]  ;;  %v4433_v62 = vld [vmem:[#allocation2 + $0x30] sm:$0xff] }
  0x23   : > { %3718 = vmatpush3.msra.mxu1 %v3107_v31  ;;  %3651 = vmatmul.mubr.msk.f32.gmra.mxu0 %vm263_vm0, %v4315_v33  ;;  %v4435_v63 = vld [vmem:[#allocation2 + $0x38] sm:$0xff]  ;;  %v3095_v2 = vld [vmem:[%s5356_s1 + $0x50] sm:$0xff]  ;;  %v4457_v5 = vld [vmem:[#allocation2 + $0x40] sm:$0xff] }
  0x24   : > { %3679 = vmatmul.mubr.msk.f32.gmra.mxu1 %vm263_vm0, %v4313_v32  ;;  %3691 = vmatprep.subr.mxu0 %v3082_v34  ;;  %v3096_v0 = vld [vmem:[%s5356_s1 + $0x58] sm:$0xff]  ;;  %v3127_v3 = vld [vmem:[%s5356_s1 + $0x1d0] sm:$0xff]  ;;  %v4459_v7 = vld [vmem:[#allocation2 + $0x48] sm:$0xff] }
  0x25   : > { %3719 = vmatprep.subr.mxu1 %v3106_v35  ;;  %3692 = vmatpush3.msra.mxu0 %v3082_v34  ;;  %v3128_v1 = vld [vmem:[%s5356_s1 + $0x1d8] sm:$0xff]  ;;  %v562_v6 = vld [vmem:[#allocation2 + $0x4f] sm:$0xff]  ;;  %v3093_v10 = vld [vmem:[%s5356_s1 + $0x40] sm:$0xff] }
  0x26   : > { %3720 = vmatpush3.msra.mxu1 %v3106_v35  ;;  %3693 = vmatprep.subr.mxu0 %v3081_v36  ;;  %v3094_v8 = vld [vmem:[%s5356_s1 + $0x48] sm:$0xff]  ;;  %v3125_v11 = vld [vmem:[%s5356_s1 + $0x1c0] sm:$0xff]  ;;  %v3156_v13 = vld [vmem:[%s5356_s1 + $0x178] sm:$0xff] }
  0x27   : > { %3721 = vmatprep.subr.mxu1 %v3105_v37  ;;  %3653 = vmatprep.mubr.msk.f32.mxu0 %vm263_vm0, %v4337_v38  ;;  %v3126_v9 = vld [vmem:[%s5356_s1 + $0x1c8] sm:$0xff]  ;;  %v3148_v14 = vld [vmem:[%s5356_s1 + $0xb8] sm:$0xff]  ;;  %v3155_v15 = vld [vmem:[%s5356_s1 + $0x170] sm:$0xff] }
  0x28   : > { %3681 = vmatprep.mubr.msk.f32.mxu1 %vm263_vm0, %v4315_v33  ;;  %3694 = vmatpush3.msra.mxu0 %v3081_v36  ;;  %v725_v12 = vld [vmem:[#allocation2 + $0x8] sm:$0xff]  ;;  %v3147_v16 = vld [vmem:[%s5356_s1 + $0xb0] sm:$0xff]  ;;  %v3153_v19 = vld [vmem:[%s5356_s1 + $0x160] sm:$0xff] }
  0x29   : > { %3722 = vmatpush3.msra.mxu1 %v3105_v37  ;;  %3654 = vmatmul.mubr.msk.f32.gmra.mxu0 %vm263_vm0, %v4339_v39  ;;  %v3154_v17 = vld [vmem:[%s5356_s1 + $0x168] sm:$0xff]  ;;  %v3145_v20 = vld [vmem:[%s5356_s1 + $0xa0] sm:$0xff]  ;;  %v3152_v21 = vld [vmem:[%s5356_s1 + $0x158] sm:$0xff] }
  0x2a   : > { %3682 = vmatmul.mubr.msk.f32.gmra.mxu1 %vm263_vm0, %v4337_v38  ;;  %3695 = vmatprep.subr.mxu0 %v3080_v40  ;;  %v3146_v18 = vld [vmem:[%s5356_s1 + $0xa8] sm:$0xff]  ;;  %v3144_v22 = vld [vmem:[%s5356_s1 + $0x98] sm:$0xff]  ;;  %v3151_v23 = vld [vmem:[%s5356_s1 + $0x150] sm:$0xff] }
  0x2b   : > { %3723 = vmatprep.subr.mxu1 %v3104_v41  ;;  %3696 = vmatpush3.msra.mxu0 %v3080_v40  ;;  %v3143_v24 = vld [vmem:[%s5356_s1 + $0x90] sm:$0xff]  ;;  %v3150_v26 = vld [vmem:[%s5356_s1 + $0x148] sm:$0xff]  ;;  %v3149_v28 = vld [vmem:[%s5356_s1 + $0x140] sm:$0xff] }
  0x2c   : > { %3724 = vmatpush3.msra.mxu1 %v3104_v41  ;;  %3697 = vmatprep.subr.mxu0 %v3079_v42  ;;  %v996_v25 = vld [vmem:[#allocation2 + $0x50] sm:$0xff]  ;;  %v3141_v29 = vld [vmem:[%s5356_s1 + $0x80] sm:$0xff]  ;;  %v3178_v37 = vld [vmem:[%s5356_s1 + $0x228] sm:$0xff] }
  0x2d   : > { %3725 = vmatprep.subr.mxu1 %v3103_v43  ;;  %3656 = vmatprep.mubr.msk.f32.mxu0 %vm263_vm0, %v4361_v44  ;;  %v1152_v30 = vld [vmem:[#allocation2 + $0x11] sm:$0xff]  ;;  %v1151_v31 = vld [vmem:[#allocation2 + $0x9] sm:$0xff]  ;;  %v1154_v34 = vld [vmem:[#allocation2 + $0x21] sm:$0xff] }
  0x2e   : > { %3684 = vmatprep.mubr.msk.f32.mxu1 %vm263_vm0, %v4339_v39  ;;  %3698 = vmatpush3.msra.mxu0 %v3079_v42  ;;  %v3179_v35 = vld [vmem:[%s5356_s1 + $0x230] sm:$0xff]  ;;  %v1157_v40 = vld [vmem:[#allocation2 + $0x39] sm:$0xff]  ;;  %v1158_v42 = vld [vmem:[#allocation2 + $0x41] sm:$0xff] }
  0x2f   : > { %3726 = vmatpush3.msra.mxu1 %v3103_v43  ;;  %3657 = vmatmul.mubr.msk.f32.gmra.mxu0 %vm263_vm0, %v4363_v45  ;;  %v1155_v36 = vld [vmem:[#allocation2 + $0x29] sm:$0xff]  ;;  %v3176_v41 = vld [vmem:[%s5356_s1 + $0x218] sm:$0xff] }
  0x30   : > { %3685 = vmatmul.mubr.msk.f32.gmra.mxu1 %vm263_vm0, %v4361_v44  ;;  %3699 = vmatprep.subr.mxu0 %v3078_v46  ;;  %v3175_v43 = vld [vmem:[%s5356_s1 + $0x210] sm:$0xff] }
  0x31   : > { %3727 = vmatprep.subr.mxu1 %v3102_v47  ;;  %3700 = vmatpush3.msra.mxu0 %v3078_v46  ;;  %v3173_v46 = vld [vmem:[%s5356_s1 + $0x200] sm:$0xff] }
  0x32   : > { %3728 = vmatpush3.msra.mxu1 %v3102_v47  ;;  %3701 = vmatprep.subr.mxu0 %v3077_v48  ;;  %v1422_v47 = vld [vmem:[#allocation2 + $0x51] sm:$0xff] }
  0x33   : > { %3729 = vmatprep.subr.mxu1 %v3101_v49  ;;  %3702 = vmatpush3.msra.mxu0 %v3077_v48  ;;  %v3198_v48 = vld [vmem:[%s5356_s1 + $0x278] sm:$0xff] }
  0x34   : > { %3703 = vmatprep.mubr.msk.f32.mxu0 %vm263_vm0, %v4294_v27  ;;  %3730 = vmatpush3.msra.mxu1 %v3101_v49  ;;  %v3142_v27 = vld [vmem:[%s5356_s1 + $0x88] sm:$0xff]  ;;  %v3206_v49 = vld [vmem:[%s5356_s1 + $0x338] sm:$0xff] }
  0x35   : > { %3731 = vmatprep.mubr.msk.f32.mxu1 %vm263_vm0, %v4385_v50  ;;  %3704 = vmatmul.mubr.msk.f32.vlgmr.msra.gmra.mxu0 %vm263_vm0, %v4313_v32  ;;  %v1153_v32 = vld [vmem:[#allocation2 + $0x19] sm:$0xff] }
  0x36   : > { %3732 = vmatmul.mubr.msk.f32.vlgmr.msra.gmra.mxu1 %vm263_vm0, %v4387_v51  ;;  %3743 = vmatprep.subr.mxu0 %v3100_v52 }
  0x37   : > { %3771 = vmatprep.subr.mxu1 %v3132_v53  ;;  %3744 = vmatpush3.msra.mxu0 %v3100_v52  ;;  %v3196_v52 = vld [vmem:[%s5356_s1 + $0x268] sm:$0xff] }
  0x38   : > { %3772 = vmatpush3.msra.mxu1 %v3132_v53  ;;  %3745 = vmatprep.subr.mxu0 %v3099_v54  ;;  %v3204_v53 = vld [vmem:[%s5356_s1 + $0x328] sm:$0xff] }
  0x39   : > { %3773 = vmatprep.subr.mxu1 %v3131_v55  ;;  %3706 = vmatprep.mubr.msk.f32.mxu0 %vm263_vm0, %v4315_v33  ;;  %v3180_v33 = vld [vmem:[%s5356_s1 + $0x238] sm:$0xff] }
  0x3a   : > { %3734 = vmatprep.mubr.msk.f32.mxu1 %vm263_vm0, %v4409_v56  ;;  %3746 = vmatpush3.msra.mxu0 %v3099_v54  ;;  %v3195_v54 = vld [vmem:[%s5356_s1 + $0x260] sm:$0xff] }
  0x3b   : > { %3774 = vmatpush3.msra.mxu1 %v3131_v55  ;;  %3707 = vmatmul.mubr.msk.f32.gmra.mxu0 %vm263_vm0, %v4337_v38  ;;  %v1156_v38 = vld [vmem:[#allocation2 + $0x31] sm:$0xff]  ;;  %v3203_v55 = vld [vmem:[%s5356_s1 + $0x320] sm:$0xff] }
  0x3c   : > { %3735 = vmatmul.mubr.msk.f32.gmra.mxu1 %vm263_vm0, %v4411_v57  ;;  %3747 = vmatprep.subr.mxu0 %v3098_v58 }
  0x3d   : > { %3775 = vmatprep.subr.mxu1 %v3130_v59  ;;  %3748 = vmatpush3.msra.mxu0 %v3098_v58  ;;  %v3193_v58 = vld [vmem:[%s5356_s1 + $0x250] sm:$0xff] }
  0x3e   : > { %3776 = vmatpush3.msra.mxu1 %v3130_v59  ;;  %3749 = vmatprep.subr.mxu0 %v3097_v60  ;;  %v3201_v59 = vld [vmem:[%s5356_s1 + $0x310] sm:$0xff] }
  0x3f   : > { %3777 = vmatprep.subr.mxu1 %v3129_v61  ;;  %3709 = vmatprep.mubr.msk.f32.mxu0 %vm263_vm0, %v4339_v39  ;;  %v3177_v39 = vld [vmem:[%s5356_s1 + $0x220] sm:$0xff] }
  0x40   : > { %3737 = vmatprep.mubr.msk.f32.mxu1 %vm263_vm0, %v4433_v62  ;;  %3750 = vmatpush3.msra.mxu0 %v3097_v60  ;;  %v3192_v60 = vld [vmem:[%s5356_s1 + $0x248] sm:$0xff] }
  0x41   : > { %3778 = vmatpush3.msra.mxu1 %v3129_v61  ;;  %3710 = vmatmul.mubr.msk.f32.gmra.mxu0 %vm263_vm0, %v4361_v44  ;;  %v1168_v44 = vld [vmem:[#allocation2 + $0x49] sm:$0xff] }
  0x42   : > { %3738 = vmatmul.mubr.msk.f32.gmra.mxu1 %vm263_vm0, %v4435_v63  ;;  %3751 = vmatprep.subr.mxu0 %v3096_v0  ;;  %v3200_v61 = vld [vmem:[%s5356_s1 + $0x308] sm:$0xff] }
  0x43   : > { %3779 = vmatprep.subr.mxu1 %v3128_v1  ;;  %3752 = vmatpush3.msra.mxu0 %v3096_v0  ;;  %v1631_v0 = vld [vmem:[#allocation2 + $0x7] sm:$0xff] }
  0x44   : > { %3780 = vmatpush3.msra.mxu1 %v3128_v1  ;;  %3753 = vmatprep.subr.mxu0 %v3095_v2  ;;  %v4657_v1 = vld [vmem:[%s5356_s1 + $0x378] sm:$0xff] }
  0x45   : > { %3781 = vmatprep.subr.mxu1 %v3127_v3  ;;  %3712 = vmatprep.mubr.msk.f32.mxu0 %vm263_vm0, %v4363_v45  ;;  %v3174_v45 = vld [vmem:[%s5356_s1 + $0x208] sm:$0xff]  ;;  %5380 = vst [vmem:[#allocation3_spill] sm:$0xff] %v4657_v1 }
  0x46   : > { %3740 = vmatprep.mubr.msk.f32.mxu1 %vm263_vm0, %v4457_v5  ;;  %3754 = vmatpush3.msra.mxu0 %v3095_v2  ;;  %v4663_v2 = vld [vmem:[%s5356_s1 + $0x3f8] sm:$0xff] }
  0x47   : > { %3782 = vmatpush3.msra.mxu1 %v3127_v3  ;;  %3713 = vmatmul.mubr.msk.f32.gmra.mxu0 %vm263_vm0, %v562_v6  ;;  %5381 = vst [vmem:[#allocation4_spill] sm:$0xff] %v4663_v2 }
  0x48   : > { %3741 = vmatmul.mubr.msk.f32.gmra.mxu1 %vm263_vm0, %v4459_v7  ;;  %3755 = vmatprep.subr.mxu0 %v3094_v8 }
  0x49   : > { %3783 = vmatprep.subr.mxu1 %v3126_v9  ;;  %3756 = vmatpush3.msra.mxu0 %v3094_v8 }
  0x4a   : > { %3784 = vmatpush3.msra.mxu1 %v3126_v9  ;;  %3757 = vmatprep.subr.mxu0 %v3093_v10 }
  0x4b   : > { %3785 = vmatprep.subr.mxu1 %v3125_v11  ;;  %3758 = vmatpush3.msra.mxu0 %v3093_v10 }
  0x4c   : > { %3759 = vmatprep.mubr.msk.f32.mxu0 %vm263_vm0, %v725_v12  ;;  %3786 = vmatpush3.msra.mxu1 %v3125_v11 }
  0x4d   : > { %3787 = vmatprep.mubr.msk.f32.mxu1 %vm263_vm0, %v4387_v51  ;;  %3760 = vmatmul.mubr.msk.f32.vlgmr.msra.gmra.mxu0 %vm263_vm0, %v4385_v50  ;;  %v3197_v50 = vld [vmem:[%s5356_s1 + $0x270] sm:$0xff] }
  0x4e   : > { %3788 = vmatmul.mubr.msk.f32.vlgmr.msra.gmra.mxu1 %vm263_vm0, %v4409_v56  ;;  %3799 = vmatprep.subr.mxu0 %v3156_v13 }
  0x4f   : > { %3827 = vmatprep.subr.mxu1 %v3148_v14  ;;  %3800 = vmatpush3.msra.mxu0 %v3156_v13 }
  0x50   : > { %3828 = vmatpush3.msra.mxu1 %v3148_v14  ;;  %3801 = vmatprep.subr.mxu0 %v3155_v15 }
  0x51   : > { %3829 = vmatprep.subr.mxu1 %v3147_v16  ;;  %3762 = vmatprep.mubr.msk.f32.mxu0 %vm263_vm0, %v4387_v51  ;;  %v3205_v51 = vld [vmem:[%s5356_s1 + $0x330] sm:$0xff] }
  0x52   : > { %3790 = vmatprep.mubr.msk.f32.mxu1 %vm263_vm0, %v4411_v57  ;;  %3802 = vmatpush3.msra.mxu0 %v3155_v15 }
  0x53   : > { %3830 = vmatpush3.msra.mxu1 %v3147_v16  ;;  %3763 = vmatmul.mubr.msk.f32.gmra.mxu0 %vm263_vm0, %v4409_v56  ;;  %v3194_v56 = vld [vmem:[%s5356_s1 + $0x258] sm:$0xff] }
  0x54   : > { %3791 = vmatmul.mubr.msk.f32.gmra.mxu1 %vm263_vm0, %v4433_v62  ;;  %3803 = vmatprep.subr.mxu0 %v3154_v17 }
  0x55   : > { %3831 = vmatprep.subr.mxu1 %v3146_v18  ;;  %3804 = vmatpush3.msra.mxu0 %v3154_v17 }
  0x56   : > { %3832 = vmatpush3.msra.mxu1 %v3146_v18  ;;  %3805 = vmatprep.subr.mxu0 %v3153_v19 }
  0x57   : > { %3833 = vmatprep.subr.mxu1 %v3145_v20  ;;  %3765 = vmatprep.mubr.msk.f32.mxu0 %vm263_vm0, %v4411_v57  ;;  %v3202_v57 = vld [vmem:[%s5356_s1 + $0x318] sm:$0xff] }
  0x58   : > { %3793 = vmatprep.mubr.msk.f32.mxu1 %vm263_vm0, %v4435_v63  ;;  %3806 = vmatpush3.msra.mxu0 %v3153_v19 }
  0x59   : > { %3834 = vmatpush3.msra.mxu1 %v3145_v20  ;;  %3766 = vmatmul.mubr.msk.f32.gmra.mxu0 %vm263_vm0, %v4433_v62  ;;  %v3191_v62 = vld [vmem:[%s5356_s1 + $0x240] sm:$0xff] }
  0x5a   : > { %3794 = vmatmul.mubr.msk.f32.gmra.mxu1 %vm263_vm0, %v4457_v5  ;;  %3807 = vmatprep.subr.mxu0 %v3152_v21 }
  0x5b   : > { %3835 = vmatprep.subr.mxu1 %v3144_v22  ;;  %3808 = vmatpush3.msra.mxu0 %v3152_v21 }
  0x5c   : > { %3836 = vmatpush3.msra.mxu1 %v3144_v22  ;;  %3809 = vmatprep.subr.mxu0 %v3151_v23 }
  0x5d   : > { %3837 = vmatprep.subr.mxu1 %v3143_v24  ;;  %3768 = vmatprep.mubr.msk.f32.mxu0 %vm263_vm0, %v4435_v63  ;;  %v3199_v63 = vld [vmem:[%s5356_s1 + $0x300] sm:$0xff] }
  0x5e   : > { %3796 = vmatprep.mubr.msk.f32.mxu1 %vm263_vm0, %v4459_v7  ;;  %3810 = vmatpush3.msra.mxu0 %v3151_v23 }
  0x5f   : > { %3838 = vmatpush3.msra.mxu1 %v3143_v24  ;;  %3769 = vmatmul.mubr.msk.f32.gmra.mxu0 %vm263_vm0, %v4457_v5 }
  0x60   : > { %3797 = vmatmul.mubr.msk.f32.gmra.mxu1 %vm263_vm0, %v996_v25  ;;  %3811 = vmatprep.subr.mxu0 %v3150_v26 }
  0x61   : > { %3839 = vmatprep.subr.mxu1 %v3142_v27  ;;  %3812 = vmatpush3.msra.mxu0 %v3150_v26 }
  0x62   : > { %3840 = vmatpush3.msra.mxu1 %v3142_v27  ;;  %3813 = vmatprep.subr.mxu0 %v3149_v28 }
  0x63   : > { %3841 = vmatprep.subr.mxu1 %v3141_v29  ;;  %3814 = vmatpush3.msra.mxu0 %v3149_v28 }
  0x64   : > { %3815 = vmatprep.mubr.msk.f32.mxu0 %vm263_vm0, %v1152_v30  ;;  %3842 = vmatpush3.msra.mxu1 %v3141_v29 }
  0x65   : > { %3843 = vmatprep.mubr.msk.f32.mxu1 %vm263_vm0, %v1151_v31  ;;  %3816 = vmatmul.mubr.msk.f32.vlgmr.msra.gmra.mxu0 %vm263_vm0, %v1153_v32 }
  0x66   : > { %3844 = vmatmul.mubr.msk.f32.vlgmr.msra.gmra.mxu1 %vm263_vm0, %v1152_v30  ;;  %3855 = vmatprep.subr.mxu0 %v3180_v33 }
  0x67   : > { %3818 = vmatprep.mubr.msk.f32.mxu0 %vm263_vm0, %v1154_v34  ;;  %3856 = vmatpush3.msra.mxu0 %v3180_v33 }
  0x68   : > { %3846 = vmatprep.mubr.msk.f32.mxu1 %vm263_vm0, %v1153_v32  ;;  %3857 = vmatprep.subr.mxu0 %v3179_v35 }
  0x69   : > { %3858 = vmatpush3.msra.mxu0 %v3179_v35  ;;  %3883 = vmatprep.subr.mxu1 %v3206_v49 }
  0x6a   : > { %3847 = vmatmul.mubr.msk.f32.gmra.mxu1 %vm263_vm0, %v1154_v34  ;;  %3819 = vmatmul.mubr.msk.f32.gmra.mxu0 %vm263_vm0, %v1155_v36 }
  0x6b   : > { %3859 = vmatprep.subr.mxu0 %v3178_v37  ;;  %3821 = vmatprep.mubr.msk.f32.mxu0 %vm263_vm0, %v1156_v38 }
  0x6c   : > { %3860 = vmatpush3.msra.mxu0 %v3178_v37  ;;  %3849 = vmatprep.mubr.msk.f32.mxu1 %vm263_vm0, %v1155_v36 }
  0x6d   : > { %3861 = vmatprep.subr.mxu0 %v3177_v39  ;;  %3884 = vmatpush3.msra.mxu1 %v3206_v49 }
  0x6e   : > { %3862 = vmatpush3.msra.mxu0 %v3177_v39  ;;  %3850 = vmatmul.mubr.msk.f32.gmra.mxu1 %vm263_vm0, %v1156_v38 }
  0x6f   : > { %3822 = vmatmul.mubr.msk.f32.gmra.mxu0 %vm263_vm0, %v1157_v40  ;;  %3863 = vmatprep.subr.mxu0 %v3176_v41 }
  0x70   : > { %3864 = vmatpush3.msra.mxu0 %v3176_v41  ;;  %3824 = vmatprep.mubr.msk.f32.mxu0 %vm263_vm0, %v1158_v42 }
  0x71   : > { %3865 = vmatprep.subr.mxu0 %v3175_v43  ;;  %3852 = vmatprep.mubr.msk.f32.mxu1 %vm263_vm0, %v1157_v40 }
  0x72   : > { %3866 = vmatpush3.msra.mxu0 %v3175_v43  ;;  %3853 = vmatmul.mubr.msk.f32.gmra.mxu1 %vm263_vm0, %v1158_v42 }
  0x73   : > { %3825 = vmatmul.mubr.msk.f32.gmra.mxu0 %vm263_vm0, %v1168_v44  ;;  %3867 = vmatprep.subr.mxu0 %v3174_v45 }
  0x74   : > { %3868 = vmatpush3.msra.mxu0 %v3174_v45  ;;  %3871 = vmatprep.mubr.msk.f32.mxu0 %vm263_vm0, %v1153_v32 }
  0x75   : > { %3869 = vmatprep.subr.mxu0 %v3173_v46  ;;  %3885 = vmatprep.subr.mxu1 %v3205_v51 }
  0x76   : > { %3870 = vmatpush3.msra.mxu0 %v3173_v46  ;;  %3886 = vmatpush3.msra.mxu1 %v3205_v51 }
  0x77   : > { %3872 = vmatmul.mubr.msk.f32.vlgmr.msra.gmra.mxu0 %vm263_vm0, %v1154_v34  ;;  %3911 = vmatprep.subr.mxu0 %v3198_v48 }
  0x78   : > { %3874 = vmatprep.mubr.msk.f32.mxu0 %vm263_vm0, %v1155_v36  ;;  %3912 = vmatpush3.msra.mxu0 %v3198_v48 }
  0x79   : > { %3913 = vmatprep.subr.mxu0 %v3197_v50  ;;  %3887 = vmatprep.subr.mxu1 %v3204_v53 }
  0x7a   : > { %3914 = vmatpush3.msra.mxu0 %v3197_v50  ;;  %3888 = vmatpush3.msra.mxu1 %v3204_v53 }
  0x7b   : > { %3875 = vmatmul.mubr.msk.f32.gmra.mxu0 %vm263_vm0, %v1156_v38  ;;  %3915 = vmatprep.subr.mxu0 %v3196_v52 }
  0x7c   : > { %3877 = vmatprep.mubr.msk.f32.mxu0 %vm263_vm0, %v1157_v40  ;;  %3916 = vmatpush3.msra.mxu0 %v3196_v52 }
  0x7d   : > { %3917 = vmatprep.subr.mxu0 %v3195_v54  ;;  %3889 = vmatprep.subr.mxu1 %v3203_v55 }
  0x7e   : > { %3918 = vmatpush3.msra.mxu0 %v3195_v54  ;;  %3890 = vmatpush3.msra.mxu1 %v3203_v55 }
  0x7f   : > { %3878 = vmatmul.mubr.msk.f32.gmra.mxu0 %vm263_vm0, %v1158_v42  ;;  %3919 = vmatprep.subr.mxu0 %v3194_v56 }
  0x80   : > { %3880 = vmatprep.mubr.msk.f32.mxu0 %vm263_vm0, %v1168_v44  ;;  %3891 = vmatprep.subr.mxu1 %v3202_v57  ;;  %v198_v44 = vlaneseq }
  0x81   : > { %3920 = vmatpush3.msra.mxu0 %v3194_v56  ;;  %3892 = vmatpush3.msra.mxu1 %v3202_v57 }
  0x82   : > { %3921 = vmatprep.subr.mxu0 %v3193_v58  ;;  %3893 = vmatprep.subr.mxu1 %v3201_v59 }
  0x83   : > { %3881 = vmatmul.mubr.msk.f32.gmra.mxu0 %vm263_vm0, %v1422_v47  ;;  %3894 = vmatpush3.msra.mxu1 %v3201_v59  ;;  %v199_v47 = vshrl.u32 %v198_v44, 7 }
  0x84   : > { %3922 = vmatpush3.msra.mxu0 %v3193_v58  ;;  %3895 = vmatprep.subr.mxu1 %v3200_v61 }
  0x85   : > { %3923 = vmatprep.subr.mxu0 %v3192_v60  ;;  %3896 = vmatpush3.msra.mxu1 %v3200_v61  ;;  %v200_v50 = vadd.s32 8, %v199_v47  ;;  %v202_v53 = vadd.s32 24, %v199_v47  ;;  %v201_v54 = vadd.s32 16, %v199_v47  ;;  %v204_v55 = vadd.s32 40, %v199_v47 }
  0x86   : > { %3924 = vmatpush3.msra.mxu0 %v3192_v60  ;;  %3897 = vmatprep.subr.mxu1 %v3199_v63  ;;  %v203_v59 = vadd.s32 32, %v199_v47  ;;  %v206_v60 = vadd.s32 56, %v199_v47  ;;  %v205_v61 = vadd.s32 48, %v199_v47 }
  0x87   : > { %3925 = vmatprep.subr.mxu0 %v3191_v62  ;;  %3927 = vmatprep.mubr.msk.f32.mxu0 %vm263_vm0, %v1631_v0  ;;  %v208_v58 = vand.u32 7, %v200_v50  ;;  %v209_v0 = vand.u32 7, %v201_v54  ;;  %v212_v44 = vand.u32 7, %v204_v55  ;;  %v5391_v50 = vmov 0.0  }
  0x88   : > { %3926 = vmatpush3.msra.mxu0 %v3191_v62  ;;  %3898 = vmatpush3.msra.mxu1 %v3199_v63  ;;  %v207_v62 = vand.u32 7, %v199_v47  ;;  %v210_v63 = vand.u32 7, %v202_v53 }
  0x89   : > { %3967 = vmatprep.subr.mxu0 %v4657_v1  ;;  %3939 = vmatprep.subr.mxu1 %v4663_v2  ;;  %vm216_vm1 = vcmp.ne.s32.totalorder %v208_v58, 0  ;;  %v211_v1 = vand.u32 7, %v203_v59  ;;  %vm217_vm4 = vcmp.ne.s32.totalorder %v209_v0, 0  ;;  %vm220_vm5 = vcmp.ne.s32.totalorder %v212_v44, 0 }
  0x8a   : > { %vm215_vm2 = vcmp.ne.s32.totalorder %v207_v62, 0  ;;  %vm218_vm3 = vcmp.ne.s32.totalorder %v210_v63, 0  ;;  %vm240_vm9 = vcmp.ne.s32.totalorder %v208_v58, 7  ;;  %vm239_vm10 = vcmp.ne.s32.totalorder %v207_v62, 7 }
  0x8b   : > { %v4775_v47 = vsel %vm215_vm2, 1.0, %v5391_v50  ;;  %vm219_vm6 = vcmp.ne.s32.totalorder %v211_v1, 0  ;;  %vm242_vm11 = vcmp.ne.s32.totalorder %v210_v63, 7  ;;  %vm241_vm12 = vcmp.ne.s32.totalorder %v209_v0, 7 }
  0x8c   : > { %5392 = vst [vmem:[#allocation14_spill] sm:$0xff] %v4775_v47  ;;  %v4782_v55 = vsel %vm218_vm3, 1.0, %v5391_v50  ;;  %v4785_v59 = vsel %vm217_vm4, 1.0, %v5391_v50  ;;  %vm244_vm13 = vcmp.ne.s32.totalorder %v212_v44, 7  ;;  %vm243_vm14 = vcmp.ne.s32.totalorder %v211_v1, 7 }
  0x8d   : > { %5393 = vst [vmem:[#allocation15_spill] sm:$0xff] %v4782_v55  ;;  %5394 = vst [vmem:[#allocation16_spill] sm:$0xff] %v4785_v59  ;;  %v4804_v0 = vsel %vm240_vm9, 1.0, %v5391_v50  ;;  %v4810_v44 = vsel %vm242_vm11, 1.0, %v5391_v50 }
  0x8e   : > { %5401 = vst [vmem:[#allocation23_spill] sm:$0xff] %v4804_v0  ;;  %5403 = vst [vmem:[#allocation25_spill] sm:$0xff] %v4810_v44 }
  0xdd   : > { %v4667_v3 = vpop.f32.mrf.mxu0 }
  0xde   : > { %v4669_v5 = vpop.f32.mrf.mxu1 }
  0xdf   : > { %v4671_v6 = vpop.f32.mrf.mxu0 }
  0xe0   : > { %v4673_v7 = vpop.f32.mrf.mxu1 }
  0xe1   : > { %v517_v1 = vadd.f32 %v4673_v7, %v4671_v6 }
  0xe3   : > { %v4675_v8 = vpop.f32.mrf.mxu0 }
  0xe4   : > { %v4677_v9 = vpop.f32.mrf.mxu1 }
  0xe5   : > { %v4679_v10 = vpop.f32.mrf.mxu0 }
  0xe6   : > { %v4681_v11 = vpop.f32.mrf.mxu1 }
  0xe7   : > { %v527_v44 = vadd.f32 %v4681_v11, %v4679_v10 }
  0xe9   : > { %v4683_v12 = vpop.f32.mrf.mxu0 }
  0xea   : > { %v4685_v13 = vpop.f32.mrf.mxu1 }
  0xeb   : > { %v4687_v14 = vpop.f32.mrf.mxu0 }
  0xec   : > { %v4689_v15 = vpop.f32.mrf.mxu1 }
  0xef   : > { %v4691_v16 = vpop.f32.mrf.mxu0 }
  0xf0   : > { %v4693_v17 = vpop.f32.mrf.mxu1 }
  0xf1   : > { %v4695_v18 = vpop.f32.mrf.mxu0 }
  0xf2   : > { %v4697_v19 = vpop.f32.mrf.mxu1 }
  0xf5   : > { %v4699_v20 = vpop.f32.mrf.mxu0 }
  0xf6   : > { %v4701_v21 = vpop.f32.mrf.mxu1 }
  0xf7   : > { %v4703_v22 = vpop.f32.mrf.mxu0 }
  0xf8   : > { %v4705_v23 = vpop.f32.mrf.mxu1  ;;  %v701_v6 = vadd.f32 %v4703_v22, %v517_v1 }
  0xfb   : > { %v4707_v24 = vpop.f32.mrf.mxu0 }
  0xfc   : > { %v4709_v25 = vpop.f32.mrf.mxu1 }
  0xfd   : > { %v4711_v26 = vpop.f32.mrf.mxu0 }
  0xfe   : > { %v4713_v27 = vpop.f32.mrf.mxu1 }
 0x101   : > { %v4715_v28 = vpop.f32.mrf.mxu0 }
 0x102   : > { %v4717_v29 = vpop.f32.mrf.mxu1 }
 0x103   : > { %v4719_v30 = vpop.f32.mrf.mxu0 }
 0x104   : > { %v4721_v31 = vpop.f32.mrf.mxu1 }
 0x105   : > { %5382 = vst [vmem:[#allocation5_spill] sm:$0xff] %v4721_v31 }
 0x107   : > { %v4723_v32 = vpop.f32.mrf.mxu0 }
 0x108   : > { %v4725_v33 = vpop.f32.mrf.mxu1 }
 0x109   : > { %5383 = vst [vmem:[#allocation6_spill] sm:$0xff] %v4725_v33  ;;  %v4727_v34 = vpop.f32.mrf.mxu0  ;;  %v4807_v33 = vsel %vm239_vm10, 1.0, %v5391_v50 }
 0x10a   : > { %v4729_v35 = vpop.f32.mrf.mxu1  ;;  %5402 = vst [vmem:[#allocation24_spill] sm:$0xff] %v4807_v33  ;;  %v532_v33 = vadd.f32 %v4677_v9, %v4675_v8  ;;  %v537_v8 = vadd.f32 %v4689_v15, %v4687_v14  ;;  %v547_v15 = vadd.f32 %v4697_v19, %v4695_v18 }
 0x10b   : > { %5384 = vst [vmem:[#allocation7_spill] sm:$0xff] %v4729_v35  ;;  %v213_v35 = vand.u32 7, %v205_v61 }
 0x10c   : > { %v704_v9 = vadd.f32 %v4707_v24, %v532_v33  ;;  %v705_v22 = vadd.f32 %v4719_v30, %v537_v8  ;;  %v5409_v1 = vld [vmem:[#allocation5_spill] sm:$0xff] }
 0x10d   : > { %v4731_v36 = vpop.f32.mrf.mxu0  ;;  %vm221_vm8 = vcmp.ne.s32.totalorder %v213_v35, 0 }
 0x10e   : > { %v4733_v37 = vpop.f32.mrf.mxu1  ;;  %v4799_v62 = vsel %vm221_vm8, 1.0, %v5391_v50  ;;  %v956_v7 = vadd.f32 %v4731_v36, %v4701_v21  ;;  %v712_v18 = vmul.f32 %v4782_v55, %v704_v9 }
 0x10f   : > { %v4735_v38 = vpop.f32.mrf.mxu0  ;;  %5399 = vst [vmem:[#allocation21_spill] sm:$0xff] %v4799_v62 }
 0x110   : > { %v4737_v39 = vpop.f32.mrf.mxu1  ;;  %v951_v10 = vadd.f32 %v4735_v38, %v4705_v23 }
 0x113   : > { %v4739_v40 = vpop.f32.mrf.mxu0 }
 0x114   : > { %v4741_v41 = vpop.f32.mrf.mxu1  ;;  %v966_v23 = vadd.f32 %v4739_v40, %v4709_v25  ;;  %v1135_v25 = vadd.f32 %v4737_v39, %v951_v10 }
 0x115   : > { %v4743_v42 = vpop.f32.mrf.mxu0 }
 0x116   : > { %v4745_v43 = vpop.f32.mrf.mxu1  ;;  %v961_v24 = vadd.f32 %v4743_v42, %v4713_v27  ;;  %v5413_v10 = vld [vmem:[#allocation21_spill] sm:$0xff] }
 0x118   : > { %v1137_v39 = vadd.f32 %v4745_v43, %v961_v24 }
 0x119   : > { %v4747_v45 = vpop.f32.mrf.mxu0 }
 0x11a   : > { %v4749_v46 = vpop.f32.mrf.mxu1  ;;  %v976_v27 = vadd.f32 %v4747_v45, %v4717_v29 }
 0x11b   : > { %v4751_v48 = vpop.f32.mrf.mxu0 }
 0x11c   : > { %5385 = vst [vmem:[#allocation8_spill] sm:$0xff] %v4751_v48  ;;  %v4753_v49 = vpop.f32.mrf.mxu1  ;;  %v522_v48 = vadd.f32 %v4669_v5, %v4667_v3  ;;  %v542_v3 = vadd.f32 %v4685_v13, %v4683_v12  ;;  %v552_v12 = vadd.f32 %v4693_v17, %v4691_v16  ;;  %v703_v13 = vadd.f32 %v4711_v26, %v527_v44 }
 0x11d   : > { %5386 = vst [vmem:[#allocation9_spill] sm:$0xff] %v4753_v49  ;;  %v4772_v49 = vsel %vm216_vm1, 1.0, %v5391_v50  ;;  %vm245_vm1 = vcmp.ne.s32.totalorder %v213_v35, 7  ;;  %v709_v26 = vmul.f32 %v4775_v47, %v701_v6  ;;  %v1140_v44 = vadd.f32 %v4749_v46, %v976_v27 }
 0x11e   : > { %v702_v5 = vadd.f32 %v4699_v20, %v522_v48  ;;  %v706_v20 = vadd.f32 %v4715_v28, %v542_v3  ;;  %v4852_v14 = vsel %vm245_vm1, 1.0, %v5391_v50  ;;  %v1136_v28 = vadd.f32 %v4733_v37, %v956_v7  ;;  %v5412_v7 = vld [vmem:[#allocation24_spill] sm:$0xff] }
 0x11f   : > { %v4755_v51 = vpop.f32.mrf.mxu0  ;;  %5408 = vst [vmem:[#allocation30_spill] sm:$0xff] %v4852_v14  ;;  %v708_v19 = vadd.f32 %v4723_v32, %v552_v12  ;;  %v711_v36 = vmul.f32 %v4785_v59, %v703_v13  ;;  %v1138_v32 = vadd.f32 %v4741_v41, %v966_v23  ;;  %v4891_v41 = vld [vmem:[%s5357_s2] ss:$0 sm:$0xff] }
 0x120   : > { %5387 = vst [vmem:[#allocation10_spill] sm:$0xff] %v4755_v51  ;;  %v4757_v52 = vpop.f32.mrf.mxu1  ;;  %v4793_v51 = vsel %vm219_vm6, 1.0, %v5391_v50  ;;  %v710_v17 = vmul.f32 %v4772_v49, %v702_v5  ;;  %v4901_v23 = vld [vmem:[%s5358_s3] ss:$0 sm:$0xff] }
 0x121   : > { %5388 = vst [vmem:[#allocation11_spill] sm:$0xff] %v4757_v52  ;;  %v4759_v56 = vpop.f32.mrf.mxu0  ;;  %v214_v52 = vand.u32 7, %v206_v60  ;;  %v4788_v60 = vsel %vm220_vm5, 1.0, %v5391_v50  ;;  %5397 = vst [vmem:[#allocation19_spill] sm:$0xff] %v4793_v51  ;;  %v1146_v13 = vadd.f32 %v1138_v32, %v712_v18  ;;  %v1145_v46 = vadd.f32 %v1137_v39, %v711_v36  ;;  %v5418_v18 = vld [vmem:[#allocation7_spill] sm:$0xff] }
 0x122   : > { %5389 = vst [vmem:[#allocation12_spill] sm:$0xff] %v4759_v56  ;;  %v4761_v57 = vpop.f32.mrf.mxu1  ;;  %5395 = vst [vmem:[#allocation17_spill] sm:$0xff] %v4788_v60  ;;  %v714_v38 = vmul.f32 %v4788_v60, %v706_v20  ;;  %v1144_v29 = vadd.f32 %v1136_v28, %v710_v17  ;;  %v5414_v20 = vld [vmem:[#allocation6_spill] sm:$0xff] }
 0x123   : > { %5390 = vst [vmem:[#allocation13_spill] sm:$0xff] %v4761_v57  ;;  %vm222_vm7 = vcmp.ne.s32.totalorder %v214_v52, 0  ;;  %vm246_vm15 = vcmp.ne.s32.totalorder %v214_v52, 7  ;;  %v5410_v3 = vld [vmem:[#allocation8_spill] sm:$0xff] }
 0x124   : > { %v4796_v58 = vsel %vm222_vm7, 1.0, %v5391_v50  ;;  %v4845_v35 = vsel %vm246_vm15, 1.0, %v5391_v50 }
 0x125   : > { %v4763_v4 = vpop.f32.mrf.mxu0  ;;  %5398 = vst [vmem:[#allocation20_spill] sm:$0xff] %v4796_v58  ;;  %5407 = vst [vmem:[#allocation29_spill] sm:$0xff] %v4845_v35 }
 0x126   : > { %v4765_v2 = vpop.f32.mrf.mxu1 }
 0x127   : > { %v4767_v56 = vpop.f32.mrf.mxu0  ;;  %v1382_v33 = vadd.f32 %v4765_v2, %v4763_v4  ;;  %v713_v4 = vmul.f32 %v4793_v51, %v705_v22  ;;  %v707_v2 = vadd.f32 %v4727_v34, %v547_v15  ;;  %v971_v34 = vadd.f32 %v5410_v3, %v5409_v1  ;;  %v5415_v15 = vld [vmem:[#allocation10_spill] sm:$0xff] }
 0x128   : > { %v4769_v57 = vpop.f32.mrf.mxu1  ;;  %v986_v22 = vadd.f32 %v5415_v15, %v5414_v20 }
 0x129   : > { %v1377_v37 = vadd.f32 %v4769_v57, %v4767_v56  ;;  %v716_v56 = vmul.f32 %v4796_v58, %v708_v19  ;;  %v1143_v57 = vadd.f32 %v1135_v25, %v709_v26  ;;  %v715_v12 = vmul.f32 %v5413_v10, %v707_v2  ;;  %v5416_v26 = vld [vmem:[#allocation25_spill] sm:$0xff] }
 0x12a   : > { %v4777_v53 = vpop.f32.mrf.mxu0  ;;  %v4779_v54 = vpop.f32.mrf.mxu1  ;;  %v1148_v19 = vadd.f32 %v1140_v44, %v714_v38  ;;  %v5417_v25 = vld [vmem:[#allocation9_spill] sm:$0xff] }
 0x12b   : > { %v1392_v45 = vadd.f32 %v4779_v54, %v4777_v53  ;;  %v1139_v27 = vadd.f32 %v5417_v25, %v971_v34 }
 0x12c   : > { %v4790_v61 = vpop.f32.mrf.mxu0  ;;  %v1386_v62 = vpop.f32.mrf.mxu1 }
 0x12d   : > { %5396 = vst [vmem:[#allocation18_spill] sm:$0xff] %v4790_v61  ;;  %v4813_v61 = vsel %vm241_vm12, 1.0, %v5391_v50  ;;  %v1147_v15 = vadd.f32 %v1139_v27, %v713_v4 }
 0x12e   : > { %5404 = vst [vmem:[#allocation26_spill] sm:$0xff] %v4813_v61  ;;  %v4829_v61 = vsel %vm243_vm14, 1.0, %v5391_v50  ;;  %v3851_v21 = vpop.f32.mrf.mxu1 }
 0x12f   : > { %v4801_v63 = vpop.f32.mrf.mxu0  ;;  %5406 = vst [vmem:[#allocation28_spill] sm:$0xff] %v4829_v61 }
 0x130   : > { %5400 = vst [vmem:[#allocation22_spill] sm:$0xff] %v4801_v63  ;;  %v4820_v63 = vsel %vm244_vm13, 1.0, %v5391_v50  ;;  %v1396_v40 = vpop.f32.mrf.mxu1 }
 0x131   : > { %5405 = vst [vmem:[#allocation27_spill] sm:$0xff] %v4820_v63  ;;  %v4826_v31 = vpop.f32.mrf.mxu0 }
 0x132   : > { %v3854_v53 = vpop.f32.mrf.mxu1  ;;  %v1397_v38 = vadd.f32 %v1396_v40, %v4826_v31 }
 0x133   : > { %v4842_v11 = vpop.f32.mrf.mxu0 }
 0x134   : > { %v5411_v5 = vld [vmem:[#allocation18_spill] sm:$0xff]  ;;  %v1406_v32 = vpop.f32.mrf.mxu1  ;;  %v1412_v44 = vadd.f32 %v3854_v53, %v4842_v11 }
 0x135   : > { %v4861_v16 = vpop.f32.mrf.mxu0  ;;  %v1387_v6 = vadd.f32 %v1386_v62, %v5411_v5 }
 0x137   : > { %v3873_v30 = vpop.f32.mrf.mxu0 }
 0x138   : > { %v1562_v42 = vadd.f32 %v3873_v30, %v1382_v33  ;;  %v5419_v30 = vld [vmem:[#allocation12_spill] sm:$0xff] }
 0x139   : > { %v1522_v48 = vpop.f32.mrf.mxu0  ;;  %v981_v36 = vadd.f32 %v5419_v30, %v5418_v18 }
 0x13a   : > { %v1570_v52 = vmul.f32 %v4804_v0, %v1562_v42  ;;  %v1561_v50 = vadd.f32 %v1522_v48, %v1377_v37  ;;  %v5420_v37 = vld [vmem:[#allocation22_spill] sm:$0xff] }
 0x13b   : > { %v3876_v43 = vpop.f32.mrf.mxu0  ;;  %v1402_v42 = vadd.f32 %v3851_v21, %v5420_v37 }
 0x13c   : > { %v1578_v54 = vadd.f32 %v1570_v52, %v1144_v29  ;;  %v1569_v8 = vmul.f32 %v5412_v7, %v1561_v50  ;;  %v1564_v9 = vadd.f32 %v3876_v43, %v1392_v45  ;;  %v5421_v45 = vld [vmem:[#allocation26_spill] sm:$0xff]  ;;  %v5422_v50 = vld [vmem:[#allocation11_spill] sm:$0xff] }
 0x13d   : > { %v1532_v24 = vpop.f32.mrf.mxu0 }
 0x13e   : > { %v1593_v62 = vmul.f32 %v4891_v41, %v1578_v54  ;;  %v1577_v17 = vadd.f32 %v1569_v8, %v1143_v57  ;;  %v1572_v28 = vmul.f32 %v5416_v26, %v1564_v9  ;;  %v1563_v33 = vadd.f32 %v1532_v24, %v1387_v6  ;;  %v5423_v6 = vld [vmem:[#allocation13_spill] sm:$0xff] }
 0x13f   : > { %v3879_v2 = vpop.f32.mrf.mxu0  ;;  %v1142_v57 = vadd.f32 %v5422_v50, %v986_v22  ;;  %v1141_v54 = vadd.f32 %v5423_v6, %v981_v36  ;;  %v1407_v8 = vadd.f32 %v1406_v32, %v4861_v16  ;;  %v3227_v6 = vld [vmem:[%s5356_s1 + $0x3e0] sm:$0xff] }
 0x140   : > { %v1608_v39 = vadd.f32 %v4901_v23, %v1593_v62  ;;  %v1592_v48 = vmul.f32 %v4891_v41, %v1577_v17  ;;  %v1580_v29 = vadd.f32 %v1572_v28, %v1146_v13  ;;  %v1571_v52 = vmul.f32 %v5421_v45, %v1563_v33 }
 0x141   : > { %v1566_v1 = vadd.f32 %v3879_v2, %v1402_v42  ;;  %v1542_v3 = vpop.f32.mrf.mxu0  ;;  %v1150_v22 = vadd.f32 %v1142_v57, %v716_v56  ;;  %v1149_v30 = vadd.f32 %v1141_v54, %v715_v12 }
 0x142   : > { %v1616_v34 = vmax.f32 %v1608_v39, 0.0  ;;  %v1607_v21 = vadd.f32 %v4901_v23, %v1592_v48  ;;  %v1595_v43 = vmul.f32 %v4891_v41, %v1580_v29  ;;  %v1579_v5 = vadd.f32 %v1571_v52, %v1145_v46 }
 0x143   : > { %v1574_v9 = vmul.f32 %v4820_v63, %v1566_v1  ;;  %v1565_v13 = vadd.f32 %v1542_v3, %v1397_v38  ;;  %v3882_v20 = vpop.f32.mrf.mxu0  ;;  %v3253_v38 = vld [vmem:[%s5356_s1 + $0x370] sm:$0xff]  ;;  %v5425_v1 = vld [vmem:[#allocation4_spill] sm:$0xff] }
 0x144   : > { %1624 = vst.msk [vmem:[#allocation2 + $0x18] sm:$0xff] %vm263_vm0, %v1616_v34  ;;  %v1615_v31 = vmax.f32 %v1607_v21, 0.0  ;;  %v1610_v11 = vadd.f32 %v4901_v23, %v1595_v43  ;;  %v1594_v40 = vmul.f32 %v4891_v41, %v1579_v5  ;;  %v1568_v53 = vadd.f32 %v3882_v20, %v1412_v44  ;;  %v5424_v44 = vld [vmem:[#allocation3_spill] sm:$0xff]  ;;  %v3252_v34 = vld [vmem:[%s5356_s1 + $0x368] sm:$0xff]  ;;  %v3249_v20 = vld [vmem:[%s5356_s1 + $0x350] sm:$0xff] }
 0x145   : > { %v1582_v24 = vadd.f32 %v1574_v9, %v1148_v19  ;;  %v1573_v46 = vmul.f32 %v4829_v61, %v1565_v13  ;;  %v1552_v62 = vpop.f32.mrf.mxu0  ;;  %v3228_v43 = vld [vmem:[%s5356_s1 + $0x3e8] sm:$0xff]  ;;  %v3251_v5 = vld [vmem:[%s5356_s1 + $0x360] sm:$0xff]  ;;  %v3226_v13 = vld [vmem:[%s5356_s1 + $0x3d8] sm:$0xff] }
 0x146   : > { %1623 = vst.msk [vmem:[#allocation2 + $0x10] sm:$0xff] %vm263_vm0, %v1615_v31  ;;  %v1618_v16 = vmax.f32 %v1610_v11, 0.0  ;;  %v1609_v17 = vadd.f32 %v4901_v23, %v1594_v40  ;;  %v1576_v28 = vmul.f32 %v4845_v35, %v1568_v53  ;;  %v1567_v33 = vadd.f32 %v1552_v62, %v1407_v8  ;;  %v3250_v8 = vld [vmem:[%s5356_s1 + $0x358] sm:$0xff]  ;;  %v3225_v31 = vld [vmem:[%s5356_s1 + $0x3d0] sm:$0xff]  ;;  %v3248_v40 = vld [vmem:[%s5356_s1 + $0x348] sm:$0xff] }
 0x147   : > { %v1597_v25 = vmul.f32 %v4891_v41, %v1582_v24  ;;  %v1581_v18 = vadd.f32 %v1573_v46, %v1147_v15  ;;  %v3224_v15 = vld [vmem:[%s5356_s1 + $0x3c8] sm:$0xff]  ;;  %v3223_v46 = vld [vmem:[%s5356_s1 + $0x3c0] sm:$0xff]  ;;  %v3278_v62 = vld [vmem:[%s5356_s1 + $0x438] sm:$0xff] }
 0x148   : > { %1626 = vst.msk [vmem:[#allocation2 + $0x28] sm:$0xff] %vm263_vm0, %v1618_v16  ;;  %v1617_v4 = vmax.f32 %v1609_v17, 0.0  ;;  %v1584_v56 = vadd.f32 %v1576_v28, %v1150_v22  ;;  %v1575_v19 = vmul.f32 %v4852_v14, %v1567_v33  ;;  %v3247_v22 = vld [vmem:[%s5356_s1 + $0x340] sm:$0xff]  ;;  %v3246_v17 = vld [vmem:[%s5356_s1 + $0x2b8] sm:$0xff]  ;;  %v3277_v33 = vld [vmem:[%s5356_s1 + $0x430] sm:$0xff] }
 0x149   : > { %v1612_v27 = vadd.f32 %v4901_v23, %v1597_v25  ;;  %v1596_v36 = vmul.f32 %v4891_v41, %v1581_v18  ;;  %v3245_v25 = vld [vmem:[%s5356_s1 + $0x2b0] sm:$0xff]  ;;  %v3276_v18 = vld [vmem:[%s5356_s1 + $0x428] sm:$0xff] }
 0x14a   : > { %1625 = vst.msk [vmem:[#allocation2 + $0x20] sm:$0xff] %vm263_vm0, %v1617_v4  ;;  %v1599_v37 = vmul.f32 %v4891_v41, %v1584_v56  ;;  %v1583_v42 = vadd.f32 %v1575_v19, %v1149_v30  ;;  %v3244_v4 = vld [vmem:[%s5356_s1 + $0x2a8] sm:$0xff]  ;;  %v3275_v19 = vld [vmem:[%s5356_s1 + $0x420] sm:$0xff] }
 0x14b   : > { %v1620_v2 = vmax.f32 %v1612_v27, 0.0  ;;  %v1611_v32 = vadd.f32 %v4901_v23, %v1596_v36  ;;  %v5037_v16 = vld [vmem:[#allocation2 + $0x18] sm:$0xff]  ;;  %v3243_v27 = vld [vmem:[%s5356_s1 + $0x2a0] sm:$0xff] }
 0x14c   : > { %v1614_v12 = vadd.f32 %v4901_v23, %v1599_v37  ;;  %v1598_v39 = vmul.f32 %v4891_v41, %v1583_v42  ;;  %v3229_v41 = vld [vmem:[%s5356_s1 + $0x3f0] sm:$0xff]  ;;  %v3274_v36 = vld [vmem:[%s5356_s1 + $0x418] sm:$0xff] }
 0x14d   : > { %1628 = vst.msk [vmem:[#allocation2 + $0x38] sm:$0xff] %vm263_vm0, %v1620_v2  ;;  %v1619_v48 = vmax.f32 %v1611_v32, 0.0  ;;  %v1632_v29 = vld [vmem:[#allocation2 + $0xf] sm:$0xff]  ;;  %v4938_v52 = vld [vmem:[#allocation2 + $0x17] sm:$0xff] }
 0x14e   : > { %v1622_v50 = vmax.f32 %v1614_v12, 0.0  ;;  %v1613_v57 = vadd.f32 %v4901_v23, %v1598_v39  ;;  %3899 = vmatprep.mubr.msk.f32.mxu1 %vm263_vm0, %v1632_v29  ;;  %3928 = vmatmul.mubr.msk.f32.vlgmr.msra.gmra.mxu0 %vm263_vm0, %v1632_v29  ;;  %v5025_v24 = vld [vmem:[#allocation2 + $0x10] sm:$0xff]  ;;  %v3242_v42 = vld [vmem:[%s5356_s1 + $0x298] sm:$0xff]  ;;  %v3272_v39 = vld [vmem:[%s5356_s1 + $0x408] sm:$0xff] }
 0x14f   : > { %1627 = vst.msk [vmem:[#allocation2 + $0x30] sm:$0xff] %vm263_vm0, %v1619_v48  ;;  %3900 = vmatmul.mubr.msk.f32.vlgmr.msra.gmra.mxu1 %vm263_vm0, %v4938_v52  ;;  %3930 = vmatprep.mubr.msk.f32.mxu0 %vm263_vm0, %v4938_v52  ;;  %v5061_v30 = vld [vmem:[#allocation2 + $0x28] sm:$0xff]  ;;  %v3273_v32 = vld [vmem:[%s5356_s1 + $0x410] sm:$0xff] }
 0x150   : > { %1630 = vst.msk [vmem:[#allocation2 + $0x48] sm:$0xff] %vm263_vm0, %v1622_v50  ;;  %v1621_v23 = vmax.f32 %v1613_v57, 0.0  ;;  %3968 = vmatpush3.msra.mxu0 %v5424_v44  ;;  %3940 = vmatpush3.msra.mxu1 %v5425_v1  ;;  %v3241_v12 = vld [vmem:[%s5356_s1 + $0x290] sm:$0xff]  ;;  %v3240_v29 = vld [vmem:[%s5356_s1 + $0x288] sm:$0xff]  ;;  %v3271_v50 = vld [vmem:[%s5356_s1 + $0x400] sm:$0xff] }
 0x151   : > { %3969 = vmatprep.subr.mxu0 %v3253_v38  ;;  %3941 = vmatprep.subr.mxu1 %v3229_v41  ;;  %v4957_v3 = vld [vmem:[#allocation2 + $0x1f] sm:$0xff]  ;;  %v4962_v21 = vld [vmem:[#allocation2 + $0x27] sm:$0xff]  ;;  %v3293_v44 = vld [vmem:[%s5356_s1 + $0x2f0] sm:$0xff] }
 0x152   : > { %1629 = vst.msk [vmem:[#allocation2 + $0x40] sm:$0xff] %vm263_vm0, %v1621_v23  ;;  %3970 = vmatpush3.msra.mxu0 %v3253_v38  ;;  %3902 = vmatprep.mubr.msk.f32.mxu1 %vm263_vm0, %v4957_v3  ;;  %v5046_v28 = vld [vmem:[#allocation2 + $0x20] sm:$0xff]  ;;  %v2065_v38 = vld [vmem:[#allocation2 + $0x8] sm:$0xff]  ;;  %v3302_v23 = vld [vmem:[%s5356_s1 + $0x3b8] sm:$0xff] }
 0x153   : > { %3931 = vmatmul.mubr.msk.f32.gmra.mxu0 %vm263_vm0, %v4957_v3  ;;  %3942 = vmatpush3.msra.mxu1 %v3229_v41  ;;  %v3239_v57 = vld [vmem:[%s5356_s1 + $0x280] sm:$0xff]  ;;  %v3294_v41 = vld [vmem:[%s5356_s1 + $0x2f8] sm:$0xff]  ;;  %v3301_v1 = vld [vmem:[%s5356_s1 + $0x3b0] sm:$0xff] }
 0x154   : > { %3971 = vmatprep.subr.mxu0 %v3252_v34  ;;  %3903 = vmatmul.mubr.msk.f32.gmra.mxu1 %vm263_vm0, %v4962_v21  ;;  %v5085_v37 = vld [vmem:[#allocation2 + $0x38] sm:$0xff] }
 0x155   : > { %3933 = vmatprep.mubr.msk.f32.mxu0 %vm263_vm0, %v4962_v21  ;;  %3943 = vmatprep.subr.mxu1 %v3228_v43 }
 0x156   : > { %3972 = vmatpush3.msra.mxu0 %v3252_v34  ;;  %3944 = vmatpush3.msra.mxu1 %v3228_v43  ;;  %v4982_v54 = vld [vmem:[#allocation2 + $0x2f] sm:$0xff]  ;;  %v4987_v9 = vld [vmem:[#allocation2 + $0x37] sm:$0xff]  ;;  %v3299_v43 = vld [vmem:[%s5356_s1 + $0x3a0] sm:$0xff] }
 0x157   : > { %3973 = vmatprep.subr.mxu0 %v3251_v5  ;;  %3945 = vmatprep.subr.mxu1 %v3227_v6  ;;  %v5070_v56 = vld [vmem:[#allocation2 + $0x30] sm:$0xff]  ;;  %v2082_v48 = vld [vmem:[#allocation2 + $0x48] sm:$0xff] }
 0x158   : > { %3974 = vmatpush3.msra.mxu0 %v3251_v5  ;;  %3905 = vmatprep.mubr.msk.f32.mxu1 %vm263_vm0, %v4982_v54  ;;  %v3300_v34 = vld [vmem:[%s5356_s1 + $0x3a8] sm:$0xff]  ;;  %v3290_v5 = vld [vmem:[%s5356_s1 + $0x2d8] sm:$0xff] }
 0x159   : > { %3934 = vmatmul.mubr.msk.f32.gmra.mxu0 %vm263_vm0, %v4982_v54  ;;  %3946 = vmatpush3.msra.mxu1 %v3227_v6  ;;  %v5006_v11 = vld [vmem:[#allocation2 + $0x3f] sm:$0xff]  ;;  %v5011_v53 = vld [vmem:[#allocation2 + $0x47] sm:$0xff] }
 0x15a   : > { %3975 = vmatprep.subr.mxu0 %v3250_v8  ;;  %3906 = vmatmul.mubr.msk.f32.gmra.mxu1 %vm263_vm0, %v4987_v9  ;;  %v5094_v2 = vld [vmem:[#allocation2 + $0x40] sm:$0xff]  ;;  %v3298_v6 = vld [vmem:[%s5356_s1 + $0x398] sm:$0xff] }
 0x15b   : > { %3936 = vmatprep.mubr.msk.f32.mxu0 %vm263_vm0, %v4987_v9  ;;  %3947 = vmatprep.subr.mxu1 %v3226_v13 }
 0x15c   : > { %3976 = vmatpush3.msra.mxu0 %v3250_v8  ;;  %3948 = vmatpush3.msra.mxu1 %v3226_v13  ;;  %v3297_v8 = vld [vmem:[%s5356_s1 + $0x390] sm:$0xff]  ;;  %v3288_v13 = vld [vmem:[%s5356_s1 + $0x2c8] sm:$0xff] }
 0x15d   : > { %3977 = vmatprep.subr.mxu0 %v3249_v20  ;;  %3949 = vmatprep.subr.mxu1 %v3225_v31 }
 0x15e   : > { %3978 = vmatpush3.msra.mxu0 %v3249_v20  ;;  %3908 = vmatprep.mubr.msk.f32.mxu1 %vm263_vm0, %v5006_v11  ;;  %v3296_v20 = vld [vmem:[%s5356_s1 + $0x388] sm:$0xff] }
 0x15f   : > { %3937 = vmatmul.mubr.msk.f32.gmra.mxu0 %vm263_vm0, %v5006_v11  ;;  %3950 = vmatpush3.msra.mxu1 %v3225_v31  ;;  %v3287_v31 = vld [vmem:[%s5356_s1 + $0x2c0] sm:$0xff] }
 0x160   : > { %3979 = vmatprep.subr.mxu0 %v3248_v40  ;;  %3909 = vmatmul.mubr.msk.f32.gmra.mxu1 %vm263_vm0, %v5011_v53 }
 0x161   : > { %3951 = vmatprep.subr.mxu1 %v3224_v15  ;;  %3980 = vmatpush3.msra.mxu0 %v3248_v40  ;;  %v3295_v40 = vld [vmem:[%s5356_s1 + $0x380] sm:$0xff] }
 0x162   : > { %3983 = vmatprep.mubr.msk.f32.mxu0 %vm263_vm0, %v5025_v24  ;;  %3952 = vmatpush3.msra.mxu1 %v3224_v15  ;;  %v3326_v15 = vld [vmem:[%s5356_s1 + $0x478] sm:$0xff] }
 0x163   : > { %3955 = vmatprep.mubr.msk.f32.mxu1 %vm263_vm0, %v4938_v52  ;;  %3981 = vmatprep.subr.mxu0 %v3247_v22  ;;  %v1902_v52 = vld [vmem:[#allocation2 + $0x4f] sm:$0xff] }
 0x164   : > { %3953 = vmatprep.subr.mxu1 %v3223_v46  ;;  %3982 = vmatpush3.msra.mxu0 %v3247_v22  ;;  %v2493_v22 = vld [vmem:[#allocation2 + $0x19] sm:$0xff] }
 0x165   : > { %3954 = vmatpush3.msra.mxu1 %v3223_v46  ;;  %3984 = vmatmul.mubr.msk.f32.vlgmr.msra.gmra.mxu0 %vm263_vm0, %v5037_v16  ;;  %v3325_v46 = vld [vmem:[%s5356_s1 + $0x470] sm:$0xff] }
 0x166   : > { %4023 = vmatprep.subr.mxu0 %v3278_v62  ;;  %3956 = vmatmul.mubr.msk.f32.vlgmr.msra.gmra.mxu1 %vm263_vm0, %v4957_v3  ;;  %v3292_v3 = vld [vmem:[%s5356_s1 + $0x2e8] sm:$0xff] }
 0x167   : > { %3986 = vmatprep.mubr.msk.f32.mxu0 %vm263_vm0, %v5046_v28  ;;  %3995 = vmatprep.subr.mxu1 %v3246_v17 }
 0x168   : > { %4024 = vmatpush3.msra.mxu0 %v3278_v62  ;;  %3958 = vmatprep.mubr.msk.f32.mxu1 %vm263_vm0, %v4962_v21  ;;  %v3291_v21 = vld [vmem:[%s5356_s1 + $0x2e0] sm:$0xff]  ;;  %v3324_v62 = vld [vmem:[%s5356_s1 + $0x468] sm:$0xff] }
 0x169   : > { %3996 = vmatpush3.msra.mxu1 %v3246_v17  ;;  %4025 = vmatprep.subr.mxu0 %v3277_v33  ;;  %v3323_v17 = vld [vmem:[%s5356_s1 + $0x460] sm:$0xff] }
 0x16a   : > { %3997 = vmatprep.subr.mxu1 %v3245_v25  ;;  %4026 = vmatpush3.msra.mxu0 %v3277_v33  ;;  %v3322_v33 = vld [vmem:[%s5356_s1 + $0x458] sm:$0xff] }
 0x16b   : > { %3987 = vmatmul.mubr.msk.f32.gmra.mxu0 %vm263_vm0, %v5061_v30  ;;  %3998 = vmatpush3.msra.mxu1 %v3245_v25  ;;  %v2497_v25 = vld [vmem:[#allocation2 + $0x39] sm:$0xff] }
 0x16c   : > { %4027 = vmatprep.subr.mxu0 %v3276_v18  ;;  %3959 = vmatmul.mubr.msk.f32.gmra.mxu1 %vm263_vm0, %v4982_v54  ;;  %v3289_v54 = vld [vmem:[%s5356_s1 + $0x2d0] sm:$0xff] }
 0x16d   : > { %3989 = vmatprep.mubr.msk.f32.mxu0 %vm263_vm0, %v5070_v56  ;;  %3999 = vmatprep.subr.mxu1 %v3244_v4 }
 0x16e   : > { %4028 = vmatpush3.msra.mxu0 %v3276_v18  ;;  %3961 = vmatprep.mubr.msk.f32.mxu1 %vm263_vm0, %v4987_v9  ;;  %v2336_v9 = vld [vmem:[#allocation2 + $0x50] sm:$0xff] }
 0x16f   : > { %4000 = vmatpush3.msra.mxu1 %v3244_v4  ;;  %4029 = vmatprep.subr.mxu0 %v3275_v19  ;;  %v3321_v18 = vld [vmem:[%s5356_s1 + $0x450] sm:$0xff]  ;;  %v3320_v4 = vld [vmem:[%s5356_s1 + $0x448] sm:$0xff] }
 0x170   : > { %4001 = vmatprep.subr.mxu1 %v3243_v27  ;;  %4030 = vmatpush3.msra.mxu0 %v3275_v19  ;;  %v3319_v19 = vld [vmem:[%s5356_s1 + $0x440] sm:$0xff] }
 0x171   : > { %3990 = vmatmul.mubr.msk.f32.gmra.mxu0 %vm263_vm0, %v5085_v37  ;;  %4002 = vmatpush3.msra.mxu1 %v3243_v27  ;;  %v2762_v27 = vld [vmem:[#allocation2 + $0x51] sm:$0xff] }
 0x172   : > { %4031 = vmatprep.subr.mxu0 %v3274_v36  ;;  %3962 = vmatmul.mubr.msk.f32.gmra.mxu1 %vm263_vm0, %v5006_v11  ;;  %v2491_v11 = vld [vmem:[#allocation2 + $0x9] sm:$0xff] }
 0x173   : > { %3992 = vmatprep.mubr.msk.f32.mxu0 %vm263_vm0, %v5094_v2  ;;  %4003 = vmatprep.subr.mxu1 %v3242_v42 }
 0x174   : > { %4032 = vmatpush3.msra.mxu0 %v3274_v36  ;;  %3964 = vmatprep.mubr.msk.f32.mxu1 %vm263_vm0, %v5011_v53  ;;  %v2492_v53 = vld [vmem:[#allocation2 + $0x11] sm:$0xff] }
 0x175   : > { %4004 = vmatpush3.msra.mxu1 %v3242_v42  ;;  %4033 = vmatprep.subr.mxu0 %v3273_v32 }
 0x176   : > { %4005 = vmatprep.subr.mxu1 %v3241_v12  ;;  %4034 = vmatpush3.msra.mxu0 %v3273_v32 }
 0x177   : > { %3993 = vmatmul.mubr.msk.f32.gmra.mxu0 %vm263_vm0, %v2082_v48  ;;  %4006 = vmatpush3.msra.mxu1 %v3241_v12 }
 0x178   : > { %4035 = vmatprep.subr.mxu0 %v3272_v39  ;;  %3965 = vmatmul.mubr.msk.f32.gmra.mxu1 %vm263_vm0, %v1902_v52 }
 0x179   : > { %4007 = vmatprep.subr.mxu1 %v3240_v29  ;;  %4036 = vmatpush3.msra.mxu0 %v3272_v39 }
 0x17a   : > { %4039 = vmatprep.mubr.msk.f32.mxu0 %vm263_vm0, %v5037_v16  ;;  %4008 = vmatpush3.msra.mxu1 %v3240_v29 }
 0x17b   : > { %4037 = vmatprep.subr.mxu0 %v3271_v50  ;;  %4009 = vmatprep.subr.mxu1 %v3239_v57 }
 0x17c   : > { %4038 = vmatpush3.msra.mxu0 %v3271_v50  ;;  %4010 = vmatpush3.msra.mxu1 %v3239_v57 }
 0x17d   : > { %4011 = vmatprep.mubr.msk.f32.mxu1 %vm263_vm0, %v2065_v38  ;;  %4040 = vmatmul.mubr.msk.f32.vlgmr.msra.gmra.mxu0 %vm263_vm0, %v5046_v28 }
 0x17e   : > { %4079 = vmatprep.subr.mxu0 %v3294_v41  ;;  %4012 = vmatmul.mubr.msk.f32.vlgmr.msra.gmra.mxu1 %vm263_vm0, %v5025_v24  ;;  %v2494_v24 = vld [vmem:[#allocation2 + $0x21] sm:$0xff] }
 0x17f   : > { %4042 = vmatprep.mubr.msk.f32.mxu0 %vm263_vm0, %v5061_v30  ;;  %4051 = vmatprep.subr.mxu1 %v3302_v23 }
 0x180   : > { %4080 = vmatpush3.msra.mxu0 %v3294_v41  ;;  %4014 = vmatprep.mubr.msk.f32.mxu1 %vm263_vm0, %v5037_v16  ;;  %v2495_v16 = vld [vmem:[#allocation2 + $0x29] sm:$0xff] }
 0x181   : > { %4052 = vmatpush3.msra.mxu1 %v3302_v23  ;;  %4081 = vmatprep.subr.mxu0 %v3293_v44 }
 0x182   : > { %4053 = vmatprep.subr.mxu1 %v3301_v1  ;;  %4082 = vmatpush3.msra.mxu0 %v3293_v44 }
 0x183   : > { %4043 = vmatmul.mubr.msk.f32.gmra.mxu0 %vm263_vm0, %v5070_v56  ;;  %4054 = vmatpush3.msra.mxu1 %v3301_v1 }
 0x184   : > { %4083 = vmatprep.subr.mxu0 %v3292_v3  ;;  %4015 = vmatmul.mubr.msk.f32.gmra.mxu1 %vm263_vm0, %v5046_v28  ;;  %v2496_v28 = vld [vmem:[#allocation2 + $0x31] sm:$0xff] }
 0x185   : > { %4045 = vmatprep.mubr.msk.f32.mxu0 %vm263_vm0, %v5085_v37  ;;  %4055 = vmatprep.subr.mxu1 %v3300_v34 }
 0x186   : > { %4084 = vmatpush3.msra.mxu0 %v3292_v3  ;;  %4017 = vmatprep.mubr.msk.f32.mxu1 %vm263_vm0, %v5061_v30  ;;  %v2498_v30 = vld [vmem:[#allocation2 + $0x41] sm:$0xff] }
 0x187   : > { %4056 = vmatpush3.msra.mxu1 %v3300_v34  ;;  %4085 = vmatprep.subr.mxu0 %v3291_v21 }
 0x188   : > { %4057 = vmatprep.subr.mxu1 %v3299_v43  ;;  %4086 = vmatpush3.msra.mxu0 %v3291_v21 }
 0x189   : > { %4046 = vmatmul.mubr.msk.f32.gmra.mxu0 %vm263_vm0, %v5094_v2  ;;  %4058 = vmatpush3.msra.mxu1 %v3299_v43 }
 0x18a   : > { %4087 = vmatprep.subr.mxu0 %v3290_v5  ;;  %4018 = vmatmul.mubr.msk.f32.gmra.mxu1 %vm263_vm0, %v5070_v56  ;;  %v2508_v56 = vld [vmem:[#allocation2 + $0x49] sm:$0xff] }
 0x18b   : > { %4048 = vmatprep.mubr.msk.f32.mxu0 %vm263_vm0, %v2082_v48  ;;  %4059 = vmatprep.subr.mxu1 %v3298_v6 }
 0x18c   : > { %4088 = vmatpush3.msra.mxu0 %v3290_v5  ;;  %4020 = vmatprep.mubr.msk.f32.mxu1 %vm263_vm0, %v5085_v37 }
 0x18d   : > { %4060 = vmatpush3.msra.mxu1 %v3298_v6  ;;  %4089 = vmatprep.subr.mxu0 %v3289_v54 }
 0x18e   : > { %4061 = vmatprep.subr.mxu1 %v3297_v8  ;;  %4090 = vmatpush3.msra.mxu0 %v3289_v54 }
 0x18f   : > { %4049 = vmatmul.mubr.msk.f32.gmra.mxu0 %vm263_vm0, %v2336_v9  ;;  %4062 = vmatpush3.msra.mxu1 %v3297_v8 }
 0x190   : > { %4091 = vmatprep.subr.mxu0 %v3288_v13  ;;  %4021 = vmatmul.mubr.msk.f32.gmra.mxu1 %vm263_vm0, %v5094_v2 }
 0x191   : > { %4063 = vmatprep.subr.mxu1 %v3296_v20  ;;  %4092 = vmatpush3.msra.mxu0 %v3288_v13 }
 0x192   : > { %4095 = vmatprep.mubr.msk.f32.mxu0 %vm263_vm0, %v2491_v11  ;;  %4064 = vmatpush3.msra.mxu1 %v3296_v20 }
 0x193   : > { %4067 = vmatprep.mubr.msk.f32.mxu1 %vm263_vm0, %v2492_v53  ;;  %4093 = vmatprep.subr.mxu0 %v3287_v31 }
 0x194   : > { %4065 = vmatprep.subr.mxu1 %v3295_v40  ;;  %4094 = vmatpush3.msra.mxu0 %v3287_v31 }
 0x195   : > { %4066 = vmatpush3.msra.mxu1 %v3295_v40  ;;  %4096 = vmatmul.mubr.msk.f32.vlgmr.msra.gmra.mxu0 %vm263_vm0, %v2492_v53 }
 0x196   : > { %4068 = vmatmul.mubr.msk.f32.vlgmr.msra.gmra.mxu1 %vm263_vm0, %v2493_v22  ;;  %4098 = vmatprep.mubr.msk.f32.mxu0 %vm263_vm0, %v2493_v22 }
 0x197   : > { %4107 = vmatprep.subr.mxu1 %v3326_v15  ;;  %4070 = vmatprep.mubr.msk.f32.mxu1 %vm263_vm0, %v2494_v24 }
 0x198   : > { %4108 = vmatpush3.msra.mxu1 %v3326_v15 }
 0x199   : > { %4109 = vmatprep.subr.mxu1 %v3325_v46  ;;  %4099 = vmatmul.mubr.msk.f32.gmra.mxu0 %vm263_vm0, %v2494_v24 }
 0x19a   : > { %4110 = vmatpush3.msra.mxu1 %v3325_v46  ;;  %4101 = vmatprep.mubr.msk.f32.mxu0 %vm263_vm0, %v2495_v16 }
 0x19b   : > { %4071 = vmatmul.mubr.msk.f32.gmra.mxu1 %vm263_vm0, %v2495_v16  ;;  %4111 = vmatprep.subr.mxu1 %v3324_v62 }
 0x19c   : > { %4073 = vmatprep.mubr.msk.f32.mxu1 %vm263_vm0, %v2496_v28  ;;  %4112 = vmatpush3.msra.mxu1 %v3324_v62 }
 0x19d   : > { %4113 = vmatprep.subr.mxu1 %v3323_v17  ;;  %4102 = vmatmul.mubr.msk.f32.gmra.mxu0 %vm263_vm0, %v2496_v28 }
 0x19e   : > { %4114 = vmatpush3.msra.mxu1 %v3323_v17  ;;  %4104 = vmatprep.mubr.msk.f32.mxu0 %vm263_vm0, %v2497_v25 }
 0x19f   : > { %4074 = vmatmul.mubr.msk.f32.gmra.mxu1 %vm263_vm0, %v2497_v25  ;;  %4115 = vmatprep.subr.mxu1 %v3322_v33 }
 0x1a0   : > { %4076 = vmatprep.mubr.msk.f32.mxu1 %vm263_vm0, %v2498_v30  ;;  %4116 = vmatpush3.msra.mxu1 %v3322_v33 }
 0x1a1   : > { %4117 = vmatprep.subr.mxu1 %v3321_v18  ;;  %4105 = vmatmul.mubr.msk.f32.gmra.mxu0 %vm263_vm0, %v2498_v30 }
 0x1a2   : > { %4118 = vmatpush3.msra.mxu1 %v3321_v18 }
 0x1a3   : > { %4077 = vmatmul.mubr.msk.f32.gmra.mxu1 %vm263_vm0, %v2508_v56  ;;  %4119 = vmatprep.subr.mxu1 %v3320_v4 }
 0x1a4   : > { %4120 = vmatpush3.msra.mxu1 %v3320_v4  ;;  %4123 = vmatprep.mubr.msk.f32.mxu1 %vm263_vm0, %v2493_v22 }
 0x1a5   : > { %4121 = vmatprep.subr.mxu1 %v3319_v19 }
 0x1a6   : > { %4122 = vmatpush3.msra.mxu1 %v3319_v19 }
 0x1a7   : > { %4124 = vmatmul.mubr.msk.f32.vlgmr.msra.gmra.mxu1 %vm263_vm0, %v2494_v24 }
 0x1a8   : > { %4126 = vmatprep.mubr.msk.f32.mxu1 %vm263_vm0, %v2495_v16 }
 0x1ab   : > { %4127 = vmatmul.mubr.msk.f32.gmra.mxu1 %vm263_vm0, %v2496_v28 }
 0x1ac   : > { %4129 = vmatprep.mubr.msk.f32.mxu1 %vm263_vm0, %v2497_v25 }
 0x1af   : > { %4130 = vmatmul.mubr.msk.f32.gmra.mxu1 %vm263_vm0, %v2498_v30 }
 0x1b0   : > { %4132 = vmatprep.mubr.msk.f32.mxu1 %vm263_vm0, %v2508_v56 }
 0x1b3   : > { %4133 = vmatmul.mubr.msk.f32.gmra.mxu1 %vm263_vm0, %v2762_v27 }
 0x20e   : > { %v3929_v36 = vpop.f32.mrf.mxu0 }
 0x20f   : > { %v3901_v37 = vpop.f32.mrf.mxu1 }
 0x210   : > { %v1856_v42 = vpop.f32.mrf.mxu0  ;;  %v1862_v10 = vadd.f32 %v3929_v36, %v3901_v37 }
 0x211   : > { %v1748_v2 = vpop.f32.mrf.mxu1 }
 0x213   : > { %v3932_v32 = vpop.f32.mrf.mxu0 }
 0x214   : > { %v3904_v12 = vpop.f32.mrf.mxu1 }
 0x215   : > { %v1866_v39 = vpop.f32.mrf.mxu0 }
 0x216   : > { %v1758_v48 = vpop.f32.mrf.mxu1 }
 0x219   : > { %v3935_v29 = vpop.f32.mrf.mxu0 }
 0x21a   : > { %v3907_v52 = vpop.f32.mrf.mxu1 }
 0x21b   : > { %v1876_v50 = vpop.f32.mrf.mxu0 }
 0x21c   : > { %v1768_v57 = vpop.f32.mrf.mxu1 }
 0x21d   : > { %v1877_v0 = vadd.f32 %v1876_v50, %v1768_v57 }
 0x21f   : > { %v3938_v38 = vpop.f32.mrf.mxu0 }
 0x220   : > { %v3910_v41 = vpop.f32.mrf.mxu1 }
 0x221   : > { %v1886_v23 = vpop.f32.mrf.mxu0  ;;  %v1892_v59 = vadd.f32 %v3938_v38, %v3910_v41 }
 0x222   : > { %v1778_v44 = vpop.f32.mrf.mxu1 }
 0x223   : > { %v1887_v36 = vadd.f32 %v1886_v23, %v1778_v44  ;;  %v5440_v23 = vld [vmem:[#allocation17_spill] sm:$0xff] }
 0x225   : > { %v3985_v1 = vpop.f32.mrf.mxu0 }
 0x226   : > { %v3957_v3 = vpop.f32.mrf.mxu1 }
 0x227   : > { %v2182_v34 = vpop.f32.mrf.mxu0 }
 0x228   : > { %v2002_v21 = vpop.f32.mrf.mxu1 }
 0x22b   : > { %v3988_v43 = vpop.f32.mrf.mxu0 }
 0x22c   : > { %v3960_v5 = vpop.f32.mrf.mxu1 }
 0x22d   : > { %v2192_v6 = vpop.f32.mrf.mxu0 }
 0x22e   : > { %v2012_v54 = vpop.f32.mrf.mxu1 }
 0x231   : > { %v3991_v8 = vpop.f32.mrf.mxu0 }
 0x232   : > { %v3963_v9 = vpop.f32.mrf.mxu1 }
 0x233   : > { %v5245_v13 = vpop.f32.mrf.mxu0 }
 0x234   : > { %5426 = vst [vmem:[#allocation5_spill] sm:$0xff] %v5245_v13  ;;  %v2022_v20 = vpop.f32.mrf.mxu1  ;;  %v1872_v13 = vadd.f32 %v3932_v32, %v3904_v12 }
 0x235   : > { %v2045_v37 = vadd.f32 %v2022_v20, %v1877_v0  ;;  %v5444_v20 = vld [vmem:[#allocation20_spill] sm:$0xff] }
 0x237   : > { %v5247_v31 = vpop.f32.mrf.mxu0 }
 0x238   : > { %5427 = vst [vmem:[#allocation8_spill] sm:$0xff] %v5247_v31  ;;  %v3966_v11 = vpop.f32.mrf.mxu1 }
 0x239   : > { %v5249_v40 = vpop.f32.mrf.mxu0  ;;  %v2048_v57 = vadd.f32 %v3966_v11, %v1892_v59  ;;  %v5443_v59 = vld [vmem:[#allocation23_spill] sm:$0xff] }
 0x23a   : > { %5428 = vst [vmem:[#allocation18_spill] sm:$0xff] %v5249_v40  ;;  %v5251_v53 = vpop.f32.mrf.mxu1 }
 0x23b   : > { %5429 = vst [vmem:[#allocation6_spill] sm:$0xff] %v5251_v53  ;;  %v2044_v53 = vadd.f32 %v3960_v5, %v1872_v13  ;;  %v5441_v5 = vld [vmem:[#allocation19_spill] sm:$0xff]  ;;  %v2056_v11 = vmul.f32 %v5444_v20, %v2048_v57 }
 0x23d   : > { %v4041_v15 = vpop.f32.mrf.mxu0 }
 0x23e   : > { %v4013_v22 = vpop.f32.mrf.mxu1 }
 0x23f   : > { %v2436_v24 = vpop.f32.mrf.mxu0 }
 0x240   : > { %v2290_v46 = vpop.f32.mrf.mxu1 }
 0x241   : > { %v2291_v51 = vadd.f32 %v2290_v46, %v2182_v34 }
 0x243   : > { %v4044_v62 = vpop.f32.mrf.mxu0 }
 0x244   : > { %v4016_v16 = vpop.f32.mrf.mxu1 }
 0x245   : > { %v2446_v17 = vpop.f32.mrf.mxu0 }
 0x246   : > { %v2300_v28 = vpop.f32.mrf.mxu1 }
 0x249   : > { %v5253_v33 = vpop.f32.mrf.mxu0 }
 0x24a   : > { %5430 = vst [vmem:[#allocation10_spill] sm:$0xff] %v5253_v33  ;;  %v4019_v25 = vpop.f32.mrf.mxu1 }
 0x24b   : > { %v5255_v18 = vpop.f32.mrf.mxu0  ;;  %v2316_v38 = vadd.f32 %v4019_v25, %v3991_v8 }
 0x24c   : > { %5431 = vst [vmem:[#allocation9_spill] sm:$0xff] %v5255_v18  ;;  %v2310_v30 = vpop.f32.mrf.mxu1  ;;  %v1857_v18 = vadd.f32 %v1856_v42, %v1748_v2  ;;  %v2306_v42 = vadd.f32 %v4016_v16, %v3988_v43  ;;  %v2301_v2 = vadd.f32 %v2300_v28, %v2192_v6  ;;  %v2053_v6 = vmul.f32 %v5441_v5, %v2045_v37 }
 0x24e   : > { %v2041_v58 = vadd.f32 %v2002_v21, %v1857_v18 }
 0x24f   : > { %v5257_v4 = vpop.f32.mrf.mxu0 }
 0x250   : > { %5432 = vst [vmem:[#allocation7_spill] sm:$0xff] %v5257_v4  ;;  %v5259_v56 = vpop.f32.mrf.mxu1  ;;  %v1867_v4 = vadd.f32 %v1866_v39, %v1758_v48 }
 0x251   : > { %5433 = vst [vmem:[#allocation12_spill] sm:$0xff] %v5259_v56  ;;  %v5261_v19 = vpop.f32.mrf.mxu0  ;;  %v1882_v56 = vadd.f32 %v3935_v29, %v3907_v52  ;;  %v5438_v52 = vld [vmem:[#allocation15_spill] sm:$0xff] }
 0x252   : > { %5434 = vst [vmem:[#allocation22_spill] sm:$0xff] %v5261_v19  ;;  %v5263_v27 = vpop.f32.mrf.mxu1  ;;  %v2042_v19 = vadd.f32 %v3957_v3, %v1862_v10  ;;  %v2043_v55 = vadd.f32 %v2012_v54, %v1867_v4  ;;  %v5437_v10 = vld [vmem:[#allocation14_spill] sm:$0xff]  ;;  %v2052_v50 = vmul.f32 %v5438_v52, %v2044_v53  ;;  %v5439_v3 = vld [vmem:[#allocation16_spill] sm:$0xff] }
 0x253   : > { %5435 = vst [vmem:[#allocation11_spill] sm:$0xff] %v5263_v27  ;;  %v2296_v27 = vadd.f32 %v4013_v22, %v3985_v1  ;;  %v2046_v47 = vadd.f32 %v3963_v9, %v1882_v56  ;;  %v2049_v39 = vmul.f32 %v5437_v10, %v2041_v58  ;;  %v2475_v1 = vadd.f32 %v2436_v24, %v2291_v51  ;;  %v5445_v53 = vld [vmem:[#allocation10_spill] sm:$0xff]  ;;  %v5449_v4 = vld [vmem:[#allocation8_spill] sm:$0xff] }
 0x254   : > { %v2050_v12 = vmul.f32 %v4772_v49, %v2042_v19  ;;  %v2051_v34 = vmul.f32 %v5439_v3, %v2043_v55  ;;  %v5442_v49 = vld [vmem:[#allocation6_spill] sm:$0xff]  ;;  %v2478_v58 = vadd.f32 %v4044_v62, %v2306_v42  ;;  %v2477_v9 = vadd.f32 %v2446_v17, %v2301_v2  ;;  %v5448_v17 = vld [vmem:[#allocation21_spill] sm:$0xff] }
 0x255   : > { %v4097_v14 = vpop.f32.mrf.mxu0  ;;  %v2476_v48 = vadd.f32 %v4041_v15, %v2296_v27  ;;  %v2054_v0 = vmul.f32 %v5440_v23, %v2046_v47  ;;  %v2047_v54 = vadd.f32 %v5442_v49, %v1887_v36  ;;  %v2483_v55 = vadd.f32 %v2475_v1, %v2049_v39  ;;  %v5287_v15 = vld [vmem:[%s5357_s2 + $0x1] ss:$0 sm:$0xff]  ;;  %v5451_v36 = vld [vmem:[#allocation25_spill] sm:$0xff]  ;;  %v5453_v39 = vld [vmem:[#allocation18_spill] sm:$0xff] }
 0x256   : > { %v4069_v35 = vpop.f32.mrf.mxu1  ;;  %v2480_v47 = vadd.f32 %v5445_v53, %v2316_v38  ;;  %v2486_v25 = vadd.f32 %v2478_v58, %v2052_v50  ;;  %v2485_v18 = vadd.f32 %v2477_v9, %v2051_v34  ;;  %v5456_v34 = vld [vmem:[#allocation26_spill] sm:$0xff] }
 0x257   : > { %v2716_v61 = vpop.f32.mrf.mxu0  ;;  %v2722_v29 = vadd.f32 %v4097_v14, %v4069_v35  ;;  %v2484_v14 = vadd.f32 %v2476_v48, %v2050_v12  ;;  %v2055_v28 = vmul.f32 %v5448_v17, %v2047_v54  ;;  %v5452_v12 = vld [vmem:[#allocation9_spill] sm:$0xff] }
 0x258   : > { %v2608_v63 = vpop.f32.mrf.mxu1  ;;  %v5450_v56 = vld [vmem:[#allocation12_spill] sm:$0xff]  ;;  %v2488_v2 = vadd.f32 %v2480_v47, %v2054_v0 }
 0x259   : > { %v4100_v40 = vpop.f32.mrf.mxu0  ;;  %v2717_v44 = vadd.f32 %v2716_v61, %v2608_v63  ;;  %v5446_v61 = vld [vmem:[#allocation5_spill] sm:$0xff]  ;;  %v2326_v19 = vadd.f32 %v5450_v56, %v5449_v4  ;;  %v5462_v4 = vld [vmem:[#allocation30_spill] sm:$0xff] }
 0x25a   : > { %v2311_v63 = vadd.f32 %v2310_v30, %v5446_v61  ;;  %v5296_v30 = vld [vmem:[%s5358_s3 + $0x1] ss:$0 sm:$0xff] }
 0x25b   : > { %v4072_v45 = vpop.f32.mrf.mxu1  ;;  %v2726_v7 = vpop.f32.mrf.mxu0  ;;  %v5454_v48 = vld [vmem:[#allocation11_spill] sm:$0xff] }
 0x25c   : > { %v2732_v13 = vadd.f32 %v4100_v40, %v4072_v45  ;;  %v5447_v45 = vld [vmem:[#allocation24_spill] sm:$0xff]  ;;  %v2479_v10 = vadd.f32 %v5452_v12, %v2311_v63 }
 0x25d   : > { %v2618_v26 = vpop.f32.mrf.mxu1 }
 0x25e   : > { %v2727_v24 = vadd.f32 %v2726_v7, %v2618_v26  ;;  %v2487_v47 = vadd.f32 %v2479_v10, %v2053_v6 }
 0x25f   : > { %v5265_v31 = vpop.f32.mrf.mxu1 }
 0x260   : > { %5436 = vst [vmem:[#allocation13_spill] sm:$0xff] %v5265_v31  ;;  %v4103_v31 = vpop.f32.mrf.mxu0 }
 0x261   : > { %v5267_v33 = vpop.f32.mrf.mxu1 }
 0x262   : > { %v2736_v21 = vpop.f32.mrf.mxu0 }
 0x263   : > { %v5269_v60 = vpop.f32.mrf.mxu1  ;;  %v2737_v0 = vadd.f32 %v2736_v21, %v5267_v33  ;;  %v5459_v21 = vld [vmem:[#allocation27_spill] sm:$0xff] }
 0x264   : > { %v4106_v46 = vpop.f32.mrf.mxu0 }
 0x265   : > { %v5271_v32 = vpop.f32.mrf.mxu1  ;;  %v2752_v5 = vadd.f32 %v4106_v46, %v5269_v60 }
 0x266   : > { %v2746_v1 = vpop.f32.mrf.mxu0 }
 0x267   : > { %v4125_v41 = vpop.f32.mrf.mxu1  ;;  %v5455_v52 = vld [vmem:[#allocation13_spill] sm:$0xff]  ;;  %v2747_v60 = vadd.f32 %v2746_v1, %v5271_v32 }
 0x268   : > { %v2902_v43 = vadd.f32 %v4125_v41, %v2722_v29  ;;  %v2321_v29 = vadd.f32 %v5454_v48, %v5453_v39  ;;  %v2742_v50 = vadd.f32 %v4103_v31, %v5455_v52 }
 0x269   : > { %v2862_v35 = vpop.f32.mrf.mxu1 }
 0x26a   : > { %v2910_v51 = vmul.f32 %v5443_v59, %v2902_v43  ;;  %v2901_v8 = vadd.f32 %v2862_v35, %v2717_v44  ;;  %v5457_v44 = vld [vmem:[#allocation7_spill] sm:$0xff] }
 0x26b   : > { %v4128_v22 = vpop.f32.mrf.mxu1  ;;  %v2482_v43 = vadd.f32 %v5457_v44, %v2326_v19 }
 0x26c   : > { %v2918_v62 = vadd.f32 %v2910_v51, %v2484_v14  ;;  %v2909_v40 = vmul.f32 %v5447_v45, %v2901_v8  ;;  %v2904_v16 = vadd.f32 %v4128_v22, %v2732_v13  ;;  %v5458_v14 = vld [vmem:[#allocation22_spill] sm:$0xff]  ;;  %v5460_v22 = vld [vmem:[#allocation28_spill] sm:$0xff]  ;;  %v5461_v45 = vld [vmem:[#allocation29_spill] sm:$0xff] }
 0x26d   : > { %v2872_v27 = vpop.f32.mrf.mxu1  ;;  %v2481_v33 = vadd.f32 %v5458_v14, %v2321_v29  ;;  %v2490_v61 = vadd.f32 %v2482_v43, %v2056_v11 }
 0x26e   : > { %v2934_v7 = vmul.f32 %v5287_v15, %v2918_v62  ;;  %v2917_v26 = vadd.f32 %v2909_v40, %v2483_v55  ;;  %v2912_v37 = vmul.f32 %v5451_v36, %v2904_v16  ;;  %v2903_v42 = vadd.f32 %v2872_v27, %v2727_v24 }
 0x26f   : > { %v4131_v57 = vpop.f32.mrf.mxu1 }
 0x270   : > { %v2950_v38 = vadd.f32 %v5296_v30, %v2934_v7  ;;  %v2933_v41 = vmul.f32 %v5287_v15, %v2917_v26  ;;  %v2920_v3 = vadd.f32 %v2912_v37, %v2486_v25  ;;  %v2911_v23 = vmul.f32 %v5456_v34, %v2903_v42 }
 0x271   : > { %v2906_v31 = vadd.f32 %v4131_v57, %v2742_v50  ;;  %v2882_v49 = vpop.f32.mrf.mxu1 }
 0x272   : > { %v2958_v54 = vmax.f32 %v2950_v38, 0.0  ;;  %v2949_v58 = vadd.f32 %v5296_v30, %v2933_v41  ;;  %v2936_v9 = vmul.f32 %v5287_v15, %v2920_v3  ;;  %v2919_v35 = vadd.f32 %v2911_v23, %v2485_v18 }
 0x273   : > { %v2914_v13 = vmul.f32 %v5459_v21, %v2906_v31  ;;  %v2905_v59 = vadd.f32 %v2882_v49, %v2737_v0  ;;  %v4134_v51 = vpop.f32.mrf.mxu1  ;;  %v2489_v18 = vadd.f32 %v2481_v33, %v2055_v28 }
 0x274   : > { %2966 = vst.msk [vmem:[%s5315_s20 + $0x8] sm:$0xff] %vm263_vm0, %v2958_v54  ;;  %v2957_v8 = vmax.f32 %v2949_v58, 0.0  ;;  %v2952_v20 = vadd.f32 %v5296_v30, %v2936_v9  ;;  %v2935_v55 = vmul.f32 %v5287_v15, %v2919_v35  ;;  %v2908_v53 = vadd.f32 %v4134_v51, %v2752_v5 }
 0x275   : > { %v2922_v63 = vadd.f32 %v2914_v13, %v2488_v2  ;;  %v2913_v24 = vmul.f32 %v5460_v22, %v2905_v59  ;;  %v2892_v32 = vpop.f32.mrf.mxu1 }
 0x276   : > { %2965 = vst.msk [vmem:[%s5315_s20] sm:$0xff] %vm263_vm0, %v2957_v8  ;;  %v2960_v46 = vmax.f32 %v2952_v20, 0.0  ;;  %v2951_v62 = vadd.f32 %v5296_v30, %v2935_v55  ;;  %v2916_v40 = vmul.f32 %v5461_v45, %v2908_v53  ;;  %v2907_v16 = vadd.f32 %v2892_v32, %v2747_v60 }
 0x277   : > { %v2938_v17 = vmul.f32 %v5287_v15, %v2922_v63  ;;  %v2921_v25 = vadd.f32 %v2913_v24, %v2487_v47 }
 0x278   : > { %2968 = vst.msk [vmem:[%s5315_s20 + $0x18] sm:$0xff] %vm263_vm0, %v2960_v46  ;;  %v2959_v6 = vmax.f32 %v2951_v62, 0.0  ;;  %v2924_v11 = vadd.f32 %v2916_v40, %v2490_v61  ;;  %v2915_v56 = vmul.f32 %v5462_v4, %v2907_v16 }
 0x279   : > { %v2954_v19 = vadd.f32 %v5296_v30, %v2938_v17  ;;  %v2937_v27 = vmul.f32 %v5287_v15, %v2921_v25 }
 0x27a   : > { %2967 = vst.msk [vmem:[%s5315_s20 + $0x10] sm:$0xff] %vm263_vm0, %v2959_v6  ;;  %v2940_v7 = vmul.f32 %v5287_v15, %v2924_v11  ;;  %v2923_v26 = vadd.f32 %v2915_v56, %v2489_v18 }
 0x27b   : > { %v2962_v36 = vmax.f32 %v2954_v19, 0.0  ;;  %v2953_v28 = vadd.f32 %v5296_v30, %v2937_v27 }
 0x27c   : > { %v2956_v37 = vadd.f32 %v5296_v30, %v2940_v7  ;;  %v2939_v42 = vmul.f32 %v5287_v15, %v2923_v26 }
 0x27d   : > { %2970 = vst.msk [vmem:[%s5315_s20 + $0x28] sm:$0xff] %vm263_vm0, %v2962_v36  ;;  %v2961_v2 = vmax.f32 %v2953_v28, 0.0 }
 0x27e   : > { %v2964_v12 = vmax.f32 %v2956_v37, 0.0  ;;  %v2955_v10 = vadd.f32 %v5296_v30, %v2939_v42 }
 0x27f   : > { %2969 = vst.msk [vmem:[%s5315_s20 + $0x20] sm:$0xff] %vm263_vm0, %v2961_v2 }
 0x280   : > { %2972 = vst.msk [vmem:[%s5315_s20 + $0x38] sm:$0xff] %vm263_vm0, %v2964_v12  ;;  %v2963_v39 = vmax.f32 %v2955_v10, 0.0 }
 0x282   : > { %2971 = vst.msk [vmem:[%s5315_s20 + $0x30] sm:$0xff] %vm263_vm0, %v2963_v39 }
 0x283 PF: > { %s14_s15 = sadd.s32 1, %s4150_s15  }
 0x284   : > { %p11_p4 = scmp.ge.s32.totalorder %s14_s15, 4  }
 0x286   :  { %13 = sbr.rel (!%p11_p4) target bundleno = 1 (0x1), region = 85 }

// kernel: model_forward.8
= control target key start
LH: loop header
LB: loop body
LE: loop exit
PB: predicated region body
PF: predicated region fallthrough
CT: control target
= control target key end

     0   :  { %s3995_s15 = smov 0   ;;  %s4793_s0 = inlined_call_operand.vmem [shape: f32[2,16,64], index: 0, kind: input, shape index: {}]   ;;  %s4794_s1 = inlined_call_operand.vmem [shape: f32[3,9,64,64], index: 1, kind: input, shape index: {}]   ;;  %s4795_s2 = inlined_call_operand.vmem [shape: f32[3,1,64], index: 2, kind: input, shape index: {}]   ;;  %s4796_s3 = inlined_call_operand.vmem [shape: f32[3,1,64], index: 3, kind: input, shape index: {}]   ;;  %s4797_s4 = inlined_call_operand.vmem [shape: f32[2,16,64], index: 4, kind: output, shape index: {}]  }
   0x1 LB: > { %s2880_s16 = sadd.s32 4294967295, %s3967_s15   ;;  %p2884_p0 = scmp.ge.s32.totalorder %s3967_s15, 1  ;;  %s3967_s15 = sphi %s3995_s15, %s14_s15  }
   0x2   : > { %p162_p1 = scmp.lt.s32.totalorder %s3967_s15, 3 }
   0x4   : > { %p163_p2 = pnand %p2884_p0, %p162_p1 }
   0x5   : > { %p4012_p3 = scmp.lt.s32.totalorder (!%p163_p2), %s2880_s16, 1 }
   0x6   : > { %166 = sbr.rel (%p163_p2) target bundleno = 880 (0x370), region = 36 }
   0xb   : > { %v2900_v0 = vld [vmem:[%s4794_s1 + $0xf8] sm:$0xff]  ;;  %v2899_v2 = vld [vmem:[%s4794_s1 + $0xf0] sm:$0xff]  ;;  %vm215_vm0 = vcmask 523264   ;;  %v3969_v4 = vmov 0.0   ;;  %v2898_v5 = vld [vmem:[%s4794_s1 + $0xe8] sm:$0xff]  ;;  %s4800_s16 = smov (!%p4012_p3, %s2880_s16), 1 }
   0xc   : > { %v233_v1 = vld [vmem:[%s4794_s1 + $0x38] sm:$0xff]  ;;  %3439 = vmatprep.subr.mxu0 %v2900_v0  ;;  %v232_v3 = vld [vmem:[%s4794_s1 + $0x30] sm:$0xff]  ;;  %216 = vst.msk [vmem:[#allocation2] sm:$0xff] %vm215_vm0, %v3969_v4  ;;  %217 = vst.msk [vmem:[#allocation2 + $0x8] sm:$0xff] %vm215_vm0, %v3969_v4  ;;  %s3167_s8 = sshll.u32 %s4800_s16, 4 }
   0xd   : > { %3458 = vmatprep.subr.mxu1 %v233_v1  ;;  %218 = vst.msk [vmem:[#allocation2 + $0x10] sm:$0xff] %vm215_vm0, %v3969_v4  ;;  %219 = vst.msk [vmem:[#allocation2 + $0x18] sm:$0xff] %vm215_vm0, %v3969_v4  ;;  %3440 = vmatpush3.msra.mxu0 %v2900_v0  ;;  %v231_v6 = vld [vmem:[%s4794_s1 + $0x28] sm:$0xff]  ;;  %v2897_v7 = vld [vmem:[%s4794_s1 + $0xe0] sm:$0xff]  ;;  %s192_s13 = scalar_lea.vmem %s4793_s0, %s3167_s8  ;;  %s197_s30 = scalar_lea.vmem %s4797_s4, %s3167_s8 }
   0xe   : > { %3459 = vmatpush3.msra.mxu1 %v233_v1  ;;  %3441 = vmatprep.subr.mxu0 %v2899_v2  ;;  %v230_v8 = vld [vmem:[%s4794_s1 + $0x20] sm:$0xff]  ;;  %v2896_v9 = vld [vmem:[%s4794_s1 + $0xd8] sm:$0xff]  ;;  %v221_v12 = vld [vmem:[%s192_s13 + $0x8] sm:$0xff] }
   0xf   : > { %3460 = vmatprep.subr.mxu1 %v232_v3  ;;  %3442 = vmatpush3.msra.mxu0 %v2899_v2  ;;  %v229_v10 = vld [vmem:[%s4794_s1 + $0x18] sm:$0xff]  ;;  %v220_v11 = vld [vmem:[%s192_s13] sm:$0xff]  ;;  %223 = vst.msk [vmem:[#allocation2 + $0x10] sm:$0xff] %vm215_vm0, %v221_v12  ;;  %v2895_v13 = vld [vmem:[%s4794_s1 + $0xd0] sm:$0xff] }
  0x10   : > { %3461 = vmatpush3.msra.mxu1 %v232_v3  ;;  %3443 = vmatprep.subr.mxu0 %v2898_v5  ;;  %222 = vst.msk [vmem:[#allocation2 + $0x8] sm:$0xff] %vm215_vm0, %v220_v11  ;;  %v228_v14 = vld [vmem:[%s4794_s1 + $0x10] sm:$0xff]  ;;  %v2894_v15 = vld [vmem:[%s4794_s1 + $0xc8] sm:$0xff]  ;;  %v2893_v17 = vld [vmem:[%s4794_s1 + $0xc0] sm:$0xff] }
  0x11   : > { %3462 = vmatprep.subr.mxu1 %v231_v6  ;;  %3444 = vmatpush3.msra.mxu0 %v2898_v5  ;;  %v227_v16 = vld [vmem:[%s4794_s1 + $0x8] sm:$0xff]  ;;  %v226_v18 = vld [vmem:[%s4794_s1] sm:$0xff]  ;;  %v2912_v23 = vld [vmem:[%s4794_s1 + $0x1b8] sm:$0xff] }
  0x12   : > { %3463 = vmatpush3.msra.mxu1 %v231_v6  ;;  %3445 = vmatprep.subr.mxu0 %v2897_v7  ;;  %v2930_v24 = vld [vmem:[%s4794_s1 + $0x138] sm:$0xff]  ;;  %v2911_v25 = vld [vmem:[%s4794_s1 + $0x1b0] sm:$0xff]  ;;  %v2910_v27 = vld [vmem:[%s4794_s1 + $0x1a8] sm:$0xff] }
  0x13   : > { %3464 = vmatprep.subr.mxu1 %v230_v8  ;;  %3446 = vmatpush3.msra.mxu0 %v2897_v7  ;;  %v2929_v26 = vld [vmem:[%s4794_s1 + $0x130] sm:$0xff]  ;;  %v2928_v28 = vld [vmem:[%s4794_s1 + $0x128] sm:$0xff]  ;;  %v2909_v29 = vld [vmem:[%s4794_s1 + $0x1a0] sm:$0xff] }
  0x14   : > { %3465 = vmatpush3.msra.mxu1 %v230_v8  ;;  %3447 = vmatprep.subr.mxu0 %v2896_v9  ;;  %v2927_v30 = vld [vmem:[%s4794_s1 + $0x120] sm:$0xff]  ;;  %v2908_v31 = vld [vmem:[%s4794_s1 + $0x198] sm:$0xff]  ;;  %v2907_v33 = vld [vmem:[%s4794_s1 + $0x190] sm:$0xff] }
  0x15   : > { %3466 = vmatprep.subr.mxu1 %v229_v10  ;;  %3448 = vmatpush3.msra.mxu0 %v2896_v9  ;;  %v2926_v32 = vld [vmem:[%s4794_s1 + $0x118] sm:$0xff]  ;;  %v2925_v34 = vld [vmem:[%s4794_s1 + $0x110] sm:$0xff]  ;;  %v2906_v35 = vld [vmem:[%s4794_s1 + $0x188] sm:$0xff] }
  0x16   : > { %3467 = vmatpush3.msra.mxu1 %v229_v10  ;;  %3449 = vmatprep.subr.mxu0 %v2895_v13  ;;  %v2924_v36 = vld [vmem:[%s4794_s1 + $0x108] sm:$0xff]  ;;  %v2905_v37 = vld [vmem:[%s4794_s1 + $0x180] sm:$0xff]  ;;  %v408_v39 = vld [vmem:[#allocation2 + $0x13] sm:$0xff] }
  0x17   : > { %3468 = vmatprep.subr.mxu1 %v228_v14  ;;  %3450 = vmatpush3.msra.mxu0 %v2895_v13  ;;  %v234_v19 = vld [vmem:[#allocation2 + $0x7] sm:$0xff]  ;;  %v235_v21 = vld [vmem:[#allocation2 + $0xf] sm:$0xff]  ;;  %v2922_v41 = vld [vmem:[%s4794_s1 + $0x78] sm:$0xff] }
  0x18   : > { %3469 = vmatpush3.msra.mxu1 %v228_v14  ;;  %3451 = vmatprep.subr.mxu0 %v2894_v15  ;;  %v224_v20 = vld [vmem:[#allocation2 + $0x3] sm:$0xff]  ;;  %v225_v22 = vld [vmem:[#allocation2 + $0xb] sm:$0xff]  ;;  %v2942_v42 = vld [vmem:[%s4794_s1 + $0x1f8] sm:$0xff] }
  0x19   : > { %3470 = vmatprep.subr.mxu1 %v227_v16  ;;  %3452 = vmatpush3.msra.mxu0 %v2894_v15  ;;  %v2923_v38 = vld [vmem:[%s4794_s1 + $0x100] sm:$0xff]  ;;  %v516_v40 = vld [vmem:[#allocation2 + $0x8] sm:$0xff]  ;;  %v517_v43 = vld [vmem:[#allocation2 + $0x10] sm:$0xff] }
  0x1a   : > { %3471 = vmatpush3.msra.mxu1 %v227_v16  ;;  %3453 = vmatprep.subr.mxu0 %v2893_v17  ;;  %v2921_v44 = vld [vmem:[%s4794_s1 + $0x70] sm:$0xff]  ;;  %v2920_v46 = vld [vmem:[%s4794_s1 + $0x68] sm:$0xff]  ;;  %v2919_v48 = vld [vmem:[%s4794_s1 + $0x60] sm:$0xff] }
  0x1b   : > { %3472 = vmatprep.subr.mxu1 %v226_v18  ;;  %3454 = vmatpush3.msra.mxu0 %v2893_v17  ;;  %v2941_v45 = vld [vmem:[%s4794_s1 + $0x1f0] sm:$0xff]  ;;  %v2940_v47 = vld [vmem:[%s4794_s1 + $0x1e8] sm:$0xff]  ;;  %v2939_v49 = vld [vmem:[%s4794_s1 + $0x1e0] sm:$0xff] }
  0x1c   : > { %3455 = vmatprep.mubr.msk.f32.mxu0 %vm215_vm0, %v234_v19  ;;  %3473 = vmatpush3.msra.mxu1 %v226_v18  ;;  %v2918_v50 = vld [vmem:[%s4794_s1 + $0x58] sm:$0xff]  ;;  %v2917_v52 = vld [vmem:[%s4794_s1 + $0x50] sm:$0xff]  ;;  %v2916_v54 = vld [vmem:[%s4794_s1 + $0x48] sm:$0xff] }
  0x1d   : > { %3474 = vmatprep.mubr.msk.f32.mxu1 %vm215_vm0, %v224_v20  ;;  %3456 = vmatmul.mubr.msk.f32.vlgmr.msra.gmra.mxu0 %vm215_vm0, %v235_v21  ;;  %v2938_v51 = vld [vmem:[%s4794_s1 + $0x1d8] sm:$0xff]  ;;  %v2937_v53 = vld [vmem:[%s4794_s1 + $0x1d0] sm:$0xff]  ;;  %v2936_v55 = vld [vmem:[%s4794_s1 + $0x1c8] sm:$0xff] }
  0x1e   : > { %3475 = vmatmul.mubr.msk.f32.vlgmr.msra.gmra.mxu1 %vm215_vm0, %v225_v22  ;;  %3477 = vmatprep.subr.mxu0 %v2912_v23  ;;  %v2915_v56 = vld [vmem:[%s4794_s1 + $0x40] sm:$0xff]  ;;  %v506_v59 = vld [vmem:[#allocation2 + $0xc] sm:$0xff]  ;;  %v2960_v60 = vld [vmem:[%s4794_s1 + $0x178] sm:$0xff] }
  0x1f   : > { %3496 = vmatprep.subr.mxu1 %v2930_v24  ;;  %3478 = vmatpush3.msra.mxu0 %v2912_v23  ;;  %v2935_v57 = vld [vmem:[%s4794_s1 + $0x1c0] sm:$0xff]  ;;  %v2952_v61 = vld [vmem:[%s4794_s1 + $0xb8] sm:$0xff]  ;;  %v2959_v63 = vld [vmem:[%s4794_s1 + $0x170] sm:$0xff] }
  0x20   : > { %3497 = vmatpush3.msra.mxu1 %v2930_v24  ;;  %3479 = vmatprep.subr.mxu0 %v2911_v25  ;;  %v505_v58 = vld [vmem:[#allocation2 + $0x4] sm:$0xff]  ;;  %v690_v62 = vld [vmem:[#allocation2 + $0x14] sm:$0xff] }
  0x21   : > { %3498 = vmatprep.subr.mxu1 %v2929_v26  ;;  %3480 = vmatpush3.msra.mxu0 %v2911_v25  ;;  %v2951_v0 = vld [vmem:[%s4794_s1 + $0xb0] sm:$0xff]  ;;  %v2958_v1 = vld [vmem:[%s4794_s1 + $0x168] sm:$0xff]  ;;  %v2957_v3 = vld [vmem:[%s4794_s1 + $0x160] sm:$0xff] }
  0x22   : > { %3499 = vmatpush3.msra.mxu1 %v2929_v26  ;;  %3481 = vmatprep.subr.mxu0 %v2910_v27  ;;  %v2950_v2 = vld [vmem:[%s4794_s1 + $0xa8] sm:$0xff]  ;;  %v2949_v5 = vld [vmem:[%s4794_s1 + $0xa0] sm:$0xff]  ;;  %v2956_v6 = vld [vmem:[%s4794_s1 + $0x158] sm:$0xff] }
  0x23   : > { %3500 = vmatprep.subr.mxu1 %v2928_v28  ;;  %3482 = vmatpush3.msra.mxu0 %v2910_v27  ;;  %v2948_v7 = vld [vmem:[%s4794_s1 + $0x98] sm:$0xff]  ;;  %v2955_v8 = vld [vmem:[%s4794_s1 + $0x150] sm:$0xff]  ;;  %v2954_v10 = vld [vmem:[%s4794_s1 + $0x148] sm:$0xff] }
  0x24   : > { %3501 = vmatpush3.msra.mxu1 %v2928_v28  ;;  %3483 = vmatprep.subr.mxu0 %v2909_v29  ;;  %v2947_v9 = vld [vmem:[%s4794_s1 + $0x90] sm:$0xff]  ;;  %v2946_v11 = vld [vmem:[%s4794_s1 + $0x88] sm:$0xff]  ;;  %v2953_v12 = vld [vmem:[%s4794_s1 + $0x140] sm:$0xff] }
  0x25   : > { %3502 = vmatprep.subr.mxu1 %v2927_v30  ;;  %3484 = vmatpush3.msra.mxu0 %v2909_v29  ;;  %v2945_v13 = vld [vmem:[%s4794_s1 + $0x80] sm:$0xff]  ;;  %v796_v14 = vld [vmem:[#allocation2 + $0x9] sm:$0xff]  ;;  %v797_v16 = vld [vmem:[#allocation2 + $0x11] sm:$0xff] }
  0x26   : > { %3503 = vmatpush3.msra.mxu1 %v2927_v30  ;;  %3485 = vmatprep.subr.mxu0 %v2908_v31  ;;  %v785_v15 = vld [vmem:[#allocation2 + $0x5] sm:$0xff]  ;;  %v786_v17 = vld [vmem:[#allocation2 + $0xd] sm:$0xff]  ;;  %v2972_v18 = vld [vmem:[%s4794_s1 + $0x238] sm:$0xff] }
  0x27   : > { %3504 = vmatprep.subr.mxu1 %v2926_v32  ;;  %3486 = vmatpush3.msra.mxu0 %v2908_v31  ;;  %v2971_v19 = vld [vmem:[%s4794_s1 + $0x230] sm:$0xff]  ;;  %v2970_v20 = vld [vmem:[%s4794_s1 + $0x228] sm:$0xff]  ;;  %v2969_v21 = vld [vmem:[%s4794_s1 + $0x220] sm:$0xff] }
  0x28   : > { %3505 = vmatpush3.msra.mxu1 %v2926_v32  ;;  %3487 = vmatprep.subr.mxu0 %v2907_v33  ;;  %v2967_v23 = vld [vmem:[%s4794_s1 + $0x210] sm:$0xff]  ;;  %v2966_v24 = vld [vmem:[%s4794_s1 + $0x208] sm:$0xff]  ;;  %v2965_v25 = vld [vmem:[%s4794_s1 + $0x200] sm:$0xff] }
  0x29   : > { %3506 = vmatprep.subr.mxu1 %v2925_v34  ;;  %3488 = vmatpush3.msra.mxu0 %v2907_v33  ;;  %v970_v26 = vld [vmem:[#allocation2 + $0x15] sm:$0xff]  ;;  %v2990_v31 = vld [vmem:[%s4794_s1 + $0x328] sm:$0xff]  ;;  %v2989_v33 = vld [vmem:[%s4794_s1 + $0x320] sm:$0xff] }
  0x2a   : > { %3507 = vmatpush3.msra.mxu1 %v2925_v34  ;;  %3489 = vmatprep.subr.mxu0 %v2906_v35  ;;  %v2992_v27 = vld [vmem:[%s4794_s1 + $0x338] sm:$0xff]  ;;  %v2991_v29 = vld [vmem:[%s4794_s1 + $0x330] sm:$0xff]  ;;  %v2982_v32 = vld [vmem:[%s4794_s1 + $0x268] sm:$0xff] }
  0x2b   : > { %3508 = vmatprep.subr.mxu1 %v2924_v36  ;;  %3490 = vmatpush3.msra.mxu0 %v2906_v35  ;;  %v2984_v28 = vld [vmem:[%s4794_s1 + $0x278] sm:$0xff]  ;;  %v2983_v30 = vld [vmem:[%s4794_s1 + $0x270] sm:$0xff]  ;;  %v2981_v34 = vld [vmem:[%s4794_s1 + $0x260] sm:$0xff] }
  0x2c   : > { %3509 = vmatpush3.msra.mxu1 %v2924_v36  ;;  %3491 = vmatprep.subr.mxu0 %v2905_v37  ;;  %v2988_v35 = vld [vmem:[%s4794_s1 + $0x318] sm:$0xff] }
  0x2d   : > { %3510 = vmatprep.subr.mxu1 %v2923_v38  ;;  %3492 = vmatpush3.msra.mxu0 %v2905_v37  ;;  %v2980_v36 = vld [vmem:[%s4794_s1 + $0x258] sm:$0xff]  ;;  %v2987_v37 = vld [vmem:[%s4794_s1 + $0x310] sm:$0xff] }
  0x2e   : > { %3493 = vmatprep.mubr.msk.f32.mxu0 %vm215_vm0, %v225_v22  ;;  %3511 = vmatpush3.msra.mxu1 %v2923_v38  ;;  %v2968_v22 = vld [vmem:[%s4794_s1 + $0x218] sm:$0xff]  ;;  %v2979_v38 = vld [vmem:[%s4794_s1 + $0x250] sm:$0xff] }
  0x2f   : > { %3494 = vmatmul.mubr.msk.f32.vlgmr.msra.gmra.mxu0 %vm215_vm0, %v408_v39  ;;  %3512 = vmatprep.mubr.msk.f32.mxu1 %vm215_vm0, %v516_v40  ;;  %v2986_v39 = vld [vmem:[%s4794_s1 + $0x308] sm:$0xff] }
  0x30   : > { %3515 = vmatprep.subr.mxu0 %v2922_v41  ;;  %3534 = vmatprep.subr.mxu1 %v2942_v42  ;;  %v2978_v40 = vld [vmem:[%s4794_s1 + $0x248] sm:$0xff] }
  0x31   : > { %3513 = vmatmul.mubr.msk.f32.vlgmr.msra.gmra.mxu1 %vm215_vm0, %v517_v43  ;;  %3516 = vmatpush3.msra.mxu0 %v2922_v41  ;;  %v2985_v41 = vld [vmem:[%s4794_s1 + $0x300] sm:$0xff]  ;;  %v4312_v43 = vld [vmem:[%s4794_s1 + $0x3f8] sm:$0xff] }
  0x32   : > { %3535 = vmatpush3.msra.mxu1 %v2942_v42  ;;  %3517 = vmatprep.subr.mxu0 %v2921_v44  ;;  %v2977_v42 = vld [vmem:[%s4794_s1 + $0x240] sm:$0xff] }
  0x33   : > { %3536 = vmatprep.subr.mxu1 %v2941_v45  ;;  %3518 = vmatpush3.msra.mxu0 %v2921_v44  ;;  %v4317_v44 = vld [vmem:[%s4794_s1 + $0x378] sm:$0xff] }
  0x34   : > { %3537 = vmatpush3.msra.mxu1 %v2941_v45  ;;  %3519 = vmatprep.subr.mxu0 %v2920_v46 }
  0x35   : > { %3538 = vmatprep.subr.mxu1 %v2940_v47  ;;  %3520 = vmatpush3.msra.mxu0 %v2920_v46 }
  0x36   : > { %3539 = vmatpush3.msra.mxu1 %v2940_v47  ;;  %3521 = vmatprep.subr.mxu0 %v2919_v48 }
  0x37   : > { %3540 = vmatprep.subr.mxu1 %v2939_v49  ;;  %3522 = vmatpush3.msra.mxu0 %v2919_v48  ;;  %v198_v48 = vlaneseq }
  0x38   : > { %3541 = vmatpush3.msra.mxu1 %v2939_v49  ;;  %3523 = vmatprep.subr.mxu0 %v2918_v50 }
  0x39   : > { %3542 = vmatprep.subr.mxu1 %v2938_v51  ;;  %3524 = vmatpush3.msra.mxu0 %v2918_v50 }
  0x3a   : > { %3543 = vmatpush3.msra.mxu1 %v2938_v51  ;;  %3525 = vmatprep.subr.mxu0 %v2917_v52 }
  0x3b   : > { %3544 = vmatprep.subr.mxu1 %v2937_v53  ;;  %3526 = vmatpush3.msra.mxu0 %v2917_v52  ;;  %v199_v52 = vshrl.u32 %v198_v48, 7  ;;  %v3018_v48 = vld [vmem:[%s4794_s1 + $0x358] sm:$0xff] }
  0x3c   : > { %3545 = vmatpush3.msra.mxu1 %v2937_v53  ;;  %3527 = vmatprep.subr.mxu0 %v2916_v54 }
  0x3d   : > { %3546 = vmatprep.subr.mxu1 %v2936_v55  ;;  %3528 = vmatpush3.msra.mxu0 %v2916_v54 }
  0x3e   : > { %3547 = vmatpush3.msra.mxu1 %v2936_v55  ;;  %3529 = vmatprep.subr.mxu0 %v2915_v56  ;;  %v200_v55 = vadd.s32 8, %v199_v52 }
  0x3f   : > { %3548 = vmatprep.subr.mxu1 %v2935_v57  ;;  %3530 = vmatpush3.msra.mxu0 %v2915_v56 }
  0x40   : > { %3531 = vmatprep.mubr.msk.f32.mxu0 %vm215_vm0, %v505_v58  ;;  %3549 = vmatpush3.msra.mxu1 %v2935_v57  ;;  %v202_v58 = vand.u32 3, %v200_v55  ;;  %v3014_v55 = vld [vmem:[%s4794_s1 + $0x2b8] sm:$0xff] }
  0x41   : > { %3532 = vmatmul.mubr.msk.f32.vlgmr.msra.gmra.mxu0 %vm215_vm0, %v506_v59  ;;  %3550 = vmatprep.mubr.msk.f32.mxu1 %vm215_vm0, %v506_v59  ;;  %v201_v59 = vand.u32 3, %v199_v52  ;;  %v3016_v52 = vld [vmem:[%s4794_s1 + $0x348] sm:$0xff] }
  0x42   : > { %3553 = vmatprep.subr.mxu0 %v2960_v60  ;;  %3572 = vmatprep.subr.mxu1 %v2952_v61  ;;  %vm204_vm1 = vcmp.ne.s32.totalorder %v202_v58, 0  ;;  %vm210_vm3 = vcmp.ne.s32.totalorder %v202_v58, 3 }
  0x43   : > { %3551 = vmatmul.mubr.msk.f32.vlgmr.msra.gmra.mxu1 %vm215_vm0, %v690_v62  ;;  %3554 = vmatpush3.msra.mxu0 %v2960_v60  ;;  %vm203_vm2 = vcmp.ne.s32.totalorder %v201_v59, 0  ;;  %vm209_vm4 = vcmp.ne.s32.totalorder %v201_v59, 3 }
  0x44   : > { %3573 = vmatpush3.msra.mxu1 %v2952_v61  ;;  %3555 = vmatprep.subr.mxu0 %v2959_v63 }
  0x45   : > { %3574 = vmatprep.subr.mxu1 %v2951_v0  ;;  %3556 = vmatpush3.msra.mxu0 %v2959_v63 }
  0x46   : > { %3575 = vmatpush3.msra.mxu1 %v2951_v0  ;;  %3557 = vmatprep.subr.mxu0 %v2958_v1 }
  0x47   : > { %3576 = vmatprep.subr.mxu1 %v2950_v2  ;;  %3558 = vmatpush3.msra.mxu0 %v2958_v1 }
  0x48   : > { %3577 = vmatpush3.msra.mxu1 %v2950_v2  ;;  %3559 = vmatprep.subr.mxu0 %v2957_v3 }
  0x49   : > { %3578 = vmatprep.subr.mxu1 %v2949_v5  ;;  %3560 = vmatpush3.msra.mxu0 %v2957_v3 }
  0x4a   : > { %3579 = vmatpush3.msra.mxu1 %v2949_v5  ;;  %3561 = vmatprep.subr.mxu0 %v2956_v6 }
  0x4b   : > { %3580 = vmatprep.subr.mxu1 %v2948_v7  ;;  %3562 = vmatpush3.msra.mxu0 %v2956_v6  ;;  %v4322_v6 = vsel %vm204_vm1, 1.0, %v3969_v4 }
  0x4c   : > { %3581 = vmatpush3.msra.mxu1 %v2948_v7  ;;  %3563 = vmatprep.subr.mxu0 %v2955_v8 }
  0x4d   : > { %3582 = vmatprep.subr.mxu1 %v2947_v9  ;;  %3564 = vmatpush3.msra.mxu0 %v2955_v8 }
  0x4e   : > { %3583 = vmatpush3.msra.mxu1 %v2947_v9  ;;  %3565 = vmatprep.subr.mxu0 %v2954_v10 }
  0x4f   : > { %3584 = vmatprep.subr.mxu1 %v2946_v11  ;;  %3566 = vmatpush3.msra.mxu0 %v2954_v10 }
  0x50   : > { %3585 = vmatpush3.msra.mxu1 %v2946_v11  ;;  %3567 = vmatprep.subr.mxu0 %v2953_v12 }
  0x51   : > { %3586 = vmatprep.subr.mxu1 %v2945_v13  ;;  %3568 = vmatpush3.msra.mxu0 %v2953_v12  ;;  %v4325_v12 = vsel %vm203_vm2, 1.0, %v3969_v4 }
  0x52   : > { %3569 = vmatprep.mubr.msk.f32.mxu0 %vm215_vm0, %v796_v14  ;;  %3587 = vmatpush3.msra.mxu1 %v2945_v13  ;;  %v4328_v13 = vsel %vm210_vm3, 1.0, %v3969_v4 }
  0x53   : > { %3588 = vmatprep.mubr.msk.f32.mxu1 %vm215_vm0, %v785_v15  ;;  %3570 = vmatmul.mubr.msk.f32.vlgmr.msra.gmra.mxu0 %vm215_vm0, %v797_v16 }
  0x54   : > { %3589 = vmatmul.mubr.msk.f32.vlgmr.msra.gmra.mxu1 %vm215_vm0, %v786_v17  ;;  %3591 = vmatprep.subr.mxu0 %v2972_v18 }
  0x55   : > { %3607 = vmatprep.mubr.msk.f32.mxu0 %vm215_vm0, %v786_v17  ;;  %3592 = vmatpush3.msra.mxu0 %v2972_v18 }
  0x56   : > { %3593 = vmatprep.subr.mxu0 %v2971_v19  ;;  %3610 = vmatprep.subr.mxu1 %v2992_v27 }
  0x57   : > { %3594 = vmatpush3.msra.mxu0 %v2971_v19  ;;  %3611 = vmatpush3.msra.mxu1 %v2992_v27  ;;  %v4332_v19 = vsel %vm209_vm4, 1.0, %v3969_v4  ;;  %v2976_v4 = vld [vmem:[%s4796_s3] ss:$0 sm:$0xff] }
  0x58   : > { %3595 = vmatprep.subr.mxu0 %v2970_v20  ;;  %3612 = vmatprep.subr.mxu1 %v2991_v29 }
  0x59   : > { %3596 = vmatpush3.msra.mxu0 %v2970_v20  ;;  %3613 = vmatpush3.msra.mxu1 %v2991_v29 }
  0x5a   : > { %3597 = vmatprep.subr.mxu0 %v2969_v21  ;;  %3614 = vmatprep.subr.mxu1 %v2990_v31 }
  0x5b   : > { %3598 = vmatpush3.msra.mxu0 %v2969_v21  ;;  %3615 = vmatpush3.msra.mxu1 %v2990_v31 }
  0x5c   : > { %3599 = vmatprep.subr.mxu0 %v2968_v22  ;;  %3616 = vmatprep.subr.mxu1 %v2989_v33 }
  0x5d   : > { %3600 = vmatpush3.msra.mxu0 %v2968_v22  ;;  %3617 = vmatpush3.msra.mxu1 %v2989_v33 }
  0x5e   : > { %3601 = vmatprep.subr.mxu0 %v2967_v23  ;;  %3618 = vmatprep.subr.mxu1 %v2988_v35 }
  0x5f   : > { %3602 = vmatpush3.msra.mxu0 %v2967_v23  ;;  %3619 = vmatpush3.msra.mxu1 %v2988_v35 }
  0x60   : > { %3603 = vmatprep.subr.mxu0 %v2966_v24  ;;  %3620 = vmatprep.subr.mxu1 %v2987_v37 }
  0x61   : > { %3604 = vmatpush3.msra.mxu0 %v2966_v24  ;;  %3621 = vmatpush3.msra.mxu1 %v2987_v37 }
  0x62   : > { %3605 = vmatprep.subr.mxu0 %v2965_v25  ;;  %3622 = vmatprep.subr.mxu1 %v2986_v39 }
  0x63   : > { %3606 = vmatpush3.msra.mxu0 %v2965_v25  ;;  %3623 = vmatpush3.msra.mxu1 %v2986_v39  ;;  %v2975_v25 = vld [vmem:[%s4795_s2] ss:$0 sm:$0xff] }
  0x64   : > { %3608 = vmatmul.mubr.msk.f32.vlgmr.msra.gmra.mxu0 %vm215_vm0, %v970_v26  ;;  %3629 = vmatprep.subr.mxu0 %v2984_v28 }
  0x65   : > { %3630 = vmatpush3.msra.mxu0 %v2984_v28  ;;  %3624 = vmatprep.subr.mxu1 %v2985_v41 }
  0x66   : > { %3631 = vmatprep.subr.mxu0 %v2983_v30  ;;  %3625 = vmatpush3.msra.mxu1 %v2985_v41  ;;  %v3021_v41 = vld [vmem:[%s4794_s1 + $0x370] sm:$0xff] }
  0x67   : > { %3632 = vmatpush3.msra.mxu0 %v2983_v30  ;;  %3648 = vmatprep.subr.mxu1 %v4312_v43 }
  0x68   : > { %3633 = vmatprep.subr.mxu0 %v2982_v32 }
  0x69   : > { %3634 = vmatpush3.msra.mxu0 %v2982_v32 }
  0x6a   : > { %3635 = vmatprep.subr.mxu0 %v2981_v34 }
  0x6b   : > { %3636 = vmatpush3.msra.mxu0 %v2981_v34 }
  0x6c   : > { %3637 = vmatprep.subr.mxu0 %v2980_v36 }
  0x6d   : > { %3638 = vmatpush3.msra.mxu0 %v2980_v36 }
  0x6e   : > { %3639 = vmatprep.subr.mxu0 %v2979_v38 }
  0x6f   : > { %3640 = vmatpush3.msra.mxu0 %v2979_v38 }
  0x70   : > { %3641 = vmatprep.subr.mxu0 %v2978_v40 }
  0x71   : > { %3642 = vmatpush3.msra.mxu0 %v2978_v40  ;;  %v3003_v40 = vld [vmem:[%s4794_s1 + $0x3f0] sm:$0xff] }
  0x72   : > { %3643 = vmatprep.subr.mxu0 %v2977_v42 }
  0x73   : > { %3644 = vmatpush3.msra.mxu0 %v2977_v42 }
  0x74   : > { %3667 = vmatprep.subr.mxu0 %v4317_v44 }
  0xdd   : > { %v3457_v46 = vpop.f32.mrf.mxu0 }
  0xde   : > { %v3476_v45 = vpop.f32.mrf.mxu1 }
  0xdf   : > { %v317_v49 = vpop.f32.mrf.mxu0  ;;  %v404_v0 = vadd.f32 %v3476_v45, %v3457_v46  ;;  %v3002_v45 = vld [vmem:[%s4794_s1 + $0x3e8] sm:$0xff] }
  0xe0   : > { %v398_v47 = vpop.f32.mrf.mxu1  ;;  %v3020_v46 = vld [vmem:[%s4794_s1 + $0x368] sm:$0xff] }
  0xe1   : > { %v399_v2 = vadd.f32 %v398_v47, %v317_v49  ;;  %v3000_v47 = vld [vmem:[%s4794_s1 + $0x3d8] sm:$0xff]  ;;  %v2999_v49 = vld [vmem:[%s4794_s1 + $0x3d0] sm:$0xff] }
  0xef   : > { %v3495_v51 = vpop.f32.mrf.mxu0 }
  0xf0   : > { %v500_v3 = vadd.f32 %v3495_v51, %v404_v0  ;;  %v2998_v51 = vld [vmem:[%s4794_s1 + $0x3c8] sm:$0xff] }
  0xf1   : > { %v3514_v50 = vpop.f32.mrf.mxu1  ;;  %v490_v54 = vpop.f32.mrf.mxu0  ;;  %v3032_v0 = vld [vmem:[%s4794_s1 + $0x428] sm:$0xff] }
  0xf2   : > { %v499_v9 = vadd.f32 %v490_v54, %v399_v2  ;;  %v502_v15 = vmul.f32 %v4322_v6, %v500_v3  ;;  %v3015_v54 = vld [vmem:[%s4794_s1 + $0x340] sm:$0xff]  ;;  %v3010_v3 = vld [vmem:[%s4794_s1 + $0x298] sm:$0xff] }
  0xf3   : > { %v599_v53 = vpop.f32.mrf.mxu1  ;;  %v3031_v2 = vld [vmem:[%s4794_s1 + $0x420] sm:$0xff] }
  0xf4   : > { %v501_v21 = vmul.f32 %v4325_v12, %v499_v9  ;;  %v3008_v9 = vld [vmem:[%s4794_s1 + $0x288] sm:$0xff] }
 0x101   : > { %v3533_v56 = vpop.f32.mrf.mxu0 }
 0x102   : > { %v686_v1 = vadd.f32 %v3533_v56, %v3514_v50  ;;  %v3017_v50 = vld [vmem:[%s4794_s1 + $0x350] sm:$0xff]  ;;  %v3034_v56 = vld [vmem:[%s4794_s1 + $0x438] sm:$0xff] }
 0x103   : > { %v3552_v57 = vpop.f32.mrf.mxu1  ;;  %v680_v60 = vpop.f32.mrf.mxu0 }
 0x104   : > { %v681_v5 = vadd.f32 %v680_v60, %v599_v53  ;;  %v782_v10 = vadd.f32 %v3552_v57, %v686_v1  ;;  %v2997_v53 = vld [vmem:[%s4794_s1 + $0x3c0] sm:$0xff]  ;;  %v3013_v60 = vld [vmem:[%s4794_s1 + $0x2b0] sm:$0xff] }
 0x105   : > { %v772_v61 = vpop.f32.mrf.mxu1  ;;  %v3011_v1 = vld [vmem:[%s4794_s1 + $0x2a0] sm:$0xff] }
 0x106   : > { %v781_v16 = vadd.f32 %v772_v61, %v681_v5  ;;  %v784_v22 = vadd.f32 %v782_v10, %v502_v15  ;;  %v3033_v61 = vld [vmem:[%s4794_s1 + $0x430] sm:$0xff]  ;;  %v3030_v5 = vld [vmem:[%s4794_s1 + $0x418] sm:$0xff]  ;;  %v3028_v10 = vld [vmem:[%s4794_s1 + $0x408] sm:$0xff] }
 0x107   : > { %v3052_v15 = vld [vmem:[%s4794_s1 + $0x3b8] sm:$0xff] }
 0x108   : > { %v783_v26 = vadd.f32 %v781_v16, %v501_v21  ;;  %v3044_v16 = vld [vmem:[%s4794_s1 + $0x2f8] sm:$0xff]  ;;  %v3043_v21 = vld [vmem:[%s4794_s1 + $0x2f0] sm:$0xff] }
 0x113   : > { %v3571_v62 = vpop.f32.mrf.mxu0 }
 0x114   : > { %v3590_v63 = vpop.f32.mrf.mxu1 }
 0x115   : > { %v879_v7 = vpop.f32.mrf.mxu0  ;;  %v966_v11 = vadd.f32 %v3590_v63, %v3571_v62  ;;  %v3012_v63 = vld [vmem:[%s4794_s1 + $0x2a8] sm:$0xff] }
 0x116   : > { %v960_v8 = vpop.f32.mrf.mxu1 }
 0x117   : > { %v961_v17 = vadd.f32 %v960_v8, %v879_v7  ;;  %v3009_v7 = vld [vmem:[%s4794_s1 + $0x290] sm:$0xff] }
 0x118   : > { %v3029_v8 = vld [vmem:[%s4794_s1 + $0x410] sm:$0xff] }
 0x124   : > { %v3609_v14 = vpop.f32.mrf.mxu0 }
 0x125   : > { %v1062_v18 = vadd.f32 %v3609_v14, %v966_v11  ;;  %v3007_v11 = vld [vmem:[%s4794_s1 + $0x280] sm:$0xff] }
 0x126   : > { %v1052_v20 = vpop.f32.mrf.mxu0  ;;  %v3027_v14 = vld [vmem:[%s4794_s1 + $0x400] sm:$0xff] }
 0x127   : > { %v1064_v23 = vmul.f32 %v4328_v13, %v1062_v18  ;;  %v1061_v24 = vadd.f32 %v1052_v20, %v961_v17  ;;  %v3051_v20 = vld [vmem:[%s4794_s1 + $0x3b0] sm:$0xff] }
 0x129   : > { %v1066_v27 = vadd.f32 %v1064_v23, %v784_v22  ;;  %v1063_v28 = vmul.f32 %v4332_v19, %v1061_v24  ;;  %v3050_v23 = vld [vmem:[%s4794_s1 + $0x3a8] sm:$0xff] }
 0x12a   : > { %v3042_v24 = vld [vmem:[%s4794_s1 + $0x2e8] sm:$0xff] }
 0x12b   : > { %v1075_v29 = vmul.f32 %v2975_v25, %v1066_v27  ;;  %v1065_v30 = vadd.f32 %v1063_v28, %v783_v26  ;;  %v3041_v26 = vld [vmem:[%s4794_s1 + $0x2e0] sm:$0xff]  ;;  %v3048_v27 = vld [vmem:[%s4794_s1 + $0x398] sm:$0xff] }
 0x12c   : > { %v3040_v28 = vld [vmem:[%s4794_s1 + $0x2d8] sm:$0xff] }
 0x12d   : > { %v1084_v31 = vadd.f32 %v2976_v4, %v1075_v29  ;;  %v1074_v32 = vmul.f32 %v2975_v25, %v1065_v30  ;;  %v3049_v25 = vld [vmem:[%s4794_s1 + $0x3a0] sm:$0xff]  ;;  %v3039_v29 = vld [vmem:[%s4794_s1 + $0x2d0] sm:$0xff]  ;;  %v3046_v30 = vld [vmem:[%s4794_s1 + $0x388] sm:$0xff] }
 0x12f   : > { %v1086_v33 = vmax.f32 %v1084_v31, 0.0  ;;  %v1083_v34 = vadd.f32 %v2976_v4, %v1074_v32  ;;  %v3047_v4 = vld [vmem:[%s4794_s1 + $0x390] sm:$0xff]  ;;  %v3038_v31 = vld [vmem:[%s4794_s1 + $0x2c8] sm:$0xff]  ;;  %v3045_v32 = vld [vmem:[%s4794_s1 + $0x380] sm:$0xff] }
 0x131   : > { %1088 = vst.msk [vmem:[#allocation2 + $0x10] sm:$0xff] %vm215_vm0, %v1086_v33  ;;  %v1085_v35 = vmax.f32 %v1083_v34, 0.0  ;;  %v3037_v33 = vld [vmem:[%s4794_s1 + $0x2c0] sm:$0xff]  ;;  %v3064_v34 = vld [vmem:[%s4794_s1 + $0x478] sm:$0xff] }
 0x133   : > { %1087 = vst.msk [vmem:[#allocation2 + $0x8] sm:$0xff] %vm215_vm0, %v1085_v35 }
 0x138   : > { %v1274_v57 = vld [vmem:[#allocation2 + $0x13] sm:$0xff] }
 0x139   : > { %v1383_v58 = vld [vmem:[#allocation2 + $0x10] sm:$0xff] }
 0x13a   : > { %v1100_v36 = vld [vmem:[#allocation2 + $0x7] sm:$0xff]  ;;  %v1101_v38 = vld [vmem:[#allocation2 + $0xf] sm:$0xff] }
 0x13b   : > { %v1089_v37 = vld [vmem:[#allocation2 + $0x3] sm:$0xff]  ;;  %3626 = vmatprep.mubr.msk.f32.mxu1 %vm215_vm0, %v1100_v36  ;;  %v1090_v39 = vld [vmem:[#allocation2 + $0xb] sm:$0xff]  ;;  %v1556_v17 = vld [vmem:[#allocation2 + $0x14] sm:$0xff] }
 0x13c   : > { %3645 = vmatprep.mubr.msk.f32.mxu0 %vm215_vm0, %v1089_v37  ;;  %3627 = vmatmul.mubr.msk.f32.vlgmr.msra.gmra.mxu1 %vm215_vm0, %v1101_v38  ;;  %v1382_v42 = vld [vmem:[#allocation2 + $0x8] sm:$0xff]  ;;  %v1663_v35 = vld [vmem:[#allocation2 + $0x11] sm:$0xff] }
 0x13d   : > { %3646 = vmatmul.mubr.msk.f32.vlgmr.msra.gmra.mxu0 %vm215_vm0, %v1090_v39  ;;  %3649 = vmatpush3.msra.mxu1 %v4312_v43  ;;  %v3001_v43 = vld [vmem:[%s4794_s1 + $0x3e0] sm:$0xff]  ;;  %v1555_v62 = vld [vmem:[#allocation2 + $0xc] sm:$0xff] }
 0x13e   : > { %3668 = vmatpush3.msra.mxu0 %v4317_v44  ;;  %3650 = vmatprep.subr.mxu1 %v3003_v40  ;;  %v3019_v44 = vld [vmem:[%s4794_s1 + $0x360] sm:$0xff]  ;;  %v1662_v18 = vld [vmem:[#allocation2 + $0x9] sm:$0xff] }
 0x13f   : > { %3664 = vmatprep.mubr.msk.f32.mxu1 %vm215_vm0, %v1090_v39  ;;  %3669 = vmatprep.subr.mxu0 %v3021_v41  ;;  %v1371_v59 = vld [vmem:[#allocation2 + $0x4] sm:$0xff]  ;;  %v1652_v36 = vld [vmem:[#allocation2 + $0xd] sm:$0xff] }
 0x140   : > { %3683 = vmatprep.mubr.msk.f32.mxu0 %vm215_vm0, %v1382_v42  ;;  %3651 = vmatpush3.msra.mxu1 %v3003_v40  ;;  %v1651_v22 = vld [vmem:[#allocation2 + $0x5] sm:$0xff]  ;;  %v3063_v37 = vld [vmem:[%s4794_s1 + $0x470] sm:$0xff]  ;;  %v3060_v40 = vld [vmem:[%s4794_s1 + $0x458] sm:$0xff] }
 0x141   : > { %3670 = vmatpush3.msra.mxu0 %v3021_v41  ;;  %3652 = vmatprep.subr.mxu1 %v3002_v45  ;;  %v3062_v38 = vld [vmem:[%s4794_s1 + $0x468] sm:$0xff]  ;;  %v3061_v39 = vld [vmem:[%s4794_s1 + $0x460] sm:$0xff]  ;;  %v3059_v41 = vld [vmem:[%s4794_s1 + $0x450] sm:$0xff] }
 0x142   : > { %3671 = vmatprep.subr.mxu0 %v3020_v46  ;;  %3653 = vmatpush3.msra.mxu1 %v3002_v45  ;;  %v3058_v42 = vld [vmem:[%s4794_s1 + $0x448] sm:$0xff]  ;;  %v3057_v45 = vld [vmem:[%s4794_s1 + $0x440] sm:$0xff] }
 0x143   : > { %3672 = vmatpush3.msra.mxu0 %v3020_v46  ;;  %3654 = vmatprep.subr.mxu1 %v3001_v43  ;;  %v1836_v46 = vld [vmem:[#allocation2 + $0x15] sm:$0xff] }
 0x144   : > { %3673 = vmatprep.subr.mxu0 %v3019_v44  ;;  %3655 = vmatpush3.msra.mxu1 %v3001_v43  ;;  %v3086_v43 = vld [vmem:[%s4794_s1 + $0x578] sm:$0xff] }
 0x145   : > { %3674 = vmatpush3.msra.mxu0 %v3019_v44  ;;  %3656 = vmatprep.subr.mxu1 %v3000_v47  ;;  %v3078_v44 = vld [vmem:[%s4794_s1 + $0x4b8] sm:$0xff] }
 0x146   : > { %3675 = vmatprep.subr.mxu0 %v3018_v48  ;;  %3657 = vmatpush3.msra.mxu1 %v3000_v47  ;;  %v3085_v47 = vld [vmem:[%s4794_s1 + $0x570] sm:$0xff] }
 0x147   : > { %3676 = vmatpush3.msra.mxu0 %v3018_v48  ;;  %3658 = vmatprep.subr.mxu1 %v2999_v49  ;;  %v3077_v48 = vld [vmem:[%s4794_s1 + $0x4b0] sm:$0xff] }
 0x148   : > { %3677 = vmatprep.subr.mxu0 %v3017_v50  ;;  %3659 = vmatpush3.msra.mxu1 %v2999_v49  ;;  %v3084_v49 = vld [vmem:[%s4794_s1 + $0x568] sm:$0xff] }
 0x149   : > { %3678 = vmatpush3.msra.mxu0 %v3017_v50  ;;  %3660 = vmatprep.subr.mxu1 %v2998_v51  ;;  %v3076_v50 = vld [vmem:[%s4794_s1 + $0x4a8] sm:$0xff] }
 0x14a   : > { %3679 = vmatprep.subr.mxu0 %v3016_v52  ;;  %3661 = vmatpush3.msra.mxu1 %v2998_v51  ;;  %v3083_v51 = vld [vmem:[%s4794_s1 + $0x560] sm:$0xff] }
 0x14b   : > { %3680 = vmatpush3.msra.mxu0 %v3016_v52  ;;  %3662 = vmatprep.subr.mxu1 %v2997_v53  ;;  %v3075_v52 = vld [vmem:[%s4794_s1 + $0x4a0] sm:$0xff] }
 0x14c   : > { %3681 = vmatprep.subr.mxu0 %v3015_v54  ;;  %3663 = vmatpush3.msra.mxu1 %v2997_v53  ;;  %v3082_v53 = vld [vmem:[%s4794_s1 + $0x558] sm:$0xff] }
 0x14d   : > { %3682 = vmatpush3.msra.mxu0 %v3015_v54  ;;  %3665 = vmatmul.mubr.msk.f32.vlgmr.msra.gmra.mxu1 %vm215_vm0, %v1274_v57  ;;  %v3074_v54 = vld [vmem:[%s4794_s1 + $0x498] sm:$0xff]  ;;  %v3080_v57 = vld [vmem:[%s4794_s1 + $0x548] sm:$0xff] }
 0x14e   : > { %3684 = vmatmul.mubr.msk.f32.vlgmr.msra.gmra.mxu0 %vm215_vm0, %v1383_v58  ;;  %3686 = vmatprep.subr.mxu1 %v3014_v55  ;;  %v3072_v58 = vld [vmem:[%s4794_s1 + $0x488] sm:$0xff] }
 0x14f   : > { %3705 = vmatprep.subr.mxu0 %v3034_v56  ;;  %3687 = vmatpush3.msra.mxu1 %v3014_v55  ;;  %v3081_v55 = vld [vmem:[%s4794_s1 + $0x550] sm:$0xff] }
 0x150   : > { %3702 = vmatprep.mubr.msk.f32.mxu1 %vm215_vm0, %v1371_v59  ;;  %3706 = vmatpush3.msra.mxu0 %v3034_v56  ;;  %v3073_v56 = vld [vmem:[%s4794_s1 + $0x490] sm:$0xff]  ;;  %v3079_v59 = vld [vmem:[%s4794_s1 + $0x540] sm:$0xff] }
 0x151   : > { %3721 = vmatprep.mubr.msk.f32.mxu0 %vm215_vm0, %v1555_v62  ;;  %3688 = vmatprep.subr.mxu1 %v3013_v60 }
 0x152   : > { %3707 = vmatprep.subr.mxu0 %v3033_v61  ;;  %3689 = vmatpush3.msra.mxu1 %v3013_v60  ;;  %v3071_v60 = vld [vmem:[%s4794_s1 + $0x480] sm:$0xff] }
 0x153   : > { %3708 = vmatpush3.msra.mxu0 %v3033_v61  ;;  %3690 = vmatprep.subr.mxu1 %v3012_v63  ;;  %v3098_v61 = vld [vmem:[%s4794_s1 + $0x638] sm:$0xff] }
 0x154   : > { %3709 = vmatprep.subr.mxu0 %v3032_v0  ;;  %3691 = vmatpush3.msra.mxu1 %v3012_v63 }
 0x155   : > { %3710 = vmatpush3.msra.mxu0 %v3032_v0  ;;  %3692 = vmatprep.subr.mxu1 %v3011_v1 }
 0x156   : > { %3711 = vmatprep.subr.mxu0 %v3031_v2  ;;  %3693 = vmatpush3.msra.mxu1 %v3011_v1 }
 0x157   : > { %3712 = vmatpush3.msra.mxu0 %v3031_v2  ;;  %3694 = vmatprep.subr.mxu1 %v3010_v3 }
 0x158   : > { %3713 = vmatprep.subr.mxu0 %v3030_v5  ;;  %3695 = vmatpush3.msra.mxu1 %v3010_v3 }
 0x159   : > { %3714 = vmatpush3.msra.mxu0 %v3030_v5  ;;  %3696 = vmatprep.subr.mxu1 %v3009_v7 }
 0x15a   : > { %3715 = vmatprep.subr.mxu0 %v3029_v8  ;;  %3697 = vmatpush3.msra.mxu1 %v3009_v7 }
 0x15b   : > { %3716 = vmatpush3.msra.mxu0 %v3029_v8  ;;  %3698 = vmatprep.subr.mxu1 %v3008_v9 }
 0x15c   : > { %3717 = vmatprep.subr.mxu0 %v3028_v10  ;;  %3699 = vmatpush3.msra.mxu1 %v3008_v9 }
 0x15d   : > { %3718 = vmatpush3.msra.mxu0 %v3028_v10  ;;  %3700 = vmatprep.subr.mxu1 %v3007_v11 }
 0x15e   : > { %3719 = vmatprep.subr.mxu0 %v3027_v14  ;;  %3701 = vmatpush3.msra.mxu1 %v3007_v11 }
 0x15f   : > { %3720 = vmatpush3.msra.mxu0 %v3027_v14  ;;  %3703 = vmatmul.mubr.msk.f32.vlgmr.msra.gmra.mxu1 %vm215_vm0, %v1555_v62  ;;  %v3116_v62 = vld [vmem:[%s4794_s1 + $0x5b8] sm:$0xff] }
 0x160   : > { %3722 = vmatmul.mubr.msk.f32.vlgmr.msra.gmra.mxu0 %vm215_vm0, %v1556_v17  ;;  %3724 = vmatprep.subr.mxu1 %v3052_v15 }
 0x161   : > { %3743 = vmatprep.subr.mxu0 %v3044_v16  ;;  %3725 = vmatpush3.msra.mxu1 %v3052_v15 }
 0x162   : > { %3740 = vmatprep.mubr.msk.f32.mxu1 %vm215_vm0, %v1662_v18  ;;  %3744 = vmatpush3.msra.mxu0 %v3044_v16 }
 0x163   : > { %3759 = vmatprep.mubr.msk.f32.mxu0 %vm215_vm0, %v1651_v22  ;;  %3726 = vmatprep.subr.mxu1 %v3051_v20 }
 0x164   : > { %3745 = vmatprep.subr.mxu0 %v3043_v21  ;;  %3727 = vmatpush3.msra.mxu1 %v3051_v20 }
 0x165   : > { %3746 = vmatpush3.msra.mxu0 %v3043_v21  ;;  %3728 = vmatprep.subr.mxu1 %v3050_v23 }
 0x166   : > { %3747 = vmatprep.subr.mxu0 %v3042_v24  ;;  %3729 = vmatpush3.msra.mxu1 %v3050_v23 }
 0x167   : > { %3748 = vmatpush3.msra.mxu0 %v3042_v24  ;;  %3730 = vmatprep.subr.mxu1 %v3049_v25 }
 0x168   : > { %3749 = vmatprep.subr.mxu0 %v3041_v26  ;;  %3731 = vmatpush3.msra.mxu1 %v3049_v25 }
 0x169   : > { %3750 = vmatpush3.msra.mxu0 %v3041_v26  ;;  %3732 = vmatprep.subr.mxu1 %v3048_v27 }
 0x16a   : > { %3751 = vmatprep.subr.mxu0 %v3040_v28  ;;  %3733 = vmatpush3.msra.mxu1 %v3048_v27 }
 0x16b   : > { %3752 = vmatpush3.msra.mxu0 %v3040_v28  ;;  %3734 = vmatprep.subr.mxu1 %v3047_v4 }
 0x16c   : > { %3753 = vmatprep.subr.mxu0 %v3039_v29  ;;  %3735 = vmatpush3.msra.mxu1 %v3047_v4 }
 0x16d   : > { %3754 = vmatpush3.msra.mxu0 %v3039_v29  ;;  %3736 = vmatprep.subr.mxu1 %v3046_v30 }
 0x16e   : > { %3755 = vmatprep.subr.mxu0 %v3038_v31  ;;  %3737 = vmatpush3.msra.mxu1 %v3046_v30 }
 0x16f   : > { %3756 = vmatpush3.msra.mxu0 %v3038_v31  ;;  %3738 = vmatprep.subr.mxu1 %v3045_v32 }
 0x170   : > { %3757 = vmatprep.subr.mxu0 %v3037_v33  ;;  %3739 = vmatpush3.msra.mxu1 %v3045_v32 }
 0x171   : > { %3758 = vmatpush3.msra.mxu0 %v3037_v33  ;;  %3741 = vmatmul.mubr.msk.f32.vlgmr.msra.gmra.mxu1 %vm215_vm0, %v1663_v35 }
 0x172   : > { %3760 = vmatmul.mubr.msk.f32.vlgmr.msra.gmra.mxu0 %vm215_vm0, %v1652_v36  ;;  %3762 = vmatprep.subr.mxu1 %v3064_v34 }
 0x173   : > { %3778 = vmatprep.mubr.msk.f32.mxu1 %vm215_vm0, %v1652_v36  ;;  %3763 = vmatpush3.msra.mxu1 %v3064_v34 }
 0x174   : > { %3764 = vmatprep.subr.mxu1 %v3063_v37  ;;  %3781 = vmatprep.subr.mxu0 %v3086_v43 }
 0x175   : > { %3765 = vmatpush3.msra.mxu1 %v3063_v37  ;;  %3782 = vmatpush3.msra.mxu0 %v3086_v43  ;;  %v3068_v37 = vld [vmem:[%s4795_s2 + $0x1] ss:$0 sm:$0xff] }
 0x176   : > { %3766 = vmatprep.subr.mxu1 %v3062_v38  ;;  %3783 = vmatprep.subr.mxu0 %v3085_v47 }
 0x177   : > { %3767 = vmatpush3.msra.mxu1 %v3062_v38  ;;  %3784 = vmatpush3.msra.mxu0 %v3085_v47 }
 0x178   : > { %3768 = vmatprep.subr.mxu1 %v3061_v39  ;;  %3785 = vmatprep.subr.mxu0 %v3084_v49 }
 0x179   : > { %3769 = vmatpush3.msra.mxu1 %v3061_v39  ;;  %3786 = vmatpush3.msra.mxu0 %v3084_v49 }
 0x17a   : > { %3770 = vmatprep.subr.mxu1 %v3060_v40  ;;  %3787 = vmatprep.subr.mxu0 %v3083_v51 }
 0x17b   : > { %3771 = vmatpush3.msra.mxu1 %v3060_v40  ;;  %3788 = vmatpush3.msra.mxu0 %v3083_v51 }
 0x17c   : > { %3772 = vmatprep.subr.mxu1 %v3059_v41  ;;  %3789 = vmatprep.subr.mxu0 %v3082_v53 }
 0x17d   : > { %3773 = vmatpush3.msra.mxu1 %v3059_v41  ;;  %3790 = vmatpush3.msra.mxu0 %v3082_v53  ;;  %v3070_v41 = vld [vmem:[%s4796_s3 + $0x1] ss:$0 sm:$0xff]  ;;  %v3097_v53 = vld [vmem:[%s4794_s1 + $0x630] sm:$0xff] }
 0x17e   : > { %3774 = vmatprep.subr.mxu1 %v3058_v42  ;;  %3791 = vmatprep.subr.mxu0 %v3081_v55 }
 0x17f   : > { %3775 = vmatpush3.msra.mxu1 %v3058_v42  ;;  %3792 = vmatpush3.msra.mxu0 %v3081_v55 }
 0x180   : > { %3776 = vmatprep.subr.mxu1 %v3057_v45  ;;  %3793 = vmatprep.subr.mxu0 %v3080_v57 }
 0x181   : > { %3777 = vmatpush3.msra.mxu1 %v3057_v45  ;;  %3794 = vmatpush3.msra.mxu0 %v3080_v57  ;;  %v3114_v57 = vld [vmem:[%s4794_s1 + $0x5a8] sm:$0xff] }
 0x182   : > { %3779 = vmatmul.mubr.msk.f32.vlgmr.msra.gmra.mxu1 %vm215_vm0, %v1836_v46  ;;  %3800 = vmatprep.subr.mxu1 %v3078_v44 }
 0x183   : > { %3801 = vmatpush3.msra.mxu1 %v3078_v44  ;;  %3795 = vmatprep.subr.mxu0 %v3079_v59 }
 0x184   : > { %3802 = vmatprep.subr.mxu1 %v3077_v48  ;;  %3796 = vmatpush3.msra.mxu0 %v3079_v59  ;;  %v3113_v59 = vld [vmem:[%s4794_s1 + $0x5a0] sm:$0xff] }
 0x185   : > { %3803 = vmatpush3.msra.mxu1 %v3077_v48  ;;  %3819 = vmatprep.subr.mxu0 %v3098_v61 }
 0x186   : > { %3804 = vmatprep.subr.mxu1 %v3076_v50 }
 0x187   : > { %3805 = vmatpush3.msra.mxu1 %v3076_v50 }
 0x188   : > { %3806 = vmatprep.subr.mxu1 %v3075_v52 }
 0x189   : > { %3807 = vmatpush3.msra.mxu1 %v3075_v52 }
 0x18a   : > { %3808 = vmatprep.subr.mxu1 %v3074_v54 }
 0x18b   : > { %3809 = vmatpush3.msra.mxu1 %v3074_v54  ;;  %v3115_v54 = vld [vmem:[%s4794_s1 + $0x5b0] sm:$0xff] }
 0x18c   : > { %3810 = vmatprep.subr.mxu1 %v3073_v56 }
 0x18d   : > { %3811 = vmatpush3.msra.mxu1 %v3073_v56  ;;  %v3096_v56 = vld [vmem:[%s4794_s1 + $0x628] sm:$0xff] }
 0x18e   : > { %3812 = vmatprep.subr.mxu1 %v3072_v58 }
 0x18f   : > { %3813 = vmatpush3.msra.mxu1 %v3072_v58  ;;  %v3095_v58 = vld [vmem:[%s4794_s1 + $0x620] sm:$0xff] }
 0x190   : > { %3814 = vmatprep.subr.mxu1 %v3071_v60 }
 0x191   : > { %3815 = vmatpush3.msra.mxu1 %v3071_v60  ;;  %v3094_v60 = vld [vmem:[%s4794_s1 + $0x618] sm:$0xff] }
 0x192   : > { %3838 = vmatprep.subr.mxu1 %v3116_v62 }
 0x1fc   : > { %v3628_v63 = vpop.f32.mrf.mxu1 }
 0x1fd   : > { %v3647_v0 = vpop.f32.mrf.mxu0 }
 0x1fe   : > { %v1183_v1 = vpop.f32.mrf.mxu1  ;;  %v1270_v17 = vadd.f32 %v3647_v0, %v3628_v63  ;;  %v3111_v63 = vld [vmem:[%s4794_s1 + $0x590] sm:$0xff]  ;;  %v3092_v0 = vld [vmem:[%s4794_s1 + $0x608] sm:$0xff] }
 0x1ff   : > { %v1264_v2 = vpop.f32.mrf.mxu0 }
 0x200   : > { %v1265_v20 = vadd.f32 %v1264_v2, %v1183_v1  ;;  %v3110_v1 = vld [vmem:[%s4794_s1 + $0x588] sm:$0xff]  ;;  %v3091_v2 = vld [vmem:[%s4794_s1 + $0x600] sm:$0xff] }
 0x20d   : > { %v3666_v3 = vpop.f32.mrf.mxu1 }
 0x20e   : > { %v3685_v5 = vpop.f32.mrf.mxu0  ;;  %v1366_v21 = vadd.f32 %v3666_v3, %v1270_v17  ;;  %v3109_v3 = vld [vmem:[%s4794_s1 + $0x580] sm:$0xff]  ;;  %v3126_v17 = vld [vmem:[%s4794_s1 + $0x668] sm:$0xff] }
 0x20f   : > { %v1356_v7 = vpop.f32.mrf.mxu1 }
 0x210   : > { %v1465_v8 = vpop.f32.mrf.mxu0  ;;  %v1365_v25 = vadd.f32 %v1356_v7, %v1265_v20  ;;  %v1368_v4 = vmul.f32 %v4322_v6, %v1366_v21  ;;  %v3128_v7 = vld [vmem:[%s4794_s1 + $0x678] sm:$0xff]  ;;  %v3125_v20 = vld [vmem:[%s4794_s1 + $0x660] sm:$0xff] }
 0x211   : > { %v3104_v21 = vld [vmem:[%s4794_s1 + $0x4d8] sm:$0xff] }
 0x212   : > { %v1367_v33 = vmul.f32 %v4325_v12, %v1365_v25  ;;  %v3102_v25 = vld [vmem:[%s4794_s1 + $0x4c8] sm:$0xff] }
 0x21f   : > { %v3704_v9 = vpop.f32.mrf.mxu1 }
 0x220   : > { %v3723_v10 = vpop.f32.mrf.mxu0  ;;  %v1552_v18 = vadd.f32 %v3704_v9, %v3685_v5  ;;  %v3108_v5 = vld [vmem:[%s4794_s1 + $0x4f8] sm:$0xff] }
 0x221   : > { %v1546_v11 = vpop.f32.mrf.mxu1 }
 0x222   : > { %v1638_v14 = vpop.f32.mrf.mxu0  ;;  %v1547_v22 = vadd.f32 %v1546_v11, %v1465_v8  ;;  %v1648_v26 = vadd.f32 %v3723_v10, %v1552_v18  ;;  %v3107_v11 = vld [vmem:[%s4794_s1 + $0x4f0] sm:$0xff]  ;;  %v3105_v18 = vld [vmem:[%s4794_s1 + $0x4e0] sm:$0xff] }
 0x224   : > { %v1647_v29 = vadd.f32 %v1638_v14, %v1547_v22  ;;  %v1650_v34 = vadd.f32 %v1648_v26, %v1368_v4  ;;  %v3127_v14 = vld [vmem:[%s4794_s1 + $0x670] sm:$0xff]  ;;  %v3124_v22 = vld [vmem:[%s4794_s1 + $0x658] sm:$0xff]  ;;  %v3122_v26 = vld [vmem:[%s4794_s1 + $0x648] sm:$0xff] }
 0x225   : > { %v3146_v4 = vld [vmem:[%s4794_s1 + $0x5f8] sm:$0xff] }
 0x226   : > { %v1649_v38 = vadd.f32 %v1647_v29, %v1367_v33  ;;  %v3138_v29 = vld [vmem:[%s4794_s1 + $0x538] sm:$0xff]  ;;  %v3137_v33 = vld [vmem:[%s4794_s1 + $0x530] sm:$0xff] }
 0x231   : > { %v3742_v15 = vpop.f32.mrf.mxu1 }
 0x232   : > { %v3761_v16 = vpop.f32.mrf.mxu0 }
 0x233   : > { %v1745_v23 = vpop.f32.mrf.mxu1  ;;  %v1832_v27 = vadd.f32 %v3761_v16, %v3742_v15  ;;  %v3106_v16 = vld [vmem:[%s4794_s1 + $0x4e8] sm:$0xff] }
 0x234   : > { %v1826_v24 = vpop.f32.mrf.mxu0 }
 0x235   : > { %v1827_v30 = vadd.f32 %v1826_v24, %v1745_v23  ;;  %v3103_v23 = vld [vmem:[%s4794_s1 + $0x4d0] sm:$0xff] }
 0x236   : > { %v3123_v24 = vld [vmem:[%s4794_s1 + $0x650] sm:$0xff] }
 0x242   : > { %v3780_v28 = vpop.f32.mrf.mxu1 }
 0x243   : > { %v1928_v31 = vadd.f32 %v3780_v28, %v1832_v27  ;;  %v3101_v27 = vld [vmem:[%s4794_s1 + $0x4c0] sm:$0xff] }
 0x244   : > { %v1918_v32 = vpop.f32.mrf.mxu1  ;;  %v3121_v28 = vld [vmem:[%s4794_s1 + $0x640] sm:$0xff] }
 0x245   : > { %v1930_v35 = vmul.f32 %v4328_v13, %v1928_v31  ;;  %v1927_v36 = vadd.f32 %v1918_v32, %v1827_v30  ;;  %v3145_v32 = vld [vmem:[%s4794_s1 + $0x5f0] sm:$0xff] }
 0x247   : > { %v1932_v39 = vadd.f32 %v1930_v35, %v1650_v34  ;;  %v1929_v40 = vmul.f32 %v4332_v19, %v1927_v36  ;;  %v3144_v35 = vld [vmem:[%s4794_s1 + $0x5e8] sm:$0xff] }
 0x248   : > { %v3136_v36 = vld [vmem:[%s4794_s1 + $0x528] sm:$0xff] }
 0x249   : > { %v1942_v42 = vmul.f32 %v3068_v37, %v1932_v39  ;;  %v1931_v45 = vadd.f32 %v1929_v40, %v1649_v38  ;;  %v3135_v38 = vld [vmem:[%s4794_s1 + $0x520] sm:$0xff]  ;;  %v3142_v39 = vld [vmem:[%s4794_s1 + $0x5d8] sm:$0xff] }
 0x24a   : > { %v3134_v40 = vld [vmem:[%s4794_s1 + $0x518] sm:$0xff] }
 0x24b   : > { %v1952_v46 = vadd.f32 %v3070_v41, %v1942_v42  ;;  %v1941_v43 = vmul.f32 %v3068_v37, %v1931_v45  ;;  %v3143_v37 = vld [vmem:[%s4794_s1 + $0x5e0] sm:$0xff]  ;;  %v3133_v42 = vld [vmem:[%s4794_s1 + $0x510] sm:$0xff]  ;;  %v3140_v45 = vld [vmem:[%s4794_s1 + $0x5c8] sm:$0xff] }
 0x24d   : > { %v1954_v44 = vmax.f32 %v1952_v46, 0.0  ;;  %v1951_v47 = vadd.f32 %v3070_v41, %v1941_v43  ;;  %v3141_v41 = vld [vmem:[%s4794_s1 + $0x5d0] sm:$0xff]  ;;  %v3132_v46 = vld [vmem:[%s4794_s1 + $0x508] sm:$0xff]  ;;  %v3139_v43 = vld [vmem:[%s4794_s1 + $0x5c0] sm:$0xff] }
 0x24f   : > { %1956 = vst.msk [vmem:[#allocation2 + $0x10] sm:$0xff] %vm215_vm0, %v1954_v44  ;;  %v1953_v48 = vmax.f32 %v1951_v47, 0.0  ;;  %v3131_v44 = vld [vmem:[%s4794_s1 + $0x500] sm:$0xff]  ;;  %v3158_v47 = vld [vmem:[%s4794_s1 + $0x6b8] sm:$0xff] }
 0x251   : > { %1955 = vst.msk [vmem:[#allocation2 + $0x8] sm:$0xff] %vm215_vm0, %v1953_v48 }
 0x256   : > { %v2142_v8 = vld [vmem:[#allocation2 + $0x13] sm:$0xff] }
 0x257   : > { %v2251_v9 = vld [vmem:[#allocation2 + $0x10] sm:$0xff] }
 0x258   : > { %v1968_v49 = vld [vmem:[#allocation2 + $0x7] sm:$0xff]  ;;  %v1969_v51 = vld [vmem:[#allocation2 + $0xf] sm:$0xff] }
 0x259   : > { %v1957_v50 = vld [vmem:[#allocation2 + $0x3] sm:$0xff]  ;;  %3797 = vmatprep.mubr.msk.f32.mxu0 %vm215_vm0, %v1968_v49  ;;  %v1958_v52 = vld [vmem:[#allocation2 + $0xb] sm:$0xff]  ;;  %v2424_v30 = vld [vmem:[#allocation2 + $0x14] sm:$0xff] }
 0x25a   : > { %3816 = vmatprep.mubr.msk.f32.mxu1 %vm215_vm0, %v1957_v50  ;;  %3798 = vmatmul.mubr.msk.f32.vlgmr.msra.gmra.mxu0 %vm215_vm0, %v1969_v51  ;;  %v2250_v55 = vld [vmem:[#allocation2 + $0x8] sm:$0xff]  ;;  %v2531_v48 = vld [vmem:[#allocation2 + $0x11] sm:$0xff] }
 0x25b   : > { %3817 = vmatmul.mubr.msk.f32.vlgmr.msra.gmra.mxu1 %vm215_vm0, %v1958_v52  ;;  %3820 = vmatpush3.msra.mxu0 %v3098_v61  ;;  %v3112_v61 = vld [vmem:[%s4794_s1 + $0x598] sm:$0xff]  ;;  %v2239_v10 = vld [vmem:[#allocation2 + $0x4] sm:$0xff]  ;;  %v2423_v15 = vld [vmem:[#allocation2 + $0xc] sm:$0xff] }
 0x25c   : > { %3839 = vmatpush3.msra.mxu1 %v3116_v62  ;;  %3821 = vmatprep.subr.mxu0 %v3097_v53  ;;  %v3093_v62 = vld [vmem:[%s4794_s1 + $0x610] sm:$0xff]  ;;  %v2519_v34 = vld [vmem:[#allocation2 + $0x5] sm:$0xff] }
 0x25d   : > { %3835 = vmatprep.mubr.msk.f32.mxu0 %vm215_vm0, %v1958_v52  ;;  %3840 = vmatprep.subr.mxu1 %v3115_v54  ;;  %v2530_v31 = vld [vmem:[#allocation2 + $0x9] sm:$0xff]  ;;  %v3155_v52 = vld [vmem:[%s4794_s1 + $0x6a0] sm:$0xff] }
 0x25e   : > { %3854 = vmatprep.mubr.msk.f32.mxu1 %vm215_vm0, %v2250_v55  ;;  %3822 = vmatpush3.msra.mxu0 %v3097_v53  ;;  %v2520_v49 = vld [vmem:[#allocation2 + $0xd] sm:$0xff]  ;;  %v3154_v53 = vld [vmem:[%s4794_s1 + $0x698] sm:$0xff] }
 0x25f   : > { %3841 = vmatpush3.msra.mxu1 %v3115_v54  ;;  %3823 = vmatprep.subr.mxu0 %v3096_v56  ;;  %v3157_v50 = vld [vmem:[%s4794_s1 + $0x6b0] sm:$0xff]  ;;  %v3156_v51 = vld [vmem:[%s4794_s1 + $0x6a8] sm:$0xff] }
 0x260   : > { %3842 = vmatprep.subr.mxu1 %v3114_v57  ;;  %3824 = vmatpush3.msra.mxu0 %v3096_v56  ;;  %v3153_v54 = vld [vmem:[%s4794_s1 + $0x690] sm:$0xff]  ;;  %v3152_v55 = vld [vmem:[%s4794_s1 + $0x688] sm:$0xff]  ;;  %v3151_v56 = vld [vmem:[%s4794_s1 + $0x680] sm:$0xff] }
 0x261   : > { %3843 = vmatpush3.msra.mxu1 %v3114_v57  ;;  %3825 = vmatprep.subr.mxu0 %v3095_v58  ;;  %v2704_v57 = vld [vmem:[#allocation2 + $0x15] sm:$0xff] }
 0x262   : > { %3844 = vmatprep.subr.mxu1 %v3113_v59  ;;  %3826 = vmatpush3.msra.mxu0 %v3095_v58 }
 0x263   : > { %3845 = vmatpush3.msra.mxu1 %v3113_v59  ;;  %3827 = vmatprep.subr.mxu0 %v3094_v60 }
 0x264   : > { %3846 = vmatprep.subr.mxu1 %v3112_v61  ;;  %3828 = vmatpush3.msra.mxu0 %v3094_v60 }
 0x265   : > { %3847 = vmatpush3.msra.mxu1 %v3112_v61  ;;  %3829 = vmatprep.subr.mxu0 %v3093_v62 }
 0x266   : > { %3848 = vmatprep.subr.mxu1 %v3111_v63  ;;  %3830 = vmatpush3.msra.mxu0 %v3093_v62 }
 0x267   : > { %3849 = vmatpush3.msra.mxu1 %v3111_v63  ;;  %3831 = vmatprep.subr.mxu0 %v3092_v0 }
 0x268   : > { %3850 = vmatprep.subr.mxu1 %v3110_v1  ;;  %3832 = vmatpush3.msra.mxu0 %v3092_v0 }
 0x269   : > { %3851 = vmatpush3.msra.mxu1 %v3110_v1  ;;  %3833 = vmatprep.subr.mxu0 %v3091_v2 }
 0x26a   : > { %3852 = vmatprep.subr.mxu1 %v3109_v3  ;;  %3834 = vmatpush3.msra.mxu0 %v3091_v2 }
 0x26b   : > { %3853 = vmatpush3.msra.mxu1 %v3109_v3  ;;  %3836 = vmatmul.mubr.msk.f32.vlgmr.msra.gmra.mxu0 %vm215_vm0, %v2142_v8 }
 0x26c   : > { %3855 = vmatmul.mubr.msk.f32.vlgmr.msra.gmra.mxu1 %vm215_vm0, %v2251_v9  ;;  %3857 = vmatprep.subr.mxu0 %v3108_v5 }
 0x26d   : > { %3876 = vmatprep.subr.mxu1 %v3128_v7  ;;  %3858 = vmatpush3.msra.mxu0 %v3108_v5 }
 0x26e   : > { %3873 = vmatprep.mubr.msk.f32.mxu0 %vm215_vm0, %v2239_v10  ;;  %3877 = vmatpush3.msra.mxu1 %v3128_v7 }
 0x26f   : > { %3892 = vmatprep.mubr.msk.f32.mxu1 %vm215_vm0, %v2423_v15  ;;  %3859 = vmatprep.subr.mxu0 %v3107_v11 }
 0x270   : > { %3878 = vmatprep.subr.mxu1 %v3127_v14  ;;  %3860 = vmatpush3.msra.mxu0 %v3107_v11 }
 0x271   : > { %3879 = vmatpush3.msra.mxu1 %v3127_v14  ;;  %3861 = vmatprep.subr.mxu0 %v3106_v16 }
 0x272   : > { %3880 = vmatprep.subr.mxu1 %v3126_v17  ;;  %3862 = vmatpush3.msra.mxu0 %v3106_v16 }
 0x273   : > { %3881 = vmatpush3.msra.mxu1 %v3126_v17  ;;  %3863 = vmatprep.subr.mxu0 %v3105_v18 }
 0x274   : > { %3882 = vmatprep.subr.mxu1 %v3125_v20  ;;  %3864 = vmatpush3.msra.mxu0 %v3105_v18 }
 0x275   : > { %3883 = vmatpush3.msra.mxu1 %v3125_v20  ;;  %3865 = vmatprep.subr.mxu0 %v3104_v21 }
 0x276   : > { %3884 = vmatprep.subr.mxu1 %v3124_v22  ;;  %3866 = vmatpush3.msra.mxu0 %v3104_v21 }
 0x277   : > { %3885 = vmatpush3.msra.mxu1 %v3124_v22  ;;  %3867 = vmatprep.subr.mxu0 %v3103_v23 }
 0x278   : > { %3886 = vmatprep.subr.mxu1 %v3123_v24  ;;  %3868 = vmatpush3.msra.mxu0 %v3103_v23 }
 0x279   : > { %3887 = vmatpush3.msra.mxu1 %v3123_v24  ;;  %3869 = vmatprep.subr.mxu0 %v3102_v25 }
 0x27a   : > { %3888 = vmatprep.subr.mxu1 %v3122_v26  ;;  %3870 = vmatpush3.msra.mxu0 %v3102_v25 }
 0x27b   : > { %3889 = vmatpush3.msra.mxu1 %v3122_v26  ;;  %3871 = vmatprep.subr.mxu0 %v3101_v27 }
 0x27c   : > { %3890 = vmatprep.subr.mxu1 %v3121_v28  ;;  %3872 = vmatpush3.msra.mxu0 %v3101_v27 }
 0x27d   : > { %3891 = vmatpush3.msra.mxu1 %v3121_v28  ;;  %3874 = vmatmul.mubr.msk.f32.vlgmr.msra.gmra.mxu0 %vm215_vm0, %v2423_v15 }
 0x27e   : > { %3893 = vmatmul.mubr.msk.f32.vlgmr.msra.gmra.mxu1 %vm215_vm0, %v2424_v30  ;;  %3895 = vmatprep.subr.mxu0 %v3146_v4 }
 0x27f   : > { %3914 = vmatprep.subr.mxu1 %v3138_v29  ;;  %3896 = vmatpush3.msra.mxu0 %v3146_v4 }
 0x280   : > { %3911 = vmatprep.mubr.msk.f32.mxu0 %vm215_vm0, %v2530_v31  ;;  %3915 = vmatpush3.msra.mxu1 %v3138_v29 }
 0x281   : > { %3930 = vmatprep.mubr.msk.f32.mxu1 %vm215_vm0, %v2519_v34  ;;  %3897 = vmatprep.subr.mxu0 %v3145_v32 }
 0x282   : > { %3916 = vmatprep.subr.mxu1 %v3137_v33  ;;  %3898 = vmatpush3.msra.mxu0 %v3145_v32  ;;  %v3162_v32 = vld [vmem:[%s4795_s2 + $0x2] ss:$0 sm:$0xff] }
 0x283   : > { %3917 = vmatpush3.msra.mxu1 %v3137_v33  ;;  %3899 = vmatprep.subr.mxu0 %v3144_v35 }
 0x284   : > { %3918 = vmatprep.subr.mxu1 %v3136_v36  ;;  %3900 = vmatpush3.msra.mxu0 %v3144_v35 }
 0x285   : > { %3919 = vmatpush3.msra.mxu1 %v3136_v36  ;;  %3901 = vmatprep.subr.mxu0 %v3143_v37 }
 0x286   : > { %3920 = vmatprep.subr.mxu1 %v3135_v38  ;;  %3902 = vmatpush3.msra.mxu0 %v3143_v37 }
 0x287   : > { %3921 = vmatpush3.msra.mxu1 %v3135_v38  ;;  %3903 = vmatprep.subr.mxu0 %v3142_v39 }
 0x288   : > { %3922 = vmatprep.subr.mxu1 %v3134_v40  ;;  %3904 = vmatpush3.msra.mxu0 %v3142_v39 }
 0x289   : > { %3923 = vmatpush3.msra.mxu1 %v3134_v40  ;;  %3905 = vmatprep.subr.mxu0 %v3141_v41 }
 0x28a   : > { %3924 = vmatprep.subr.mxu1 %v3133_v42  ;;  %3906 = vmatpush3.msra.mxu0 %v3141_v41 }
 0x28b   : > { %3925 = vmatpush3.msra.mxu1 %v3133_v42  ;;  %3907 = vmatprep.subr.mxu0 %v3140_v45 }
 0x28c   : > { %3926 = vmatprep.subr.mxu1 %v3132_v46  ;;  %3908 = vmatpush3.msra.mxu0 %v3140_v45 }
 0x28d   : > { %3927 = vmatpush3.msra.mxu1 %v3132_v46  ;;  %3909 = vmatprep.subr.mxu0 %v3139_v43 }
 0x28e   : > { %3928 = vmatprep.subr.mxu1 %v3131_v44  ;;  %3910 = vmatpush3.msra.mxu0 %v3139_v43 }
 0x28f   : > { %3929 = vmatpush3.msra.mxu1 %v3131_v44  ;;  %3912 = vmatmul.mubr.msk.f32.vlgmr.msra.gmra.mxu0 %vm215_vm0, %v2531_v48 }
 0x290   : > { %3931 = vmatmul.mubr.msk.f32.vlgmr.msra.gmra.mxu1 %vm215_vm0, %v2520_v49  ;;  %3933 = vmatprep.subr.mxu0 %v3158_v47 }
 0x291   : > { %3949 = vmatprep.mubr.msk.f32.mxu0 %vm215_vm0, %v2520_v49  ;;  %3934 = vmatpush3.msra.mxu0 %v3158_v47 }
 0x292   : > { %3935 = vmatprep.subr.mxu0 %v3157_v50 }
 0x293   : > { %3936 = vmatpush3.msra.mxu0 %v3157_v50 }
 0x294   : > { %3937 = vmatprep.subr.mxu0 %v3156_v51 }
 0x295   : > { %3938 = vmatpush3.msra.mxu0 %v3156_v51 }
 0x296   : > { %3939 = vmatprep.subr.mxu0 %v3155_v52 }
 0x297   : > { %3940 = vmatpush3.msra.mxu0 %v3155_v52 }
 0x298   : > { %3941 = vmatprep.subr.mxu0 %v3154_v53 }
 0x299   : > { %3942 = vmatpush3.msra.mxu0 %v3154_v53 }
 0x29a   : > { %3943 = vmatprep.subr.mxu0 %v3153_v54 }
 0x29b   : > { %3944 = vmatpush3.msra.mxu0 %v3153_v54 }
 0x29c   : > { %3945 = vmatprep.subr.mxu0 %v3152_v55 }
 0x29d   : > { %3946 = vmatpush3.msra.mxu0 %v3152_v55 }
 0x29e   : > { %3947 = vmatprep.subr.mxu0 %v3151_v56 }
 0x29f   : > { %3948 = vmatpush3.msra.mxu0 %v3151_v56 }
 0x2a0   : > { %3950 = vmatmul.mubr.msk.f32.vlgmr.msra.gmra.mxu0 %vm215_vm0, %v2704_v57 }
 0x31a   : > { %v3799_v58 = vpop.f32.mrf.mxu0 }
 0x31b   : > { %v3818_v59 = vpop.f32.mrf.mxu1 }
 0x31c   : > { %v2051_v60 = vpop.f32.mrf.mxu0  ;;  %v2138_v10 = vadd.f32 %v3818_v59, %v3799_v58 }
 0x31d   : > { %v2132_v61 = vpop.f32.mrf.mxu1 }
 0x31e   : > { %v2133_v14 = vadd.f32 %v2132_v61, %v2051_v60 }
 0x32b   : > { %v3837_v62 = vpop.f32.mrf.mxu0 }
 0x32c   : > { %v3856_v63 = vpop.f32.mrf.mxu1  ;;  %v2234_v15 = vadd.f32 %v3837_v62, %v2138_v10 }
 0x32d   : > { %v2224_v0 = vpop.f32.mrf.mxu0 }
 0x32e   : > { %v2333_v1 = vpop.f32.mrf.mxu1  ;;  %v2233_v20 = vadd.f32 %v2224_v0, %v2133_v14  ;;  %v2236_v24 = vmul.f32 %v4322_v6, %v2234_v15  ;;  %v3164_v6 = vld [vmem:[%s4796_s3 + $0x2] ss:$0 sm:$0xff] }
 0x330   : > { %v2235_v4 = vmul.f32 %v4325_v12, %v2233_v20 }
 0x33d   : > { %v3875_v2 = vpop.f32.mrf.mxu0 }
 0x33e   : > { %v3894_v3 = vpop.f32.mrf.mxu1  ;;  %v2420_v11 = vadd.f32 %v3875_v2, %v3856_v63 }
 0x33f   : > { %v2414_v5 = vpop.f32.mrf.mxu0 }
 0x340   : > { %v2506_v7 = vpop.f32.mrf.mxu1  ;;  %v2415_v16 = vadd.f32 %v2414_v5, %v2333_v1  ;;  %v2516_v21 = vadd.f32 %v3894_v3, %v2420_v11 }
 0x342   : > { %v2515_v25 = vadd.f32 %v2506_v7, %v2415_v16  ;;  %v2518_v29 = vadd.f32 %v2516_v21, %v2236_v24 }
 0x344   : > { %v2517_v33 = vadd.f32 %v2515_v25, %v2235_v4 }
 0x34f   : > { %v3913_v8 = vpop.f32.mrf.mxu0 }
 0x350   : > { %v3932_v9 = vpop.f32.mrf.mxu1 }
 0x351   : > { %v2613_v17 = vpop.f32.mrf.mxu0  ;;  %v2700_v22 = vadd.f32 %v3932_v9, %v3913_v8 }
 0x352   : > { %v2694_v18 = vpop.f32.mrf.mxu1 }
 0x353   : > { %v2695_v26 = vadd.f32 %v2694_v18, %v2613_v17 }
 0x360   : > { %v3951_v23 = vpop.f32.mrf.mxu0 }
 0x361   : > { %v2796_v27 = vadd.f32 %v3951_v23, %v2700_v22 }
 0x362   : > { %v2786_v28 = vpop.f32.mrf.mxu0 }
 0x363   : > { %v2798_v30 = vmul.f32 %v4328_v13, %v2796_v27  ;;  %v2795_v31 = vadd.f32 %v2786_v28, %v2695_v26 }
 0x365   : > { %v2800_v34 = vadd.f32 %v2798_v30, %v2518_v29  ;;  %v2797_v35 = vmul.f32 %v4332_v19, %v2795_v31 }
 0x367   : > { %v2810_v36 = vmul.f32 %v3162_v32, %v2800_v34  ;;  %v2799_v37 = vadd.f32 %v2797_v35, %v2517_v33 }
 0x369   : > { %v2820_v38 = vadd.f32 %v3164_v6, %v2810_v36  ;;  %v2809_v12 = vmul.f32 %v3162_v32, %v2799_v37 }
 0x36b   : > { %v2822_v13 = vmax.f32 %v2820_v38, 0.0  ;;  %v2819_v39 = vadd.f32 %v3164_v6, %v2809_v12 }
 0x36d   : > { %2824 = vst.msk [vmem:[%s197_s30 + $0x8] sm:$0xff] %vm215_vm0, %v2822_v13  ;;  %v2821_v40 = vmax.f32 %v2819_v39, 0.0 }
 0x36f   : > { %2823 = vst.msk [vmem:[%s197_s30] sm:$0xff] %vm215_vm0, %v2821_v40 }
 0x370 PF: > { %s14_s15 = sadd.s32 1, %s3967_s15  }
 0x371   : > { %p11_p4 = scmp.ge.s32.totalorder %s14_s15, 4  }
 0x373   :  { %13 = sbr.rel (!%p11_p4) target bundleno = 1 (0x1), region = 96 }

// kernel: model_forward.6
= control target key start
LH: loop header
LB: loop body
LE: loop exit
PB: predicated region body
PF: predicated region fallthrough
CT: control target
= control target key end

     0   :  { %s9884_s15 = smov 0   ;;  %s13790_s0 = inlined_call_operand.vmem [shape: f32[2,256,64], index: 0, kind: input, shape index: {}]   ;;  %s13791_s1 = inlined_call_operand.vmem [shape: f32[2,9,64,64], index: 1, kind: input, shape index: {}]   ;;  %s13792_s2 = inlined_call_operand.vmem [shape: f32[2,1,64], index: 2, kind: input, shape index: {}]   ;;  %s13793_s3 = inlined_call_operand.vmem [shape: f32[2,1,64], index: 3, kind: input, shape index: {}]   ;;  %s13794_s4 = inlined_call_operand.vmem [shape: f32[2,256,64], index: 4, kind: output, shape index: {}]  }
   0x1 LB: > { %s7206_s16 = sadd.s32 4294967295, %s9856_s15   ;;  %p7210_p0 = scmp.ge.s32.totalorder %s9856_s15, 1  ;;  %s9856_s15 = sphi %s9884_s15, %s14_s15  }
   0x2   : > { %p162_p1 = scmp.lt.s32.totalorder %s9856_s15, 3 }
   0x4   : > { %p163_p2 = pnand %p7210_p0, %p162_p1 }
   0x6   : > { %166 = sbr.rel (%p163_p2) target bundleno = 1036 (0x40c), region = 36 }
   0xb   : > { %v7254_v0 = vld [vmem:[%s13791_s1 + $0xf8] sm:$0xff]  ;;  %v7253_v2 = vld [vmem:[%s13791_s1 + $0xf0] sm:$0xff]  ;;  %p9903_p3 = scmp.lt.s32.totalorder %s7206_s16, 1  ;;  %vm455_vm0 = vcmask 523264   ;;  %v13795_v4 = vmov 0.0   ;;  %v7252_v5 = vld [vmem:[%s13791_s1 + $0xe8] sm:$0xff] }
   0xc   : > { %v597_v1 = vld [vmem:[%s13791_s1 + $0x38] sm:$0xff]  ;;  %8689 = vmatprep.subr.mxu0 %v7254_v0  ;;  %v596_v3 = vld [vmem:[%s13791_s1 + $0x30] sm:$0xff]  ;;  %458 = vst.msk [vmem:[#allocation2 + $0x10] sm:$0xff] %vm455_vm0, %v13795_v4  ;;  %459 = vst.msk [vmem:[#allocation2 + $0x18] sm:$0xff] %vm455_vm0, %v13795_v4 }
   0xd   : > { %8753 = vmatprep.subr.mxu1 %v597_v1  ;;  %456 = vst.msk [vmem:[#allocation2] sm:$0xff] %vm455_vm0, %v13795_v4  ;;  %457 = vst.msk [vmem:[#allocation2 + $0x8] sm:$0xff] %vm455_vm0, %v13795_v4  ;;  %8690 = vmatpush3.msra.mxu0 %v7254_v0  ;;  %v595_v6 = vld [vmem:[%s13791_s1 + $0x28] sm:$0xff]  ;;  %s14260_s16 = smov (!%p9903_p3, %s7206_s16), 1  ;;  %v7251_v7 = vld [vmem:[%s13791_s1 + $0xe0] sm:$0xff] }
   0xe   : > { %460 = vst.msk [vmem:[#allocation2 + $0x20] sm:$0xff] %vm455_vm0, %v13795_v4  ;;  %461 = vst.msk [vmem:[#allocation2 + $0x28] sm:$0xff] %vm455_vm0, %v13795_v4  ;;  %8754 = vmatpush3.msra.mxu1 %v597_v1  ;;  %8691 = vmatprep.subr.mxu0 %v7253_v2  ;;  %v594_v8 = vld [vmem:[%s13791_s1 + $0x20] sm:$0xff]  ;;  %s7967_s8 = sshll.u32 %s14260_s16, 8  ;;  %v7250_v9 = vld [vmem:[%s13791_s1 + $0xd8] sm:$0xff] }
   0xf   : > { %462 = vst.msk [vmem:[#allocation2 + $0x30] sm:$0xff] %vm455_vm0, %v13795_v4  ;;  %463 = vst.msk [vmem:[#allocation2 + $0x38] sm:$0xff] %vm455_vm0, %v13795_v4  ;;  %8755 = vmatprep.subr.mxu1 %v596_v3  ;;  %8692 = vmatpush3.msra.mxu0 %v7253_v2  ;;  %v593_v10 = vld [vmem:[%s13791_s1 + $0x18] sm:$0xff]  ;;  %s10016_s17 = scalar_lea.vmem %s13790_s0, %s7967_s8  ;;  %v7249_v11 = vld [vmem:[%s13791_s1 + $0xd0] sm:$0xff]  ;;  %s13564_s21 = scalar_lea.vmem %s13794_s4, %s7967_s8 }
  0x10   : > { %464 = vst.msk [vmem:[#allocation2 + $0x40] sm:$0xff] %vm455_vm0, %v13795_v4  ;;  %465 = vst.msk [vmem:[#allocation2 + $0x48] sm:$0xff] %vm455_vm0, %v13795_v4  ;;  %8756 = vmatpush3.msra.mxu1 %v596_v3  ;;  %8693 = vmatprep.subr.mxu0 %v7252_v5  ;;  %v592_v12 = vld [vmem:[%s13791_s1 + $0x10] sm:$0xff]  ;;  %v494_v13 = vld [vmem:[%s10016_s17] sm:$0xff] }
  0x11   : > { %466 = vst.msk [vmem:[#allocation2 + $0x50] sm:$0xff] %vm455_vm0, %v13795_v4  ;;  %467 = vst.msk [vmem:[#allocation2 + $0x58] sm:$0xff] %vm455_vm0, %v13795_v4  ;;  %8757 = vmatprep.subr.mxu1 %v595_v6  ;;  %8694 = vmatpush3.msra.mxu0 %v7252_v5  ;;  %v495_v14 = vld [vmem:[%s10016_s17 + $0x8] sm:$0xff]  ;;  %v496_v15 = vld [vmem:[%s10016_s17 + $0x10] sm:$0xff] }
  0x12   : > { %468 = vst.msk [vmem:[#allocation2 + $0x60] sm:$0xff] %vm455_vm0, %v13795_v4  ;;  %469 = vst.msk [vmem:[#allocation2 + $0x68] sm:$0xff] %vm455_vm0, %v13795_v4  ;;  %8758 = vmatpush3.msra.mxu1 %v595_v6  ;;  %8695 = vmatprep.subr.mxu0 %v7251_v7  ;;  %v497_v16 = vld [vmem:[%s10016_s17 + $0x18] sm:$0xff]  ;;  %v498_v17 = vld [vmem:[%s10016_s17 + $0x20] sm:$0xff] }
  0x13   : > { %470 = vst.msk [vmem:[#allocation2 + $0x70] sm:$0xff] %vm455_vm0, %v13795_v4  ;;  %471 = vst.msk [vmem:[#allocation2 + $0x78] sm:$0xff] %vm455_vm0, %v13795_v4  ;;  %8759 = vmatprep.subr.mxu1 %v594_v8  ;;  %v499_v18 = vld [vmem:[%s10016_s17 + $0x28] sm:$0xff]  ;;  %8696 = vmatpush3.msra.mxu0 %v7251_v7  ;;  %v500_v21 = vld [vmem:[%s10016_s17 + $0x30] sm:$0xff] }
  0x14   : > { %472 = vst.msk [vmem:[#allocation2 + $0x80] sm:$0xff] %vm455_vm0, %v13795_v4  ;;  %473 = vst.msk [vmem:[#allocation2 + $0x88] sm:$0xff] %vm455_vm0, %v13795_v4  ;;  %8760 = vmatpush3.msra.mxu1 %v594_v8  ;;  %v7248_v19 = vld [vmem:[%s13791_s1 + $0xc8] sm:$0xff]  ;;  %8697 = vmatprep.subr.mxu0 %v7250_v9  ;;  %v501_v22 = vld [vmem:[%s10016_s17 + $0x38] sm:$0xff] }
  0x15   : > { %474 = vst.msk [vmem:[#allocation2 + $0x90] sm:$0xff] %vm455_vm0, %v13795_v4  ;;  %475 = vst.msk [vmem:[#allocation2 + $0x98] sm:$0xff] %vm455_vm0, %v13795_v4  ;;  %v591_v20 = vld [vmem:[%s13791_s1 + $0x8] sm:$0xff]  ;;  %8761 = vmatprep.subr.mxu1 %v593_v10  ;;  %v502_v23 = vld [vmem:[%s10016_s17 + $0x40] sm:$0xff]  ;;  %8698 = vmatpush3.msra.mxu0 %v7250_v9 }
  0x16   : > { %476 = vst.msk [vmem:[#allocation2 + $0xa0] sm:$0xff] %vm455_vm0, %v13795_v4  ;;  %477 = vst.msk [vmem:[#allocation2 + $0xa8] sm:$0xff] %vm455_vm0, %v13795_v4  ;;  %v503_v24 = vld [vmem:[%s10016_s17 + $0x48] sm:$0xff]  ;;  %8762 = vmatpush3.msra.mxu1 %v593_v10  ;;  %v7247_v25 = vld [vmem:[%s13791_s1 + $0xc0] sm:$0xff]  ;;  %8699 = vmatprep.subr.mxu0 %v7249_v11 }
  0x17   : > { %478 = vst.msk [vmem:[#allocation2 + $0xb0] sm:$0xff] %vm455_vm0, %v13795_v4  ;;  %479 = vst.msk [vmem:[#allocation2 + $0xb8] sm:$0xff] %vm455_vm0, %v13795_v4  ;;  %v504_v26 = vld [vmem:[%s10016_s17 + $0x50] sm:$0xff]  ;;  %v505_v27 = vld [vmem:[%s10016_s17 + $0x58] sm:$0xff]  ;;  %8763 = vmatprep.subr.mxu1 %v592_v12  ;;  %8700 = vmatpush3.msra.mxu0 %v7249_v11 }
  0x18   : > { %480 = vst.msk [vmem:[#allocation2 + $0xc0] sm:$0xff] %vm455_vm0, %v13795_v4  ;;  %481 = vst.msk [vmem:[#allocation2 + $0xc8] sm:$0xff] %vm455_vm0, %v13795_v4  ;;  %v590_v28 = vld [vmem:[%s13791_s1] sm:$0xff]  ;;  %v507_v30 = vld [vmem:[%s10016_s17 + $0x68] sm:$0xff]  ;;  %8764 = vmatpush3.msra.mxu1 %v592_v12  ;;  %8701 = vmatprep.subr.mxu0 %v7248_v19 }
  0x19   : > { %482 = vst.msk [vmem:[#allocation2 + $0xd0] sm:$0xff] %vm455_vm0, %v13795_v4  ;;  %483 = vst.msk [vmem:[#allocation2 + $0xd8] sm:$0xff] %vm455_vm0, %v13795_v4  ;;  %v506_v29 = vld [vmem:[%s10016_s17 + $0x60] sm:$0xff]  ;;  %v508_v31 = vld [vmem:[%s10016_s17 + $0x70] sm:$0xff]  ;;  %8765 = vmatprep.subr.mxu1 %v591_v20  ;;  %8702 = vmatpush3.msra.mxu0 %v7248_v19 }
  0x1a   : > { %484 = vst.msk [vmem:[#allocation2 + $0xe0] sm:$0xff] %vm455_vm0, %v13795_v4  ;;  %485 = vst.msk [vmem:[#allocation2 + $0xe8] sm:$0xff] %vm455_vm0, %v13795_v4  ;;  %v509_v32 = vld [vmem:[%s10016_s17 + $0x78] sm:$0xff]  ;;  %v510_v33 = vld [vmem:[%s10016_s17 + $0x80] sm:$0xff]  ;;  %8766 = vmatpush3.msra.mxu1 %v591_v20  ;;  %8703 = vmatprep.subr.mxu0 %v7247_v25 }
  0x1b   : > { %486 = vst.msk [vmem:[#allocation2 + $0xf0] sm:$0xff] %vm455_vm0, %v13795_v4  ;;  %487 = vst.msk [vmem:[#allocation2 + $0xf8] sm:$0xff] %vm455_vm0, %v13795_v4  ;;  %v511_v34 = vld [vmem:[%s10016_s17 + $0x88] sm:$0xff]  ;;  %v512_v35 = vld [vmem:[%s10016_s17 + $0x90] sm:$0xff]  ;;  %8767 = vmatprep.subr.mxu1 %v590_v28  ;;  %8704 = vmatpush3.msra.mxu0 %v7247_v25 }
  0x1c   : > { %488 = vst.msk [vmem:[#allocation2 + $0x100] sm:$0xff] %vm455_vm0, %v13795_v4  ;;  %489 = vst.msk [vmem:[#allocation2 + $0x108] sm:$0xff] %vm455_vm0, %v13795_v4  ;;  %v558_v37 = vld [vmem:[#allocation2 + $0x7] sm:$0xff]  ;;  %v559_v39 = vld [vmem:[#allocation2 + $0xf] sm:$0xff]  ;;  %8768 = vmatpush3.msra.mxu1 %v590_v28 }
  0x1d   : > { %490 = vst.msk [vmem:[#allocation2 + $0x110] sm:$0xff] %vm455_vm0, %v13795_v4  ;;  %491 = vst.msk [vmem:[#allocation2 + $0x118] sm:$0xff] %vm455_vm0, %v13795_v4  ;;  %v7326_v40 = vld [vmem:[%s13791_s1 + $0x1b8] sm:$0xff]  ;;  %v514_v43 = vld [vmem:[%s10016_s17 + $0xa0] sm:$0xff]  ;;  %8769 = vmatprep.mubr.msk.f32.mxu1 %vm455_vm0, %v558_v37 }
  0x1e   : > { %492 = vst.msk [vmem:[#allocation2 + $0x120] sm:$0xff] %vm455_vm0, %v13795_v4  ;;  %493 = vst.msk [vmem:[#allocation2 + $0x128] sm:$0xff] %vm455_vm0, %v13795_v4  ;;  %v513_v42 = vld [vmem:[%s10016_s17 + $0x98] sm:$0xff]  ;;  %8770 = vmatmul.mubr.msk.f32.vlgmr.msra.gmra.mxu1 %vm455_vm0, %v559_v39  ;;  %v7325_v44 = vld [vmem:[%s13791_s1 + $0x1b0] sm:$0xff]  ;;  %8817 = vmatprep.subr.mxu0 %v7326_v40 }
  0x1f   : > { %526 = vst.msk [vmem:[#allocation2 + $0x18] sm:$0xff] %vm455_vm0, %v494_v13  ;;  %527 = vst.msk [vmem:[#allocation2 + $0x20] sm:$0xff] %vm455_vm0, %v495_v14  ;;  %v515_v45 = vld [vmem:[%s10016_s17 + $0xa8] sm:$0xff]  ;;  %v516_v49 = vld [vmem:[%s10016_s17 + $0xb0] sm:$0xff] }
  0x20   : > { %528 = vst.msk [vmem:[#allocation2 + $0x28] sm:$0xff] %vm455_vm0, %v496_v15  ;;  %529 = vst.msk [vmem:[#allocation2 + $0x30] sm:$0xff] %vm455_vm0, %v497_v16  ;;  %v7324_v48 = vld [vmem:[%s13791_s1 + $0x1a8] sm:$0xff]  ;;  %v517_v50 = vld [vmem:[%s10016_s17 + $0xb8] sm:$0xff] }
  0x21   : > { %530 = vst.msk [vmem:[#allocation2 + $0x38] sm:$0xff] %vm455_vm0, %v498_v17  ;;  %531 = vst.msk [vmem:[#allocation2 + $0x40] sm:$0xff] %vm455_vm0, %v499_v18  ;;  %v518_v51 = vld [vmem:[%s10016_s17 + $0xc0] sm:$0xff]  ;;  %v519_v52 = vld [vmem:[%s10016_s17 + $0xc8] sm:$0xff] }
  0x22   : > { %532 = vst.msk [vmem:[#allocation2 + $0x48] sm:$0xff] %vm455_vm0, %v500_v21  ;;  %533 = vst.msk [vmem:[#allocation2 + $0x50] sm:$0xff] %vm455_vm0, %v501_v22  ;;  %v7374_v54 = vld [vmem:[%s13791_s1 + $0x138] sm:$0xff]  ;;  %v520_v56 = vld [vmem:[%s10016_s17 + $0xd0] sm:$0xff] }
  0x23   : > { %534 = vst.msk [vmem:[#allocation2 + $0x58] sm:$0xff] %vm455_vm0, %v502_v23  ;;  %535 = vst.msk [vmem:[#allocation2 + $0x60] sm:$0xff] %vm455_vm0, %v503_v24  ;;  %8881 = vmatprep.subr.mxu1 %v7374_v54  ;;  %v7373_v57 = vld [vmem:[%s13791_s1 + $0x130] sm:$0xff]  ;;  %v521_v58 = vld [vmem:[%s10016_s17 + $0xd8] sm:$0xff] }
  0x24   : > { %536 = vst.msk [vmem:[#allocation2 + $0x68] sm:$0xff] %vm455_vm0, %v504_v26  ;;  %537 = vst.msk [vmem:[#allocation2 + $0x70] sm:$0xff] %vm455_vm0, %v505_v27  ;;  %8882 = vmatpush3.msra.mxu1 %v7374_v54  ;;  %v7323_v59 = vld [vmem:[%s13791_s1 + $0x1a0] sm:$0xff]  ;;  %v523_v61 = vld [vmem:[%s10016_s17 + $0xe8] sm:$0xff] }
  0x25   : > { %538 = vst.msk [vmem:[#allocation2 + $0x78] sm:$0xff] %vm455_vm0, %v506_v29  ;;  %539 = vst.msk [vmem:[#allocation2 + $0x80] sm:$0xff] %vm455_vm0, %v507_v30  ;;  %v522_v60 = vld [vmem:[%s10016_s17 + $0xe0] sm:$0xff]  ;;  %8883 = vmatprep.subr.mxu1 %v7373_v57  ;;  %v524_v0 = vld [vmem:[%s10016_s17 + $0xf0] sm:$0xff] }
  0x26   : > { %540 = vst.msk [vmem:[#allocation2 + $0x88] sm:$0xff] %vm455_vm0, %v508_v31  ;;  %541 = vst.msk [vmem:[#allocation2 + $0x90] sm:$0xff] %vm455_vm0, %v509_v32  ;;  %v560_v36 = vld [vmem:[#allocation2 + $0x17] sm:$0xff]  ;;  %v561_v38 = vld [vmem:[#allocation2 + $0x1f] sm:$0xff]  ;;  %8884 = vmatpush3.msra.mxu1 %v7373_v57 }
  0x27   : > { %542 = vst.msk [vmem:[#allocation2 + $0x98] sm:$0xff] %vm455_vm0, %v510_v33  ;;  %543 = vst.msk [vmem:[#allocation2 + $0xa0] sm:$0xff] %vm455_vm0, %v511_v34  ;;  %8705 = vmatprep.mubr.msk.f32.mxu0 %vm455_vm0, %v560_v36  ;;  %v10078_v41 = vld [vmem:[#allocation2 + $0x27] sm:$0xff]  ;;  %v10093_v46 = vld [vmem:[#allocation2 + $0x2f] sm:$0xff]  ;;  %8772 = vmatprep.mubr.msk.f32.mxu1 %vm455_vm0, %v560_v36 }
  0x28   : > { %544 = vst.msk [vmem:[#allocation2 + $0xa8] sm:$0xff] %vm455_vm0, %v512_v35  ;;  %545 = vst.msk [vmem:[#allocation2 + $0xb0] sm:$0xff] %vm455_vm0, %v513_v42  ;;  %8706 = vmatmul.mubr.msk.f32.vlgmr.msra.gmra.mxu0 %vm455_vm0, %v561_v38  ;;  %v10097_v47 = vld [vmem:[#allocation2 + $0x37] sm:$0xff]  ;;  %8773 = vmatmul.mubr.msk.f32.gmra.mxu1 %vm455_vm0, %v561_v38  ;;  %v10114_v53 = vld [vmem:[#allocation2 + $0x3f] sm:$0xff] }
  0x29   : > { %546 = vst.msk [vmem:[#allocation2 + $0xb8] sm:$0xff] %vm455_vm0, %v514_v43  ;;  %8708 = vmatprep.mubr.msk.f32.mxu0 %vm455_vm0, %v10078_v41  ;;  %547 = vst.msk [vmem:[#allocation2 + $0xc0] sm:$0xff] %vm455_vm0, %v515_v45  ;;  %8818 = vmatpush3.msra.mxu0 %v7326_v40  ;;  %v10122_v55 = vld [vmem:[#allocation2 + $0x47] sm:$0xff]  ;;  %v10144_v62 = vld [vmem:[#allocation2 + $0x4f] sm:$0xff] }
  0x2a   : > { %8819 = vmatprep.subr.mxu0 %v7325_v44  ;;  %548 = vst.msk [vmem:[#allocation2 + $0xc8] sm:$0xff] %vm455_vm0, %v516_v49  ;;  %8775 = vmatprep.mubr.msk.f32.mxu1 %vm455_vm0, %v10078_v41  ;;  %549 = vst.msk [vmem:[#allocation2 + $0xd0] sm:$0xff] %vm455_vm0, %v517_v50  ;;  %v10148_v63 = vld [vmem:[#allocation2 + $0x57] sm:$0xff]  ;;  %v7372_v2 = vld [vmem:[%s13791_s1 + $0x128] sm:$0xff] }
  0x2b   : > { %550 = vst.msk [vmem:[#allocation2 + $0xd8] sm:$0xff] %vm455_vm0, %v518_v51  ;;  %551 = vst.msk [vmem:[#allocation2 + $0xe0] sm:$0xff] %vm455_vm0, %v519_v52  ;;  %8820 = vmatpush3.msra.mxu0 %v7325_v44  ;;  %v525_v1 = vld [vmem:[%s10016_s17 + $0xf8] sm:$0xff]  ;;  %v10170_v6 = vld [vmem:[#allocation2 + $0x67] sm:$0xff]  ;;  %8885 = vmatprep.subr.mxu1 %v7372_v2 }
  0x2c   : > { %8709 = vmatmul.mubr.msk.f32.gmra.mxu0 %vm455_vm0, %v10093_v46  ;;  %8821 = vmatprep.subr.mxu0 %v7324_v48  ;;  %552 = vst.msk [vmem:[#allocation2 + $0xe8] sm:$0xff] %vm455_vm0, %v520_v56  ;;  %553 = vst.msk [vmem:[#allocation2 + $0xf0] sm:$0xff] %vm455_vm0, %v521_v58  ;;  %v7322_v3 = vld [vmem:[%s13791_s1 + $0x198] sm:$0xff]  ;;  %v7371_v7 = vld [vmem:[%s13791_s1 + $0x120] sm:$0xff] }
  0x2d   : > { %8711 = vmatprep.mubr.msk.f32.mxu0 %vm455_vm0, %v10097_v47  ;;  %8776 = vmatmul.mubr.msk.f32.gmra.mxu1 %vm455_vm0, %v10093_v46  ;;  %554 = vst.msk [vmem:[#allocation2 + $0xf8] sm:$0xff] %vm455_vm0, %v522_v60  ;;  %555 = vst.msk [vmem:[#allocation2 + $0x100] sm:$0xff] %vm455_vm0, %v523_v61  ;;  %v10168_v5 = vld [vmem:[#allocation2 + $0x5f] sm:$0xff]  ;;  %v7321_v8 = vld [vmem:[%s13791_s1 + $0x190] sm:$0xff] }
  0x2e   : > { %8778 = vmatprep.mubr.msk.f32.mxu1 %vm455_vm0, %v10097_v47  ;;  %8822 = vmatpush3.msra.mxu0 %v7324_v48  ;;  %556 = vst.msk [vmem:[#allocation2 + $0x108] sm:$0xff] %vm455_vm0, %v524_v0  ;;  %557 = vst.msk [vmem:[#allocation2 + $0x110] sm:$0xff] %vm455_vm0, %v525_v1  ;;  %v10186_v9 = vld [vmem:[#allocation2 + $0x6f] sm:$0xff]  ;;  %v10188_v10 = vld [vmem:[#allocation2 + $0x77] sm:$0xff] }
  0x2f   : > { %8823 = vmatprep.subr.mxu0 %v7323_v59  ;;  %8886 = vmatpush3.msra.mxu1 %v7372_v2  ;;  %v7370_v11 = vld [vmem:[%s13791_s1 + $0x118] sm:$0xff]  ;;  %v7320_v12 = vld [vmem:[%s13791_s1 + $0x188] sm:$0xff]  ;;  %v7369_v15 = vld [vmem:[%s13791_s1 + $0x110] sm:$0xff] }
  0x30   : > { %8712 = vmatmul.mubr.msk.f32.gmra.mxu0 %vm455_vm0, %v10114_v53  ;;  %8887 = vmatprep.subr.mxu1 %v7371_v7  ;;  %v10204_v13 = vld [vmem:[#allocation2 + $0x7f] sm:$0xff]  ;;  %v10206_v14 = vld [vmem:[#allocation2 + $0x87] sm:$0xff]  ;;  %v10222_v17 = vld [vmem:[#allocation2 + $0x8f] sm:$0xff] }
  0x31   : > { %8714 = vmatprep.mubr.msk.f32.mxu0 %vm455_vm0, %v10122_v55  ;;  %8779 = vmatmul.mubr.msk.f32.gmra.mxu1 %vm455_vm0, %v10114_v53  ;;  %v7319_v16 = vld [vmem:[%s13791_s1 + $0x180] sm:$0xff]  ;;  %v10224_v18 = vld [vmem:[#allocation2 + $0x97] sm:$0xff]  ;;  %v7368_v19 = vld [vmem:[%s13791_s1 + $0x108] sm:$0xff] }
  0x32   : > { %8781 = vmatprep.mubr.msk.f32.mxu1 %vm455_vm0, %v10122_v55  ;;  %8824 = vmatpush3.msra.mxu0 %v7323_v59  ;;  %v10236_v20 = vld [vmem:[%s13791_s1 + $0x78] sm:$0xff]  ;;  %v10244_v22 = vld [vmem:[#allocation2 + $0xa7] sm:$0xff]  ;;  %v10258_v24 = vld [vmem:[#allocation2 + $0xaf] sm:$0xff] }
  0x33   : > { %8825 = vmatprep.subr.mxu0 %v7322_v3  ;;  %8888 = vmatpush3.msra.mxu1 %v7371_v7  ;;  %v10242_v21 = vld [vmem:[#allocation2 + $0x9f] sm:$0xff]  ;;  %v10260_v25 = vld [vmem:[#allocation2 + $0xb7] sm:$0xff]  ;;  %v10275_v28 = vld [vmem:[#allocation2 + $0xc7] sm:$0xff] }
  0x34   : > { %8715 = vmatmul.mubr.msk.f32.gmra.mxu0 %vm455_vm0, %v10144_v62  ;;  %8889 = vmatprep.subr.mxu1 %v7370_v11  ;;  %v7367_v23 = vld [vmem:[%s13791_s1 + $0x100] sm:$0xff]  ;;  %v7446_v26 = vld [vmem:[%s13791_s1 + $0x1f8] sm:$0xff]  ;;  %v10285_v29 = vld [vmem:[#allocation2 + $0xcf] sm:$0xff] }
  0x35   : > { %8717 = vmatprep.mubr.msk.f32.mxu0 %vm455_vm0, %v10148_v63  ;;  %8782 = vmatmul.mubr.msk.f32.gmra.mxu1 %vm455_vm0, %v10144_v62  ;;  %v10273_v27 = vld [vmem:[#allocation2 + $0xbf] sm:$0xff]  ;;  %v10287_v30 = vld [vmem:[#allocation2 + $0xd7] sm:$0xff]  ;;  %v10299_v32 = vld [vmem:[#allocation2 + $0xe7] sm:$0xff] }
  0x36   : > { %8784 = vmatprep.mubr.msk.f32.mxu1 %vm455_vm0, %v10148_v63  ;;  %8826 = vmatpush3.msra.mxu0 %v7322_v3  ;;  %v10297_v31 = vld [vmem:[#allocation2 + $0xdf] sm:$0xff]  ;;  %v10309_v33 = vld [vmem:[#allocation2 + $0xef] sm:$0xff]  ;;  %v10311_v34 = vld [vmem:[#allocation2 + $0xf7] sm:$0xff] }
  0x37   : > { %8827 = vmatprep.subr.mxu0 %v7321_v8  ;;  %8890 = vmatpush3.msra.mxu1 %v7370_v11  ;;  %v10321_v35 = vld [vmem:[#allocation2 + $0xff] sm:$0xff]  ;;  %v10323_v36 = vld [vmem:[#allocation2 + $0x107] sm:$0xff]  ;;  %v10333_v37 = vld [vmem:[#allocation2 + $0x10f] sm:$0xff] }
  0x38   : > { %8718 = vmatmul.mubr.msk.f32.gmra.mxu0 %vm455_vm0, %v10168_v5  ;;  %8891 = vmatprep.subr.mxu1 %v7369_v15  ;;  %v10335_v38 = vld [vmem:[#allocation2 + $0x18] sm:$0xff]  ;;  %v10345_v39 = vld [vmem:[#allocation2 + $0x20] sm:$0xff]  ;;  %v10347_v40 = vld [vmem:[#allocation2 + $0x28] sm:$0xff] }
  0x39   : > { %8720 = vmatprep.mubr.msk.f32.mxu0 %vm455_vm0, %v10170_v6  ;;  %8785 = vmatmul.mubr.msk.f32.gmra.mxu1 %vm455_vm0, %v10168_v5  ;;  %v7365_v42 = vld [vmem:[%s13791_s1 + $0x70] sm:$0xff]  ;;  %v10363_v43 = vld [vmem:[#allocation2 + $0x38] sm:$0xff]  ;;  %v7364_v44 = vld [vmem:[%s13791_s1 + $0x68] sm:$0xff] }
  0x3a   : > { %8787 = vmatprep.mubr.msk.f32.mxu1 %vm455_vm0, %v10170_v6  ;;  %8828 = vmatpush3.msra.mxu0 %v7321_v8  ;;  %v7445_v45 = vld [vmem:[%s13791_s1 + $0x1f0] sm:$0xff]  ;;  %v7363_v48 = vld [vmem:[%s13791_s1 + $0x60] sm:$0xff]  ;;  %v7444_v49 = vld [vmem:[%s13791_s1 + $0x1e8] sm:$0xff] }
  0x3b   : > { %8829 = vmatprep.subr.mxu0 %v7320_v12  ;;  %8892 = vmatpush3.msra.mxu1 %v7369_v15  ;;  %v10397_v50 = vld [vmem:[#allocation2 + $0x50] sm:$0xff]  ;;  %v10399_v51 = vld [vmem:[#allocation2 + $0x58] sm:$0xff]  ;;  %v10415_v54 = vld [vmem:[#allocation2 + $0x60] sm:$0xff] }
  0x3c   : > { %8721 = vmatmul.mubr.msk.f32.gmra.mxu0 %vm455_vm0, %v10186_v9  ;;  %8893 = vmatprep.subr.mxu1 %v7368_v19  ;;  %v7362_v52 = vld [vmem:[%s13791_s1 + $0x58] sm:$0xff]  ;;  %v7361_v56 = vld [vmem:[%s13791_s1 + $0x50] sm:$0xff]  ;;  %v7360_v60 = vld [vmem:[%s13791_s1 + $0x48] sm:$0xff] }
  0x3d   : > { %8723 = vmatprep.mubr.msk.f32.mxu0 %vm455_vm0, %v10188_v10  ;;  %8788 = vmatmul.mubr.msk.f32.gmra.mxu1 %vm455_vm0, %v10186_v9  ;;  %v7442_v57 = vld [vmem:[%s13791_s1 + $0x1d8] sm:$0xff]  ;;  %v10433_v58 = vld [vmem:[#allocation2 + $0x70] sm:$0xff]  ;;  %v7359_v0 = vld [vmem:[%s13791_s1 + $0x40] sm:$0xff] }
  0x3e   : > { %8790 = vmatprep.mubr.msk.f32.mxu1 %vm455_vm0, %v10188_v10  ;;  %8830 = vmatpush3.msra.mxu0 %v7320_v12  ;;  %v10435_v59 = vld [vmem:[#allocation2 + $0x78] sm:$0xff]  ;;  %v7441_v61 = vld [vmem:[%s13791_s1 + $0x1d0] sm:$0xff]  ;;  %v7440_v1 = vld [vmem:[%s13791_s1 + $0x1c8] sm:$0xff] }
  0x3f   : > { %8831 = vmatprep.subr.mxu0 %v7319_v16  ;;  %8894 = vmatpush3.msra.mxu1 %v7368_v19  ;;  %v10469_v2 = vld [vmem:[#allocation2 + $0x90] sm:$0xff]  ;;  %v10471_v3 = vld [vmem:[#allocation2 + $0x98] sm:$0xff]  ;;  %v10489_v7 = vld [vmem:[#allocation2 + $0xa0] sm:$0xff] }
  0x40   : > { %8724 = vmatmul.mubr.msk.f32.gmra.mxu0 %vm455_vm0, %v10204_v13  ;;  %8895 = vmatprep.subr.mxu1 %v7367_v23  ;;  %v10491_v8 = vld [vmem:[#allocation2 + $0xa8] sm:$0xff]  ;;  %v10507_v11 = vld [vmem:[#allocation2 + $0xb8] sm:$0xff]  ;;  %v10517_v12 = vld [vmem:[#allocation2 + $0xc0] sm:$0xff] }
  0x41   : > { %8726 = vmatprep.mubr.msk.f32.mxu0 %vm455_vm0, %v10206_v14  ;;  %8791 = vmatmul.mubr.msk.f32.gmra.mxu1 %vm455_vm0, %v10204_v13  ;;  %v10531_v15 = vld [vmem:[#allocation2 + $0xd8] sm:$0xff] }
  0x42   : > { %8793 = vmatprep.mubr.msk.f32.mxu1 %vm455_vm0, %v10206_v14  ;;  %8832 = vmatpush3.msra.mxu0 %v7319_v16  ;;  %v10541_v16 = vld [vmem:[#allocation2 + $0xe0] sm:$0xff]  ;;  %v10555_v19 = vld [vmem:[#allocation2 + $0xf8] sm:$0xff] }
  0x43   : > { %8945 = vmatprep.subr.mxu0 %v10236_v20  ;;  %8896 = vmatpush3.msra.mxu1 %v7367_v23  ;;  %v1192_v23 = vld [vmem:[#allocation2 + $0x11f] sm:$0xff] }
  0x44   : > { %8727 = vmatmul.mubr.msk.f32.gmra.mxu0 %vm455_vm0, %v10222_v17  ;;  %9009 = vmatprep.subr.mxu1 %v7446_v26 }
  0x45   : > { %8729 = vmatprep.mubr.msk.f32.mxu0 %vm455_vm0, %v10224_v18  ;;  %8794 = vmatmul.mubr.msk.f32.gmra.mxu1 %vm455_vm0, %v10222_v17 }
  0x46   : > { %8796 = vmatprep.mubr.msk.f32.mxu1 %vm455_vm0, %v10224_v18 }
  0x48   : > { %8730 = vmatmul.mubr.msk.f32.gmra.mxu0 %vm455_vm0, %v10242_v21 }
  0x49   : > { %8732 = vmatprep.mubr.msk.f32.mxu0 %vm455_vm0, %v10244_v22  ;;  %8797 = vmatmul.mubr.msk.f32.gmra.mxu1 %vm455_vm0, %v10242_v21 }
  0x4a   : > { %8799 = vmatprep.mubr.msk.f32.mxu1 %vm455_vm0, %v10244_v22 }
  0x4c   : > { %8733 = vmatmul.mubr.msk.f32.gmra.mxu0 %vm455_vm0, %v10258_v24 }
  0x4d   : > { %8735 = vmatprep.mubr.msk.f32.mxu0 %vm455_vm0, %v10260_v25  ;;  %8800 = vmatmul.mubr.msk.f32.gmra.mxu1 %vm455_vm0, %v10258_v24 }
  0x4e   : > { %8802 = vmatprep.mubr.msk.f32.mxu1 %vm455_vm0, %v10260_v25 }
  0x50   : > { %8736 = vmatmul.mubr.msk.f32.gmra.mxu0 %vm455_vm0, %v10273_v27 }
  0x51   : > { %8738 = vmatprep.mubr.msk.f32.mxu0 %vm455_vm0, %v10275_v28  ;;  %8803 = vmatmul.mubr.msk.f32.gmra.mxu1 %vm455_vm0, %v10273_v27 }
  0x52   : > { %8805 = vmatprep.mubr.msk.f32.mxu1 %vm455_vm0, %v10275_v28 }
  0x54   : > { %8739 = vmatmul.mubr.msk.f32.gmra.mxu0 %vm455_vm0, %v10285_v29 }
  0x55   : > { %8741 = vmatprep.mubr.msk.f32.mxu0 %vm455_vm0, %v10287_v30  ;;  %8806 = vmatmul.mubr.msk.f32.gmra.mxu1 %vm455_vm0, %v10285_v29 }
  0x56   : > { %8808 = vmatprep.mubr.msk.f32.mxu1 %vm455_vm0, %v10287_v30 }
  0x58   : > { %8742 = vmatmul.mubr.msk.f32.gmra.mxu0 %vm455_vm0, %v10297_v31 }
  0x59   : > { %8744 = vmatprep.mubr.msk.f32.mxu0 %vm455_vm0, %v10299_v32  ;;  %8809 = vmatmul.mubr.msk.f32.gmra.mxu1 %vm455_vm0, %v10297_v31 }
  0x5a   : > { %8811 = vmatprep.mubr.msk.f32.mxu1 %vm455_vm0, %v10299_v32 }
  0x5c   : > { %8745 = vmatmul.mubr.msk.f32.gmra.mxu0 %vm455_vm0, %v10309_v33 }
  0x5d   : > { %8747 = vmatprep.mubr.msk.f32.mxu0 %vm455_vm0, %v10311_v34  ;;  %8812 = vmatmul.mubr.msk.f32.gmra.mxu1 %vm455_vm0, %v10309_v33 }
  0x5e   : > { %8814 = vmatprep.mubr.msk.f32.mxu1 %vm455_vm0, %v10311_v34 }
  0x60   : > { %8748 = vmatmul.mubr.msk.f32.gmra.mxu0 %vm455_vm0, %v10321_v35 }
  0x61   : > { %8750 = vmatprep.mubr.msk.f32.mxu0 %vm455_vm0, %v10323_v36  ;;  %8815 = vmatmul.mubr.msk.f32.gmra.mxu1 %vm455_vm0, %v10321_v35 }
  0x62   : > { %8897 = vmatprep.mubr.msk.f32.mxu1 %vm455_vm0, %v10335_v38 }
  0x64   : > { %8751 = vmatmul.mubr.msk.f32.gmra.mxu0 %vm455_vm0, %v10333_v37 }
  0x65   : > { %8833 = vmatprep.mubr.msk.f32.mxu0 %vm455_vm0, %v10078_v41  ;;  %8898 = vmatmul.mubr.msk.f32.vlgmr.msra.gmra.mxu1 %vm455_vm0, %v10345_v39  ;;  %v10359_v41 = vld [vmem:[#allocation2 + $0x30] sm:$0xff] }
  0x66   : > { %8900 = vmatprep.mubr.msk.f32.mxu1 %vm455_vm0, %v10347_v40  ;;  %9010 = vmatpush3.msra.mxu1 %v7446_v26  ;;  %v1620_v26 = vld [vmem:[#allocation2 + $0x10] sm:$0xff] }
  0x67   : > { %9011 = vmatprep.subr.mxu1 %v7445_v45 }
  0x68   : > { %8834 = vmatmul.mubr.msk.f32.vlgmr.msra.gmra.mxu0 %vm455_vm0, %v10093_v46  ;;  %v10379_v46 = vld [vmem:[#allocation2 + $0x40] sm:$0xff]  ;;  %9012 = vmatpush3.msra.mxu1 %v7445_v45  ;;  %v2649_v45 = vld [vmem:[#allocation2 + $0x9] sm:$0xff] }
  0x69   : > { %8946 = vmatpush3.msra.mxu0 %v10236_v20  ;;  %8836 = vmatprep.mubr.msk.f32.mxu0 %vm455_vm0, %v10097_v47  ;;  %v10381_v47 = vld [vmem:[#allocation2 + $0x48] sm:$0xff]  ;;  %v10565_v20 = vld [vmem:[#allocation2 + $0x100] sm:$0xff] }
  0x6a   : > { %8947 = vmatprep.subr.mxu0 %v7365_v42  ;;  %8901 = vmatmul.mubr.msk.f32.gmra.mxu1 %vm455_vm0, %v10359_v41 }
  0x6b   : > { %8948 = vmatpush3.msra.mxu0 %v7365_v42  ;;  %8903 = vmatprep.mubr.msk.f32.mxu1 %vm455_vm0, %v10363_v43  ;;  %v7566_v42 = vld [vmem:[%s13791_s1 + $0x238] sm:$0xff] }
  0x6c   : > { %8837 = vmatmul.mubr.msk.f32.gmra.mxu0 %vm455_vm0, %v10114_v53  ;;  %8949 = vmatprep.subr.mxu0 %v7364_v44  ;;  %v7443_v53 = vld [vmem:[%s13791_s1 + $0x1e0] sm:$0xff] }
  0x6d   : > { %8839 = vmatprep.mubr.msk.f32.mxu0 %vm455_vm0, %v10122_v55  ;;  %8950 = vmatpush3.msra.mxu0 %v7364_v44  ;;  %v10417_v55 = vld [vmem:[#allocation2 + $0x68] sm:$0xff]  ;;  %v2651_v44 = vld [vmem:[#allocation2 + $0x19] sm:$0xff] }
  0x6e   : > { %8904 = vmatmul.mubr.msk.f32.gmra.mxu1 %vm455_vm0, %v10379_v46  ;;  %8951 = vmatprep.subr.mxu0 %v7363_v48 }
  0x6f   : > { %8906 = vmatprep.mubr.msk.f32.mxu1 %vm455_vm0, %v10381_v47  ;;  %9013 = vmatprep.subr.mxu1 %v7444_v49 }
  0x70   : > { %8840 = vmatmul.mubr.msk.f32.gmra.mxu0 %vm455_vm0, %v10144_v62  ;;  %9014 = vmatpush3.msra.mxu1 %v7444_v49  ;;  %v10451_v62 = vld [vmem:[#allocation2 + $0x80] sm:$0xff]  ;;  %v7565_v49 = vld [vmem:[%s13791_s1 + $0x230] sm:$0xff] }
  0x71   : > { %8842 = vmatprep.mubr.msk.f32.mxu0 %vm455_vm0, %v10148_v63  ;;  %8952 = vmatpush3.msra.mxu0 %v7363_v48  ;;  %v10453_v63 = vld [vmem:[#allocation2 + $0x88] sm:$0xff] }
  0x72   : > { %8907 = vmatmul.mubr.msk.f32.gmra.mxu1 %vm455_vm0, %v10397_v50  ;;  %8953 = vmatprep.subr.mxu0 %v7362_v52  ;;  %v10753_v48 = vld [vmem:[#allocation2 + $0x29] sm:$0xff] }
  0x73   : > { %8909 = vmatprep.mubr.msk.f32.mxu1 %vm455_vm0, %v10399_v51  ;;  %9015 = vmatprep.subr.mxu1 %v7443_v53 }
  0x74   : > { %8843 = vmatmul.mubr.msk.f32.gmra.mxu0 %vm455_vm0, %v10168_v5  ;;  %9016 = vmatpush3.msra.mxu1 %v7443_v53  ;;  %v7439_v5 = vld [vmem:[%s13791_s1 + $0x1c0] sm:$0xff]  ;;  %v10764_v53 = vld [vmem:[#allocation2 + $0x31] sm:$0xff] }
  0x75   : > { %8845 = vmatprep.mubr.msk.f32.mxu0 %vm455_vm0, %v10170_v6  ;;  %8954 = vmatpush3.msra.mxu0 %v7362_v52  ;;  %v10479_v6 = vld [vmem:[%s13791_s1 + $0x178] sm:$0xff] }
  0x76   : > { %8910 = vmatmul.mubr.msk.f32.gmra.mxu1 %vm455_vm0, %v10415_v54  ;;  %8955 = vmatprep.subr.mxu0 %v7361_v56 }
  0x77   : > { %8912 = vmatprep.mubr.msk.f32.mxu1 %vm455_vm0, %v10417_v55  ;;  %9017 = vmatprep.subr.mxu1 %v7442_v57 }
  0x78   : > { %8846 = vmatmul.mubr.msk.f32.gmra.mxu0 %vm455_vm0, %v10186_v9  ;;  %9018 = vmatpush3.msra.mxu1 %v7442_v57  ;;  %v7486_v9 = vld [vmem:[%s13791_s1 + $0xb8] sm:$0xff] }
  0x79   : > { %8848 = vmatprep.mubr.msk.f32.mxu0 %vm455_vm0, %v10188_v10  ;;  %8956 = vmatpush3.msra.mxu0 %v7361_v56  ;;  %v10505_v10 = vld [vmem:[#allocation2 + $0xb0] sm:$0xff]  ;;  %v10767_v56 = vld [vmem:[#allocation2 + $0x39] sm:$0xff] }
  0x7a   : > { %8913 = vmatmul.mubr.msk.f32.gmra.mxu1 %vm455_vm0, %v10433_v58  ;;  %8957 = vmatprep.subr.mxu0 %v7360_v60 }
  0x7b   : > { %8915 = vmatprep.mubr.msk.f32.mxu1 %vm455_vm0, %v10435_v59  ;;  %9019 = vmatprep.subr.mxu1 %v7441_v61 }
  0x7c   : > { %8849 = vmatmul.mubr.msk.f32.gmra.mxu0 %vm455_vm0, %v10204_v13  ;;  %9020 = vmatpush3.msra.mxu1 %v7441_v61  ;;  %v10519_v13 = vld [vmem:[#allocation2 + $0xc8] sm:$0xff] }
  0x7d   : > { %8851 = vmatprep.mubr.msk.f32.mxu0 %vm455_vm0, %v10206_v14  ;;  %8958 = vmatpush3.msra.mxu0 %v7360_v60  ;;  %v10529_v14 = vld [vmem:[#allocation2 + $0xd0] sm:$0xff] }
  0x7e   : > { %8916 = vmatmul.mubr.msk.f32.gmra.mxu1 %vm455_vm0, %v10451_v62  ;;  %8959 = vmatprep.subr.mxu0 %v7359_v0 }
  0x7f   : > { %8918 = vmatprep.mubr.msk.f32.mxu1 %vm455_vm0, %v10453_v63  ;;  %9021 = vmatprep.subr.mxu1 %v7440_v1 }
  0x80   : > { %8852 = vmatmul.mubr.msk.f32.gmra.mxu0 %vm455_vm0, %v10222_v17  ;;  %9022 = vmatpush3.msra.mxu1 %v7440_v1  ;;  %v10543_v17 = vld [vmem:[#allocation2 + $0xe8] sm:$0xff] }
  0x81   : > { %8854 = vmatprep.mubr.msk.f32.mxu0 %vm455_vm0, %v10224_v18  ;;  %8960 = vmatpush3.msra.mxu0 %v7359_v0  ;;  %v10553_v18 = vld [vmem:[#allocation2 + $0xf0] sm:$0xff] }
  0x82   : > { %8919 = vmatmul.mubr.msk.f32.gmra.mxu1 %vm455_vm0, %v10469_v2  ;;  %9023 = vmatprep.subr.mxu1 %v7439_v5  ;;  %v10785_v1 = vld [vmem:[#allocation2 + $0x49] sm:$0xff] }
  0x83   : > { %8921 = vmatprep.mubr.msk.f32.mxu1 %vm455_vm0, %v10471_v3  ;;  %9073 = vmatprep.subr.mxu0 %v10479_v6 }
  0x84   : > { %8855 = vmatmul.mubr.msk.f32.gmra.mxu0 %vm455_vm0, %v10242_v21  ;;  %9024 = vmatpush3.msra.mxu1 %v7439_v5  ;;  %v1191_v21 = vld [vmem:[#allocation2 + $0x117] sm:$0xff] }
  0x85   : > { %8857 = vmatprep.mubr.msk.f32.mxu0 %vm455_vm0, %v10244_v22  ;;  %9137 = vmatprep.subr.mxu1 %v7486_v9  ;;  %v10567_v22 = vld [vmem:[#allocation2 + $0x108] sm:$0xff] }
  0x86   : > { %8922 = vmatmul.mubr.msk.f32.gmra.mxu1 %vm455_vm0, %v10489_v7 }
  0x87   : > { %8924 = vmatprep.mubr.msk.f32.mxu1 %vm455_vm0, %v10491_v8 }
  0x88   : > { %8858 = vmatmul.mubr.msk.f32.gmra.mxu0 %vm455_vm0, %v10258_v24  ;;  %v10576_v24 = vld [vmem:[#allocation2 + $0x110] sm:$0xff] }
  0x89   : > { %8860 = vmatprep.mubr.msk.f32.mxu0 %vm455_vm0, %v10260_v25  ;;  %v1619_v25 = vld [vmem:[#allocation2 + $0x8] sm:$0xff] }
  0x8a   : > { %8925 = vmatmul.mubr.msk.f32.gmra.mxu1 %vm455_vm0, %v10505_v10 }
  0x8b   : > { %8927 = vmatprep.mubr.msk.f32.mxu1 %vm455_vm0, %v10507_v11 }
  0x8c   : > { %8861 = vmatmul.mubr.msk.f32.gmra.mxu0 %vm455_vm0, %v10273_v27  ;;  %v7493_v27 = vld [vmem:[%s13791_s1 + $0x170] sm:$0xff] }
  0x8d   : > { %8863 = vmatprep.mubr.msk.f32.mxu0 %vm455_vm0, %v10275_v28  ;;  %v7492_v28 = vld [vmem:[%s13791_s1 + $0x168] sm:$0xff] }
  0x8e   : > { %8928 = vmatmul.mubr.msk.f32.gmra.mxu1 %vm455_vm0, %v10517_v12 }
  0x8f   : > { %8930 = vmatprep.mubr.msk.f32.mxu1 %vm455_vm0, %v10519_v13 }
  0x90   : > { %8864 = vmatmul.mubr.msk.f32.gmra.mxu0 %vm455_vm0, %v10285_v29  ;;  %v7485_v29 = vld [vmem:[%s13791_s1 + $0xb0] sm:$0xff] }
  0x91   : > { %8866 = vmatprep.mubr.msk.f32.mxu0 %vm455_vm0, %v10287_v30  ;;  %v7491_v30 = vld [vmem:[%s13791_s1 + $0x160] sm:$0xff] }
  0x92   : > { %8931 = vmatmul.mubr.msk.f32.gmra.mxu1 %vm455_vm0, %v10529_v14 }
  0x93   : > { %8933 = vmatprep.mubr.msk.f32.mxu1 %vm455_vm0, %v10531_v15 }
  0x94   : > { %8867 = vmatmul.mubr.msk.f32.gmra.mxu0 %vm455_vm0, %v10297_v31  ;;  %v7484_v31 = vld [vmem:[%s13791_s1 + $0xa8] sm:$0xff] }
  0x95   : > { %8869 = vmatprep.mubr.msk.f32.mxu0 %vm455_vm0, %v10299_v32  ;;  %v7490_v32 = vld [vmem:[%s13791_s1 + $0x158] sm:$0xff] }
  0x96   : > { %8934 = vmatmul.mubr.msk.f32.gmra.mxu1 %vm455_vm0, %v10541_v16 }
  0x97   : > { %8936 = vmatprep.mubr.msk.f32.mxu1 %vm455_vm0, %v10543_v17 }
  0x98   : > { %8870 = vmatmul.mubr.msk.f32.gmra.mxu0 %vm455_vm0, %v10309_v33  ;;  %v7483_v33 = vld [vmem:[%s13791_s1 + $0xa0] sm:$0xff] }
  0x99   : > { %8872 = vmatprep.mubr.msk.f32.mxu0 %vm455_vm0, %v10311_v34  ;;  %v7489_v34 = vld [vmem:[%s13791_s1 + $0x150] sm:$0xff] }
  0x9a   : > { %8937 = vmatmul.mubr.msk.f32.gmra.mxu1 %vm455_vm0, %v10553_v18 }
  0x9b   : > { %8939 = vmatprep.mubr.msk.f32.mxu1 %vm455_vm0, %v10555_v19 }
  0x9c   : > { %8873 = vmatmul.mubr.msk.f32.gmra.mxu0 %vm455_vm0, %v10321_v35  ;;  %v7482_v35 = vld [vmem:[%s13791_s1 + $0x98] sm:$0xff] }
  0x9d   : > { %8875 = vmatprep.mubr.msk.f32.mxu0 %vm455_vm0, %v10323_v36  ;;  %v7488_v36 = vld [vmem:[%s13791_s1 + $0x148] sm:$0xff] }
  0x9e   : > { %8940 = vmatmul.mubr.msk.f32.gmra.mxu1 %vm455_vm0, %v10565_v20 }
  0x9f   : > { %8942 = vmatprep.mubr.msk.f32.mxu1 %vm455_vm0, %v10567_v22 }
  0xa0   : > { %8876 = vmatmul.mubr.msk.f32.gmra.mxu0 %vm455_vm0, %v10333_v37  ;;  %v7481_v37 = vld [vmem:[%s13791_s1 + $0x90] sm:$0xff] }
  0xa1   : > { %8878 = vmatprep.mubr.msk.f32.mxu0 %vm455_vm0, %v1191_v21 }
  0xa2   : > { %8943 = vmatmul.mubr.msk.f32.gmra.mxu1 %vm455_vm0, %v10576_v24 }
  0xa3   : > { %9025 = vmatprep.mubr.msk.f32.mxu1 %vm455_vm0, %v10347_v40 }
  0xa4   : > { %8879 = vmatmul.mubr.msk.f32.gmra.mxu0 %vm455_vm0, %v1192_v23 }
  0xa5   : > { %8961 = vmatprep.mubr.msk.f32.mxu0 %vm455_vm0, %v1619_v25 }
  0xa6   : > { %9026 = vmatmul.mubr.msk.f32.vlgmr.msra.gmra.mxu1 %vm455_vm0, %v10359_v41 }
  0xa7   : > { %9028 = vmatprep.mubr.msk.f32.mxu1 %vm455_vm0, %v10363_v43  ;;  %9138 = vmatpush3.msra.mxu1 %v7486_v9 }
  0xa8   : > { %8962 = vmatmul.mubr.msk.f32.vlgmr.msra.gmra.mxu0 %vm455_vm0, %v1620_v26  ;;  %9139 = vmatprep.subr.mxu1 %v7485_v29  ;;  %v10840_v26 = vld [vmem:[#allocation2 + $0x71] sm:$0xff] }
  0xa9   : > { %9074 = vmatpush3.msra.mxu0 %v10479_v6  ;;  %8964 = vmatprep.mubr.msk.f32.mxu0 %vm455_vm0, %v10335_v38  ;;  %v7487_v38 = vld [vmem:[%s13791_s1 + $0x140] sm:$0xff] }
  0xaa   : > { %9075 = vmatprep.subr.mxu0 %v7493_v27  ;;  %9029 = vmatmul.mubr.msk.f32.gmra.mxu1 %vm455_vm0, %v10379_v46 }
  0xab   : > { %9076 = vmatpush3.msra.mxu0 %v7493_v27  ;;  %9031 = vmatprep.mubr.msk.f32.mxu1 %vm455_vm0, %v10381_v47 }
  0xac   : > { %8965 = vmatmul.mubr.msk.f32.gmra.mxu0 %vm455_vm0, %v10345_v39  ;;  %9077 = vmatprep.subr.mxu0 %v7492_v28  ;;  %v7480_v39 = vld [vmem:[%s13791_s1 + $0x88] sm:$0xff] }
  0xad   : > { %8967 = vmatprep.mubr.msk.f32.mxu0 %vm455_vm0, %v10347_v40  ;;  %9078 = vmatpush3.msra.mxu0 %v7492_v28  ;;  %v7479_v40 = vld [vmem:[%s13791_s1 + $0x80] sm:$0xff] }
  0xae   : > { %9140 = vmatpush3.msra.mxu1 %v7485_v29  ;;  %9079 = vmatprep.subr.mxu0 %v7491_v30  ;;  %v10842_v29 = vld [vmem:[#allocation2 + $0x79] sm:$0xff] }
  0xaf   : > { %9032 = vmatmul.mubr.msk.f32.gmra.mxu1 %vm455_vm0, %v10397_v50  ;;  %9141 = vmatprep.subr.mxu1 %v7484_v31 }
  0xb0   : > { %8968 = vmatmul.mubr.msk.f32.gmra.mxu0 %vm455_vm0, %v10359_v41  ;;  %9034 = vmatprep.mubr.msk.f32.mxu1 %vm455_vm0, %v10399_v51  ;;  %v2253_v41 = vld [vmem:[#allocation2 + $0x118] sm:$0xff] }
  0xb1   : > { %8970 = vmatprep.mubr.msk.f32.mxu0 %vm455_vm0, %v10363_v43  ;;  %9080 = vmatpush3.msra.mxu0 %v7491_v30  ;;  %v2254_v43 = vld [vmem:[#allocation2 + $0x120] sm:$0xff] }
  0xb2   : > { %9142 = vmatpush3.msra.mxu1 %v7484_v31  ;;  %9081 = vmatprep.subr.mxu0 %v7490_v32  ;;  %v7560_v31 = vld [vmem:[%s13791_s1 + $0x208] sm:$0xff] }
  0xb3   : > { %9035 = vmatmul.mubr.msk.f32.gmra.mxu1 %vm455_vm0, %v10415_v54  ;;  %9143 = vmatprep.subr.mxu1 %v7483_v33 }
  0xb4   : > { %8971 = vmatmul.mubr.msk.f32.gmra.mxu0 %vm455_vm0, %v10379_v46  ;;  %9037 = vmatprep.mubr.msk.f32.mxu1 %vm455_vm0, %v10417_v55  ;;  %v2652_v46 = vld [vmem:[#allocation2 + $0x21] sm:$0xff] }
  0xb5   : > { %8973 = vmatprep.mubr.msk.f32.mxu0 %vm455_vm0, %v10381_v47  ;;  %9082 = vmatpush3.msra.mxu0 %v7490_v32  ;;  %v2650_v47 = vld [vmem:[#allocation2 + $0x11] sm:$0xff] }
  0xb6   : > { %9144 = vmatpush3.msra.mxu1 %v7483_v33  ;;  %9083 = vmatprep.subr.mxu0 %v7489_v34 }
  0xb7   : > { %9038 = vmatmul.mubr.msk.f32.gmra.mxu1 %vm455_vm0, %v10433_v58  ;;  %9145 = vmatprep.subr.mxu1 %v7482_v35 }
  0xb8   : > { %8974 = vmatmul.mubr.msk.f32.gmra.mxu0 %vm455_vm0, %v10397_v50  ;;  %9040 = vmatprep.mubr.msk.f32.mxu1 %vm455_vm0, %v10435_v59 }
  0xb9   : > { %8976 = vmatprep.mubr.msk.f32.mxu0 %vm455_vm0, %v10399_v51  ;;  %9084 = vmatpush3.msra.mxu0 %v7489_v34 }
  0xba   : > { %9146 = vmatpush3.msra.mxu1 %v7482_v35  ;;  %9085 = vmatprep.subr.mxu0 %v7488_v36  ;;  %v10859_v35 = vld [vmem:[#allocation2 + $0x81] sm:$0xff] }
  0xbb   : > { %9041 = vmatmul.mubr.msk.f32.gmra.mxu1 %vm455_vm0, %v10451_v62  ;;  %9147 = vmatprep.subr.mxu1 %v7481_v37 }
  0xbc   : > { %8977 = vmatmul.mubr.msk.f32.gmra.mxu0 %vm455_vm0, %v10415_v54  ;;  %9043 = vmatprep.mubr.msk.f32.mxu1 %vm455_vm0, %v10453_v63 }
  0xbd   : > { %8979 = vmatprep.mubr.msk.f32.mxu0 %vm455_vm0, %v10417_v55  ;;  %9086 = vmatpush3.msra.mxu0 %v7488_v36 }
  0xbe   : > { %9148 = vmatpush3.msra.mxu1 %v7481_v37  ;;  %9087 = vmatprep.subr.mxu0 %v7487_v38 }
  0xbf   : > { %9044 = vmatmul.mubr.msk.f32.gmra.mxu1 %vm455_vm0, %v10469_v2  ;;  %9149 = vmatprep.subr.mxu1 %v7480_v39 }
  0xc0   : > { %8980 = vmatmul.mubr.msk.f32.gmra.mxu0 %vm455_vm0, %v10433_v58  ;;  %9046 = vmatprep.mubr.msk.f32.mxu1 %vm455_vm0, %v10471_v3  ;;  %v7564_v58 = vld [vmem:[%s13791_s1 + $0x228] sm:$0xff] }
  0xc1   : > { %8982 = vmatprep.mubr.msk.f32.mxu0 %vm455_vm0, %v10435_v59  ;;  %9088 = vmatpush3.msra.mxu0 %v7487_v38  ;;  %v10861_v38 = vld [vmem:[#allocation2 + $0x89] sm:$0xff] }
  0xc2   : > { %9150 = vmatpush3.msra.mxu1 %v7480_v39  ;;  %9201 = vmatprep.subr.mxu0 %v7566_v42 }
  0xc3   : > { %9047 = vmatmul.mubr.msk.f32.gmra.mxu1 %vm455_vm0, %v10489_v7  ;;  %9151 = vmatprep.subr.mxu1 %v7479_v40 }
  0xc4   : > { %8983 = vmatmul.mubr.msk.f32.gmra.mxu0 %vm455_vm0, %v10451_v62  ;;  %9049 = vmatprep.mubr.msk.f32.mxu1 %vm455_vm0, %v10491_v8  ;;  %v10783_v62 = vld [vmem:[#allocation2 + $0x41] sm:$0xff] }
  0xc5   : > { %8985 = vmatprep.mubr.msk.f32.mxu0 %vm455_vm0, %v10453_v63  ;;  %9152 = vmatpush3.msra.mxu1 %v7479_v40  ;;  %v7559_v40 = vld [vmem:[%s13791_s1 + $0x200] sm:$0xff] }
  0xc7   : > { %9050 = vmatmul.mubr.msk.f32.gmra.mxu1 %vm455_vm0, %v10505_v10 }
  0xc8   : > { %8986 = vmatmul.mubr.msk.f32.gmra.mxu0 %vm455_vm0, %v10469_v2  ;;  %9052 = vmatprep.mubr.msk.f32.mxu1 %vm455_vm0, %v10507_v11 }
  0xc9   : > { %8988 = vmatprep.mubr.msk.f32.mxu0 %vm455_vm0, %v10471_v3  ;;  %v7563_v3 = vld [vmem:[%s13791_s1 + $0x220] sm:$0xff] }
  0xcb   : > { %9053 = vmatmul.mubr.msk.f32.gmra.mxu1 %vm455_vm0, %v10517_v12 }
  0xcc   : > { %8989 = vmatmul.mubr.msk.f32.gmra.mxu0 %vm455_vm0, %v10489_v7  ;;  %9055 = vmatprep.mubr.msk.f32.mxu1 %vm455_vm0, %v10519_v13 }
  0xcd   : > { %8991 = vmatprep.mubr.msk.f32.mxu0 %vm455_vm0, %v10491_v8  ;;  %v10802_v8 = vld [vmem:[#allocation2 + $0x51] sm:$0xff] }
  0xcf   : > { %9056 = vmatmul.mubr.msk.f32.gmra.mxu1 %vm455_vm0, %v10529_v14 }
  0xd0   : > { %8992 = vmatmul.mubr.msk.f32.gmra.mxu0 %vm455_vm0, %v10505_v10  ;;  %9058 = vmatprep.mubr.msk.f32.mxu1 %vm455_vm0, %v10531_v15 }
  0xd1   : > { %8994 = vmatprep.mubr.msk.f32.mxu0 %vm455_vm0, %v10507_v11  ;;  %v10804_v11 = vld [vmem:[#allocation2 + $0x59] sm:$0xff] }
  0xd3   : > { %9059 = vmatmul.mubr.msk.f32.gmra.mxu1 %vm455_vm0, %v10541_v16 }
  0xd4   : > { %8995 = vmatmul.mubr.msk.f32.gmra.mxu0 %vm455_vm0, %v10517_v12  ;;  %9061 = vmatprep.mubr.msk.f32.mxu1 %vm455_vm0, %v10543_v17 }
  0xd5   : > { %8997 = vmatprep.mubr.msk.f32.mxu0 %vm455_vm0, %v10519_v13  ;;  %v7562_v13 = vld [vmem:[%s13791_s1 + $0x218] sm:$0xff] }
  0xd7   : > { %9062 = vmatmul.mubr.msk.f32.gmra.mxu1 %vm455_vm0, %v10553_v18 }
  0xd8   : > { %8998 = vmatmul.mubr.msk.f32.gmra.mxu0 %vm455_vm0, %v10529_v14  ;;  %9064 = vmatprep.mubr.msk.f32.mxu1 %vm455_vm0, %v10555_v19 }
  0xd9   : > { %9000 = vmatprep.mubr.msk.f32.mxu0 %vm455_vm0, %v10531_v15 }
  0xdb   : > { %9065 = vmatmul.mubr.msk.f32.gmra.mxu1 %vm455_vm0, %v10565_v20 }
  0xdc   : > { %9001 = vmatmul.mubr.msk.f32.gmra.mxu0 %vm455_vm0, %v10541_v16  ;;  %9067 = vmatprep.mubr.msk.f32.mxu1 %vm455_vm0, %v10567_v22  ;;  %v7561_v22 = vld [vmem:[%s13791_s1 + $0x210] sm:$0xff] }
  0xdd   : > { %9003 = vmatprep.mubr.msk.f32.mxu0 %vm455_vm0, %v10543_v17  ;;  %v10821_v17 = vld [vmem:[#allocation2 + $0x61] sm:$0xff] }
  0xde   : > { %v8771_v51 = vpop.f32.mrf.mxu1 }
  0xdf   : > { %9068 = vmatmul.mubr.msk.f32.gmra.mxu1 %vm455_vm0, %v10576_v24 }
  0xe0   : > { %9004 = vmatmul.mubr.msk.f32.gmra.mxu0 %vm455_vm0, %v10553_v18  ;;  %9070 = vmatprep.mubr.msk.f32.mxu1 %vm455_vm0, %v2253_v41  ;;  %v1002_v55 = vpop.f32.mrf.mxu1 }
  0xe1   : > { %9006 = vmatprep.mubr.msk.f32.mxu0 %vm455_vm0, %v10555_v19 }
  0xe3   : > { %9071 = vmatmul.mubr.msk.f32.gmra.mxu1 %vm455_vm0, %v2254_v43 }
  0xe4   : > { %9007 = vmatmul.mubr.msk.f32.gmra.mxu0 %vm455_vm0, %v10565_v20  ;;  %9153 = vmatprep.mubr.msk.f32.mxu1 %vm455_vm0, %v2649_v45  ;;  %v10823_v20 = vld [vmem:[#allocation2 + $0x69] sm:$0xff] }
  0xe5   : > { %9089 = vmatprep.mubr.msk.f32.mxu0 %vm455_vm0, %v2651_v44 }
  0xe7   : > { %9154 = vmatmul.mubr.msk.f32.vlgmr.msra.gmra.mxu1 %vm455_vm0, %v2650_v47  ;;  %v10880_v47 = vld [vmem:[#allocation2 + $0x99] sm:$0xff] }
  0xe8   : > { %v8707_v50 = vpop.f32.mrf.mxu0  ;;  %9090 = vmatmul.mubr.msk.f32.vlgmr.msra.gmra.mxu0 %vm455_vm0, %v2652_v46  ;;  %9156 = vmatprep.mubr.msk.f32.mxu1 %vm455_vm0, %v2651_v44  ;;  %v8774_v60 = vpop.f32.mrf.mxu1  ;;  %v10878_v44 = vld [vmem:[#allocation2 + $0x91] sm:$0xff] }
  0xe9   : > { %v10760_v52 = vadd.f32 %v8771_v51, %v8707_v50  ;;  %9202 = vmatpush3.msra.mxu0 %v7566_v42  ;;  %9092 = vmatprep.mubr.msk.f32.mxu0 %vm455_vm0, %v10753_v48 }
  0xea   : > { %v771_v54 = vpop.f32.mrf.mxu0  ;;  %9203 = vmatprep.subr.mxu0 %v7565_v49  ;;  %v1012_v0 = vpop.f32.mrf.mxu1 }
  0xeb   : > { %v10769_v57 = vadd.f32 %v1002_v55, %v771_v54  ;;  %9204 = vmatpush3.msra.mxu0 %v7565_v49  ;;  %9157 = vmatmul.mubr.msk.f32.gmra.mxu1 %vm455_vm0, %v2652_v46  ;;  %v10894_v55 = vld [vmem:[#allocation2 + $0xa1] sm:$0xff] }
  0xec   : > { %v8710_v59 = vpop.f32.mrf.mxu0  ;;  %9093 = vmatmul.mubr.msk.f32.gmra.mxu0 %vm455_vm0, %v10764_v53  ;;  %9159 = vmatprep.mubr.msk.f32.mxu1 %vm455_vm0, %v10753_v48 }
  0xed   : > { %v10777_v61 = vadd.f32 %v8774_v60, %v8710_v59  ;;  %9095 = vmatprep.mubr.msk.f32.mxu0 %vm455_vm0, %v10767_v56  ;;  %9205 = vmatprep.subr.mxu0 %v7564_v58  ;;  %v8777_v6 = vpop.f32.mrf.mxu1  ;;  %v10896_v60 = vld [vmem:[#allocation2 + $0xa9] sm:$0xff] }
  0xee   : > { %v781_v63 = vpop.f32.mrf.mxu0  ;;  %9206 = vmatpush3.msra.mxu0 %v7564_v58 }
  0xef   : > { %v10787_v2 = vadd.f32 %v1012_v0, %v781_v63  ;;  %9160 = vmatmul.mubr.msk.f32.gmra.mxu1 %vm455_vm0, %v10764_v53  ;;  %v1022_v10 = vpop.f32.mrf.mxu1  ;;  %9207 = vmatprep.subr.mxu0 %v7563_v3 }
  0xf0   : > { %v8713_v5 = vpop.f32.mrf.mxu0  ;;  %9096 = vmatmul.mubr.msk.f32.gmra.mxu0 %vm455_vm0, %v10783_v62  ;;  %9162 = vmatprep.mubr.msk.f32.mxu1 %vm455_vm0, %v10767_v56 }
  0xf1   : > { %v10796_v7 = vadd.f32 %v8777_v6, %v8713_v5  ;;  %9098 = vmatprep.mubr.msk.f32.mxu0 %vm455_vm0, %v10785_v1  ;;  %9208 = vmatpush3.msra.mxu0 %v7563_v3  ;;  %v8780_v15 = vpop.f32.mrf.mxu1  ;;  %v10910_v6 = vld [vmem:[#allocation2 + $0xb1] sm:$0xff] }
  0xf2   : > { %v791_v9 = vpop.f32.mrf.mxu0  ;;  %9209 = vmatprep.subr.mxu0 %v7562_v13 }
  0xf3   : > { %v10806_v12 = vadd.f32 %v1022_v10, %v791_v9  ;;  %9163 = vmatmul.mubr.msk.f32.gmra.mxu1 %vm455_vm0, %v10783_v62  ;;  %v1032_v19 = vpop.f32.mrf.mxu1  ;;  %9210 = vmatpush3.msra.mxu0 %v7562_v13  ;;  %v10916_v13 = vld [vmem:[#allocation2 + $0xb9] sm:$0xff] }
  0xf4   : > { %v8716_v14 = vpop.f32.mrf.mxu0  ;;  %9099 = vmatmul.mubr.msk.f32.gmra.mxu0 %vm455_vm0, %v10802_v8  ;;  %9165 = vmatprep.mubr.msk.f32.mxu1 %vm455_vm0, %v10785_v1 }
  0xf5   : > { %v10815_v16 = vadd.f32 %v8780_v15, %v8716_v14  ;;  %9101 = vmatprep.mubr.msk.f32.mxu0 %vm455_vm0, %v10804_v11  ;;  %v8783_v24 = vpop.f32.mrf.mxu1  ;;  %9211 = vmatprep.subr.mxu0 %v7561_v22 }
  0xf6   : > { %v801_v18 = vpop.f32.mrf.mxu0  ;;  %9212 = vmatpush3.msra.mxu0 %v7561_v22 }
  0xf7   : > { %v10825_v21 = vadd.f32 %v1032_v19, %v801_v18  ;;  %9166 = vmatmul.mubr.msk.f32.gmra.mxu1 %vm455_vm0, %v10802_v8  ;;  %v1042_v28 = vpop.f32.mrf.mxu1  ;;  %9213 = vmatprep.subr.mxu0 %v7560_v31  ;;  %v10928_v19 = vld [vmem:[#allocation2 + $0xc1] sm:$0xff] }
  0xf8   : > { %v8719_v23 = vpop.f32.mrf.mxu0  ;;  %9102 = vmatmul.mubr.msk.f32.gmra.mxu0 %vm455_vm0, %v10821_v17  ;;  %9168 = vmatprep.mubr.msk.f32.mxu1 %vm455_vm0, %v10804_v11 }
  0xf9   : > { %v10834_v25 = vadd.f32 %v8783_v24, %v8719_v23  ;;  %9104 = vmatprep.mubr.msk.f32.mxu0 %vm455_vm0, %v10823_v20  ;;  %v8786_v33 = vpop.f32.mrf.mxu1  ;;  %9214 = vmatpush3.msra.mxu0 %v7560_v31  ;;  %v10934_v24 = vld [vmem:[#allocation2 + $0xc9] sm:$0xff] }
  0xfa   : > { %v811_v27 = vpop.f32.mrf.mxu0  ;;  %9215 = vmatprep.subr.mxu0 %v7559_v40 }
  0xfb   : > { %v10844_v30 = vadd.f32 %v1042_v28, %v811_v27  ;;  %9169 = vmatmul.mubr.msk.f32.gmra.mxu1 %vm455_vm0, %v10821_v17  ;;  %v1052_v37 = vpop.f32.mrf.mxu1  ;;  %9216 = vmatpush3.msra.mxu0 %v7559_v40 }
  0xfc   : > { %v8722_v32 = vpop.f32.mrf.mxu0  ;;  %9105 = vmatmul.mubr.msk.f32.gmra.mxu0 %vm455_vm0, %v10840_v26  ;;  %9171 = vmatprep.mubr.msk.f32.mxu1 %vm455_vm0, %v10823_v20 }
  0xfd   : > { %v10853_v34 = vadd.f32 %v8786_v33, %v8722_v32  ;;  %9107 = vmatprep.mubr.msk.f32.mxu0 %vm455_vm0, %v10842_v29  ;;  %v8789_v41 = vpop.f32.mrf.mxu1  ;;  %v10946_v32 = vld [vmem:[#allocation2 + $0xd1] sm:$0xff] }
  0xfe   : > { %v821_v36 = vpop.f32.mrf.mxu0 }
  0xff   : > { %v10863_v39 = vadd.f32 %v1052_v37, %v821_v36  ;;  %9172 = vmatmul.mubr.msk.f32.gmra.mxu1 %vm455_vm0, %v10840_v26  ;;  %v1062_v46 = vpop.f32.mrf.mxu1  ;;  %v10952_v37 = vld [vmem:[#allocation2 + $0xd9] sm:$0xff] }
 0x100   : > { %v8725_v42 = vpop.f32.mrf.mxu0  ;;  %9108 = vmatmul.mubr.msk.f32.gmra.mxu0 %vm455_vm0, %v10859_v35  ;;  %9174 = vmatprep.mubr.msk.f32.mxu1 %vm455_vm0, %v10842_v29 }
 0x101   : > { %v10872_v43 = vadd.f32 %v8789_v41, %v8725_v42  ;;  %9110 = vmatprep.mubr.msk.f32.mxu0 %vm455_vm0, %v10861_v38  ;;  %v8792_v51 = vpop.f32.mrf.mxu1 }
 0x102   : > { %v831_v45 = vpop.f32.mrf.mxu0 }
 0x103   : > { %v10882_v49 = vadd.f32 %v1062_v46, %v831_v45  ;;  %9175 = vmatmul.mubr.msk.f32.gmra.mxu1 %vm455_vm0, %v10859_v35  ;;  %v1072_v59 = vpop.f32.mrf.mxu1  ;;  %v10964_v45 = vld [vmem:[#allocation2 + $0xe1] sm:$0xff] }
 0x104   : > { %v8728_v50 = vpop.f32.mrf.mxu0  ;;  %9111 = vmatmul.mubr.msk.f32.gmra.mxu0 %vm455_vm0, %v10878_v44  ;;  %9177 = vmatprep.mubr.msk.f32.mxu1 %vm455_vm0, %v10861_v38 }
 0x105   : > { %v10888_v54 = vadd.f32 %v8792_v51, %v8728_v50  ;;  %9113 = vmatprep.mubr.msk.f32.mxu0 %vm455_vm0, %v10880_v47  ;;  %v8795_v3 = vpop.f32.mrf.mxu1  ;;  %v10970_v51 = vld [vmem:[#allocation2 + $0xe9] sm:$0xff] }
 0x106   : > { %v841_v58 = vpop.f32.mrf.mxu0 }
 0x107   : > { %v10898_v63 = vadd.f32 %v1072_v59, %v841_v58  ;;  %9178 = vmatmul.mubr.msk.f32.gmra.mxu1 %vm455_vm0, %v10878_v44  ;;  %v10914_v10 = vpop.f32.mrf.mxu1 }
 0x108   : > { %v8731_v0 = vpop.f32.mrf.mxu0  ;;  %9114 = vmatmul.mubr.msk.f32.gmra.mxu0 %vm455_vm0, %v10894_v55  ;;  %9180 = vmatprep.mubr.msk.f32.mxu1 %vm455_vm0, %v10880_v47 }
 0x109   : > { %v10904_v5 = vadd.f32 %v8795_v3, %v8731_v0  ;;  %9116 = vmatprep.mubr.msk.f32.mxu0 %vm455_vm0, %v10896_v60  ;;  %v8798_v15 = vpop.f32.mrf.mxu1  ;;  %v10982_v3 = vld [vmem:[#allocation2 + $0xf1] sm:$0xff] }
 0x10a   : > { %v10912_v9 = vpop.f32.mrf.mxu0 }
 0x10b   : > { %9181 = vmatmul.mubr.msk.f32.gmra.mxu1 %vm455_vm0, %v10894_v55  ;;  %v10932_v23 = vpop.f32.mrf.mxu1 }
 0x10c   : > { %v8734_v14 = vpop.f32.mrf.mxu0  ;;  %9117 = vmatmul.mubr.msk.f32.gmra.mxu0 %vm455_vm0, %v10910_v6  ;;  %9183 = vmatprep.mubr.msk.f32.mxu1 %vm455_vm0, %v10896_v60  ;;  %13834 = vst [vmem:[#allocation3_spill] sm:$0xff] %v10932_v23 }
 0x10d   : > { %v10922_v18 = vadd.f32 %v8798_v15, %v8734_v14  ;;  %9119 = vmatprep.mubr.msk.f32.mxu0 %vm455_vm0, %v10916_v13  ;;  %v8801_v28 = vpop.f32.mrf.mxu1 }
 0x10e   : > { %v10930_v22 = vpop.f32.mrf.mxu0 }
 0x10f   : > { %9184 = vmatmul.mubr.msk.f32.gmra.mxu1 %vm455_vm0, %v10910_v6  ;;  %v10950_v36 = vpop.f32.mrf.mxu1 }
 0x110   : > { %v8737_v27 = vpop.f32.mrf.mxu0  ;;  %9120 = vmatmul.mubr.msk.f32.gmra.mxu0 %vm455_vm0, %v10928_v19  ;;  %9186 = vmatprep.mubr.msk.f32.mxu1 %vm455_vm0, %v10916_v13  ;;  %13836 = vst [vmem:[#allocation5_spill] sm:$0xff] %v10950_v36 }
 0x111   : > { %v10940_v31 = vadd.f32 %v8801_v28, %v8737_v27  ;;  %9122 = vmatprep.mubr.msk.f32.mxu0 %vm455_vm0, %v10934_v24  ;;  %v8804_v42 = vpop.f32.mrf.mxu1  ;;  %v10988_v27 = vld [vmem:[#allocation2 + $0xf9] sm:$0xff] }
 0x112   : > { %v10948_v33 = vpop.f32.mrf.mxu0 }
 0x113   : > { %13835 = vst [vmem:[#allocation4_spill] sm:$0xff] %v10948_v33  ;;  %9187 = vmatmul.mubr.msk.f32.gmra.mxu1 %vm455_vm0, %v10928_v19  ;;  %v10968_v50 = vpop.f32.mrf.mxu1 }
 0x114   : > { %v8740_v40 = vpop.f32.mrf.mxu0  ;;  %9123 = vmatmul.mubr.msk.f32.gmra.mxu0 %vm455_vm0, %v10946_v32  ;;  %9189 = vmatprep.mubr.msk.f32.mxu1 %vm455_vm0, %v10934_v24  ;;  %13838 = vst [vmem:[#allocation7_spill] sm:$0xff] %v10968_v50 }
 0x115   : > { %v10958_v41 = vadd.f32 %v8804_v42, %v8740_v40  ;;  %9125 = vmatprep.mubr.msk.f32.mxu0 %vm455_vm0, %v10952_v37  ;;  %v8807_v59 = vpop.f32.mrf.mxu1 }
 0x116   : > { %v10966_v46 = vpop.f32.mrf.mxu0 }
 0x117   : > { %13837 = vst [vmem:[#allocation6_spill] sm:$0xff] %v10966_v46  ;;  %9190 = vmatmul.mubr.msk.f32.gmra.mxu1 %vm455_vm0, %v10946_v32  ;;  %v10986_v15 = vpop.f32.mrf.mxu1 }
 0x118   : > { %v8743_v58 = vpop.f32.mrf.mxu0  ;;  %9126 = vmatmul.mubr.msk.f32.gmra.mxu0 %vm455_vm0, %v10964_v45  ;;  %9192 = vmatprep.mubr.msk.f32.mxu1 %vm455_vm0, %v10952_v37  ;;  %13840 = vst [vmem:[#allocation9_spill] sm:$0xff] %v10986_v15  ;;  %v11006_v15 = vld [vmem:[#allocation2 + $0x109] sm:$0xff] }
 0x119   : > { %v10976_v0 = vadd.f32 %v8807_v59, %v8743_v58  ;;  %9128 = vmatprep.mubr.msk.f32.mxu0 %vm455_vm0, %v10970_v51  ;;  %v8810_v40 = vpop.f32.mrf.mxu1  ;;  %v11000_v58 = vld [vmem:[#allocation2 + $0x101] sm:$0xff] }
 0x11a   : > { %v10984_v14 = vpop.f32.mrf.mxu0 }
 0x11b   : > { %13839 = vst [vmem:[#allocation8_spill] sm:$0xff] %v10984_v14  ;;  %9193 = vmatmul.mubr.msk.f32.gmra.mxu1 %vm455_vm0, %v10964_v45  ;;  %v11004_v4 = vpop.f32.mrf.mxu1 }
 0x11c   : > { %v8746_v28 = vpop.f32.mrf.mxu0  ;;  %9129 = vmatmul.mubr.msk.f32.gmra.mxu0 %vm455_vm0, %v10982_v3  ;;  %9195 = vmatprep.mubr.msk.f32.mxu1 %vm455_vm0, %v10970_v51  ;;  %13842 = vst [vmem:[#allocation11_spill] sm:$0xff] %v11004_v4 }
 0x11d   : > { %v10994_v42 = vadd.f32 %v8810_v40, %v8746_v28  ;;  %9131 = vmatprep.mubr.msk.f32.mxu0 %vm455_vm0, %v10988_v27  ;;  %v8813_v50 = vpop.f32.mrf.mxu1  ;;  %v11018_v40 = vld [vmem:[#allocation2 + $0x111] sm:$0xff] }
 0x11e   : > { %v11002_v59 = vpop.f32.mrf.mxu0 }
 0x11f   : > { %13841 = vst [vmem:[#allocation10_spill] sm:$0xff] %v11002_v59  ;;  %9196 = vmatmul.mubr.msk.f32.gmra.mxu1 %vm455_vm0, %v10982_v3  ;;  %v11022_v59 = vpop.f32.mrf.mxu1 }
 0x120   : > { %v8749_v14 = vpop.f32.mrf.mxu0  ;;  %9132 = vmatmul.mubr.msk.f32.gmra.mxu0 %vm455_vm0, %v11000_v58  ;;  %9198 = vmatprep.mubr.msk.f32.mxu1 %vm455_vm0, %v10988_v27  ;;  %13844 = vst [vmem:[#allocation13_spill] sm:$0xff] %v11022_v59 }
 0x121   : > { %v11012_v28 = vadd.f32 %v8813_v50, %v8749_v14  ;;  %9134 = vmatprep.mubr.msk.f32.mxu0 %vm455_vm0, %v11006_v15  ;;  %v8816_v36 = vpop.f32.mrf.mxu1 }
 0x122   : > { %v11020_v4 = vpop.f32.mrf.mxu0 }
 0x123   : > { %13843 = vst [vmem:[#allocation12_spill] sm:$0xff] %v11020_v4  ;;  %9199 = vmatmul.mubr.msk.f32.gmra.mxu1 %vm455_vm0, %v11000_v58  ;;  %v11034_v33 = vpop.f32.mrf.mxu1 }
 0x124   : > { %v8752_v46 = vpop.f32.mrf.mxu0  ;;  %9135 = vmatmul.mubr.msk.f32.gmra.mxu0 %vm455_vm0, %v11018_v40  ;;  %13846 = vst [vmem:[#allocation15_spill] sm:$0xff] %v11034_v33 }
 0x125   : > { %v11028_v50 = vadd.f32 %v8816_v36, %v8752_v46  ;;  %9217 = vmatprep.mubr.msk.f32.mxu0 %vm455_vm0, %v10753_v48  ;;  %v11036_v23 = vpop.f32.mrf.mxu1 }
 0x126   : > { %v11032_v14 = vpop.f32.mrf.mxu0 }
 0x127   : > { %13845 = vst [vmem:[#allocation14_spill] sm:$0xff] %v11032_v14  ;;  %v11045_v46 = vpop.f32.mrf.mxu1 }
 0x128   : > { %v8835_v4 = vpop.f32.mrf.mxu0  ;;  %9218 = vmatmul.mubr.msk.f32.vlgmr.msra.gmra.mxu0 %vm455_vm0, %v10764_v53 }
 0x129   : > { %v11041_v59 = vadd.f32 %v8835_v4, %v10760_v52  ;;  %9220 = vmatprep.mubr.msk.f32.mxu0 %vm455_vm0, %v10767_v56 }
 0x12a   : > { %v1364_v36 = vpop.f32.mrf.mxu0  ;;  %v11050_v33 = vpop.f32.mrf.mxu1 }
 0x12b   : > { %v11048_v48 = vadd.f32 %v1364_v36, %v10769_v57 }
 0x12c   : > { %v8838_v14 = vpop.f32.mrf.mxu0  ;;  %9221 = vmatmul.mubr.msk.f32.gmra.mxu0 %vm455_vm0, %v10783_v62  ;;  %v11059_v52 = vpop.f32.mrf.mxu1 }
 0x12d   : > { %v11055_v53 = vadd.f32 %v8838_v14, %v10777_v61  ;;  %9223 = vmatprep.mubr.msk.f32.mxu0 %vm455_vm0, %v10785_v1 }
 0x12e   : > { %v1374_v4 = vpop.f32.mrf.mxu0  ;;  %v11064_v36 = vpop.f32.mrf.mxu1 }
 0x12f   : > { %v11062_v56 = vadd.f32 %v1374_v4, %v10787_v2 }
 0x130   : > { %v8841_v57 = vpop.f32.mrf.mxu0  ;;  %9224 = vmatmul.mubr.msk.f32.gmra.mxu0 %vm455_vm0, %v10802_v8  ;;  %v11073_v1 = vpop.f32.mrf.mxu1 }
 0x131   : > { %v11069_v62 = vadd.f32 %v8841_v57, %v10796_v7  ;;  %9226 = vmatprep.mubr.msk.f32.mxu0 %vm455_vm0, %v10804_v11 }
 0x132   : > { %v1384_v61 = vpop.f32.mrf.mxu0  ;;  %v11078_v4 = vpop.f32.mrf.mxu1 }
 0x133   : > { %v11076_v14 = vadd.f32 %v1384_v61, %v10806_v12 }
 0x134   : > { %v8844_v2 = vpop.f32.mrf.mxu0  ;;  %9227 = vmatmul.mubr.msk.f32.gmra.mxu0 %vm455_vm0, %v10821_v17  ;;  %v11087_v11 = vpop.f32.mrf.mxu1 }
 0x135   : > { %v11083_v8 = vadd.f32 %v8844_v2, %v10815_v16  ;;  %9229 = vmatprep.mubr.msk.f32.mxu0 %vm455_vm0, %v10823_v20  ;;  %13847 = vst [vmem:[#allocation16_spill] sm:$0xff] %v11087_v11 }
 0x136   : > { %v1394_v7 = vpop.f32.mrf.mxu0  ;;  %v11092_v61 = vpop.f32.mrf.mxu1 }
 0x137   : > { %v11090_v57 = vadd.f32 %v1394_v7, %v10825_v21 }
 0x138   : > { %v8847_v12 = vpop.f32.mrf.mxu0  ;;  %9230 = vmatmul.mubr.msk.f32.gmra.mxu0 %vm455_vm0, %v10840_v26  ;;  %v11101_v20 = vpop.f32.mrf.mxu1 }
 0x139   : > { %v11097_v17 = vadd.f32 %v8847_v12, %v10834_v25  ;;  %9232 = vmatprep.mubr.msk.f32.mxu0 %vm455_vm0, %v10842_v29  ;;  %13848 = vst [vmem:[#allocation17_spill] sm:$0xff] %v11101_v20 }
 0x13a   : > { %v1404_v16 = vpop.f32.mrf.mxu0  ;;  %v11106_v7 = vpop.f32.mrf.mxu1 }
 0x13b   : > { %v11104_v2 = vadd.f32 %v1404_v16, %v10844_v30  ;;  %v7616_v30 = vld [vmem:[%s13791_s1 + $0x338] sm:$0xff] }
 0x13c   : > { %v8850_v21 = vpop.f32.mrf.mxu0  ;;  %9233 = vmatmul.mubr.msk.f32.gmra.mxu0 %vm455_vm0, %v10859_v35  ;;  %v11115_v29 = vpop.f32.mrf.mxu1  ;;  %9265 = vmatprep.subr.mxu1 %v7616_v30 }
 0x13d   : > { %v11111_v26 = vadd.f32 %v8850_v21, %v10853_v34  ;;  %9235 = vmatprep.mubr.msk.f32.mxu0 %vm455_vm0, %v10861_v38  ;;  %13849 = vst [vmem:[#allocation18_spill] sm:$0xff] %v11115_v29  ;;  %9266 = vmatpush3.msra.mxu1 %v7616_v30 }
 0x13e   : > { %v1414_v25 = vpop.f32.mrf.mxu0  ;;  %v11123_v20 = vpop.f32.mrf.mxu1 }
 0x13f   : > { %v11118_v12 = vadd.f32 %v1414_v25, %v10863_v39 }
 0x140   : > { %v8853_v16 = vpop.f32.mrf.mxu0  ;;  %9236 = vmatmul.mubr.msk.f32.gmra.mxu0 %vm455_vm0, %v10878_v44  ;;  %v11132_v38 = vpop.f32.mrf.mxu1 }
 0x141   : > { %v11128_v34 = vadd.f32 %v8853_v16, %v10872_v43  ;;  %9238 = vmatprep.mubr.msk.f32.mxu0 %vm455_vm0, %v10880_v47  ;;  %13850 = vst [vmem:[#allocation19_spill] sm:$0xff] %v11132_v38 }
 0x142   : > { %v1424_v35 = vpop.f32.mrf.mxu0  ;;  %v11137_v25 = vpop.f32.mrf.mxu1 }
 0x143   : > { %v11135_v39 = vadd.f32 %v1424_v35, %v10882_v49  ;;  %v7615_v49 = vld [vmem:[%s13791_s1 + $0x330] sm:$0xff] }
 0x144   : > { %v8856_v21 = vpop.f32.mrf.mxu0  ;;  %9239 = vmatmul.mubr.msk.f32.gmra.mxu0 %vm455_vm0, %v10894_v55  ;;  %v11146_v47 = vpop.f32.mrf.mxu1  ;;  %9267 = vmatprep.subr.mxu1 %v7615_v49 }
 0x145   : > { %v11142_v44 = vadd.f32 %v8856_v21, %v10888_v54  ;;  %9241 = vmatprep.mubr.msk.f32.mxu0 %vm455_vm0, %v10896_v60  ;;  %13851 = vst [vmem:[#allocation20_spill] sm:$0xff] %v11146_v47  ;;  %v1083_v54 = vadd.f32 %v10914_v10, %v10912_v9  ;;  %9268 = vmatpush3.msra.mxu1 %v7615_v49  ;;  %v7614_v10 = vld [vmem:[%s13791_s1 + $0x328] sm:$0xff] }
 0x146   : > { %v1434_v43 = vpop.f32.mrf.mxu0  ;;  %v11154_v35 = vpop.f32.mrf.mxu1  ;;  %9269 = vmatprep.subr.mxu1 %v7614_v10 }
 0x147   : > { %v11149_v30 = vadd.f32 %v1434_v43, %v10898_v63  ;;  %9270 = vmatpush3.msra.mxu1 %v7614_v10 }
 0x148   : > { %v8859_v16 = vpop.f32.mrf.mxu0  ;;  %9242 = vmatmul.mubr.msk.f32.gmra.mxu0 %vm455_vm0, %v10910_v6  ;;  %v11165_v63 = vpop.f32.mrf.mxu1 }
 0x149   : > { %v11161_v55 = vadd.f32 %v8859_v16, %v10904_v5  ;;  %9244 = vmatprep.mubr.msk.f32.mxu0 %vm455_vm0, %v10916_v13  ;;  %13852 = vst [vmem:[#allocation21_spill] sm:$0xff] %v11165_v63  ;;  %v7607_v63 = vld [vmem:[%s13791_s1 + $0x270] sm:$0xff] }
 0x14a   : > { %v1444_v60 = vpop.f32.mrf.mxu0  ;;  %v11169_v47 = vpop.f32.mrf.mxu1 }
 0x14b   : > { %v11167_v21 = vadd.f32 %v1444_v60, %v1083_v54  ;;  %v7613_v60 = vld [vmem:[%s13791_s1 + $0x320] sm:$0xff] }
 0x14c   : > { %v8862_v43 = vpop.f32.mrf.mxu0  ;;  %9245 = vmatmul.mubr.msk.f32.gmra.mxu0 %vm455_vm0, %v10928_v19  ;;  %v11180_v9 = vpop.f32.mrf.mxu1  ;;  %9271 = vmatprep.subr.mxu1 %v7613_v60 }
 0x14d   : > { %v11174_v6 = vadd.f32 %v8862_v43, %v10922_v18  ;;  %9247 = vmatprep.mubr.msk.f32.mxu0 %vm455_vm0, %v10934_v24  ;;  %13853 = vst [vmem:[#allocation22_spill] sm:$0xff] %v11180_v9  ;;  %9272 = vmatpush3.msra.mxu1 %v7613_v60  ;;  %v3283_v60 = vld [vmem:[#allocation2 + $0x119] sm:$0xff] }
 0x14e   : > { %v11178_v5 = vpop.f32.mrf.mxu0  ;;  %v11185_v49 = vpop.f32.mrf.mxu1 }
 0x150   : > { %v8865_v13 = vpop.f32.mrf.mxu0  ;;  %9248 = vmatmul.mubr.msk.f32.gmra.mxu0 %vm455_vm0, %v10946_v32  ;;  %v11196_v24 = vpop.f32.mrf.mxu1 }
 0x151   : > { %v11190_v18 = vadd.f32 %v8865_v13, %v10940_v31  ;;  %9250 = vmatprep.mubr.msk.f32.mxu0 %vm455_vm0, %v10952_v37  ;;  %13854 = vst [vmem:[#allocation23_spill] sm:$0xff] %v11196_v24 }
 0x152   : > { %v11194_v19 = vpop.f32.mrf.mxu0  ;;  %v11198_v54 = vpop.f32.mrf.mxu1 }
 0x154   : > { %v8868_v16 = vpop.f32.mrf.mxu0  ;;  %9251 = vmatmul.mubr.msk.f32.gmra.mxu0 %vm455_vm0, %v10964_v45  ;;  %v11209_v37 = vpop.f32.mrf.mxu1 }
 0x155   : > { %v11203_v32 = vadd.f32 %v8868_v16, %v10958_v41  ;;  %9253 = vmatprep.mubr.msk.f32.mxu0 %vm455_vm0, %v10970_v51  ;;  %13855 = vst [vmem:[#allocation24_spill] sm:$0xff] %v11209_v37 }
 0x156   : > { %v11207_v31 = vpop.f32.mrf.mxu0  ;;  %v11214_v10 = vpop.f32.mrf.mxu1 }
 0x158   : > { %v8871_v43 = vpop.f32.mrf.mxu0  ;;  %9254 = vmatmul.mubr.msk.f32.gmra.mxu0 %vm455_vm0, %v10982_v3  ;;  %v11225_v51 = vpop.f32.mrf.mxu1 }
 0x159   : > { %v11219_v41 = vadd.f32 %v8871_v43, %v10976_v0  ;;  %9256 = vmatprep.mubr.msk.f32.mxu0 %vm455_vm0, %v10988_v27  ;;  %13856 = vst [vmem:[#allocation25_spill] sm:$0xff] %v11225_v51  ;;  %v7612_v43 = vld [vmem:[%s13791_s1 + $0x318] sm:$0xff] }
 0x15a   : > { %v11223_v45 = vpop.f32.mrf.mxu0  ;;  %v11227_v16 = vpop.f32.mrf.mxu1  ;;  %9273 = vmatprep.subr.mxu1 %v7612_v43 }
 0x15b   : > { %9274 = vmatpush3.msra.mxu1 %v7612_v43 }
 0x15c   : > { %v8874_v13 = vpop.f32.mrf.mxu0  ;;  %9257 = vmatmul.mubr.msk.f32.gmra.mxu0 %vm455_vm0, %v11000_v58  ;;  %v11238_v27 = vpop.f32.mrf.mxu1 }
 0x15d   : > { %v11232_v3 = vadd.f32 %v8874_v13, %v10994_v42  ;;  %9259 = vmatprep.mubr.msk.f32.mxu0 %vm455_vm0, %v11006_v15  ;;  %13857 = vst [vmem:[#allocation26_spill] sm:$0xff] %v11238_v27  ;;  %v3284_v15 = vld [vmem:[#allocation2 + $0x121] sm:$0xff] }
 0x15e   : > { %v11236_v0 = vpop.f32.mrf.mxu0  ;;  %v11243_v37 = vpop.f32.mrf.mxu1 }
 0x160   : > { %v8877_v51 = vpop.f32.mrf.mxu0  ;;  %9260 = vmatmul.mubr.msk.f32.gmra.mxu0 %vm455_vm0, %v11018_v40  ;;  %v11253_v13 = vpop.f32.mrf.mxu1 }
 0x161   : > { %v11248_v42 = vadd.f32 %v8877_v51, %v11012_v28  ;;  %9262 = vmatprep.mubr.msk.f32.mxu0 %vm455_vm0, %v3283_v60  ;;  %13858 = vst [vmem:[#allocation27_spill] sm:$0xff] %v11253_v13  ;;  %v7611_v51 = vld [vmem:[%s13791_s1 + $0x310] sm:$0xff] }
 0x162   : > { %v11251_v58 = vpop.f32.mrf.mxu0  ;;  %v11255_v24 = vpop.f32.mrf.mxu1  ;;  %9275 = vmatprep.subr.mxu1 %v7611_v51 }
 0x163   : > { %9276 = vmatpush3.msra.mxu1 %v7611_v51 }
 0x164   : > { %v8880_v27 = vpop.f32.mrf.mxu0  ;;  %9263 = vmatmul.mubr.msk.f32.gmra.mxu0 %vm455_vm0, %v3284_v15  ;;  %v11263_v28 = vpop.f32.mrf.mxu1  ;;  %v7608_v15 = vld [vmem:[%s13791_s1 + $0x278] sm:$0xff] }
 0x165   : > { %v11259_v9 = vadd.f32 %v8880_v27, %v11028_v50  ;;  %13859 = vst [vmem:[#allocation28_spill] sm:$0xff] %v11263_v28  ;;  %9329 = vmatprep.subr.mxu0 %v7608_v15 }
 0x166   : > { %v11261_v40 = vpop.f32.mrf.mxu0  ;;  %v9027_v43 = vpop.f32.mrf.mxu1  ;;  %9330 = vmatpush3.msra.mxu0 %v7608_v15 }
 0x167   : > { %9331 = vmatprep.subr.mxu0 %v7607_v63 }
 0x168   : > { %v8963_v60 = vpop.f32.mrf.mxu0  ;;  %v11274_v27 = vpop.f32.mrf.mxu1  ;;  %9332 = vmatpush3.msra.mxu0 %v7607_v63 }
 0x169   : > { %v2070_v13 = vadd.f32 %v8963_v60, %v11036_v23  ;;  %13860 = vst [vmem:[#allocation29_spill] sm:$0xff] %v11274_v27  ;;  %v7606_v60 = vld [vmem:[%s13791_s1 + $0x268] sm:$0xff] }
 0x16a   : > { %v11272_v50 = vpop.f32.mrf.mxu0  ;;  %v9030_v29 = vpop.f32.mrf.mxu1  ;;  %9333 = vmatprep.subr.mxu0 %v7606_v60 }
 0x16b   : > { %v2586_v28 = vadd.f32 %v9027_v43, %v2070_v13  ;;  %9334 = vmatpush3.msra.mxu0 %v7606_v60 }
 0x16c   : > { %v8966_v38 = vpop.f32.mrf.mxu0  ;;  %v11288_v13 = vpop.f32.mrf.mxu1 }
 0x16d   : > { %v11280_v23 = vadd.f32 %v2586_v28, %v11041_v59  ;;  %v2080_v51 = vadd.f32 %v8966_v38, %v11050_v33  ;;  %v7605_v59 = vld [vmem:[%s13791_s1 + $0x260] sm:$0xff] }
 0x16e   : > { %v11286_v11 = vpop.f32.mrf.mxu0  ;;  %9335 = vmatprep.subr.mxu0 %v7605_v59 }
 0x16f   : > { %13861 = vst [vmem:[#allocation30_spill] sm:$0xff] %v11280_v23  ;;  %v2588_v43 = vadd.f32 %v9030_v29, %v2080_v51  ;;  %v9033_v27 = vpop.f32.mrf.mxu1  ;;  %9336 = vmatpush3.msra.mxu0 %v7605_v59  ;;  %v7604_v29 = vld [vmem:[%s13791_s1 + $0x258] sm:$0xff] }
 0x170   : > { %v8969_v15 = vpop.f32.mrf.mxu0  ;;  %9337 = vmatprep.subr.mxu0 %v7604_v29 }
 0x171   : > { %v11294_v33 = vadd.f32 %v2588_v43, %v11055_v53  ;;  %v2090_v38 = vadd.f32 %v8969_v15, %v11064_v36  ;;  %v11299_v28 = vpop.f32.mrf.mxu1  ;;  %9338 = vmatpush3.msra.mxu0 %v7604_v29  ;;  %v7603_v53 = vld [vmem:[%s13791_s1 + $0x250] sm:$0xff] }
 0x172   : > { %v11297_v63 = vpop.f32.mrf.mxu0  ;;  %9339 = vmatprep.subr.mxu0 %v7603_v53 }
 0x173   : > { %13862 = vst [vmem:[#allocation31_spill] sm:$0xff] %v11294_v33  ;;  %v2590_v51 = vadd.f32 %v9033_v27, %v2090_v38  ;;  %v9036_v23 = vpop.f32.mrf.mxu1  ;;  %9340 = vmatpush3.msra.mxu0 %v7603_v53  ;;  %v7602_v27 = vld [vmem:[%s13791_s1 + $0x248] sm:$0xff] }
 0x174   : > { %v8972_v60 = vpop.f32.mrf.mxu0  ;;  %9341 = vmatprep.subr.mxu0 %v7602_v27  ;;  %v3853_v53 = vld [vmem:[#allocation2 + $0x7] sm:$0xff] }
 0x175   : > { %v11308_v36 = vadd.f32 %v2590_v51, %v11069_v62  ;;  %v2100_v43 = vadd.f32 %v8972_v60, %v11078_v4  ;;  %v11313_v59 = vpop.f32.mrf.mxu1  ;;  %9342 = vmatpush3.msra.mxu0 %v7602_v27  ;;  %v7601_v62 = vld [vmem:[%s13791_s1 + $0x240] sm:$0xff]  ;;  %v7610_v60 = vld [vmem:[%s13791_s1 + $0x308] sm:$0xff]  ;;  %9345 = vmatprep.mubr.msk.f32.mxu0 %vm455_vm0, %v3853_v53 }
 0x176   : > { %v11311_v15 = vpop.f32.mrf.mxu0  ;;  %13864 = vst [vmem:[#allocation33_spill] sm:$0xff] %v11313_v59  ;;  %9343 = vmatprep.subr.mxu0 %v7601_v62  ;;  %9277 = vmatprep.subr.mxu1 %v7610_v60  ;;  %v3854_v27 = vld [vmem:[#allocation2 + $0xf] sm:$0xff] }
 0x177   : > { %13863 = vst [vmem:[#allocation32_spill] sm:$0xff] %v11308_v36  ;;  %v2592_v38 = vadd.f32 %v9036_v23, %v2100_v43  ;;  %v9039_v33 = vpop.f32.mrf.mxu1  ;;  %9344 = vmatpush3.msra.mxu0 %v7601_v62  ;;  %9278 = vmatpush3.msra.mxu1 %v7610_v60 }
 0x178   : > { %v8975_v29 = vpop.f32.mrf.mxu0  ;;  %9346 = vmatmul.mubr.msk.f32.vlgmr.msra.gmra.mxu0 %vm455_vm0, %v3854_v27 }
 0x179   : > { %v11322_v4 = vadd.f32 %v2592_v38, %v11083_v8  ;;  %v2110_v51 = vadd.f32 %v8975_v29, %v11092_v61  ;;  %v11330_v43 = vpop.f32.mrf.mxu1  ;;  %v7609_v61 = vld [vmem:[%s13791_s1 + $0x300] sm:$0xff] }
 0x17a   : > { %v11328_v23 = vpop.f32.mrf.mxu0  ;;  %13866 = vst [vmem:[#allocation35_spill] sm:$0xff] %v11330_v43  ;;  %9279 = vmatprep.subr.mxu1 %v7609_v61 }
 0x17b   : > { %13865 = vst [vmem:[#allocation34_spill] sm:$0xff] %v11322_v4  ;;  %v2594_v36 = vadd.f32 %v9039_v33, %v2110_v51  ;;  %v9042_v38 = vpop.f32.mrf.mxu1  ;;  %9280 = vmatpush3.msra.mxu1 %v7609_v61 }
 0x17c   : > { %v8978_v8 = vpop.f32.mrf.mxu0 }
 0x17d   : > { %v11338_v29 = vadd.f32 %v2594_v36, %v11097_v17  ;;  %v2120_v4 = vadd.f32 %v8978_v8, %v11106_v7  ;;  %v11343_v33 = vpop.f32.mrf.mxu1 }
 0x17e   : > { %v11341_v62 = vpop.f32.mrf.mxu0  ;;  %13869 = vst [vmem:[#allocation38_spill] sm:$0xff] %v11343_v33  ;;  %v13972_v33 = vld [vmem:[#allocation14_spill] sm:$0xff] }
 0x17f   : > { %13867 = vst [vmem:[#allocation36_spill] sm:$0xff] %v11338_v29  ;;  %13868 = vst [vmem:[#allocation37_spill] sm:$0xff] %v11341_v62  ;;  %v2596_v51 = vadd.f32 %v9042_v38, %v2120_v4  ;;  %v9045_v53 = vpop.f32.mrf.mxu1 }
 0x180   : > { %v8981_v60 = vpop.f32.mrf.mxu0 }
 0x181   : > { %v11346_v43 = vadd.f32 %v2596_v51, %v11111_v26  ;;  %v2130_v59 = vadd.f32 %v8981_v60, %v11123_v20  ;;  %v11351_v17 = vpop.f32.mrf.mxu1 }
 0x182   : > { %v11349_v27 = vpop.f32.mrf.mxu0  ;;  %13872 = vst [vmem:[#allocation41_spill] sm:$0xff] %v11351_v17  ;;  %v13938_v17 = vmov 0.0  }
 0x183   : > { %13870 = vst [vmem:[#allocation39_spill] sm:$0xff] %v11346_v43  ;;  %13871 = vst [vmem:[#allocation40_spill] sm:$0xff] %v11349_v27  ;;  %v2598_v36 = vadd.f32 %v9045_v53, %v2130_v59  ;;  %v9048_v8 = vpop.f32.mrf.mxu1  ;;  %v13973_v27 = vld [vmem:[#allocation15_spill] sm:$0xff] }
 0x184   : > { %v8984_v7 = vpop.f32.mrf.mxu0  ;;  %v1153_v62 = vadd.f32 %v13973_v27, %v13972_v33 }
 0x185   : > { %v11354_v29 = vadd.f32 %v2598_v36, %v11128_v34  ;;  %v2140_v61 = vadd.f32 %v8984_v7, %v11137_v25  ;;  %v11359_v38 = vpop.f32.mrf.mxu1  ;;  %v11372_v34 = vld [vmem:[%s13791_s1 + $0x3f8] sm:$0xff] }
 0x186   : > { %v11357_v4 = vpop.f32.mrf.mxu0  ;;  %13875 = vst [vmem:[#allocation44_spill] sm:$0xff] %v11359_v38  ;;  %13879 = vst [vmem:[#allocation48_spill] sm:$0xff] %v11372_v34  ;;  %9393 = vmatprep.subr.mxu1 %v11372_v34 }
 0x187   : > { %13873 = vst [vmem:[#allocation42_spill] sm:$0xff] %v11354_v29  ;;  %13874 = vst [vmem:[#allocation43_spill] sm:$0xff] %v11357_v4  ;;  %v2600_v26 = vadd.f32 %v9048_v8, %v2140_v61  ;;  %v9051_v43 = vpop.f32.mrf.mxu1 }
 0x188   : > { %v8987_v51 = vpop.f32.mrf.mxu0 }
 0x189   : > { %v11362_v20 = vadd.f32 %v2600_v26, %v11142_v44  ;;  %v2150_v60 = vadd.f32 %v8987_v51, %v11154_v35  ;;  %v11367_v53 = vpop.f32.mrf.mxu1 }
 0x18a   : > { %v11365_v59 = vpop.f32.mrf.mxu0  ;;  %13878 = vst [vmem:[#allocation47_spill] sm:$0xff] %v11367_v53 }
 0x18b   : > { %13876 = vst [vmem:[#allocation45_spill] sm:$0xff] %v11362_v20  ;;  %13877 = vst [vmem:[#allocation46_spill] sm:$0xff] %v11365_v59  ;;  %v2602_v25 = vadd.f32 %v9051_v43, %v2150_v60  ;;  %v9054_v7 = vpop.f32.mrf.mxu1 }
 0x18c   : > { %v8990_v36 = vpop.f32.mrf.mxu0 }
 0x18d   : > { %v11376_v8 = vadd.f32 %v2602_v25, %v11161_v55  ;;  %v2160_v44 = vadd.f32 %v8990_v36, %v11169_v47  ;;  %v11381_v61 = vpop.f32.mrf.mxu1 }
 0x18e   : > { %v11379_v35 = vpop.f32.mrf.mxu0  ;;  %13882 = vst [vmem:[#allocation51_spill] sm:$0xff] %v11381_v61 }
 0x18f   : > { %13880 = vst [vmem:[#allocation49_spill] sm:$0xff] %v11376_v8  ;;  %13881 = vst [vmem:[#allocation50_spill] sm:$0xff] %v11379_v35  ;;  %v2604_v26 = vadd.f32 %v9054_v7, %v2160_v44  ;;  %v9057_v20 = vpop.f32.mrf.mxu1 }
 0x190   : > { %v8993_v51 = vpop.f32.mrf.mxu0 }
 0x191   : > { %v11384_v29 = vadd.f32 %v2604_v26, %v11174_v6  ;;  %v2170_v43 = vadd.f32 %v8993_v51, %v11185_v49  ;;  %v11389_v34 = vpop.f32.mrf.mxu1 }
 0x192   : > { %v11387_v60 = vpop.f32.mrf.mxu0  ;;  %13885 = vst [vmem:[#allocation54_spill] sm:$0xff] %v11389_v34 }
 0x193   : > { %13883 = vst [vmem:[#allocation52_spill] sm:$0xff] %v11384_v29  ;;  %13884 = vst [vmem:[#allocation53_spill] sm:$0xff] %v11387_v60  ;;  %v2606_v55 = vadd.f32 %v9057_v20, %v2170_v43  ;;  %v9060_v8 = vpop.f32.mrf.mxu1 }
 0x194   : > { %v8996_v25 = vpop.f32.mrf.mxu0 }
 0x195   : > { %v11392_v47 = vadd.f32 %v2606_v55, %v11190_v18  ;;  %v2180_v36 = vadd.f32 %v8996_v25, %v11198_v54  ;;  %v11397_v44 = vpop.f32.mrf.mxu1 }
 0x196   : > { %v11395_v7 = vpop.f32.mrf.mxu0  ;;  %13888 = vst [vmem:[#allocation57_spill] sm:$0xff] %v11397_v44 }
 0x197   : > { %13886 = vst [vmem:[#allocation55_spill] sm:$0xff] %v11392_v47  ;;  %13887 = vst [vmem:[#allocation56_spill] sm:$0xff] %v11395_v7  ;;  %v2608_v6 = vadd.f32 %v9060_v8, %v2180_v36  ;;  %v9063_v29 = vpop.f32.mrf.mxu1 }
 0x198   : > { %v8999_v26 = vpop.f32.mrf.mxu0 }
 0x199   : > { %v11400_v49 = vadd.f32 %v2608_v6, %v11203_v32  ;;  %v2190_v51 = vadd.f32 %v8999_v26, %v11214_v10  ;;  %v11405_v43 = vpop.f32.mrf.mxu1 }
 0x19a   : > { %v11403_v20 = vpop.f32.mrf.mxu0  ;;  %13891 = vst [vmem:[#allocation60_spill] sm:$0xff] %v11405_v43 }
 0x19b   : > { %13889 = vst [vmem:[#allocation58_spill] sm:$0xff] %v11400_v49  ;;  %13890 = vst [vmem:[#allocation59_spill] sm:$0xff] %v11403_v20  ;;  %v2610_v18 = vadd.f32 %v9063_v29, %v2190_v51  ;;  %v9066_v47 = vpop.f32.mrf.mxu1 }
 0x19c   : > { %v9002_v55 = vpop.f32.mrf.mxu0 }
 0x19d   : > { %v11408_v54 = vadd.f32 %v2610_v18, %v11219_v41  ;;  %v2200_v25 = vadd.f32 %v9002_v55, %v11227_v16  ;;  %v11413_v36 = vpop.f32.mrf.mxu1 }
 0x19e   : > { %v11411_v8 = vpop.f32.mrf.mxu0  ;;  %13894 = vst [vmem:[#allocation63_spill] sm:$0xff] %v11413_v36 }
 0x19f   : > { %13892 = vst [vmem:[#allocation61_spill] sm:$0xff] %v11408_v54  ;;  %13893 = vst [vmem:[#allocation62_spill] sm:$0xff] %v11411_v8  ;;  %v2612_v32 = vadd.f32 %v9066_v47, %v2200_v25  ;;  %v9069_v49 = vpop.f32.mrf.mxu1 }
 0x1a0   : > { %v9005_v6 = vpop.f32.mrf.mxu0 }
 0x1a1   : > { %v11416_v10 = vadd.f32 %v2612_v32, %v11232_v3  ;;  %v2210_v26 = vadd.f32 %v9005_v6, %v11243_v37  ;;  %v11421_v51 = vpop.f32.mrf.mxu1 }
 0x1a2   : > { %v11419_v29 = vpop.f32.mrf.mxu0  ;;  %13897 = vst [vmem:[#allocation66_spill] sm:$0xff] %v11421_v51 }
 0x1a3   : > { %13895 = vst [vmem:[#allocation64_spill] sm:$0xff] %v11416_v10  ;;  %13896 = vst [vmem:[#allocation65_spill] sm:$0xff] %v11419_v29  ;;  %v2614_v41 = vadd.f32 %v9069_v49, %v2210_v26  ;;  %v9072_v54 = vpop.f32.mrf.mxu1  ;;  %v7729_v29 = vld [vmem:[%s13791_s1 + $0x340] sm:$0xff] }
 0x1a4   : > { %v9008_v18 = vpop.f32.mrf.mxu0 }
 0x1a5   : > { %v11424_v16 = vadd.f32 %v2614_v41, %v11248_v42  ;;  %v2220_v55 = vadd.f32 %v9008_v18, %v11255_v24  ;;  %v11429_v25 = vpop.f32.mrf.mxu1  ;;  %v7736_v24 = vld [vmem:[%s13791_s1 + $0x378] sm:$0xff]  ;;  %v7734_v18 = vld [vmem:[%s13791_s1 + $0x368] sm:$0xff] }
 0x1a6   : > { %v11427_v47 = vpop.f32.mrf.mxu0  ;;  %13900 = vst [vmem:[#allocation69_spill] sm:$0xff] %v11429_v25  ;;  %9457 = vmatprep.subr.mxu0 %v7736_v24  ;;  %v7731_v25 = vld [vmem:[%s13791_s1 + $0x350] sm:$0xff] }
 0x1a7   : > { %13898 = vst [vmem:[#allocation67_spill] sm:$0xff] %v11424_v16  ;;  %13899 = vst [vmem:[#allocation68_spill] sm:$0xff] %v11427_v47  ;;  %v2616_v3 = vadd.f32 %v9072_v54, %v2220_v55  ;;  %v11433_v37 = vpop.f32.mrf.mxu1  ;;  %9458 = vmatpush3.msra.mxu0 %v7736_v24  ;;  %v7735_v54 = vld [vmem:[%s13791_s1 + $0x370] sm:$0xff]  ;;  %v7733_v24 = vld [vmem:[%s13791_s1 + $0x360] sm:$0xff] }
 0x1a8   : > { %v11431_v32 = vpop.f32.mrf.mxu0  ;;  %13902 = vst [vmem:[#allocation71_spill] sm:$0xff] %v11433_v37  ;;  %9459 = vmatprep.subr.mxu0 %v7735_v54 }
 0x1a9   : > { %13901 = vst [vmem:[#allocation70_spill] sm:$0xff] %v11431_v32  ;;  %v11436_v6 = vadd.f32 %v2616_v3, %v11259_v9  ;;  %v11440_v26 = vpop.f32.mrf.mxu1  ;;  %9460 = vmatpush3.msra.mxu0 %v7735_v54  ;;  %v7732_v54 = vld [vmem:[%s13791_s1 + $0x358] sm:$0xff] }
 0x1aa   : > { %v11438_v49 = vpop.f32.mrf.mxu0  ;;  %13905 = vst [vmem:[#allocation74_spill] sm:$0xff] %v11440_v26  ;;  %9461 = vmatprep.subr.mxu0 %v7734_v18 }
 0x1ab   : > { %13903 = vst [vmem:[#allocation72_spill] sm:$0xff] %v11436_v6  ;;  %13904 = vst [vmem:[#allocation73_spill] sm:$0xff] %v11438_v49  ;;  %v11447_v41 = vpop.f32.mrf.mxu1  ;;  %9462 = vmatpush3.msra.mxu0 %v7734_v18 }
 0x1ac   : > { %v11445_v42 = vpop.f32.mrf.mxu0  ;;  %13907 = vst [vmem:[#allocation76_spill] sm:$0xff] %v11447_v41  ;;  %9463 = vmatprep.subr.mxu0 %v7733_v24 }
 0x1ad   : > { %13906 = vst [vmem:[#allocation75_spill] sm:$0xff] %v11445_v42  ;;  %v11459_v3 = vpop.f32.mrf.mxu1  ;;  %9464 = vmatpush3.msra.mxu0 %v7733_v24  ;;  %v7730_v24 = vld [vmem:[%s13791_s1 + $0x348] sm:$0xff] }
 0x1ae   : > { %v11452_v9 = vpop.f32.mrf.mxu0  ;;  %13910 = vst [vmem:[#allocation79_spill] sm:$0xff] %v11459_v3  ;;  %9465 = vmatprep.subr.mxu0 %v7732_v54  ;;  %v13958_v3 = vld [vmem:[#allocation3_spill] sm:$0xff] }
 0x1af   : > { %13908 = vst [vmem:[#allocation77_spill] sm:$0xff] %v11452_v9  ;;  %v11474_v18 = vpop.f32.mrf.mxu1  ;;  %9466 = vmatpush3.msra.mxu0 %v7732_v54  ;;  %v198_v54 = vlaneseq }
 0x1b0   : > { %v11457_v55 = vpop.f32.mrf.mxu0  ;;  %13913 = vst [vmem:[#allocation82_spill] sm:$0xff] %v11474_v18  ;;  %9467 = vmatprep.subr.mxu0 %v7731_v25 }
 0x1b1   : > { %13909 = vst [vmem:[#allocation78_spill] sm:$0xff] %v11457_v55  ;;  %9468 = vmatpush3.msra.mxu0 %v7731_v25  ;;  %v11483_v51 = vpop.f32.mrf.mxu1  ;;  %v11496_v44 = vshrl.u32 %v198_v54, 7 }
 0x1b2   : > { %v11464_v6 = vpop.f32.mrf.mxu0  ;;  %9469 = vmatprep.subr.mxu0 %v7730_v24  ;;  %13916 = vst [vmem:[#allocation85_spill] sm:$0xff] %v11483_v51 }
 0x1b3   : > { %13911 = vst [vmem:[#allocation80_spill] sm:$0xff] %v11464_v6  ;;  %9470 = vmatpush3.msra.mxu0 %v7730_v24  ;;  %v11492_v8 = vpop.f32.mrf.mxu1  ;;  %v201_v24 = vadd.s32 16, %v11496_v44  ;;  %v203_v7 = vadd.s32 32, %v11496_v44  ;;  %v211_v51 = vadd.s32 96, %v11496_v44  ;;  %v213_v6 = vadd.s32 112, %v11496_v44 }
 0x1b4   : > { %v11469_v16 = vpop.f32.mrf.mxu0  ;;  %9471 = vmatprep.subr.mxu0 %v7729_v29  ;;  %13919 = vst [vmem:[#allocation88_spill] sm:$0xff] %v11492_v8  ;;  %v207_v8 = vadd.s32 64, %v11496_v44  ;;  %v217_v18 = vadd.s32 144, %v11496_v44  ;;  %v227_v55 = vadd.s32 224, %v11496_v44  ;;  %v229_v60 = vadd.s32 240, %v11496_v44 }
 0x1b5   : > { %13912 = vst [vmem:[#allocation81_spill] sm:$0xff] %v11469_v16  ;;  %9472 = vmatpush3.msra.mxu0 %v7729_v29  ;;  %v231_v29 = vand.u32 15, %v11496_v44  ;;  %v233_v34 = vand.u32 15, %v201_v24  ;;  %v209_v16 = vadd.s32 80, %v11496_v44  ;;  %v219_v24 = vadd.s32 160, %v11496_v44 }
 0x1b6   : > { %v11476_v10 = vpop.f32.mrf.mxu0  ;;  %v239_v9 = vand.u32 15, %v207_v8  ;;  %v243_v35 = vand.u32 15, %v211_v51  ;;  %v245_v53 = vand.u32 15, %v213_v6  ;;  %v259_v32 = vand.u32 15, %v227_v55 }
 0x1b7   : > { %13914 = vst [vmem:[#allocation83_spill] sm:$0xff] %v11476_v10  ;;  %vm11523_vm1 = vcmp.ne.s32.totalorder %v231_v29, 0  ;;  %vm11532_vm2 = vcmp.ne.s32.totalorder %v233_v34, 0  ;;  %v241_v42 = vand.u32 15, %v209_v16  ;;  %v249_v34 = vand.u32 15, %v217_v18  ;;  %v13963_v29 = vld [vmem:[#allocation5_spill] sm:$0xff] }
 0x1b8   : > { %v11481_v47 = vpop.f32.mrf.mxu0  ;;  %v251_v26 = vand.u32 15, %v219_v24  ;;  %v261_v8 = vand.u32 15, %v229_v60  ;;  %vm271_vm5 = vcmp.ne.s32.totalorder %v239_v9, 0  ;;  %vm275_vm7 = vcmp.ne.s32.totalorder %v243_v35, 0 }
 0x1b9   : > { %13915 = vst [vmem:[#allocation84_spill] sm:$0xff] %v11481_v47  ;;  %v205_v47 = vadd.s32 48, %v11496_v44  ;;  %vm273_vm6 = vcmp.ne.s32.totalorder %v241_v42, 0  ;;  %vm277_vm8 = vcmp.ne.s32.totalorder %v245_v53, 0  ;;  %vm281_vm10 = vcmp.ne.s32.totalorder %v249_v34, 0 }
 0x1ba   : > { %v11488_v36 = vpop.f32.mrf.mxu0  ;;  %vm283_vm11 = vcmp.ne.s32.totalorder %v251_v26, 0  ;;  %vm291_vm15 = vcmp.ne.s32.totalorder %v259_v32, 0  ;;  %v11580_v9 = vsel %vm273_vm6, 1.0, %v13938_v17  ;;  %v11583_v53 = vsel %vm275_vm7, 1.0, %v13938_v17 }
 0x1bb   : > { %13917 = vst [vmem:[#allocation86_spill] sm:$0xff] %v11488_v36  ;;  %v11503_v36 = vpop.f32.mrf.mxu1  ;;  %v237_v54 = vand.u32 15, %v205_v47  ;;  %v223_v47 = vadd.s32 192, %v11496_v44  ;;  %13948 = vst [vmem:[#allocation108_spill] sm:$0xff] %v11580_v9  ;;  %v11597_v32 = vsel %vm283_vm11, 1.0, %v13938_v17  ;;  %v1093_v18 = vadd.f32 %v13958_v3, %v10930_v22  ;;  %v13969_v22 = vld [vmem:[#allocation11_spill] sm:$0xff] }
 0x1bc   : > { %v11490_v25 = vpop.f32.mrf.mxu0  ;;  %13922 = vst [vmem:[#allocation91_spill] sm:$0xff] %v11503_v36  ;;  %v215_v36 = vadd.s32 128, %v11496_v44  ;;  %13949 = vst [vmem:[#allocation109_spill] sm:$0xff] %v11583_v53  ;;  %v11613_v24 = vsel %vm291_vm15, 1.0, %v13938_v17 }
 0x1bd   : > { %13918 = vst [vmem:[#allocation87_spill] sm:$0xff] %v11490_v25  ;;  %vm11540_vm4 = vcmp.ne.s32.totalorder %v237_v54, 0  ;;  %v11551_v54 = vsel %vm11523_vm1, 1.0, %v13938_v17  ;;  %vm293_vm1 = vcmp.ne.s32.totalorder %v261_v8, 0  ;;  %13954 = vst [vmem:[#allocation114_spill] sm:$0xff] %v11597_v32  ;;  %v13965_v8 = vld [vmem:[#allocation7_spill] sm:$0xff]  ;;  %v1541_v33 = vadd.f32 %v11178_v5, %v1093_v18 }
 0x1be   : > { %v11494_v43 = vpop.f32.mrf.mxu0  ;;  %v247_v38 = vand.u32 15, %v215_v36  ;;  %13939 = vst [vmem:[#allocation99_spill] sm:$0xff] %v11551_v54  ;;  %v11558_v36 = vsel %vm11532_vm2, 1.0, %v13938_v17  ;;  %v11568_v16 = vsel %vm11540_vm4, 1.0, %v13938_v17  ;;  %13960 = vst [vmem:[#allocation118_spill] sm:$0xff] %v11613_v24 }
 0x1bf   : > { %13920 = vst [vmem:[#allocation89_spill] sm:$0xff] %v11494_v43  ;;  %v235_v43 = vand.u32 15, %v203_v7  ;;  %v221_v7 = vadd.s32 176, %v11496_v44  ;;  %13941 = vst [vmem:[#allocation101_spill] sm:$0xff] %v11558_v36 }
 0x1c0   : > { %v11498_v20 = vpop.f32.mrf.mxu0  ;;  %13943 = vst [vmem:[#allocation103_spill] sm:$0xff] %v11568_v16  ;;  %vm279_vm9 = vcmp.ne.s32.totalorder %v247_v38, 0  ;;  %v11586_v38 = vsel %vm277_vm8, 1.0, %v13938_v17 }
 0x1c1   : > { %13921 = vst [vmem:[#allocation90_spill] sm:$0xff] %v11498_v20  ;;  %v11511_v20 = vpop.f32.mrf.mxu1  ;;  %vm11536_vm3 = vcmp.ne.s32.totalorder %v235_v43, 0  ;;  %v253_v49 = vand.u32 15, %v221_v7  ;;  %v255_v43 = vand.u32 15, %v223_v47  ;;  %13950 = vst [vmem:[#allocation110_spill] sm:$0xff] %v11586_v38  ;;  %v11589_v35 = vsel %vm279_vm9, 1.0, %v13938_v17 }
 0x1c2   : > { %v11505_v10 = vpop.f32.mrf.mxu0  ;;  %13925 = vst [vmem:[#allocation94_spill] sm:$0xff] %v11511_v20  ;;  %v225_v20 = vadd.s32 208, %v11496_v44  ;;  %v11563_v51 = vsel %vm11536_vm3, 1.0, %v13938_v17  ;;  %13951 = vst [vmem:[#allocation111_spill] sm:$0xff] %v11589_v35  ;;  %v11616_v7 = vsel %vm293_vm1, 1.0, %v13938_v17  ;;  %v13962_v47 = vld [vmem:[#allocation4_spill] sm:$0xff] }
 0x1c3   : > { %13923 = vst [vmem:[#allocation92_spill] sm:$0xff] %v11505_v10  ;;  %v11544_v41 = vpop.f32.mrf.mxu1  ;;  %13942 = vst [vmem:[#allocation102_spill] sm:$0xff] %v11563_v51  ;;  %vm285_vm12 = vcmp.ne.s32.totalorder %v253_v49, 0  ;;  %vm287_vm13 = vcmp.ne.s32.totalorder %v255_v43, 0  ;;  %v1103_v34 = vadd.f32 %v13963_v29, %v13962_v47  ;;  %v13964_v43 = vld [vmem:[#allocation6_spill] sm:$0xff]  ;;  %v1555_v47 = vmul.f32 %v11551_v54, %v11048_v48 }
 0x1c4   : > { %v11508_v25 = vpop.f32.mrf.mxu0  ;;  %13936 = vst [vmem:[#allocation97_spill] sm:$0xff] %v11544_v41  ;;  %v257_v37 = vand.u32 15, %v225_v20  ;;  %v11600_v26 = vsel %vm285_vm12, 1.0, %v13938_v17  ;;  %v11603_v42 = vsel %vm287_vm13, 1.0, %v13938_v17  ;;  %13961 = vst [vmem:[#allocation119_spill] sm:$0xff] %v11616_v7  ;;  %v13971_v41 = vld [vmem:[#allocation13_spill] sm:$0xff] }
 0x1c5   : > { %13924 = vst [vmem:[#allocation93_spill] sm:$0xff] %v11508_v25  ;;  %v11570_v20 = vpop.f32.mrf.mxu1  ;;  %13955 = vst [vmem:[#allocation115_spill] sm:$0xff] %v11600_v26 }
 0x1c6   : > { %v11517_v10 = vpop.f32.mrf.mxu0  ;;  %13944 = vst [vmem:[#allocation104_spill] sm:$0xff] %v11570_v20  ;;  %vm289_vm14 = vcmp.ne.s32.totalorder %v257_v37, 0  ;;  %v11594_v37 = vsel %vm281_vm10, 1.0, %v13938_v17  ;;  %13956 = vst [vmem:[#allocation116_spill] sm:$0xff] %v11603_v42  ;;  %v13970_v20 = vld [vmem:[#allocation12_spill] sm:$0xff] }
 0x1c7   : > { %13926 = vst [vmem:[#allocation95_spill] sm:$0xff] %v11517_v10  ;;  %v11575_v10 = vsel %vm271_vm5, 1.0, %v13938_v17  ;;  %v11591_v49 = vpop.f32.mrf.mxu1  ;;  %13953 = vst [vmem:[#allocation113_spill] sm:$0xff] %v11594_v37  ;;  %v11610_v25 = vsel %vm289_vm14, 1.0, %v13938_v17  ;;  %v1143_v4 = vadd.f32 %v13971_v41, %v13970_v20  ;;  %v11645_v41 = vmul.f32 %v11568_v16, %v11090_v57 }
 0x1c8   : > { %v11530_v61 = vpop.f32.mrf.mxu0  ;;  %13946 = vst [vmem:[#allocation106_spill] sm:$0xff] %v11575_v10  ;;  %13952 = vst [vmem:[#allocation112_spill] sm:$0xff] %v11591_v49  ;;  %v11652_v48 = vmul.f32 %v11575_v10, %v11104_v2  ;;  %v11656_v20 = vmul.f32 %v11580_v9, %v11118_v12  ;;  %v11662_v57 = vmul.f32 %v11583_v53, %v11135_v39  ;;  %v204_v2 = vadd.s32 40, %v11496_v44  ;;  %v14010_v9 = vld [vmem:[#allocation74_spill] sm:$0xff] }
 0x1c9   : > { %13929 = vst [vmem:[#allocation96_spill] sm:$0xff] %v11530_v61  ;;  %13959 = vst [vmem:[#allocation3_spill] sm:$0xff] %v11610_v25  ;;  %v11634_v29 = vpop.f32.mrf.mxu1  ;;  %v11671_v12 = vmul.f32 %v11586_v38, %v11149_v30  ;;  %v2075_v30 = vadd.f32 %v11286_v11, %v11059_v52  ;;  %v208_v52 = vadd.s32 72, %v11496_v44  ;;  %v13999_v38 = vld [vmem:[#allocation46_spill] sm:$0xff] }
 0x1ca   : > { %v11546_v61 = vpop.f32.mrf.mxu0 }
 0x1cb   : > { %13937 = vst [vmem:[#allocation98_spill] sm:$0xff] %v11546_v61  ;;  %v13968_v61 = vld [vmem:[#allocation10_spill] sm:$0xff]  ;;  %v11678_v39 = vpop.f32.mrf.mxu1 }
 0x1cc   : > { %v11553_v59 = vpop.f32.mrf.mxu0  ;;  %v1133_v3 = vadd.f32 %v13969_v22, %v13968_v61  ;;  %v11641_v61 = vmul.f32 %v11563_v51, %v11076_v14  ;;  %v202_v14 = vadd.s32 24, %v11496_v44 }
 0x1cd   : > { %13940 = vst [vmem:[#allocation100_spill] sm:$0xff] %v11553_v59 }
 0x1ce   : > { %v11572_v60 = vpop.f32.mrf.mxu0  ;;  %v234_v22 = vand.u32 15, %v202_v14 }
 0x1cf   : > { %13945 = vst [vmem:[#allocation105_spill] sm:$0xff] %v11572_v60  ;;  %v13966_v60 = vld [vmem:[#allocation8_spill] sm:$0xff] }
 0x1d0   : > { %v11577_v6 = vpop.f32.mrf.mxu0  ;;  %vm11724_vm3 = vcmp.ne.s32.totalorder %v234_v22, 15  ;;  %v13984_v22 = vld [vmem:[#allocation37_spill] sm:$0xff] }
 0x1d1   : > { %13947 = vst [vmem:[#allocation107_spill] sm:$0xff] %v11577_v6  ;;  %v1113_v6 = vadd.f32 %v13965_v8, %v13964_v43  ;;  %v200_v43 = vadd.s32 8, %v11496_v44 }
 0x1d2   : > { %v11605_v55 = vpop.f32.mrf.mxu0 }
 0x1d3   : > { %13957 = vst [vmem:[#allocation117_spill] sm:$0xff] %v11605_v55  ;;  %v13967_v55 = vld [vmem:[#allocation9_spill] sm:$0xff]  ;;  %v1545_v5 = vadd.f32 %v11207_v31, %v1113_v6  ;;  %v232_v8 = vand.u32 15, %v200_v43  ;;  %v11681_v31 = vmul.f32 %v11594_v37, %v1541_v33 }
 0x1d4   : > { %v1123_v59 = vadd.f32 %v13967_v55, %v13966_v60  ;;  %v11626_v49 = vpop.f32.mrf.mxu0  ;;  %v1557_v60 = vmul.f32 %v11558_v36, %v11062_v56  ;;  %v1543_v56 = vadd.f32 %v11194_v19, %v1103_v34  ;;  %v11675_v19 = vmul.f32 %v11589_v35, %v11167_v21 }
 0x1d5   : > { %v1549_v34 = vadd.f32 %v11236_v0, %v1133_v3  ;;  %v1553_v0 = vadd.f32 %v11261_v40, %v1153_v62  ;;  %v206_v3 = vadd.s32 56, %v11496_v44  ;;  %v11696_v43 = vmul.f32 %v11600_v26, %v1545_v5  ;;  %v11709_v62 = vpop.f32.mrf.mxu1 }
 0x1d6   : > { %v11648_v27 = vpop.f32.mrf.mxu0  ;;  %v1547_v55 = vadd.f32 %v11223_v45, %v1123_v59  ;;  %v1551_v45 = vadd.f32 %v11251_v58, %v1143_v4  ;;  %v2065_v59 = vadd.f32 %v11272_v50, %v11045_v46  ;;  %v11691_v21 = vmul.f32 %v11597_v32, %v1543_v56  ;;  %v13974_v56 = vld [vmem:[#allocation29_spill] sm:$0xff] }
 0x1d7   : > { %v236_v50 = vand.u32 15, %v204_v2  ;;  %v11705_v11 = vmul.f32 %v11610_v25, %v1549_v34  ;;  %v2085_v40 = vadd.f32 %v11297_v63, %v11073_v1  ;;  %vm360_vm2 = vcmp.ne.s32.totalorder %v232_v8, 15 }
 0x1d8   : > { %v11666_v18 = vpop.f32.mrf.mxu0  ;;  %v11699_v58 = vmul.f32 %v11603_v42, %v1547_v55  ;;  %v210_v4 = vadd.s32 88, %v11496_v44  ;;  %v11713_v33 = vmul.f32 %v11613_v24, %v1551_v45  ;;  %v2585_v14 = vadd.f32 %v13974_v56, %v2065_v59  ;;  %v13975_v55 = vld [vmem:[#allocation16_spill] sm:$0xff]  ;;  %v13980_v45 = vld [vmem:[#allocation17_spill] sm:$0xff] }
 0x1d9   : > { %v2587_v5 = vadd.f32 %v11288_v13, %v2075_v30  ;;  %v2095_v2 = vadd.f32 %v11311_v15, %v13975_v55  ;;  %v11722_v25 = vmul.f32 %v11616_v7, %v1553_v0  ;;  %v238_v63 = vand.u32 15, %v206_v3  ;;  %v13983_v0 = vld [vmem:[#allocation18_spill] sm:$0xff]  ;;  %v11739_v7 = vpop.f32.mrf.mxu1 }
 0x1da   : > { %v11688_v6 = vpop.f32.mrf.mxu0  ;;  %v212_v8 = vadd.s32 104, %v11496_v44  ;;  %v2105_v59 = vadd.f32 %v11328_v23, %v13980_v45  ;;  %v11734_v13 = vsel %vm360_vm2, 1.0, %v13938_v17  ;;  %vm364_vm4 = vcmp.ne.s32.totalorder %v236_v50, 15  ;;  %v13985_v23 = vld [vmem:[#allocation33_spill] sm:$0xff] }
 0x1db   : > { %13977 = vst [vmem:[#allocation5_spill] sm:$0xff] %v11722_v25  ;;  %13982 = vst [vmem:[#allocation7_spill] sm:$0xff] %v11734_v13  ;;  %v240_v15 = vand.u32 15, %v208_v52  ;;  %v2589_v30 = vadd.f32 %v11299_v28, %v2085_v40  ;;  %v2115_v55 = vadd.f32 %v13984_v22, %v13983_v0  ;;  %v242_v3 = vand.u32 15, %v210_v4  ;;  %v11770_v37 = vpop.f32.mrf.mxu1 }
 0x1dc   : > { %v11701_v46 = vpop.f32.mrf.mxu0  ;;  %v214_v24 = vadd.s32 120, %v11496_v44  ;;  %v2617_v42 = vadd.f32 %v2585_v14, %v1555_v47  ;;  %v11742_v26 = vadd.f32 %v2587_v5, %v1557_v60  ;;  %v2591_v45 = vadd.f32 %v13985_v23, %v2095_v2  ;;  %v13991_v60 = vld [vmem:[#allocation35_spill] sm:$0xff]  ;;  %v13993_v5 = vld [vmem:[#allocation40_spill] sm:$0xff] }
 0x1dd   : > { %v11750_v50 = vsel %vm11724_vm3, 1.0, %v13938_v17  ;;  %v11753_v28 = vsel %vm364_vm4, 1.0, %v13938_v17  ;;  %vm11755_vm5 = vcmp.ne.s32.totalorder %v238_v63, 15  ;;  %v244_v40 = vand.u32 15, %v212_v8  ;;  %v13992_v14 = vld [vmem:[#allocation19_spill] sm:$0xff]  ;;  %v13995_v63 = vld [vmem:[#allocation38_spill] sm:$0xff]  ;;  %v11807_v10 = vpop.f32.mrf.mxu1 }
 0x1de   : > { %v11719_v34 = vpop.f32.mrf.mxu0  ;;  %13987 = vst [vmem:[#allocation9_spill] sm:$0xff] %v11750_v50  ;;  %13988 = vst [vmem:[#allocation10_spill] sm:$0xff] %v11753_v28  ;;  %v216_v47 = vadd.s32 136, %v11496_v44  ;;  %v2593_v4 = vadd.f32 %v13991_v60, %v2105_v59  ;;  %v2125_v2 = vadd.f32 %v13993_v5, %v13992_v14  ;;  %vm368_vm6 = vcmp.ne.s32.totalorder %v240_v15, 15  ;;  %v13996_v59 = vld [vmem:[#allocation20_spill] sm:$0xff]  ;;  %v13997_v60 = vld [vmem:[#allocation43_spill] sm:$0xff] }
 0x1df   : > { %13976 = vst [vmem:[#allocation4_spill] sm:$0xff] %v11719_v34  ;;  %v218_v1 = vadd.s32 152, %v11496_v44  ;;  %v11767_v22 = vadd.f32 %v2589_v30, %v11641_v61  ;;  %v2595_v23 = vadd.f32 %v13995_v63, %v2115_v55  ;;  %vm370_vm7 = vcmp.ne.s32.totalorder %v242_v3, 15  ;;  %v13998_v5 = vld [vmem:[#allocation21_spill] sm:$0xff]  ;;  %v14002_v30 = vld [vmem:[#allocation70_spill] sm:$0xff]  ;;  %v14003_v55 = vld [vmem:[#allocation71_spill] sm:$0xff] }
 0x1e0   : > { %v11731_v56 = vpop.f32.mrf.mxu0  ;;  %v246_v8 = vand.u32 15, %v214_v24  ;;  %v11773_v35 = vadd.f32 %v2591_v45, %v11645_v41  ;;  %v2135_v14 = vadd.f32 %v13997_v60, %v13996_v59  ;;  %v2145_v15 = vadd.f32 %v13999_v38, %v13998_v5  ;;  %v14007_v63 = vld [vmem:[#allocation41_spill] sm:$0xff] }
 0x1e1   : > { %13981 = vst [vmem:[#allocation6_spill] sm:$0xff] %v11731_v56  ;;  %v11784_v61 = vsel %vm11755_vm5, 1.0, %v13938_v17  ;;  %v3100_v3 = vadd.f32 %v14003_v55, %v14002_v30  ;;  %v11789_v24 = vsel %vm368_vm6, 1.0, %v13938_v17  ;;  %vm11791_vm8 = vcmp.ne.s32.totalorder %v244_v40, 15  ;;  %v14009_v55 = vld [vmem:[#allocation73_spill] sm:$0xff] }
 0x1e2   : > { %v11745_v32 = vpop.f32.mrf.mxu0  ;;  %14001 = vst [vmem:[#allocation13_spill] sm:$0xff] %v11784_v61  ;;  %14004 = vst [vmem:[#allocation14_spill] sm:$0xff] %v11789_v24  ;;  %v248_v45 = vand.u32 15, %v216_v47  ;;  %v11796_v38 = vadd.f32 %v2593_v4, %v11652_v48  ;;  %v2597_v59 = vadd.f32 %v14007_v63, %v2125_v2  ;;  %v11800_v52 = vsel %vm370_vm7, 1.0, %v13938_v17  ;;  %v14011_v47 = vld [vmem:[#allocation44_spill] sm:$0xff]  ;;  %v14012_v4 = vld [vmem:[#allocation47_spill] sm:$0xff] }
 0x1e3   : > { %13986 = vst [vmem:[#allocation8_spill] sm:$0xff] %v11745_v32  ;;  %14008 = vst [vmem:[#allocation15_spill] sm:$0xff] %v11800_v52  ;;  %v250_v5 = vand.u32 15, %v218_v1  ;;  %v11803_v30 = vadd.f32 %v2595_v23, %v11656_v20  ;;  %v3095_v40 = vadd.f32 %v14010_v9, %v14009_v55  ;;  %vm374_vm9 = vcmp.ne.s32.totalorder %v246_v8, 15  ;;  %v14013_v2 = vld [vmem:[#allocation22_spill] sm:$0xff]  ;;  %v14016_v1 = vld [vmem:[#allocation75_spill] sm:$0xff] }
 0x1e4   : > { %v11763_v0 = vpop.f32.mrf.mxu0  ;;  %v2599_v48 = vadd.f32 %v14011_v47, %v2135_v14  ;;  %v2601_v51 = vadd.f32 %v14012_v4, %v2145_v15  ;;  %v14014_v63 = vld [vmem:[#allocation50_spill] sm:$0xff]  ;;  %v11816_v20 = vsel %vm11791_vm8, 1.0, %v13938_v17  ;;  %v14017_v23 = vld [vmem:[#allocation76_spill] sm:$0xff]  ;;  %vm11821_vm10 = vcmp.ne.s32.totalorder %v248_v45, 15  ;;  %v11836_v41 = vld [vmem:[%s13792_s2] ss:$0 sm:$0xff]  ;;  %v11849_v47 = vpop.f32.mrf.mxu1 }
 0x1e5   : > { %13994 = vst [vmem:[#allocation11_spill] sm:$0xff] %v11763_v0  ;;  %v2155_v36 = vadd.f32 %v14014_v63, %v14013_v2  ;;  %14015 = vst [vmem:[#allocation29_spill] sm:$0xff] %v11816_v20  ;;  %v3110_v9 = vadd.f32 %v14017_v23, %v14016_v1  ;;  %v11828_v14 = vld [vmem:[%s13791_s1 + $0x438] sm:$0xff]  ;;  %v11831_v15 = vadd.f32 %v2597_v59, %v11662_v57  ;;  %vm11841_vm11 = vcmp.ne.s32.totalorder %v250_v5, 15  ;;  %v14025_v57 = vld [vmem:[#allocation79_spill] sm:$0xff] }
 0x1e6   : > { %v11779_v53 = vpop.f32.mrf.mxu0  ;;  %14020 = vst [vmem:[#allocation16_spill] sm:$0xff] %v11828_v14  ;;  %v220_v45 = vadd.s32 168, %v11496_v44  ;;  %9585 = vmatprep.subr.mxu0 %v11828_v14  ;;  %v14026_v4 = vld [vmem:[#allocation30_spill] sm:$0xff]  ;;  %v11853_v23 = vadd.f32 %v2599_v48, %v11671_v12  ;;  %v11856_v5 = vadd.f32 %v2601_v51, %v11675_v19  ;;  %v11862_v14 = vld [vmem:[%s13793_s3] ss:$0 sm:$0xff]  ;;  %v14029_v48 = vld [vmem:[#allocation23_spill] sm:$0xff] }
 0x1e7   : > { %14000 = vst [vmem:[#allocation12_spill] sm:$0xff] %v11779_v53  ;;  %v11879_v8 = vsel %vm11841_vm11, 1.0, %v13938_v17  ;;  %v11881_v53 = vpop.f32.mrf.mxu1 }
 0x1e8   : > { %v9219_v60 = vpop.f32.mrf.mxu0  ;;  %14033 = vst [vmem:[#allocation37_spill] sm:$0xff] %v11879_v8 }
 0x1e9   : > { %v3616_v16 = vadd.f32 %v9219_v60, %v3100_v3 }
 0x1ea   : > { %v3456_v54 = vpop.f32.mrf.mxu0 }
 0x1eb   : > { %v3648_v55 = vmul.f32 %v11734_v13, %v3616_v16  ;;  %v3615_v3 = vadd.f32 %v3456_v54, %v3095_v40  ;;  %v11839_v54 = vsel %vm374_vm9, 1.0, %v13938_v17  ;;  %v14024_v40 = vld [vmem:[#allocation77_spill] sm:$0xff]  ;;  %v14027_v13 = vld [vmem:[#allocation51_spill] sm:$0xff] }
 0x1ec   : > { %v9222_v60 = vpop.f32.mrf.mxu0  ;;  %14021 = vst [vmem:[#allocation17_spill] sm:$0xff] %v11839_v54  ;;  %v3105_v59 = vadd.f32 %v14025_v57, %v14024_v40  ;;  %v2603_v25 = vadd.f32 %v14027_v13, %v2155_v36  ;;  %v14030_v36 = vld [vmem:[#allocation53_spill] sm:$0xff] }
 0x1ed   : > { %v3680_v2 = vadd.f32 %v3648_v55, %v14026_v4  ;;  %v3679_v63 = vadd.f32 %v3615_v3, %v2617_v42  ;;  %v3618_v1 = vadd.f32 %v9222_v60, %v3110_v9  ;;  %v11867_v55 = vsel %vm11821_vm10, 1.0, %v13938_v17  ;;  %v14031_v9 = vld [vmem:[#allocation78_spill] sm:$0xff]  ;;  %v14037_v16 = vld [vmem:[#allocation81_spill] sm:$0xff] }
 0x1ee   : > { %v3466_v40 = vpop.f32.mrf.mxu0  ;;  %14028 = vst [vmem:[#allocation18_spill] sm:$0xff] %v11867_v55  ;;  %v2165_v13 = vadd.f32 %v14030_v36, %v14029_v48  ;;  %v14032_v3 = vld [vmem:[#allocation82_spill] sm:$0xff]  ;;  %v252_v4 = vand.u32 15, %v220_v45  ;;  %v11888_v48 = vadd.f32 %v2603_v25, %v11681_v31  ;;  %v14035_v36 = vld [vmem:[#allocation80_spill] sm:$0xff] }
 0x1ef   : > { %v3719_v42 = vmul.f32 %v11836_v41, %v3680_v2  ;;  %v3718_v12 = vmul.f32 %v11836_v41, %v3679_v63  ;;  %v3650_v51 = vmul.f32 %v11750_v50, %v3618_v1  ;;  %v3617_v19 = vadd.f32 %v3466_v40, %v3105_v59  ;;  %v14034_v59 = vld [vmem:[#allocation31_spill] sm:$0xff]  ;;  %v14038_v50 = vld [vmem:[#allocation88_spill] sm:$0xff] }
 0x1f0   : > { %v3120_v60 = vadd.f32 %v14032_v3, %v14031_v9  ;;  %v9225_v57 = vpop.f32.mrf.mxu0  ;;  %v14036_v9 = vld [vmem:[#allocation85_spill] sm:$0xff]  ;;  %v3130_v0 = vadd.f32 %v14038_v50, %v14037_v16  ;;  %vm11913_vm12 = vcmp.ne.s32.totalorder %v252_v4, 15 }
 0x1f1   : > { %v3758_v2 = vadd.f32 %v11862_v14, %v3719_v42  ;;  %v3757_v63 = vadd.f32 %v11862_v14, %v3718_v12  ;;  %v3682_v1 = vadd.f32 %v3650_v51, %v14034_v59  ;;  %v3681_v40 = vadd.f32 %v3617_v19, %v11742_v26  ;;  %v14039_v51 = vld [vmem:[#allocation54_spill] sm:$0xff]  ;;  %v14048_v4 = vld [vmem:[#allocation97_spill] sm:$0xff] }
 0x1f2   : > { %v3115_v3 = vadd.f32 %v14036_v9, %v14035_v36  ;;  %v3620_v45 = vadd.f32 %v9225_v57, %v3120_v60  ;;  %v3476_v32 = vpop.f32.mrf.mxu0  ;;  %v2605_v59 = vadd.f32 %v14039_v51, %v2165_v13  ;;  %v11899_v19 = vadd.s32 184, %v11496_v44  ;;  %v14040_v36 = vld [vmem:[#allocation83_spill] sm:$0xff]  ;;  %v11903_v60 = vpop.f32.mrf.mxu1 }
 0x1f3   : > { %v3790_v56 = vmax.f32 %v3758_v2, 0.0  ;;  %v3789_v34 = vmax.f32 %v3757_v63, 0.0  ;;  %v3721_v42 = vmul.f32 %v11836_v41, %v3682_v1  ;;  %v3720_v12 = vmul.f32 %v11836_v41, %v3681_v40  ;;  %v14041_v9 = vld [vmem:[#allocation91_spill] sm:$0xff]  ;;  %v14042_v63 = vld [vmem:[#allocation84_spill] sm:$0xff] }
 0x1f4   : > { %v3652_v26 = vmul.f32 %v11753_v28, %v3620_v45  ;;  %v3619_v25 = vadd.f32 %v3476_v32, %v3115_v3  ;;  %v9228_v31 = vpop.f32.mrf.mxu0  ;;  %v3125_v50 = vadd.f32 %v14041_v9, %v14040_v36  ;;  %v14043_v32 = vld [vmem:[#allocation94_spill] sm:$0xff]  ;;  %v14044_v40 = vld [vmem:[#allocation32_spill] sm:$0xff] }
 0x1f5   : > { %3822 = vst.msk [vmem:[#allocation2 + $0x20] sm:$0xff] %vm455_vm0, %v3790_v56  ;;  %3821 = vst.msk [vmem:[#allocation2 + $0x18] sm:$0xff] %vm455_vm0, %v3789_v34  ;;  %v3760_v57 = vadd.f32 %v11862_v14, %v3721_v42  ;;  %v3759_v13 = vadd.f32 %v11862_v14, %v3720_v12  ;;  %v3622_v2 = vadd.f32 %v9228_v31, %v3130_v0  ;;  %v14056_v28 = vld [vmem:[#allocation36_spill] sm:$0xff] }
 0x1f6   : > { %v3140_v1 = vadd.f32 %v14043_v32, %v14042_v63  ;;  %v3684_v3 = vadd.f32 %v3652_v26, %v14044_v40  ;;  %v3683_v16 = vadd.f32 %v3619_v25, %v11767_v22  ;;  %v3486_v45 = vpop.f32.mrf.mxu0  ;;  %v11919_v12 = vadd.f32 %v2605_v59, %v11691_v21  ;;  %v14047_v25 = vld [vmem:[#allocation86_spill] sm:$0xff]  ;;  %v11926_v63 = vpop.f32.mrf.mxu1 }
 0x1f7   : > { %v3792_v56 = vmax.f32 %v3760_v57, 0.0  ;;  %v3791_v36 = vmax.f32 %v3759_v13, 0.0  ;;  %v3654_v34 = vmul.f32 %v11784_v61, %v3622_v2  ;;  %v3621_v42 = vadd.f32 %v3486_v45, %v3125_v50  ;;  %v14049_v50 = vld [vmem:[#allocation34_spill] sm:$0xff]  ;;  %v14050_v13 = vld [vmem:[#allocation24_spill] sm:$0xff] }
 0x1f8   : > { %v3723_v0 = vmul.f32 %v11836_v41, %v3684_v3  ;;  %v3722_v31 = vmul.f32 %v11836_v41, %v3683_v16  ;;  %v9231_v26 = vpop.f32.mrf.mxu0  ;;  %v254_v22 = vand.u32 15, %v11899_v19  ;;  %v3135_v9 = vadd.f32 %v14048_v4, %v14047_v25  ;;  %v14051_v2 = vld [vmem:[#allocation56_spill] sm:$0xff]  ;;  %v11946_v61 = vpop.f32.mrf.mxu1 }
 0x1f9   : > { %3824 = vst.msk [vmem:[#allocation2 + $0x30] sm:$0xff] %vm455_vm0, %v3792_v56  ;;  %3823 = vst.msk [vmem:[#allocation2 + $0x28] sm:$0xff] %vm455_vm0, %v3791_v36  ;;  %v3686_v57 = vadd.f32 %v3654_v34, %v14049_v50  ;;  %v3685_v21 = vadd.f32 %v3621_v42, %v11773_v35  ;;  %v3624_v59 = vadd.f32 %v9231_v26, %v3140_v1  ;;  %v11937_v16 = vadd.s32 200, %v11496_v44  ;;  %v14052_v35 = vld [vmem:[#allocation25_spill] sm:$0xff]  ;;  %v14053_v1 = vld [vmem:[#allocation59_spill] sm:$0xff] }
 0x1fa   : > { %v2175_v32 = vadd.f32 %v14051_v2, %v14050_v13  ;;  %v3762_v40 = vadd.f32 %v11862_v14, %v3723_v0  ;;  %v3761_v19 = vadd.f32 %v11862_v14, %v3722_v31  ;;  %v3496_v3 = vpop.f32.mrf.mxu0  ;;  %v2185_v42 = vadd.f32 %v14053_v1, %v14052_v35  ;;  %v14054_v26 = vld [vmem:[#allocation87_spill] sm:$0xff]  ;;  %v14055_v25 = vld [vmem:[#allocation104_spill] sm:$0xff]  ;;  %v14059_v1 = vld [vmem:[#allocation90_spill] sm:$0xff] }
 0x1fb   : > { %v3725_v45 = vmul.f32 %v11836_v41, %v3686_v57  ;;  %v3724_v56 = vmul.f32 %v11836_v41, %v3685_v21  ;;  %v3656_v36 = vmul.f32 %v11789_v24, %v3624_v59  ;;  %v3623_v34 = vadd.f32 %v3496_v3, %v3135_v9  ;;  %v14058_v3 = vld [vmem:[#allocation112_spill] sm:$0xff] }
 0x1fc   : > { %v3150_v4 = vadd.f32 %v14055_v25, %v14054_v26  ;;  %v3794_v0 = vmax.f32 %v3762_v40, 0.0  ;;  %v3793_v50 = vmax.f32 %v3761_v19, 0.0  ;;  %v9234_v31 = vpop.f32.mrf.mxu0  ;;  %v3855_v13 = vld [vmem:[#allocation2 + $0x17] sm:$0xff]  ;;  %v3856_v2 = vld [vmem:[#allocation2 + $0x1f] sm:$0xff]  ;;  %v3160_v26 = vadd.f32 %v11634_v29, %v14059_v1 }
 0x1fd   : > { %v3764_v57 = vadd.f32 %v11862_v14, %v3725_v45  ;;  %v3763_v21 = vadd.f32 %v11862_v14, %v3724_v56  ;;  %v3688_v59 = vadd.f32 %v3656_v36, %v14056_v28  ;;  %v3687_v9 = vadd.f32 %v3623_v34, %v11796_v38  ;;  %9281 = vmatprep.mubr.msk.f32.mxu1 %vm455_vm0, %v3855_v13  ;;  %v7687_v40 = vld [vmem:[%s13791_s1 + $0x3f0] sm:$0xff]  ;;  %v14057_v19 = vld [vmem:[#allocation89_spill] sm:$0xff]  ;;  %v14061_v25 = vld [vmem:[#allocation48_spill] sm:$0xff] }
 0x1fe   : > { %v3145_v35 = vadd.f32 %v14058_v3, %v14057_v19  ;;  %3826 = vst.msk [vmem:[#allocation2 + $0x40] sm:$0xff] %vm455_vm0, %v3794_v0  ;;  %3825 = vst.msk [vmem:[#allocation2 + $0x38] sm:$0xff] %vm455_vm0, %v3793_v50  ;;  %v3626_v45 = vadd.f32 %v9234_v31, %v3150_v4  ;;  %9348 = vmatprep.mubr.msk.f32.mxu0 %vm455_vm0, %v3855_v13  ;;  %v3506_v28 = vpop.f32.mrf.mxu0  ;;  %9282 = vmatmul.mubr.msk.f32.vlgmr.msra.gmra.mxu1 %vm455_vm0, %v3856_v2  ;;  %v11967_v38 = vsel %vm11913_vm12, 1.0, %v13938_v17  ;;  %v14064_v0 = vld [vmem:[#allocation57_spill] sm:$0xff]  ;;  %v14065_v31 = vld [vmem:[#allocation92_spill] sm:$0xff] }
 0x1ff   : > { %14060 = vst [vmem:[#allocation33_spill] sm:$0xff] %v11967_v38  ;;  %v3796_v56 = vmax.f32 %v3764_v57, 0.0  ;;  %v3795_v36 = vmax.f32 %v3763_v21, 0.0  ;;  %v3727_v34 = vmul.f32 %v11836_v41, %v3688_v59  ;;  %v3726_v29 = vmul.f32 %v11836_v41, %v3687_v9  ;;  %9349 = vmatmul.mubr.msk.f32.gmra.mxu0 %vm455_vm0, %v3856_v2  ;;  %9394 = vmatpush3.msra.mxu1 %v14061_v25  ;;  %v11985_v2 = vpop.f32.mrf.mxu1  ;;  %v7686_v19 = vld [vmem:[%s13791_s1 + $0x3e8] sm:$0xff] }
 0x200   : > { %vm11973_vm13 = vcmp.ne.s32.totalorder %v254_v22, 15  ;;  %v2607_v50 = vadd.f32 %v14064_v0, %v2175_v32  ;;  %v3155_v51 = vadd.f32 %v11678_v39, %v14065_v31  ;;  %v3658_v13 = vmul.f32 %v11800_v52, %v3626_v45  ;;  %v9237_v21 = vpop.f32.mrf.mxu0  ;;  %v11981_v59 = vld [vmem:[#allocation2 + $0x27] sm:$0xff]  ;;  %v11983_v9 = vld [vmem:[#allocation2 + $0x2f] sm:$0xff]  ;;  %9395 = vmatprep.subr.mxu1 %v7687_v40 }
 0x201   : > { %v3625_v57 = vadd.f32 %v3506_v28, %v3145_v35  ;;  %3828 = vst.msk [vmem:[#allocation2 + $0x50] sm:$0xff] %vm455_vm0, %v3796_v56  ;;  %3827 = vst.msk [vmem:[#allocation2 + $0x48] sm:$0xff] %vm455_vm0, %v3795_v36  ;;  %v3766_v22 = vadd.f32 %v11862_v14, %v3727_v34  ;;  %v3765_v32 = vadd.f32 %v11862_v14, %v3726_v29  ;;  %9284 = vmatprep.mubr.msk.f32.mxu1 %vm455_vm0, %v11981_v59  ;;  %v14066_v35 = vld [vmem:[#allocation60_spill] sm:$0xff]  ;;  %v14067_v45 = vld [vmem:[#allocation93_spill] sm:$0xff] }
 0x202   : > { %v3628_v39 = vadd.f32 %v9237_v21, %v3160_v26  ;;  %9351 = vmatprep.mubr.msk.f32.mxu0 %vm455_vm0, %v11981_v59  ;;  %v256_v3 = vand.u32 15, %v11937_v16  ;;  %v2609_v1 = vadd.f32 %v14066_v35, %v2185_v42  ;;  %v3170_v28 = vadd.f32 %v11709_v62, %v14067_v45  ;;  %v14068_v56 = vld [vmem:[#allocation39_spill] sm:$0xff]  ;;  %v3516_v34 = vpop.f32.mrf.mxu0  ;;  %9285 = vmatmul.mubr.msk.f32.gmra.mxu1 %vm455_vm0, %v11983_v9 }
 0x203   : > { %v3690_v36 = vadd.f32 %v3658_v13, %v14068_v56  ;;  %v3689_v26 = vadd.f32 %v3625_v57, %v11803_v30  ;;  %v3798_v29 = vmax.f32 %v3766_v22, 0.0  ;;  %v3797_v25 = vmax.f32 %v3765_v32, 0.0  ;;  %9352 = vmatmul.mubr.msk.f32.gmra.mxu0 %vm455_vm0, %v11983_v9  ;;  %9396 = vmatpush3.msra.mxu1 %v7687_v40  ;;  %v14069_v57 = vld [vmem:[#allocation95_spill] sm:$0xff] }
 0x204   : > { %v3660_v0 = vmul.f32 %v11816_v20, %v3628_v39  ;;  %v3627_v31 = vadd.f32 %v3516_v34, %v3155_v51  ;;  %v12010_v16 = vadd.f32 %v2607_v50, %v11696_v43  ;;  %v9240_v42 = vpop.f32.mrf.mxu0  ;;  %9397 = vmatprep.subr.mxu1 %v7686_v19  ;;  %v12015_v13 = vadd.s32 216, %v11496_v44  ;;  %v12019_v51 = vpop.f32.mrf.mxu1  ;;  %v14070_v43 = vld [vmem:[#allocation42_spill] sm:$0xff] }
 0x205   : > { %v3729_v62 = vmul.f32 %v11836_v41, %v3690_v36  ;;  %v3728_v30 = vmul.f32 %v11836_v41, %v3689_v26  ;;  %v3165_v21 = vadd.f32 %v11739_v7, %v14069_v57  ;;  %3830 = vst.msk [vmem:[#allocation2 + $0x60] sm:$0xff] %vm455_vm0, %v3798_v29  ;;  %3829 = vst.msk [vmem:[#allocation2 + $0x58] sm:$0xff] %vm455_vm0, %v3797_v25  ;;  %v12025_v32 = vld [vmem:[#allocation2 + $0x37] sm:$0xff]  ;;  %v12027_v39 = vld [vmem:[#allocation2 + $0x3f] sm:$0xff]  ;;  %9398 = vmatpush3.msra.mxu1 %v7686_v19 }
 0x206   : > { %v3692_v40 = vadd.f32 %v3660_v0, %v14070_v43  ;;  %v3691_v50 = vadd.f32 %v3627_v31, %v11831_v15  ;;  %v3630_v22 = vadd.f32 %v9240_v42, %v3170_v28  ;;  %v7685_v7 = vld [vmem:[%s13791_s1 + $0x3e0] sm:$0xff]  ;;  %v12033_v35 = vadd.f32 %v2609_v1, %v11699_v58  ;;  %9287 = vmatprep.mubr.msk.f32.mxu1 %vm455_vm0, %v12025_v32  ;;  %v3526_v15 = vpop.f32.mrf.mxu0  ;;  %v14073_v26 = vld [vmem:[#allocation26_spill] sm:$0xff]  ;;  %v14075_v25 = vld [vmem:[#allocation96_spill] sm:$0xff] }
 0x207   : > { %v3768_v45 = vadd.f32 %v11862_v14, %v3729_v62  ;;  %v3767_v56 = vadd.f32 %v11862_v14, %v3728_v30  ;;  %9354 = vmatprep.mubr.msk.f32.mxu0 %vm455_vm0, %v12025_v32  ;;  %vm12041_vm14 = vcmp.ne.s32.totalorder %v256_v3, 15  ;;  %v3629_v36 = vadd.f32 %v3526_v15, %v3165_v21  ;;  %9288 = vmatmul.mubr.msk.f32.gmra.mxu1 %vm455_vm0, %v12027_v39  ;;  %v14074_v34 = vld [vmem:[#allocation62_spill] sm:$0xff]  ;;  %v7684_v57 = vld [vmem:[%s13791_s1 + $0x3d8] sm:$0xff]  ;;  %v12063_v21 = vpop.f32.mrf.mxu1 }
 0x208   : > { %v3731_v28 = vmul.f32 %v11836_v41, %v3692_v40  ;;  %v3730_v58 = vmul.f32 %v11836_v41, %v3691_v50  ;;  %v3662_v1 = vmul.f32 %v11839_v54, %v3630_v22  ;;  %v2195_v29 = vadd.f32 %v14074_v34, %v14073_v26  ;;  %9355 = vmatmul.mubr.msk.f32.gmra.mxu0 %vm455_vm0, %v12027_v39  ;;  %v9243_v62 = vpop.f32.mrf.mxu0  ;;  %v12056_v30 = vld [vmem:[#allocation2 + $0x47] sm:$0xff]  ;;  %v12058_v42 = vld [vmem:[#allocation2 + $0x4f] sm:$0xff]  ;;  %v14078_v15 = vld [vmem:[#allocation100_spill] sm:$0xff] }
 0x209   : > { %v3180_v0 = vadd.f32 %v11770_v37, %v14075_v25  ;;  %v3800_v3 = vmax.f32 %v3768_v45, 0.0  ;;  %v3799_v31 = vmax.f32 %v3767_v56, 0.0  ;;  %9399 = vmatprep.subr.mxu1 %v7685_v7  ;;  %v14076_v40 = vld [vmem:[#allocation45_spill] sm:$0xff]  ;;  %v3693_v22 = vadd.f32 %v3629_v36, %v11853_v23  ;;  %9290 = vmatprep.mubr.msk.f32.mxu1 %vm455_vm0, %v12056_v30  ;;  %v14077_v45 = vld [vmem:[#allocation98_spill] sm:$0xff]  ;;  %v7683_v34 = vld [vmem:[%s13791_s1 + $0x3d0] sm:$0xff] }
 0x20a   : > { %v3770_v43 = vadd.f32 %v11862_v14, %v3731_v28  ;;  %v3769_v37 = vadd.f32 %v11862_v14, %v3730_v58  ;;  %v3694_v50 = vadd.f32 %v3662_v1, %v14076_v40  ;;  %v3175_v56 = vadd.f32 %v11807_v10, %v14077_v45  ;;  %9357 = vmatprep.mubr.msk.f32.mxu0 %vm455_vm0, %v12056_v30  ;;  %v3536_v58 = vpop.f32.mrf.mxu0  ;;  %v14080_v25 = vld [vmem:[#allocation105_spill] sm:$0xff]  ;;  %v14083_v45 = vld [vmem:[#allocation107_spill] sm:$0xff] }
 0x20b   : > { %v3190_v26 = vadd.f32 %v11849_v47, %v14078_v15  ;;  %3832 = vst.msk [vmem:[#allocation2 + $0x70] sm:$0xff] %vm455_vm0, %v3800_v3  ;;  %3831 = vst.msk [vmem:[#allocation2 + $0x68] sm:$0xff] %vm455_vm0, %v3799_v31  ;;  %v3632_v28 = vadd.f32 %v9243_v62, %v3180_v0  ;;  %v12082_v23 = vsel %vm11973_vm13, 1.0, %v13938_v17  ;;  %9400 = vmatpush3.msra.mxu1 %v7685_v7  ;;  %v258_v19 = vand.u32 15, %v12015_v13  ;;  %v14084_v15 = vld [vmem:[#allocation49_spill] sm:$0xff] }
 0x20c   : > { %14079 = vst [vmem:[#allocation35_spill] sm:$0xff] %v12082_v23  ;;  %v3802_v1 = vmax.f32 %v3770_v43, 0.0  ;;  %v3801_v10 = vmax.f32 %v3769_v37, 0.0  ;;  %v3733_v36 = vmul.f32 %v11836_v41, %v3694_v50  ;;  %v3732_v47 = vmul.f32 %v11836_v41, %v3693_v22  ;;  %9291 = vmatmul.mubr.msk.f32.gmra.mxu1 %vm455_vm0, %v12058_v42  ;;  %9401 = vmatprep.subr.mxu1 %v7684_v57  ;;  %v9246_v3 = vpop.f32.mrf.mxu0  ;;  %v12096_v31 = vld [vmem:[#allocation2 + $0x57] sm:$0xff]  ;;  %v12098_v62 = vld [vmem:[#allocation2 + $0x5f] sm:$0xff]  ;;  %v12105_v37 = vpop.f32.mrf.mxu1 }
 0x20d   : > { %v3185_v4 = vadd.f32 %v11881_v53, %v14080_v25  ;;  %v3664_v0 = vmul.f32 %v11867_v55, %v3632_v28  ;;  %v3631_v7 = vadd.f32 %v3536_v58, %v3175_v56  ;;  %9358 = vmatmul.mubr.msk.f32.gmra.mxu0 %vm455_vm0, %v12058_v42  ;;  %v12103_v43 = vsel %vm12041_vm14, 1.0, %v13938_v17  ;;  %9402 = vmatpush3.msra.mxu1 %v7684_v57  ;;  %v14082_v57 = vld [vmem:[#allocation63_spill] sm:$0xff] }
 0x20e   : > { %14081 = vst [vmem:[#allocation19_spill] sm:$0xff] %v12103_v43  ;;  %3834 = vst.msk [vmem:[#allocation2 + $0x80] sm:$0xff] %vm455_vm0, %v3802_v1  ;;  %v3772_v53 = vadd.f32 %v11862_v14, %v3733_v36  ;;  %v3771_v40 = vadd.f32 %v11862_v14, %v3732_v47  ;;  %v3634_v50 = vadd.f32 %v9246_v3, %v3190_v26  ;;  %9293 = vmatprep.mubr.msk.f32.mxu1 %vm455_vm0, %v12096_v31  ;;  %v3546_v1 = vpop.f32.mrf.mxu0  ;;  %v7682_v26 = vld [vmem:[%s13791_s1 + $0x3c8] sm:$0xff] }
 0x20f   : > { %3833 = vst.msk [vmem:[#allocation2 + $0x78] sm:$0xff] %vm455_vm0, %v3801_v10  ;;  %9360 = vmatprep.mubr.msk.f32.mxu0 %vm455_vm0, %v12096_v31  ;;  %v2611_v22 = vadd.f32 %v14082_v57, %v2195_v29  ;;  %v3200_v56 = vadd.f32 %v11903_v60, %v14083_v45  ;;  %v3696_v28 = vadd.f32 %v3664_v0, %v14084_v15  ;;  %v14085_v29 = vld [vmem:[#allocation27_spill] sm:$0xff]  ;;  %v14086_v60 = vld [vmem:[#allocation65_spill] sm:$0xff]  ;;  %v12134_v3 = vadd.s32 232, %v11496_v44 }
 0x210   : > { %v3695_v58 = vadd.f32 %v3631_v7, %v11856_v5  ;;  %9403 = vmatprep.subr.mxu1 %v7683_v34  ;;  %v3804_v10 = vmax.f32 %v3772_v53, 0.0  ;;  %v3803_v36 = vmax.f32 %v3771_v40, 0.0  ;;  %v3666_v47 = vmul.f32 %v11879_v8, %v3634_v50  ;;  %9294 = vmatmul.mubr.msk.f32.gmra.mxu1 %vm455_vm0, %v12098_v62  ;;  %v9249_v7 = vpop.f32.mrf.mxu0  ;;  %v14087_v53 = vld [vmem:[#allocation117_spill] sm:$0xff]  ;;  %v12138_v40 = vpop.f32.mrf.mxu1  ;;  %v14088_v50 = vld [vmem:[#allocation52_spill] sm:$0xff] }
 0x211   : > { %v3633_v13 = vadd.f32 %v3546_v1, %v3185_v4  ;;  %v2205_v25 = vadd.f32 %v14086_v60, %v14085_v29  ;;  %v3735_v0 = vmul.f32 %v11836_v41, %v3696_v28  ;;  %9361 = vmatmul.mubr.msk.f32.gmra.mxu0 %vm455_vm0, %v12098_v62  ;;  %9404 = vmatpush3.msra.mxu1 %v7683_v34  ;;  %vm12157_vm15 = vcmp.ne.s32.totalorder %v258_v19, 15 }
 0x212   : > { %v3734_v5 = vmul.f32 %v11836_v41, %v3695_v58  ;;  %v3195_v4 = vadd.f32 %v11926_v63, %v14087_v53  ;;  %3836 = vst.msk [vmem:[#allocation2 + $0x90] sm:$0xff] %vm455_vm0, %v3804_v10  ;;  %3835 = vst.msk [vmem:[#allocation2 + $0x88] sm:$0xff] %vm455_vm0, %v3803_v36  ;;  %v3698_v57 = vadd.f32 %v3666_v47, %v14088_v50  ;;  %v12144_v28 = vld [vmem:[#allocation2 + $0x67] sm:$0xff]  ;;  %v12146_v58 = vld [vmem:[#allocation2 + $0x6f] sm:$0xff]  ;;  %9405 = vmatprep.subr.mxu1 %v7682_v26 }
 0x213   : > { %v3697_v45 = vadd.f32 %v3633_v13, %v11888_v48  ;;  %v3636_v15 = vadd.f32 %v9249_v7, %v3200_v56  ;;  %v12149_v34 = vadd.f32 %v2611_v22, %v11705_v11  ;;  %v3774_v63 = vadd.f32 %v11862_v14, %v3735_v0  ;;  %9296 = vmatprep.mubr.msk.f32.mxu1 %vm455_vm0, %v12144_v28  ;;  %v3556_v48 = vpop.f32.mrf.mxu0  ;;  %v7681_v47 = vld [vmem:[%s13791_s1 + $0x3c0] sm:$0xff]  ;;  %v14091_v13 = vld [vmem:[#allocation66_spill] sm:$0xff] }
 0x214   : > { %v3773_v1 = vadd.f32 %v11862_v14, %v3734_v5  ;;  %9363 = vmatprep.mubr.msk.f32.mxu0 %vm455_vm0, %v12144_v28  ;;  %v3737_v10 = vmul.f32 %v11836_v41, %v3698_v57  ;;  %v3635_v36 = vadd.f32 %v3556_v48, %v3195_v4  ;;  %9297 = vmatmul.mubr.msk.f32.gmra.mxu1 %vm455_vm0, %v12146_v58  ;;  %v12178_v4 = vpop.f32.mrf.mxu1  ;;  %v14092_v57 = vld [vmem:[#allocation55_spill] sm:$0xff] }
 0x215   : > { %v3736_v11 = vmul.f32 %v11836_v41, %v3697_v45  ;;  %v3668_v22 = vmul.f32 %v11967_v38, %v3636_v15  ;;  %v2613_v29 = vadd.f32 %v14091_v13, %v2205_v25  ;;  %v3210_v19 = vadd.f32 %v11946_v61, %v11626_v49  ;;  %9364 = vmatmul.mubr.msk.f32.gmra.mxu0 %vm455_vm0, %v12146_v58  ;;  %v9252_v5 = vpop.f32.mrf.mxu0 }
 0x216   : > { %v3806_v60 = vmax.f32 %v3774_v63, 0.0  ;;  %v3805_v0 = vmax.f32 %v3773_v1, 0.0  ;;  %v12174_v7 = vld [vmem:[#allocation2 + $0x77] sm:$0xff]  ;;  %v12176_v53 = vld [vmem:[#allocation2 + $0x7f] sm:$0xff]  ;;  %9406 = vmatpush3.msra.mxu1 %v7682_v26  ;;  %v3776_v50 = vadd.f32 %v11862_v14, %v3737_v10  ;;  %v3699_v49 = vadd.f32 %v3635_v36, %v11919_v12 }
 0x217   : > { %v3775_v25 = vadd.f32 %v11862_v14, %v3736_v11  ;;  %v3700_v45 = vadd.f32 %v3668_v22, %v14092_v57  ;;  %9299 = vmatprep.mubr.msk.f32.mxu1 %vm455_vm0, %v12174_v7  ;;  %v3205_v61 = vadd.f32 %v11985_v2, %v11648_v27  ;;  %v3220_v15 = vadd.f32 %v12019_v51, %v11666_v18  ;;  %v3566_v63 = vpop.f32.mrf.mxu0  ;;  %v12202_v18 = vld [vmem:[%s13791_s1 + $0x2b8] sm:$0xff] }
 0x218   : > { %3838 = vst.msk [vmem:[#allocation2 + $0xa0] sm:$0xff] %vm455_vm0, %v3806_v60  ;;  %3837 = vst.msk [vmem:[#allocation2 + $0x98] sm:$0xff] %vm455_vm0, %v3805_v0  ;;  %v3638_v26 = vadd.f32 %v9252_v5, %v3210_v19  ;;  %9366 = vmatprep.mubr.msk.f32.mxu0 %vm455_vm0, %v12174_v7  ;;  %v260_v12 = vand.u32 15, %v12134_v3  ;;  %9407 = vmatprep.subr.mxu1 %v7681_v47  ;;  %v3808_v1 = vmax.f32 %v3776_v50, 0.0  ;;  %v230_v13 = vadd.s32 248, %v11496_v44  ;;  %v3234_v19 = vpop.f32.mrf.mxu1  ;;  %v14094_v0 = vld [vmem:[#allocation58_spill] sm:$0xff] }
 0x219   : > { %v3807_v48 = vmax.f32 %v3775_v25, 0.0  ;;  %v3739_v10 = vmul.f32 %v11836_v41, %v3700_v45  ;;  %v3738_v27 = vmul.f32 %v11836_v41, %v3699_v49  ;;  %9300 = vmatmul.mubr.msk.f32.gmra.mxu1 %vm455_vm0, %v12176_v53  ;;  %v3215_v2 = vadd.f32 %v12063_v21, %v11688_v6  ;;  %9367 = vmatmul.mubr.msk.f32.gmra.mxu0 %vm455_vm0, %v12176_v53  ;;  %v9255_v11 = vpop.f32.mrf.mxu0  ;;  %v12209_v22 = vld [vmem:[#allocation2 + $0x87] sm:$0xff]  ;;  %v12211_v36 = vld [vmem:[#allocation2 + $0x8f] sm:$0xff] }
 0x21a   : > { %v3670_v51 = vmul.f32 %v12082_v23, %v3638_v26  ;;  %v3637_v3 = vadd.f32 %v3566_v63, %v3205_v61  ;;  %9408 = vmatpush3.msra.mxu1 %v7681_v47  ;;  %3840 = vst.msk [vmem:[#allocation2 + $0xb0] sm:$0xff] %vm455_vm0, %v3808_v1  ;;  %v3640_v60 = vadd.f32 %v9255_v11, %v3220_v15  ;;  %v12225_v44 = vsel %vm12157_vm15, 1.0, %v13938_v17  ;;  %v14097_v63 = vld [vmem:[#allocation4_spill] sm:$0xff]  ;;  %v9200_v1 = vpop.f32.mrf.mxu1 }
 0x21b   : > { %3839 = vst.msk [vmem:[#allocation2 + $0xa8] sm:$0xff] %vm455_vm0, %v3807_v48  ;;  %v3778_v6 = vadd.f32 %v11862_v14, %v3739_v10  ;;  %v3777_v21 = vadd.f32 %v11862_v14, %v3738_v27  ;;  %9302 = vmatprep.mubr.msk.f32.mxu1 %vm455_vm0, %v12209_v22  ;;  %9369 = vmatprep.mubr.msk.f32.mxu0 %vm455_vm0, %v12209_v22  ;;  %14093 = vst [vmem:[#allocation40_spill] sm:$0xff] %v12225_v44  ;;  %v3576_v25 = vpop.f32.mrf.mxu0  ;;  %vm12231_vm1 = vcmp.ne.s32.totalorder %v260_v12, 15  ;;  %v14098_v48 = vld [vmem:[#allocation61_spill] sm:$0xff] }
 0x21c   : > { %v3230_v47 = vadd.f32 %v12105_v37, %v11701_v46  ;;  %v3702_v5 = vadd.f32 %v3670_v51, %v14094_v0  ;;  %v3701_v50 = vadd.f32 %v3637_v3, %v12010_v16  ;;  %9521 = vmatprep.subr.mxu1 %v12202_v18  ;;  %v3672_v56 = vmul.f32 %v12103_v43, %v3640_v60  ;;  %v14099_v51 = vld [vmem:[#allocation28_spill] sm:$0xff] }
 0x21d   : > { %v3810_v45 = vmax.f32 %v3778_v6, 0.0  ;;  %v3809_v49 = vmax.f32 %v3777_v21, 0.0  ;;  %v3639_v61 = vadd.f32 %v3576_v25, %v3215_v2  ;;  %9303 = vmatmul.mubr.msk.f32.gmra.mxu1 %vm455_vm0, %v12211_v36  ;;  %v12240_v46 = vadd.f32 %v2613_v29, %v11713_v33  ;;  %9370 = vmatmul.mubr.msk.f32.gmra.mxu0 %vm455_vm0, %v12211_v36  ;;  %v9258_v15 = vpop.f32.mrf.mxu0  ;;  %v14100_v3 = vld [vmem:[#allocation68_spill] sm:$0xff] }
 0x21e   : > { %v3741_v16 = vmul.f32 %v11836_v41, %v3702_v5  ;;  %v3740_v37 = vmul.f32 %v11836_v41, %v3701_v50  ;;  %v262_v26 = vand.u32 15, %v230_v13  ;;  %v3225_v12 = vadd.f32 %v12138_v40, %v14097_v63  ;;  %v14102_v5 = vld [vmem:[#allocation6_spill] sm:$0xff] }
 0x21f   : > { %3842 = vst.msk [vmem:[#allocation2 + $0xc0] sm:$0xff] %vm455_vm0, %v3810_v45  ;;  %3841 = vst.msk [vmem:[#allocation2 + $0xb8] sm:$0xff] %vm455_vm0, %v3809_v49  ;;  %v3704_v33 = vadd.f32 %v3672_v56, %v14098_v48  ;;  %v3703_v29 = vadd.f32 %v3639_v61, %v12033_v35  ;;  %v3642_v10 = vadd.f32 %v9258_v15, %v3230_v47  ;;  %v12252_v27 = vld [vmem:[#allocation2 + $0x97] sm:$0xff]  ;;  %v12254_v2 = vld [vmem:[#allocation2 + $0x9f] sm:$0xff]  ;;  %v3586_v6 = vpop.f32.mrf.mxu0  ;;  %v12267_v35 = vsel %vm12231_vm1, 1.0, %v13938_v17 }
 0x220   : > { %v2215_v11 = vadd.f32 %v14100_v3, %v14099_v51  ;;  %v3780_v13 = vadd.f32 %v11862_v14, %v3741_v16  ;;  %v3779_v40 = vadd.f32 %v11862_v14, %v3740_v37  ;;  %9305 = vmatprep.mubr.msk.f32.mxu1 %vm455_vm0, %v12252_v27  ;;  %9372 = vmatprep.mubr.msk.f32.mxu0 %vm455_vm0, %v12252_v27  ;;  %vm12282_vm2 = vcmp.ne.s32.totalorder %v262_v26, 15  ;;  %v3244_v16 = vpop.f32.mrf.mxu1  ;;  %v14106_v48 = vld [vmem:[#allocation69_spill] sm:$0xff]  ;;  %v14108_v26 = vld [vmem:[#allocation11_spill] sm:$0xff] }
 0x221   : > { %14101 = vst [vmem:[#allocation38_spill] sm:$0xff] %v12267_v35  ;;  %v3743_v21 = vmul.f32 %v11836_v41, %v3704_v33  ;;  %v3742_v60 = vmul.f32 %v11836_v41, %v3703_v29  ;;  %v3674_v47 = vmul.f32 %v12225_v44, %v3642_v10  ;;  %v3641_v0 = vadd.f32 %v3586_v6, %v3225_v12  ;;  %v9261_v57 = vpop.f32.mrf.mxu0  ;;  %v14107_v29 = vld [vmem:[#allocation8_spill] sm:$0xff] }
 0x222   : > { %9306 = vmatmul.mubr.msk.f32.gmra.mxu1 %vm455_vm0, %v12254_v2  ;;  %v3240_v50 = vadd.f32 %v12178_v4, %v14102_v5  ;;  %v3812_v25 = vmax.f32 %v3780_v13, 0.0  ;;  %v3811_v45 = vmax.f32 %v3779_v40, 0.0  ;;  %9373 = vmatmul.mubr.msk.f32.gmra.mxu0 %vm455_vm0, %v12254_v2  ;;  %v12278_v49 = vld [vmem:[#allocation2 + $0xa7] sm:$0xff]  ;;  %v12280_v56 = vld [vmem:[#allocation2 + $0xaf] sm:$0xff]  ;;  %v14105_v4 = vld [vmem:[#allocation64_spill] sm:$0xff]  ;;  %v2615_v33 = vadd.f32 %v14106_v48, %v2215_v11 }
 0x223   : > { %v3782_v37 = vadd.f32 %v11862_v14, %v3743_v21  ;;  %v3781_v15 = vadd.f32 %v11862_v14, %v3742_v60  ;;  %v3706_v63 = vadd.f32 %v3674_v47, %v14105_v4  ;;  %v3705_v12 = vadd.f32 %v3641_v0, %v12149_v34  ;;  %9308 = vmatprep.mubr.msk.f32.mxu1 %vm455_vm0, %v12278_v49  ;;  %v3596_v13 = vpop.f32.mrf.mxu0 }
 0x224   : > { %v3235_v10 = vadd.f32 %v3234_v19, %v14107_v29  ;;  %v3250_v51 = vadd.f32 %v9200_v1, %v14108_v26  ;;  %3844 = vst.msk [vmem:[#allocation2 + $0xd0] sm:$0xff] %vm455_vm0, %v3812_v25  ;;  %3843 = vst.msk [vmem:[#allocation2 + $0xc8] sm:$0xff] %vm455_vm0, %v3811_v45  ;;  %v3644_v3 = vadd.f32 %v9261_v57, %v3240_v50  ;;  %9375 = vmatprep.mubr.msk.f32.mxu0 %vm455_vm0, %v12278_v49  ;;  %v14109_v19 = vld [vmem:[#allocation12_spill] sm:$0xff] }
 0x225   : > { %v3814_v40 = vmax.f32 %v3782_v37, 0.0  ;;  %v3813_v34 = vmax.f32 %v3781_v15, 0.0  ;;  %v3745_v6 = vmul.f32 %v11836_v41, %v3706_v63  ;;  %v3744_v21 = vmul.f32 %v11836_v41, %v3705_v12  ;;  %v9264_v0 = vpop.f32.mrf.mxu0 }
 0x226   : > { %9309 = vmatmul.mubr.msk.f32.gmra.mxu1 %vm455_vm0, %v12280_v56  ;;  %v3245_v1 = vadd.f32 %v3244_v16, %v14109_v19  ;;  %v3676_v11 = vmul.f32 %v12267_v35, %v3644_v3  ;;  %v3643_v60 = vadd.f32 %v3596_v13, %v3235_v10  ;;  %9376 = vmatmul.mubr.msk.f32.gmra.mxu0 %vm455_vm0, %v12280_v56  ;;  %v12310_v47 = vsel %vm12282_vm2, 1.0, %v13938_v17  ;;  %v12312_v5 = vld [vmem:[#allocation2 + $0xb7] sm:$0xff]  ;;  %v12314_v50 = vld [vmem:[#allocation2 + $0xbf] sm:$0xff] }
 0x227   : > { %14110 = vst [vmem:[#allocation20_spill] sm:$0xff] %v12310_v47  ;;  %3846 = vst.msk [vmem:[#allocation2 + $0xe0] sm:$0xff] %vm455_vm0, %v3814_v40  ;;  %v3784_v25 = vadd.f32 %v11862_v14, %v3745_v6  ;;  %v3783_v45 = vadd.f32 %v11862_v14, %v3744_v21  ;;  %v3646_v57 = vadd.f32 %v9264_v0, %v3250_v51  ;;  %9311 = vmatprep.mubr.msk.f32.mxu1 %vm455_vm0, %v12312_v5  ;;  %v14111_v17 = vld [vmem:[#allocation5_spill] sm:$0xff]  ;;  %v14112_v16 = vld [vmem:[#allocation67_spill] sm:$0xff]  ;;  %v3606_v4 = vpop.f32.mrf.mxu0 }
 0x228   : > { %3845 = vst.msk [vmem:[#allocation2 + $0xd8] sm:$0xff] %vm455_vm0, %v3813_v34  ;;  %9378 = vmatprep.mubr.msk.f32.mxu0 %vm455_vm0, %v12312_v5  ;;  %v2647_v61 = vadd.f32 %v2615_v33, %v14111_v17  ;;  %v3708_v37 = vadd.f32 %v3676_v11, %v14112_v16  ;;  %v3707_v15 = vadd.f32 %v3643_v60, %v12240_v46  ;;  %v14113_v46 = vld [vmem:[#allocation72_spill] sm:$0xff] }
 0x229   : > { %v3816_v63 = vmax.f32 %v3784_v25, 0.0  ;;  %v3815_v12 = vmax.f32 %v3783_v45, 0.0  ;;  %v3678_v48 = vmul.f32 %v12310_v47, %v3646_v57  ;;  %v3645_v29 = vadd.f32 %v3606_v4, %v3245_v1  ;;  %v12395_v16 = vld [vmem:[#allocation2 + $0x18] sm:$0xff]  ;;  %v12407_v4 = vld [vmem:[#allocation2 + $0x20] sm:$0xff] }
 0x22a   : > { %9312 = vmatmul.mubr.msk.f32.gmra.mxu1 %vm455_vm0, %v12314_v50  ;;  %v3747_v10 = vmul.f32 %v11836_v41, %v3708_v37  ;;  %v3746_v26 = vmul.f32 %v11836_v41, %v3707_v15  ;;  %9379 = vmatmul.mubr.msk.f32.gmra.mxu0 %vm455_vm0, %v12314_v50 }
 0x22b   : > { %3848 = vst.msk [vmem:[#allocation2 + $0xf0] sm:$0xff] %vm455_vm0, %v3816_v63  ;;  %3847 = vst.msk [vmem:[#allocation2 + $0xe8] sm:$0xff] %vm455_vm0, %v3815_v12  ;;  %v3710_v33 = vadd.f32 %v3678_v48, %v14113_v46  ;;  %v3709_v51 = vadd.f32 %v3645_v29, %v2647_v61  ;;  %v12337_v3 = vld [vmem:[#allocation2 + $0xc7] sm:$0xff]  ;;  %v12339_v13 = vld [vmem:[#allocation2 + $0xcf] sm:$0xff] }
 0x22c   : > { %v3786_v40 = vadd.f32 %v11862_v14, %v3747_v10  ;;  %v3785_v34 = vadd.f32 %v11862_v14, %v3746_v26  ;;  %9314 = vmatprep.mubr.msk.f32.mxu1 %vm455_vm0, %v12337_v3  ;;  %9381 = vmatprep.mubr.msk.f32.mxu0 %vm455_vm0, %v12337_v3  ;;  %v7807_v63 = vld [vmem:[%s13791_s1 + $0x430] sm:$0xff]  ;;  %v12416_v12 = vld [vmem:[#allocation2 + $0x28] sm:$0xff]  ;;  %v14114_v48 = vld [vmem:[#allocation16_spill] sm:$0xff] }
 0x22d   : > { %v3749_v6 = vmul.f32 %v11836_v41, %v3710_v33  ;;  %v3748_v21 = vmul.f32 %v11836_v41, %v3709_v51  ;;  %v12423_v29 = vld [vmem:[#allocation2 + $0x30] sm:$0xff]  ;;  %v12435_v26 = vld [vmem:[#allocation2 + $0x38] sm:$0xff]  ;;  %v7726_v46 = vld [vmem:[%s13791_s1 + $0x2a8] sm:$0xff] }
 0x22e   : > { %9315 = vmatmul.mubr.msk.f32.gmra.mxu1 %vm455_vm0, %v12339_v13  ;;  %v3818_v19 = vmax.f32 %v3786_v40, 0.0  ;;  %v3817_v1 = vmax.f32 %v3785_v34, 0.0  ;;  %9382 = vmatmul.mubr.msk.f32.gmra.mxu0 %vm455_vm0, %v12339_v13  ;;  %v7727_v10 = vld [vmem:[%s13791_s1 + $0x2b0] sm:$0xff]  ;;  %v7725_v33 = vld [vmem:[%s13791_s1 + $0x2a0] sm:$0xff]  ;;  %v12472_v51 = vld [vmem:[#allocation2 + $0x58] sm:$0xff] }
 0x22f   : > { %v12353_v11 = vld [vmem:[#allocation2 + $0xd7] sm:$0xff]  ;;  %v12355_v60 = vld [vmem:[#allocation2 + $0xdf] sm:$0xff]  ;;  %v3788_v0 = vadd.f32 %v11862_v14, %v3749_v6  ;;  %v3787_v25 = vadd.f32 %v11862_v14, %v3748_v21  ;;  %v12490_v34 = vld [vmem:[#allocation2 + $0x68] sm:$0xff] }
 0x230   : > { %9317 = vmatprep.mubr.msk.f32.mxu1 %vm455_vm0, %v12353_v11  ;;  %9384 = vmatprep.mubr.msk.f32.mxu0 %vm455_vm0, %v12353_v11  ;;  %3850 = vst.msk [vmem:[#allocation2 + $0x100] sm:$0xff] %vm455_vm0, %v3818_v19  ;;  %3849 = vst.msk [vmem:[#allocation2 + $0xf8] sm:$0xff] %vm455_vm0, %v3817_v1  ;;  %v7724_v40 = vld [vmem:[%s13791_s1 + $0x298] sm:$0xff]  ;;  %v7723_v6 = vld [vmem:[%s13791_s1 + $0x290] sm:$0xff] }
 0x231   : > { %v3820_v41 = vmax.f32 %v3788_v0, 0.0  ;;  %v3819_v45 = vmax.f32 %v3787_v25, 0.0  ;;  %v12508_v21 = vld [vmem:[#allocation2 + $0x78] sm:$0xff]  ;;  %v7722_v19 = vld [vmem:[%s13791_s1 + $0x288] sm:$0xff]  ;;  %v7721_v0 = vld [vmem:[%s13791_s1 + $0x280] sm:$0xff] }
 0x232   : > { %9318 = vmatmul.mubr.msk.f32.gmra.mxu1 %vm455_vm0, %v12355_v60  ;;  %9385 = vmatmul.mubr.msk.f32.gmra.mxu0 %vm455_vm0, %v12355_v60  ;;  %v12369_v57 = vld [vmem:[#allocation2 + $0xe7] sm:$0xff]  ;;  %v12371_v14 = vld [vmem:[#allocation2 + $0xef] sm:$0xff]  ;;  %v12546_v25 = vld [vmem:[#allocation2 + $0x98] sm:$0xff] }
 0x233   : > { %3852 = vst.msk [vmem:[#allocation2 + $0x110] sm:$0xff] %vm455_vm0, %v3820_v41  ;;  %3851 = vst.msk [vmem:[#allocation2 + $0x108] sm:$0xff] %vm455_vm0, %v3819_v45  ;;  %9320 = vmatprep.mubr.msk.f32.mxu1 %vm455_vm0, %v12369_v57  ;;  %9387 = vmatprep.mubr.msk.f32.mxu0 %vm455_vm0, %v12369_v57  ;;  %v12526_v1 = vld [vmem:[#allocation2 + $0x88] sm:$0xff]  ;;  %v12558_v41 = vld [vmem:[%s13791_s1 + $0x3b8] sm:$0xff] }
 0x234   : > { %v12583_v45 = vld [vmem:[#allocation2 + $0xc0] sm:$0xff] }
 0x235   : > { %v13035_v44 = vld [vmem:[#allocation2 + $0xe1] sm:$0xff] }
 0x236   : > { %9321 = vmatmul.mubr.msk.f32.gmra.mxu1 %vm455_vm0, %v12371_v14  ;;  %9388 = vmatmul.mubr.msk.f32.gmra.mxu0 %vm455_vm0, %v12371_v14 }
 0x237   : > { %v12383_v17 = vld [vmem:[#allocation2 + $0xf7] sm:$0xff]  ;;  %v12385_v61 = vld [vmem:[#allocation2 + $0xff] sm:$0xff] }
 0x238   : > { %9323 = vmatprep.mubr.msk.f32.mxu1 %vm455_vm0, %v12383_v17  ;;  %9390 = vmatprep.mubr.msk.f32.mxu0 %vm455_vm0, %v12383_v17  ;;  %v13051_v8 = vld [vmem:[#allocation2 + $0xf1] sm:$0xff] }
 0x23a   : > { %9324 = vmatmul.mubr.msk.f32.gmra.mxu1 %vm455_vm0, %v12385_v61  ;;  %9391 = vmatmul.mubr.msk.f32.gmra.mxu0 %vm455_vm0, %v12385_v61  ;;  %v12397_v37 = vld [vmem:[#allocation2 + $0x107] sm:$0xff]  ;;  %v12399_v15 = vld [vmem:[#allocation2 + $0x10f] sm:$0xff] }
 0x23b   : > { %9473 = vmatprep.mubr.msk.f32.mxu0 %vm455_vm0, %v12395_v16  ;;  %9326 = vmatprep.mubr.msk.f32.mxu1 %vm455_vm0, %v12397_v37  ;;  %v13067_v52 = vld [vmem:[#allocation2 + $0x101] sm:$0xff] }
 0x23e   : > { %9327 = vmatmul.mubr.msk.f32.gmra.mxu1 %vm455_vm0, %v12399_v15  ;;  %9474 = vmatmul.mubr.msk.f32.vlgmr.msra.gmra.mxu0 %vm455_vm0, %v12407_v4 }
 0x23f   : > { %9409 = vmatprep.mubr.msk.f32.mxu1 %vm455_vm0, %v11981_v59  ;;  %9476 = vmatprep.mubr.msk.f32.mxu0 %vm455_vm0, %v12416_v12  ;;  %v7806_v59 = vld [vmem:[%s13791_s1 + $0x428] sm:$0xff] }
 0x240   : > { %9586 = vmatpush3.msra.mxu0 %v14114_v48  ;;  %v7847_v48 = vld [vmem:[%s13791_s1 + $0x2f0] sm:$0xff] }
 0x241   : > { %9587 = vmatprep.subr.mxu0 %v7807_v63 }
 0x242   : > { %9410 = vmatmul.mubr.msk.f32.vlgmr.msra.gmra.mxu1 %vm455_vm0, %v11983_v9  ;;  %9588 = vmatpush3.msra.mxu0 %v7807_v63  ;;  %v12442_v9 = vld [vmem:[#allocation2 + $0x40] sm:$0xff]  ;;  %v4487_v63 = vld [vmem:[#allocation2 + $0x117] sm:$0xff] }
 0x243   : > { %9477 = vmatmul.mubr.msk.f32.gmra.mxu0 %vm455_vm0, %v12423_v29  ;;  %9412 = vmatprep.mubr.msk.f32.mxu1 %vm455_vm0, %v12025_v32  ;;  %v7805_v32 = vld [vmem:[%s13791_s1 + $0x420] sm:$0xff] }
 0x244   : > { %9479 = vmatprep.mubr.msk.f32.mxu0 %vm455_vm0, %v12435_v26  ;;  %9522 = vmatpush3.msra.mxu1 %v12202_v18  ;;  %v12454_v18 = vld [vmem:[#allocation2 + $0x48] sm:$0xff] }
 0x245   : > { %9523 = vmatprep.subr.mxu1 %v7727_v10  ;;  %9589 = vmatprep.subr.mxu0 %v7806_v59 }
 0x246   : > { %9413 = vmatmul.mubr.msk.f32.gmra.mxu1 %vm455_vm0, %v12027_v39  ;;  %9590 = vmatpush3.msra.mxu0 %v7806_v59  ;;  %v12460_v39 = vld [vmem:[#allocation2 + $0x50] sm:$0xff]  ;;  %v7846_v59 = vld [vmem:[%s13791_s1 + $0x2e8] sm:$0xff] }
 0x247   : > { %9480 = vmatmul.mubr.msk.f32.gmra.mxu0 %vm455_vm0, %v12442_v9  ;;  %9415 = vmatprep.mubr.msk.f32.mxu1 %vm455_vm0, %v12056_v30  ;;  %v7804_v30 = vld [vmem:[%s13791_s1 + $0x418] sm:$0xff] }
 0x248   : > { %9482 = vmatprep.mubr.msk.f32.mxu0 %vm455_vm0, %v12454_v18  ;;  %9524 = vmatpush3.msra.mxu1 %v7727_v10  ;;  %v7855_v10 = vld [vmem:[%s13791_s1 + $0x3b0] sm:$0xff] }
 0x249   : > { %9525 = vmatprep.subr.mxu1 %v7726_v46  ;;  %9591 = vmatprep.subr.mxu0 %v7805_v32 }
 0x24a   : > { %9416 = vmatmul.mubr.msk.f32.gmra.mxu1 %vm455_vm0, %v12058_v42  ;;  %9592 = vmatpush3.msra.mxu0 %v7805_v32  ;;  %v12478_v42 = vld [vmem:[#allocation2 + $0x60] sm:$0xff] }
 0x24b   : > { %9483 = vmatmul.mubr.msk.f32.gmra.mxu0 %vm455_vm0, %v12460_v39  ;;  %9418 = vmatprep.mubr.msk.f32.mxu1 %vm455_vm0, %v12096_v31  ;;  %v7803_v31 = vld [vmem:[%s13791_s1 + $0x410] sm:$0xff]  ;;  %v7845_v32 = vld [vmem:[%s13791_s1 + $0x2e0] sm:$0xff] }
 0x24c   : > { %9485 = vmatprep.mubr.msk.f32.mxu0 %vm455_vm0, %v12472_v51  ;;  %9526 = vmatpush3.msra.mxu1 %v7726_v46  ;;  %v7854_v46 = vld [vmem:[%s13791_s1 + $0x3a8] sm:$0xff] }
 0x24d   : > { %9527 = vmatprep.subr.mxu1 %v7725_v33  ;;  %9593 = vmatprep.subr.mxu0 %v7804_v30 }
 0x24e   : > { %9419 = vmatmul.mubr.msk.f32.gmra.mxu1 %vm455_vm0, %v12098_v62  ;;  %9594 = vmatpush3.msra.mxu0 %v7804_v30  ;;  %v12496_v62 = vld [vmem:[#allocation2 + $0x70] sm:$0xff]  ;;  %v7928_v30 = vld [vmem:[%s13791_s1 + $0x478] sm:$0xff] }
 0x24f   : > { %9486 = vmatmul.mubr.msk.f32.gmra.mxu0 %vm455_vm0, %v12478_v42  ;;  %9421 = vmatprep.mubr.msk.f32.mxu1 %vm455_vm0, %v12144_v28  ;;  %v7802_v28 = vld [vmem:[%s13791_s1 + $0x408] sm:$0xff] }
 0x250   : > { %9488 = vmatprep.mubr.msk.f32.mxu0 %vm455_vm0, %v12490_v34  ;;  %9528 = vmatpush3.msra.mxu1 %v7725_v33  ;;  %v7849_v33 = vld [vmem:[%s13791_s1 + $0x380] sm:$0xff] }
 0x251   : > { %9529 = vmatprep.subr.mxu1 %v7724_v40  ;;  %9595 = vmatprep.subr.mxu0 %v7803_v31 }
 0x252   : > { %9422 = vmatmul.mubr.msk.f32.gmra.mxu1 %vm455_vm0, %v12146_v58  ;;  %9596 = vmatpush3.msra.mxu0 %v7803_v31  ;;  %v12514_v58 = vld [vmem:[#allocation2 + $0x80] sm:$0xff]  ;;  %v12815_v31 = vpop.f32.mrf.mxu0 }
 0x253   : > { %9489 = vmatmul.mubr.msk.f32.gmra.mxu0 %vm455_vm0, %v12496_v62  ;;  %9424 = vmatprep.mubr.msk.f32.mxu1 %vm455_vm0, %v12174_v7  ;;  %v7801_v7 = vld [vmem:[%s13791_s1 + $0x400] sm:$0xff] }
 0x254   : > { %9491 = vmatprep.mubr.msk.f32.mxu0 %vm455_vm0, %v12508_v21  ;;  %9530 = vmatpush3.msra.mxu1 %v7724_v40  ;;  %v5945_v40 = vld [vmem:[#allocation2 + $0x9] sm:$0xff] }
 0x255   : > { %9531 = vmatprep.subr.mxu1 %v7723_v6  ;;  %9597 = vmatprep.subr.mxu0 %v7802_v28 }
 0x256   : > { %9425 = vmatmul.mubr.msk.f32.gmra.mxu1 %vm455_vm0, %v12176_v53  ;;  %9598 = vmatpush3.msra.mxu0 %v7802_v28  ;;  %v12532_v53 = vld [vmem:[#allocation2 + $0x90] sm:$0xff] }
 0x257   : > { %9492 = vmatmul.mubr.msk.f32.gmra.mxu0 %vm455_vm0, %v12514_v58  ;;  %9427 = vmatprep.mubr.msk.f32.mxu1 %vm455_vm0, %v12209_v22  ;;  %v12540_v22 = vld [vmem:[%s13791_s1 + $0x2f8] sm:$0xff] }
 0x258   : > { %9494 = vmatprep.mubr.msk.f32.mxu0 %vm455_vm0, %v12526_v1  ;;  %9532 = vmatpush3.msra.mxu1 %v7723_v6  ;;  %v4298_v6 = vpop.f32.mrf.mxu0 }
 0x259   : > { %9533 = vmatprep.subr.mxu1 %v7722_v19  ;;  %9599 = vmatprep.subr.mxu0 %v7801_v7 }
 0x25a   : > { %9428 = vmatmul.mubr.msk.f32.gmra.mxu1 %vm455_vm0, %v12211_v36  ;;  %9600 = vmatpush3.msra.mxu0 %v7801_v7  ;;  %v12553_v36 = vld [vmem:[#allocation2 + $0xa0] sm:$0xff]  ;;  %v7927_v7 = vld [vmem:[%s13791_s1 + $0x470] sm:$0xff] }
 0x25b   : > { %9495 = vmatmul.mubr.msk.f32.gmra.mxu0 %vm455_vm0, %v12532_v53  ;;  %9430 = vmatprep.mubr.msk.f32.mxu1 %vm455_vm0, %v12252_v27  ;;  %v12564_v27 = vld [vmem:[#allocation2 + $0xa8] sm:$0xff] }
 0x25c   : > { %9497 = vmatprep.mubr.msk.f32.mxu0 %vm455_vm0, %v12546_v25  ;;  %9534 = vmatpush3.msra.mxu1 %v7722_v19  ;;  %v12829_v19 = vld [vmem:[#allocation2 + $0x29] sm:$0xff] }
 0x25d   : > { %9535 = vmatprep.subr.mxu1 %v7721_v0  ;;  %9713 = vmatprep.subr.mxu0 %v12540_v22 }
 0x25e   : > { %9431 = vmatmul.mubr.msk.f32.gmra.mxu1 %vm455_vm0, %v12254_v2  ;;  %v12571_v2 = vld [vmem:[#allocation2 + $0xb0] sm:$0xff] }
 0x25f   : > { %9498 = vmatmul.mubr.msk.f32.gmra.mxu0 %vm455_vm0, %v12553_v36  ;;  %9433 = vmatprep.mubr.msk.f32.mxu1 %vm455_vm0, %v12278_v49  ;;  %v12577_v49 = vld [vmem:[#allocation2 + $0xb8] sm:$0xff] }
 0x260   : > { %9500 = vmatprep.mubr.msk.f32.mxu0 %vm455_vm0, %v12564_v27  ;;  %9536 = vmatpush3.msra.mxu1 %v7721_v0 }
 0x261   : > { %9649 = vmatprep.subr.mxu1 %v12558_v41 }
 0x262   : > { %9434 = vmatmul.mubr.msk.f32.gmra.mxu1 %vm455_vm0, %v12280_v56  ;;  %v12589_v56 = vld [vmem:[#allocation2 + $0xc8] sm:$0xff] }
 0x263   : > { %9501 = vmatmul.mubr.msk.f32.gmra.mxu0 %vm455_vm0, %v12571_v2  ;;  %9436 = vmatprep.mubr.msk.f32.mxu1 %vm455_vm0, %v12312_v5  ;;  %v12595_v5 = vld [vmem:[#allocation2 + $0xd0] sm:$0xff] }
 0x264   : > { %9503 = vmatprep.mubr.msk.f32.mxu0 %vm455_vm0, %v12577_v49 }
 0x266   : > { %9437 = vmatmul.mubr.msk.f32.gmra.mxu1 %vm455_vm0, %v12314_v50  ;;  %v12601_v50 = vld [vmem:[#allocation2 + $0xd8] sm:$0xff] }
 0x267   : > { %9504 = vmatmul.mubr.msk.f32.gmra.mxu0 %vm455_vm0, %v12583_v45  ;;  %9439 = vmatprep.mubr.msk.f32.mxu1 %vm455_vm0, %v12337_v3  ;;  %v12607_v3 = vld [vmem:[#allocation2 + $0xe0] sm:$0xff] }
 0x268   : > { %9506 = vmatprep.mubr.msk.f32.mxu0 %vm455_vm0, %v12589_v56 }
 0x26a   : > { %9440 = vmatmul.mubr.msk.f32.gmra.mxu1 %vm455_vm0, %v12339_v13  ;;  %v12613_v13 = vld [vmem:[#allocation2 + $0xe8] sm:$0xff] }
 0x26b   : > { %9507 = vmatmul.mubr.msk.f32.gmra.mxu0 %vm455_vm0, %v12595_v5  ;;  %9442 = vmatprep.mubr.msk.f32.mxu1 %vm455_vm0, %v12353_v11  ;;  %v12619_v11 = vld [vmem:[#allocation2 + $0xf0] sm:$0xff] }
 0x26c   : > { %9509 = vmatprep.mubr.msk.f32.mxu0 %vm455_vm0, %v12601_v50 }
 0x26e   : > { %9443 = vmatmul.mubr.msk.f32.gmra.mxu1 %vm455_vm0, %v12355_v60  ;;  %v12625_v60 = vld [vmem:[#allocation2 + $0xf8] sm:$0xff] }
 0x26f   : > { %9510 = vmatmul.mubr.msk.f32.gmra.mxu0 %vm455_vm0, %v12607_v3  ;;  %9445 = vmatprep.mubr.msk.f32.mxu1 %vm455_vm0, %v12369_v57  ;;  %v12631_v57 = vld [vmem:[#allocation2 + $0x100] sm:$0xff] }
 0x270   : > { %9512 = vmatprep.mubr.msk.f32.mxu0 %vm455_vm0, %v12613_v13 }
 0x272   : > { %9446 = vmatmul.mubr.msk.f32.gmra.mxu1 %vm455_vm0, %v12371_v14  ;;  %v12637_v14 = vld [vmem:[#allocation2 + $0x108] sm:$0xff] }
 0x273   : > { %9513 = vmatmul.mubr.msk.f32.gmra.mxu0 %vm455_vm0, %v12619_v11  ;;  %9448 = vmatprep.mubr.msk.f32.mxu1 %vm455_vm0, %v12383_v17  ;;  %v12643_v17 = vld [vmem:[#allocation2 + $0x110] sm:$0xff] }
 0x274   : > { %9515 = vmatprep.mubr.msk.f32.mxu0 %vm455_vm0, %v12625_v60 }
 0x276   : > { %9449 = vmatmul.mubr.msk.f32.gmra.mxu1 %vm455_vm0, %v12385_v61  ;;  %v4488_v61 = vld [vmem:[#allocation2 + $0x11f] sm:$0xff] }
 0x277   : > { %9516 = vmatmul.mubr.msk.f32.gmra.mxu0 %vm455_vm0, %v12631_v57  ;;  %9451 = vmatprep.mubr.msk.f32.mxu1 %vm455_vm0, %v12397_v37  ;;  %v4915_v37 = vld [vmem:[#allocation2 + $0x8] sm:$0xff] }
 0x278   : > { %9518 = vmatprep.mubr.msk.f32.mxu0 %vm455_vm0, %v12637_v14 }
 0x27a   : > { %9452 = vmatmul.mubr.msk.f32.gmra.mxu1 %vm455_vm0, %v12399_v15  ;;  %v4916_v15 = vld [vmem:[#allocation2 + $0x10] sm:$0xff] }
 0x27b   : > { %9519 = vmatmul.mubr.msk.f32.gmra.mxu0 %vm455_vm0, %v12643_v17  ;;  %9454 = vmatprep.mubr.msk.f32.mxu1 %vm455_vm0, %v4487_v63  ;;  %v12879_v63 = vld [vmem:[#allocation2 + $0x51] sm:$0xff] }
 0x27c   : > { %9601 = vmatprep.mubr.msk.f32.mxu0 %vm455_vm0, %v12416_v12 }
 0x27e   : > { %9455 = vmatmul.mubr.msk.f32.gmra.mxu1 %vm455_vm0, %v4488_v61 }
 0x27f   : > { %9602 = vmatmul.mubr.msk.f32.vlgmr.msra.gmra.mxu0 %vm455_vm0, %v12423_v29  ;;  %9537 = vmatprep.mubr.msk.f32.mxu1 %vm455_vm0, %v4915_v37  ;;  %v12883_v37 = vld [vmem:[#allocation2 + $0x59] sm:$0xff] }
 0x280   : > { %9604 = vmatprep.mubr.msk.f32.mxu0 %vm455_vm0, %v12435_v26  ;;  %9714 = vmatpush3.msra.mxu0 %v12540_v22 }
 0x281   : > { %9715 = vmatprep.subr.mxu0 %v7847_v48 }
 0x282   : > { %9538 = vmatmul.mubr.msk.f32.vlgmr.msra.gmra.mxu1 %vm455_vm0, %v4916_v15  ;;  %9716 = vmatpush3.msra.mxu0 %v7847_v48  ;;  %v7924_v48 = vld [vmem:[%s13791_s1 + $0x458] sm:$0xff] }
 0x283   : > { %9605 = vmatmul.mubr.msk.f32.gmra.mxu0 %vm455_vm0, %v12442_v9  ;;  %9540 = vmatprep.mubr.msk.f32.mxu1 %vm455_vm0, %v12395_v16  ;;  %v7853_v16 = vld [vmem:[%s13791_s1 + $0x3a0] sm:$0xff] }
 0x284   : > { %9607 = vmatprep.mubr.msk.f32.mxu0 %vm455_vm0, %v12454_v18  ;;  %9650 = vmatpush3.msra.mxu1 %v12558_v41 }
 0x285   : > { %9651 = vmatprep.subr.mxu1 %v7855_v10  ;;  %9717 = vmatprep.subr.mxu0 %v7846_v59 }
 0x286   : > { %9541 = vmatmul.mubr.msk.f32.gmra.mxu1 %vm455_vm0, %v12407_v4  ;;  %9718 = vmatpush3.msra.mxu0 %v7846_v59  ;;  %v7844_v4 = vld [vmem:[%s13791_s1 + $0x2d8] sm:$0xff] }
 0x287   : > { %9608 = vmatmul.mubr.msk.f32.gmra.mxu0 %vm455_vm0, %v12460_v39  ;;  %9543 = vmatprep.mubr.msk.f32.mxu1 %vm455_vm0, %v12416_v12  ;;  %v7852_v12 = vld [vmem:[%s13791_s1 + $0x398] sm:$0xff] }
 0x288   : > { %9610 = vmatprep.mubr.msk.f32.mxu0 %vm455_vm0, %v12472_v51  ;;  %9652 = vmatpush3.msra.mxu1 %v7855_v10 }
 0x289   : > { %9653 = vmatprep.subr.mxu1 %v7854_v46  ;;  %9719 = vmatprep.subr.mxu0 %v7845_v32 }
 0x28a   : > { %9544 = vmatmul.mubr.msk.f32.gmra.mxu1 %vm455_vm0, %v12423_v29  ;;  %9720 = vmatpush3.msra.mxu0 %v7845_v32  ;;  %v7843_v29 = vld [vmem:[%s13791_s1 + $0x2d0] sm:$0xff] }
 0x28b   : > { %9611 = vmatmul.mubr.msk.f32.gmra.mxu0 %vm455_vm0, %v12478_v42  ;;  %9546 = vmatprep.mubr.msk.f32.mxu1 %vm455_vm0, %v12435_v26  ;;  %v7851_v26 = vld [vmem:[%s13791_s1 + $0x390] sm:$0xff] }
 0x28c   : > { %9613 = vmatprep.mubr.msk.f32.mxu0 %vm455_vm0, %v12490_v34  ;;  %9654 = vmatpush3.msra.mxu1 %v7854_v46 }
 0x28d   : > { %9655 = vmatprep.subr.mxu1 %v7853_v16  ;;  %9721 = vmatprep.subr.mxu0 %v7844_v4 }
 0x28e   : > { %9547 = vmatmul.mubr.msk.f32.gmra.mxu1 %vm455_vm0, %v12442_v9  ;;  %9722 = vmatpush3.msra.mxu0 %v7844_v4  ;;  %v7842_v9 = vld [vmem:[%s13791_s1 + $0x2c8] sm:$0xff] }
 0x28f   : > { %9614 = vmatmul.mubr.msk.f32.gmra.mxu0 %vm455_vm0, %v12496_v62  ;;  %9549 = vmatprep.mubr.msk.f32.mxu1 %vm455_vm0, %v12454_v18  ;;  %v7850_v18 = vld [vmem:[%s13791_s1 + $0x388] sm:$0xff] }
 0x290   : > { %9616 = vmatprep.mubr.msk.f32.mxu0 %vm455_vm0, %v12508_v21  ;;  %9656 = vmatpush3.msra.mxu1 %v7853_v16  ;;  %v12898_v16 = vld [vmem:[#allocation2 + $0x61] sm:$0xff] }
 0x291   : > { %9657 = vmatprep.subr.mxu1 %v7852_v12  ;;  %9723 = vmatprep.subr.mxu0 %v7843_v29 }
 0x292   : > { %9550 = vmatmul.mubr.msk.f32.gmra.mxu1 %vm455_vm0, %v12460_v39  ;;  %9724 = vmatpush3.msra.mxu0 %v7843_v29  ;;  %v7841_v39 = vld [vmem:[%s13791_s1 + $0x2c0] sm:$0xff]  ;;  %v7923_v29 = vld [vmem:[%s13791_s1 + $0x450] sm:$0xff] }
 0x293   : > { %9617 = vmatmul.mubr.msk.f32.gmra.mxu0 %vm455_vm0, %v12514_v58  ;;  %9552 = vmatprep.mubr.msk.f32.mxu1 %vm455_vm0, %v12472_v51  ;;  %v5549_v51 = vld [vmem:[#allocation2 + $0x118] sm:$0xff] }
 0x294   : > { %9619 = vmatprep.mubr.msk.f32.mxu0 %vm455_vm0, %v12526_v1  ;;  %9658 = vmatpush3.msra.mxu1 %v7852_v12  ;;  %v12902_v12 = vld [vmem:[#allocation2 + $0x69] sm:$0xff] }
 0x295   : > { %9659 = vmatprep.subr.mxu1 %v7851_v26  ;;  %9725 = vmatprep.subr.mxu0 %v7842_v9 }
 0x296   : > { %9553 = vmatmul.mubr.msk.f32.gmra.mxu1 %vm455_vm0, %v12478_v42  ;;  %9726 = vmatpush3.msra.mxu0 %v7842_v9  ;;  %v5550_v42 = vld [vmem:[#allocation2 + $0x120] sm:$0xff] }
 0x297   : > { %9620 = vmatmul.mubr.msk.f32.gmra.mxu0 %vm455_vm0, %v12532_v53  ;;  %9555 = vmatprep.mubr.msk.f32.mxu1 %vm455_vm0, %v12490_v34  ;;  %v5946_v34 = vld [vmem:[#allocation2 + $0x11] sm:$0xff] }
 0x298   : > { %9622 = vmatprep.mubr.msk.f32.mxu0 %vm455_vm0, %v12546_v25  ;;  %9660 = vmatpush3.msra.mxu1 %v7851_v26 }
 0x299   : > { %9661 = vmatprep.subr.mxu1 %v7850_v18  ;;  %9727 = vmatprep.subr.mxu0 %v7841_v39 }
 0x29a   : > { %9556 = vmatmul.mubr.msk.f32.gmra.mxu1 %vm455_vm0, %v12496_v62  ;;  %9728 = vmatpush3.msra.mxu0 %v7841_v39  ;;  %v5947_v62 = vld [vmem:[#allocation2 + $0x19] sm:$0xff] }
 0x29b   : > { %9623 = vmatmul.mubr.msk.f32.gmra.mxu0 %vm455_vm0, %v12553_v36  ;;  %9558 = vmatprep.mubr.msk.f32.mxu1 %vm455_vm0, %v12508_v21  ;;  %v5948_v21 = vld [vmem:[#allocation2 + $0x21] sm:$0xff] }
 0x29c   : > { %9625 = vmatprep.mubr.msk.f32.mxu0 %vm455_vm0, %v12564_v27  ;;  %9662 = vmatpush3.msra.mxu1 %v7850_v18 }
 0x29d   : > { %9663 = vmatprep.subr.mxu1 %v7849_v33 }
 0x29e   : > { %9559 = vmatmul.mubr.msk.f32.gmra.mxu1 %vm455_vm0, %v12514_v58 }
 0x29f   : > { %9626 = vmatmul.mubr.msk.f32.gmra.mxu0 %vm455_vm0, %v12571_v2  ;;  %9561 = vmatprep.mubr.msk.f32.mxu1 %vm455_vm0, %v12526_v1 }
 0x2a0   : > { %9628 = vmatprep.mubr.msk.f32.mxu0 %vm455_vm0, %v12577_v49  ;;  %9664 = vmatpush3.msra.mxu1 %v7849_v33 }
 0x2a1   : > { %9777 = vmatprep.subr.mxu1 %v7928_v30 }
 0x2a2   : > { %9562 = vmatmul.mubr.msk.f32.gmra.mxu1 %vm455_vm0, %v12532_v53 }
 0x2a3   : > { %9629 = vmatmul.mubr.msk.f32.gmra.mxu0 %vm455_vm0, %v12583_v45  ;;  %9564 = vmatprep.mubr.msk.f32.mxu1 %vm455_vm0, %v12546_v25  ;;  %v12841_v25 = vld [vmem:[#allocation2 + $0x31] sm:$0xff] }
 0x2a4   : > { %9631 = vmatprep.mubr.msk.f32.mxu0 %vm455_vm0, %v12589_v56 }
 0x2a6   : > { %9565 = vmatmul.mubr.msk.f32.gmra.mxu1 %vm455_vm0, %v12553_v36 }
 0x2a7   : > { %9632 = vmatmul.mubr.msk.f32.gmra.mxu0 %vm455_vm0, %v12595_v5  ;;  %9567 = vmatprep.mubr.msk.f32.mxu1 %vm455_vm0, %v12564_v27  ;;  %v12847_v27 = vld [vmem:[#allocation2 + $0x39] sm:$0xff] }
 0x2a8   : > { %9634 = vmatprep.mubr.msk.f32.mxu0 %vm455_vm0, %v12601_v50 }
 0x2aa   : > { %9568 = vmatmul.mubr.msk.f32.gmra.mxu1 %vm455_vm0, %v12571_v2  ;;  %v7926_v2 = vld [vmem:[%s13791_s1 + $0x468] sm:$0xff] }
 0x2ab   : > { %9635 = vmatmul.mubr.msk.f32.gmra.mxu0 %vm455_vm0, %v12607_v3  ;;  %9570 = vmatprep.mubr.msk.f32.mxu1 %vm455_vm0, %v12577_v49 }
 0x2ac   : > { %9637 = vmatprep.mubr.msk.f32.mxu0 %vm455_vm0, %v12613_v13 }
 0x2ae   : > { %9571 = vmatmul.mubr.msk.f32.gmra.mxu1 %vm455_vm0, %v12583_v45 }
 0x2af   : > { %9638 = vmatmul.mubr.msk.f32.gmra.mxu0 %vm455_vm0, %v12619_v11  ;;  %9573 = vmatprep.mubr.msk.f32.mxu1 %vm455_vm0, %v12589_v56 }
 0x2b0   : > { %9640 = vmatprep.mubr.msk.f32.mxu0 %vm455_vm0, %v12625_v60 }
 0x2b2   : > { %9574 = vmatmul.mubr.msk.f32.gmra.mxu1 %vm455_vm0, %v12595_v5  ;;  %v12860_v5 = vld [vmem:[#allocation2 + $0x41] sm:$0xff] }
 0x2b3   : > { %9641 = vmatmul.mubr.msk.f32.gmra.mxu0 %vm455_vm0, %v12631_v57  ;;  %9576 = vmatprep.mubr.msk.f32.mxu1 %vm455_vm0, %v12601_v50 }
 0x2b4   : > { %9643 = vmatprep.mubr.msk.f32.mxu0 %vm455_vm0, %v12637_v14 }
 0x2b6   : > { %9577 = vmatmul.mubr.msk.f32.gmra.mxu1 %vm455_vm0, %v12607_v3  ;;  %v12864_v3 = vld [vmem:[#allocation2 + $0x49] sm:$0xff] }
 0x2b7   : > { %9644 = vmatmul.mubr.msk.f32.gmra.mxu0 %vm455_vm0, %v12643_v17  ;;  %9579 = vmatprep.mubr.msk.f32.mxu1 %vm455_vm0, %v12613_v13  ;;  %v7925_v13 = vld [vmem:[%s13791_s1 + $0x460] sm:$0xff] }
 0x2b8   : > { %9646 = vmatprep.mubr.msk.f32.mxu0 %vm455_vm0, %v5549_v51 }
 0x2ba   : > { %9580 = vmatmul.mubr.msk.f32.gmra.mxu1 %vm455_vm0, %v12619_v11 }
 0x2bb   : > { %9647 = vmatmul.mubr.msk.f32.gmra.mxu0 %vm455_vm0, %v5550_v42  ;;  %9582 = vmatprep.mubr.msk.f32.mxu1 %vm455_vm0, %v12625_v60  ;;  %v12921_v42 = vld [vmem:[#allocation2 + $0x79] sm:$0xff] }
 0x2bc   : > { %9729 = vmatprep.mubr.msk.f32.mxu0 %vm455_vm0, %v5945_v40  ;;  %v7922_v40 = vld [vmem:[%s13791_s1 + $0x448] sm:$0xff] }
 0x2be   : > { %9583 = vmatmul.mubr.msk.f32.gmra.mxu1 %vm455_vm0, %v12631_v57  ;;  %v12826_v28 = vpop.f32.mrf.mxu1 }
 0x2bf   : > { %9730 = vmatmul.mubr.msk.f32.vlgmr.msra.gmra.mxu0 %vm455_vm0, %v5946_v34  ;;  %9665 = vmatprep.mubr.msk.f32.mxu1 %vm455_vm0, %v5947_v62  ;;  %v9350_v58 = vpop.f32.mrf.mxu0 }
 0x2c0   : > { %9732 = vmatprep.mubr.msk.f32.mxu0 %vm455_vm0, %v5947_v62  ;;  %v4067_v1 = vpop.f32.mrf.mxu1 }
 0x2c1   : > { %v12839_v53 = vadd.f32 %v4298_v6, %v4067_v1  ;;  %v4308_v0 = vpop.f32.mrf.mxu0 }
 0x2c2   : > { %9666 = vmatmul.mubr.msk.f32.vlgmr.msra.gmra.mxu1 %vm455_vm0, %v5948_v21  ;;  %v9286_v22 = vpop.f32.mrf.mxu1 }
 0x2c3   : > { %9733 = vmatmul.mubr.msk.f32.gmra.mxu0 %vm455_vm0, %v5948_v21  ;;  %9668 = vmatprep.mubr.msk.f32.mxu1 %vm455_vm0, %v12829_v19  ;;  %v12843_v36 = vadd.f32 %v9350_v58, %v9286_v22  ;;  %v9353_v41 = vpop.f32.mrf.mxu0  ;;  %v7921_v22 = vld [vmem:[%s13791_s1 + $0x440] sm:$0xff] }
 0x2c4   : > { %9735 = vmatprep.mubr.msk.f32.mxu0 %vm455_vm0, %v12829_v19  ;;  %9778 = vmatpush3.msra.mxu1 %v7928_v30  ;;  %v4077_v49 = vpop.f32.mrf.mxu1  ;;  %v12917_v30 = vld [vmem:[#allocation2 + $0x71] sm:$0xff] }
 0x2c5   : > { %9779 = vmatprep.subr.mxu1 %v7927_v7  ;;  %v12858_v45 = vadd.f32 %v4308_v0, %v4077_v49  ;;  %v4318_v56 = vpop.f32.mrf.mxu0  ;;  %v12940_v0 = vld [vmem:[#allocation2 + $0x89] sm:$0xff] }
 0x2c6   : > { %9669 = vmatmul.mubr.msk.f32.gmra.mxu1 %vm455_vm0, %v12841_v25 }
 0x2c7   : > { %9736 = vmatmul.mubr.msk.f32.gmra.mxu0 %vm455_vm0, %v12841_v25  ;;  %9671 = vmatprep.mubr.msk.f32.mxu1 %vm455_vm0, %v12847_v27  ;;  %v9289_v50 = vpop.f32.mrf.mxu1 }
 0x2c8   : > { %9738 = vmatprep.mubr.msk.f32.mxu0 %vm455_vm0, %v12847_v27  ;;  %9780 = vmatpush3.msra.mxu1 %v7927_v7  ;;  %v12869_v11 = vadd.f32 %v9353_v41, %v9289_v50  ;;  %v9356_v60 = vpop.f32.mrf.mxu0  ;;  %v12936_v7 = vld [vmem:[#allocation2 + $0x81] sm:$0xff] }
 0x2c9   : > { %9781 = vmatprep.subr.mxu1 %v7926_v2  ;;  %v4087_v57 = vpop.f32.mrf.mxu1 }
 0x2ca   : > { %9672 = vmatmul.mubr.msk.f32.gmra.mxu1 %vm455_vm0, %v12860_v5  ;;  %v12877_v14 = vadd.f32 %v4318_v56, %v4087_v57  ;;  %v4328_v17 = vpop.f32.mrf.mxu0  ;;  %v12959_v57 = vld [vmem:[#allocation2 + $0x99] sm:$0xff] }
 0x2cb   : > { %9739 = vmatmul.mubr.msk.f32.gmra.mxu0 %vm455_vm0, %v12860_v5  ;;  %9674 = vmatprep.mubr.msk.f32.mxu1 %vm455_vm0, %v12864_v3 }
 0x2cc   : > { %9741 = vmatprep.mubr.msk.f32.mxu0 %vm455_vm0, %v12864_v3  ;;  %9782 = vmatpush3.msra.mxu1 %v7926_v2  ;;  %v9292_v61 = vpop.f32.mrf.mxu1 }
 0x2cd   : > { %9783 = vmatprep.subr.mxu1 %v7925_v13  ;;  %v12888_v15 = vadd.f32 %v9356_v60, %v9292_v61  ;;  %v9359_v10 = vpop.f32.mrf.mxu0 }
 0x2ce   : > { %9675 = vmatmul.mubr.msk.f32.gmra.mxu1 %vm455_vm0, %v12879_v63  ;;  %v4097_v59 = vpop.f32.mrf.mxu1 }
 0x2cf   : > { %9742 = vmatmul.mubr.msk.f32.gmra.mxu0 %vm455_vm0, %v12879_v63  ;;  %9677 = vmatprep.mubr.msk.f32.mxu1 %vm455_vm0, %v12883_v37  ;;  %v12896_v46 = vadd.f32 %v4328_v17, %v4097_v59  ;;  %v4338_v32 = vpop.f32.mrf.mxu0 }
 0x2d0   : > { %9744 = vmatprep.mubr.msk.f32.mxu0 %vm455_vm0, %v12883_v37  ;;  %9784 = vmatpush3.msra.mxu1 %v7925_v13  ;;  %v9295_v4 = vpop.f32.mrf.mxu1  ;;  %v12955_v13 = vld [vmem:[#allocation2 + $0x91] sm:$0xff] }
 0x2d1   : > { %9785 = vmatprep.subr.mxu1 %v7924_v48  ;;  %v12907_v26 = vadd.f32 %v9359_v10, %v9295_v4  ;;  %v9362_v9 = vpop.f32.mrf.mxu0 }
 0x2d2   : > { %9678 = vmatmul.mubr.msk.f32.gmra.mxu1 %vm455_vm0, %v12898_v16  ;;  %v4107_v18 = vpop.f32.mrf.mxu1 }
 0x2d3   : > { %9745 = vmatmul.mubr.msk.f32.gmra.mxu0 %vm455_vm0, %v12898_v16  ;;  %9680 = vmatprep.mubr.msk.f32.mxu1 %vm455_vm0, %v12902_v12  ;;  %v12915_v39 = vadd.f32 %v4338_v32, %v4107_v18  ;;  %v4348_v33 = vpop.f32.mrf.mxu0  ;;  %v12971_v32 = vld [vmem:[#allocation2 + $0xa1] sm:$0xff] }
 0x2d4   : > { %9747 = vmatprep.mubr.msk.f32.mxu0 %vm455_vm0, %v12902_v12  ;;  %9786 = vmatpush3.msra.mxu1 %v7924_v48  ;;  %v9298_v51 = vpop.f32.mrf.mxu1 }
 0x2d5   : > { %9787 = vmatprep.subr.mxu1 %v7923_v29  ;;  %v12926_v34 = vadd.f32 %v9362_v9, %v9298_v51  ;;  %v9365_v62 = vpop.f32.mrf.mxu0 }
 0x2d6   : > { %9681 = vmatmul.mubr.msk.f32.gmra.mxu1 %vm455_vm0, %v12917_v30  ;;  %v4117_v6 = vpop.f32.mrf.mxu1 }
 0x2d7   : > { %9748 = vmatmul.mubr.msk.f32.gmra.mxu0 %vm455_vm0, %v12917_v30  ;;  %9683 = vmatprep.mubr.msk.f32.mxu1 %vm455_vm0, %v12921_v42  ;;  %v12934_v21 = vadd.f32 %v4348_v33, %v4117_v6  ;;  %v4358_v58 = vpop.f32.mrf.mxu0 }
 0x2d8   : > { %9750 = vmatprep.mubr.msk.f32.mxu0 %vm455_vm0, %v12921_v42  ;;  %9788 = vmatpush3.msra.mxu1 %v7923_v29  ;;  %v12975_v29 = vld [vmem:[#allocation2 + $0xa9] sm:$0xff] }
 0x2d9   : > { %9789 = vmatprep.subr.mxu1 %v7922_v40  ;;  %v9301_v1 = vpop.f32.mrf.mxu1  ;;  %v9368_v2 = vpop.f32.mrf.mxu0 }
 0x2da   : > { %9684 = vmatmul.mubr.msk.f32.gmra.mxu1 %vm455_vm0, %v12936_v7  ;;  %v12945_v41 = vadd.f32 %v9365_v62, %v9301_v1  ;;  %v12987_v62 = vld [vmem:[#allocation2 + $0xb1] sm:$0xff] }
 0x2db   : > { %9751 = vmatmul.mubr.msk.f32.gmra.mxu0 %vm455_vm0, %v12936_v7  ;;  %9686 = vmatprep.mubr.msk.f32.mxu1 %vm455_vm0, %v12940_v0  ;;  %v4127_v49 = vpop.f32.mrf.mxu1  ;;  %v4368_v50 = vpop.f32.mrf.mxu0 }
 0x2dc   : > { %9753 = vmatprep.mubr.msk.f32.mxu0 %vm455_vm0, %v12940_v0  ;;  %9790 = vmatpush3.msra.mxu1 %v7922_v40  ;;  %v12953_v56 = vadd.f32 %v4358_v58, %v4127_v49  ;;  %v12991_v58 = vld [vmem:[#allocation2 + $0xb9] sm:$0xff] }
 0x2dd   : > { %9791 = vmatprep.subr.mxu1 %v7921_v22  ;;  %v9304_v60 = vpop.f32.mrf.mxu1  ;;  %v9371_v61 = vpop.f32.mrf.mxu0 }
 0x2de   : > { %9687 = vmatmul.mubr.msk.f32.gmra.mxu1 %vm455_vm0, %v12955_v13  ;;  %v12961_v17 = vadd.f32 %v9368_v2, %v9304_v60  ;;  %v13003_v60 = vld [vmem:[#allocation2 + $0xc1] sm:$0xff] }
 0x2df   : > { %9754 = vmatmul.mubr.msk.f32.gmra.mxu0 %vm455_vm0, %v12955_v13  ;;  %9689 = vmatprep.mubr.msk.f32.mxu1 %vm455_vm0, %v12959_v57  ;;  %v4137_v48 = vpop.f32.mrf.mxu1  ;;  %v4378_v59 = vpop.f32.mrf.mxu0 }
 0x2e0   : > { %9756 = vmatprep.mubr.msk.f32.mxu0 %vm455_vm0, %v12959_v57  ;;  %9792 = vmatpush3.msra.mxu1 %v7921_v22  ;;  %v12969_v10 = vadd.f32 %v4368_v50, %v4137_v48  ;;  %v13007_v48 = vld [vmem:[#allocation2 + $0xc9] sm:$0xff] }
 0x2e2   : > { %v9307_v4 = vpop.f32.mrf.mxu1  ;;  %9690 = vmatmul.mubr.msk.f32.gmra.mxu1 %vm455_vm0, %v12971_v32  ;;  %v9374_v18 = vpop.f32.mrf.mxu0 }
 0x2e3   : > { %v12977_v9 = vadd.f32 %v9371_v61, %v9307_v4  ;;  %9757 = vmatmul.mubr.msk.f32.gmra.mxu0 %vm455_vm0, %v12971_v32  ;;  %9692 = vmatprep.mubr.msk.f32.mxu1 %vm455_vm0, %v12975_v29 }
 0x2e4   : > { %9759 = vmatprep.mubr.msk.f32.mxu0 %vm455_vm0, %v12975_v29  ;;  %v4147_v33 = vpop.f32.mrf.mxu1  ;;  %v4388_v40 = vpop.f32.mrf.mxu0 }
 0x2e5   : > { %v12985_v51 = vadd.f32 %v4378_v59, %v4147_v33 }
 0x2e6   : > { %v9310_v6 = vpop.f32.mrf.mxu1  ;;  %9693 = vmatmul.mubr.msk.f32.gmra.mxu1 %vm455_vm0, %v12987_v62  ;;  %v9377_v22 = vpop.f32.mrf.mxu0 }
 0x2e7   : > { %v12993_v1 = vadd.f32 %v9374_v18, %v9310_v6  ;;  %9760 = vmatmul.mubr.msk.f32.gmra.mxu0 %vm455_vm0, %v12987_v62  ;;  %9695 = vmatprep.mubr.msk.f32.mxu1 %vm455_vm0, %v12991_v58  ;;  %v13019_v6 = vld [vmem:[#allocation2 + $0xd1] sm:$0xff] }
 0x2e8   : > { %9762 = vmatprep.mubr.msk.f32.mxu0 %vm455_vm0, %v12991_v58  ;;  %v4157_v2 = vpop.f32.mrf.mxu1  ;;  %v4398_v50 = vpop.f32.mrf.mxu0 }
 0x2e9   : > { %v13001_v49 = vadd.f32 %v4388_v40, %v4157_v2 }
 0x2ea   : > { %v9313_v61 = vpop.f32.mrf.mxu1  ;;  %9696 = vmatmul.mubr.msk.f32.gmra.mxu1 %vm455_vm0, %v13003_v60  ;;  %v9380_v4 = vpop.f32.mrf.mxu0 }
 0x2eb   : > { %v13009_v59 = vadd.f32 %v9377_v22, %v9313_v61  ;;  %9763 = vmatmul.mubr.msk.f32.gmra.mxu0 %vm455_vm0, %v13003_v60  ;;  %9698 = vmatprep.mubr.msk.f32.mxu1 %vm455_vm0, %v13007_v48  ;;  %v13023_v22 = vld [vmem:[#allocation2 + $0xd9] sm:$0xff] }
 0x2ec   : > { %9765 = vmatprep.mubr.msk.f32.mxu0 %vm455_vm0, %v13007_v48  ;;  %v4167_v18 = vpop.f32.mrf.mxu1  ;;  %v4408_v40 = vpop.f32.mrf.mxu0 }
 0x2ed   : > { %v13017_v33 = vadd.f32 %v4398_v50, %v4167_v18 }
 0x2ee   : > { %v9316_v2 = vpop.f32.mrf.mxu1  ;;  %9699 = vmatmul.mubr.msk.f32.gmra.mxu1 %vm455_vm0, %v13019_v6  ;;  %v9383_v47 = vpop.f32.mrf.mxu0 }
 0x2ef   : > { %v13025_v61 = vadd.f32 %v9380_v4, %v9316_v2  ;;  %9766 = vmatmul.mubr.msk.f32.gmra.mxu0 %vm455_vm0, %v13019_v6  ;;  %9701 = vmatprep.mubr.msk.f32.mxu1 %vm455_vm0, %v13023_v22  ;;  %v13039_v4 = vld [vmem:[#allocation2 + $0xe9] sm:$0xff] }
 0x2f0   : > { %9768 = vmatprep.mubr.msk.f32.mxu0 %vm455_vm0, %v13023_v22  ;;  %v4177_v50 = vpop.f32.mrf.mxu1  ;;  %v4418_v35 = vpop.f32.mrf.mxu0 }
 0x2f1   : > { %v13033_v18 = vadd.f32 %v4408_v40, %v4177_v50 }
 0x2f2   : > { %v9319_v43 = vpop.f32.mrf.mxu1  ;;  %9702 = vmatmul.mubr.msk.f32.gmra.mxu1 %vm455_vm0, %v13035_v44  ;;  %v9386_v23 = vpop.f32.mrf.mxu0 }
 0x2f3   : > { %v13041_v2 = vadd.f32 %v9383_v47, %v9319_v43  ;;  %9769 = vmatmul.mubr.msk.f32.gmra.mxu0 %vm455_vm0, %v13035_v44  ;;  %9704 = vmatprep.mubr.msk.f32.mxu1 %vm455_vm0, %v13039_v4  ;;  %v13055_v43 = vld [vmem:[#allocation2 + $0xf9] sm:$0xff] }
 0x2f4   : > { %9771 = vmatprep.mubr.msk.f32.mxu0 %vm455_vm0, %v13039_v4  ;;  %v4187_v40 = vpop.f32.mrf.mxu1  ;;  %v4428_v38 = vpop.f32.mrf.mxu0  ;;  %14117 = vst [vmem:[#allocation46_spill] sm:$0xff] %v13055_v43 }
 0x2f5   : > { %14115 = vst [vmem:[#allocation43_spill] sm:$0xff] %v13041_v2  ;;  %v13049_v50 = vadd.f32 %v4418_v35, %v4187_v40 }
 0x2f6   : > { %v9322_v55 = vpop.f32.mrf.mxu1  ;;  %9705 = vmatmul.mubr.msk.f32.gmra.mxu1 %vm455_vm0, %v13051_v8  ;;  %v9389_v54 = vpop.f32.mrf.mxu0 }
 0x2f7   : > { %14116 = vst [vmem:[#allocation21_spill] sm:$0xff] %v13049_v50  ;;  %v13057_v47 = vadd.f32 %v9386_v23, %v9322_v55  ;;  %9772 = vmatmul.mubr.msk.f32.gmra.mxu0 %vm455_vm0, %v13051_v8  ;;  %9707 = vmatprep.mubr.msk.f32.mxu1 %vm455_vm0, %v13055_v43  ;;  %v13071_v55 = vld [vmem:[#allocation2 + $0x109] sm:$0xff]  ;;  %v13081_v50 = vld [vmem:[#allocation2 + $0x111] sm:$0xff] }
 0x2f8   : > { %9774 = vmatprep.mubr.msk.f32.mxu0 %vm455_vm0, %v13055_v43  ;;  %v4197_v35 = vpop.f32.mrf.mxu1  ;;  %v4438_v20 = vpop.f32.mrf.mxu0  ;;  %14122 = vst [vmem:[#allocation74_spill] sm:$0xff] %v13081_v50 }
 0x2f9   : > { %14118 = vst [vmem:[#allocation70_spill] sm:$0xff] %v13057_v47  ;;  %v13065_v40 = vadd.f32 %v4428_v38, %v4197_v35 }
 0x2fa   : > { %v9325_v24 = vpop.f32.mrf.mxu1  ;;  %9708 = vmatmul.mubr.msk.f32.gmra.mxu1 %vm455_vm0, %v13067_v52  ;;  %v9392_v47 = vpop.f32.mrf.mxu0 }
 0x2fb   : > { %14119 = vst [vmem:[#allocation71_spill] sm:$0xff] %v13065_v40  ;;  %v13073_v23 = vadd.f32 %v9389_v54, %v9325_v24  ;;  %9775 = vmatmul.mubr.msk.f32.gmra.mxu0 %vm455_vm0, %v13067_v52  ;;  %9710 = vmatprep.mubr.msk.f32.mxu1 %vm455_vm0, %v13071_v55 }
 0x2fc   : > { %v4207_v38 = vpop.f32.mrf.mxu1  ;;  %v4448_v40 = vpop.f32.mrf.mxu0 }
 0x2fd   : > { %14120 = vst [vmem:[#allocation41_spill] sm:$0xff] %v13073_v23  ;;  %v13079_v35 = vadd.f32 %v4438_v20, %v4207_v38  ;;  %v4304_v23 = vadd.f32 %v12815_v31, %v12826_v28 }
 0x2fe   : > { %v9328_v43 = vpop.f32.mrf.mxu1  ;;  %9711 = vmatmul.mubr.msk.f32.gmra.mxu1 %vm455_vm0, %v13081_v50  ;;  %v13087_v24 = vpop.f32.mrf.mxu0 }
 0x2ff   : > { %14121 = vst [vmem:[#allocation73_spill] sm:$0xff] %v13079_v35  ;;  %v13085_v2 = vadd.f32 %v9392_v47, %v9328_v43  ;;  %9793 = vmatprep.mubr.msk.f32.mxu1 %vm455_vm0, %v12829_v19 }
 0x300   : > { %v4217_v54 = vpop.f32.mrf.mxu1  ;;  %v13095_v38 = vpop.f32.mrf.mxu0 }
 0x301   : > { %v13093_v20 = vadd.f32 %v4448_v40, %v4217_v54 }
 0x302   : > { %v9411_v35 = vpop.f32.mrf.mxu1  ;;  %9794 = vmatmul.mubr.msk.f32.vlgmr.msra.gmra.mxu1 %vm455_vm0, %v12841_v25 }
 0x303   : > { %v13099_v50 = vadd.f32 %v9411_v35, %v4304_v23  ;;  %v13101_v43 = vpop.f32.mrf.mxu0  ;;  %9796 = vmatprep.mubr.msk.f32.mxu1 %vm455_vm0, %v12847_v27 }
 0x304   : > { %v4660_v19 = vpop.f32.mrf.mxu1 }
 0x305   : > { %v13106_v47 = vadd.f32 %v4660_v19, %v12839_v53  ;;  %v13108_v31 = vpop.f32.mrf.mxu0 }
 0x306   : > { %v9414_v28 = vpop.f32.mrf.mxu1  ;;  %9797 = vmatmul.mubr.msk.f32.gmra.mxu1 %vm455_vm0, %v12860_v5 }
 0x307   : > { %v13113_v40 = vadd.f32 %v9414_v28, %v12843_v36  ;;  %v13115_v25 = vpop.f32.mrf.mxu0  ;;  %9799 = vmatprep.mubr.msk.f32.mxu1 %vm455_vm0, %v12864_v3 }
 0x308   : > { %v4670_v23 = vpop.f32.mrf.mxu1 }
 0x309   : > { %v13120_v27 = vadd.f32 %v4670_v23, %v12858_v45  ;;  %v13122_v53 = vpop.f32.mrf.mxu0 }
 0x30a   : > { %v9417_v35 = vpop.f32.mrf.mxu1  ;;  %9800 = vmatmul.mubr.msk.f32.gmra.mxu1 %vm455_vm0, %v12879_v63 }
 0x30b   : > { %v13127_v5 = vadd.f32 %v9417_v35, %v12869_v11  ;;  %v13129_v36 = vpop.f32.mrf.mxu0  ;;  %9802 = vmatprep.mubr.msk.f32.mxu1 %vm455_vm0, %v12883_v37 }
 0x30c   : > { %v4680_v54 = vpop.f32.mrf.mxu1 }
 0x30d   : > { %v13134_v3 = vadd.f32 %v4680_v54, %v12877_v14  ;;  %v13136_v45 = vpop.f32.mrf.mxu0 }
 0x30e   : > { %v9420_v19 = vpop.f32.mrf.mxu1  ;;  %9803 = vmatmul.mubr.msk.f32.gmra.mxu1 %vm455_vm0, %v12898_v16 }
 0x30f   : > { %v13141_v63 = vadd.f32 %v9420_v19, %v12888_v15  ;;  %v13143_v11 = vpop.f32.mrf.mxu0  ;;  %9805 = vmatprep.mubr.msk.f32.mxu1 %vm455_vm0, %v12902_v12 }
 0x310   : > { %v4690_v28 = vpop.f32.mrf.mxu1 }
 0x311   : > { %v13148_v37 = vadd.f32 %v4690_v28, %v12896_v46  ;;  %v13150_v14 = vpop.f32.mrf.mxu0 }
 0x312   : > { %v9423_v23 = vpop.f32.mrf.mxu1  ;;  %9806 = vmatmul.mubr.msk.f32.gmra.mxu1 %vm455_vm0, %v12917_v30 }
 0x313   : > { %v13155_v16 = vadd.f32 %v9423_v23, %v12907_v26  ;;  %v13157_v15 = vpop.f32.mrf.mxu0  ;;  %9808 = vmatprep.mubr.msk.f32.mxu1 %vm455_vm0, %v12921_v42 }
 0x314   : > { %v4700_v35 = vpop.f32.mrf.mxu1 }
 0x315   : > { %v13162_v12 = vadd.f32 %v4700_v35, %v12915_v39  ;;  %v13164_v46 = vpop.f32.mrf.mxu0 }
 0x316   : > { %v9426_v54 = vpop.f32.mrf.mxu1  ;;  %9809 = vmatmul.mubr.msk.f32.gmra.mxu1 %vm455_vm0, %v12936_v7 }
 0x317   : > { %v13169_v30 = vadd.f32 %v9426_v54, %v12926_v34  ;;  %v13171_v26 = vpop.f32.mrf.mxu0  ;;  %9811 = vmatprep.mubr.msk.f32.mxu1 %vm455_vm0, %v12940_v0 }
 0x318   : > { %v4710_v19 = vpop.f32.mrf.mxu1 }
 0x319   : > { %v13176_v42 = vadd.f32 %v4710_v19, %v12934_v21  ;;  %v13178_v39 = vpop.f32.mrf.mxu0 }
 0x31a   : > { %v9429_v28 = vpop.f32.mrf.mxu1  ;;  %9812 = vmatmul.mubr.msk.f32.gmra.mxu1 %vm455_vm0, %v12955_v13 }
 0x31b   : > { %v13183_v7 = vadd.f32 %v9429_v28, %v12945_v41  ;;  %v13185_v34 = vpop.f32.mrf.mxu0  ;;  %9814 = vmatprep.mubr.msk.f32.mxu1 %vm455_vm0, %v12959_v57 }
 0x31c   : > { %v4720_v23 = vpop.f32.mrf.mxu1 }
 0x31d   : > { %v13190_v0 = vadd.f32 %v4720_v23, %v12953_v56  ;;  %v13192_v21 = vpop.f32.mrf.mxu0 }
 0x31e   : > { %v9432_v35 = vpop.f32.mrf.mxu1  ;;  %9815 = vmatmul.mubr.msk.f32.gmra.mxu1 %vm455_vm0, %v12971_v32 }
 0x31f   : > { %v13197_v13 = vadd.f32 %v9432_v35, %v12961_v17  ;;  %v13199_v41 = vpop.f32.mrf.mxu0  ;;  %9817 = vmatprep.mubr.msk.f32.mxu1 %vm455_vm0, %v12975_v29 }
 0x320   : > { %v4730_v54 = vpop.f32.mrf.mxu1 }
 0x321   : > { %v13204_v57 = vadd.f32 %v4730_v54, %v12969_v10  ;;  %v13206_v56 = vpop.f32.mrf.mxu0 }
 0x322   : > { %v9435_v19 = vpop.f32.mrf.mxu1  ;;  %9818 = vmatmul.mubr.msk.f32.gmra.mxu1 %vm455_vm0, %v12987_v62 }
 0x323   : > { %v13211_v32 = vadd.f32 %v9435_v19, %v12977_v9  ;;  %v13213_v17 = vpop.f32.mrf.mxu0  ;;  %9820 = vmatprep.mubr.msk.f32.mxu1 %vm455_vm0, %v12991_v58 }
 0x324   : > { %v4740_v28 = vpop.f32.mrf.mxu1 }
 0x325   : > { %v13218_v29 = vadd.f32 %v4740_v28, %v12985_v51  ;;  %v13220_v10 = vpop.f32.mrf.mxu0 }
 0x326   : > { %v9438_v23 = vpop.f32.mrf.mxu1  ;;  %9821 = vmatmul.mubr.msk.f32.gmra.mxu1 %vm455_vm0, %v13003_v60 }
 0x327   : > { %v13225_v62 = vadd.f32 %v9438_v23, %v12993_v1  ;;  %v13227_v9 = vpop.f32.mrf.mxu0  ;;  %9823 = vmatprep.mubr.msk.f32.mxu1 %vm455_vm0, %v13007_v48 }
 0x328   : > { %v4750_v35 = vpop.f32.mrf.mxu1 }
 0x329   : > { %v13232_v58 = vadd.f32 %v4750_v35, %v13001_v49  ;;  %v13234_v51 = vpop.f32.mrf.mxu0 }
 0x32a   : > { %v9441_v54 = vpop.f32.mrf.mxu1  ;;  %9824 = vmatmul.mubr.msk.f32.gmra.mxu1 %vm455_vm0, %v13019_v6 }
 0x32b   : > { %v13239_v60 = vadd.f32 %v9441_v54, %v13009_v59  ;;  %v13241_v1 = vpop.f32.mrf.mxu0  ;;  %9826 = vmatprep.mubr.msk.f32.mxu1 %vm455_vm0, %v13023_v22  ;;  %v14127_v54 = vld [vmem:[#allocation43_spill] sm:$0xff] }
 0x32c   : > { %v4760_v19 = vpop.f32.mrf.mxu1 }
 0x32d   : > { %v13246_v48 = vadd.f32 %v4760_v19, %v13017_v33  ;;  %v13248_v49 = vpop.f32.mrf.mxu0  ;;  %v14130_v19 = vld [vmem:[#allocation46_spill] sm:$0xff] }
 0x32e   : > { %v9444_v28 = vpop.f32.mrf.mxu1  ;;  %9827 = vmatmul.mubr.msk.f32.gmra.mxu1 %vm455_vm0, %v13035_v44 }
 0x32f   : > { %v13253_v6 = vadd.f32 %v9444_v28, %v13025_v61  ;;  %v13255_v59 = vpop.f32.mrf.mxu0  ;;  %9829 = vmatprep.mubr.msk.f32.mxu1 %vm455_vm0, %v13039_v4  ;;  %v14131_v4 = vld [vmem:[#allocation21_spill] sm:$0xff] }
 0x330   : > { %14124 = vst [vmem:[#allocation47_spill] sm:$0xff] %v13255_v59  ;;  %v4770_v23 = vpop.f32.mrf.mxu1 }
 0x331   : > { %14123 = vst [vmem:[#allocation44_spill] sm:$0xff] %v13253_v6  ;;  %v13260_v22 = vadd.f32 %v4770_v23, %v13033_v18  ;;  %v13262_v33 = vpop.f32.mrf.mxu0 }
 0x332   : > { %14126 = vst [vmem:[#allocation50_spill] sm:$0xff] %v13262_v33  ;;  %v9447_v35 = vpop.f32.mrf.mxu1  ;;  %9830 = vmatmul.mubr.msk.f32.gmra.mxu1 %vm455_vm0, %v13051_v8  ;;  %v14134_v33 = vld [vmem:[#allocation70_spill] sm:$0xff] }
 0x333   : > { %14125 = vst [vmem:[#allocation22_spill] sm:$0xff] %v13260_v22  ;;  %v13267_v44 = vadd.f32 %v9447_v35, %v14127_v54  ;;  %v13269_v61 = vpop.f32.mrf.mxu0  ;;  %9832 = vmatprep.mubr.msk.f32.mxu1 %vm455_vm0, %v14130_v19  ;;  %v6579_v19 = vld [vmem:[#allocation2 + $0x119] sm:$0xff] }
 0x334   : > { %14129 = vst [vmem:[#allocation76_spill] sm:$0xff] %v13269_v61  ;;  %v4780_v28 = vpop.f32.mrf.mxu1  ;;  %v14137_v61 = vld [vmem:[#allocation71_spill] sm:$0xff] }
 0x335   : > { %14128 = vst [vmem:[#allocation75_spill] sm:$0xff] %v13267_v44  ;;  %v13274_v59 = vadd.f32 %v4780_v28, %v14131_v4  ;;  %v13276_v18 = vpop.f32.mrf.mxu0 }
 0x336   : > { %14133 = vst [vmem:[#allocation79_spill] sm:$0xff] %v13276_v18  ;;  %v9450_v23 = vpop.f32.mrf.mxu1  ;;  %9833 = vmatmul.mubr.msk.f32.gmra.mxu1 %vm455_vm0, %v13067_v52  ;;  %v14140_v18 = vld [vmem:[#allocation74_spill] sm:$0xff]  ;;  %v14141_v52 = vld [vmem:[#allocation41_spill] sm:$0xff] }
 0x337   : > { %14132 = vst [vmem:[#allocation77_spill] sm:$0xff] %v13274_v59  ;;  %v13281_v8 = vadd.f32 %v9450_v23, %v14134_v33  ;;  %v13283_v35 = vpop.f32.mrf.mxu0  ;;  %9835 = vmatprep.mubr.msk.f32.mxu1 %vm455_vm0, %v13071_v55  ;;  %v6580_v23 = vld [vmem:[#allocation2 + $0x121] sm:$0xff] }
 0x338   : > { %14136 = vst [vmem:[#allocation51_spill] sm:$0xff] %v13283_v35  ;;  %v4790_v54 = vpop.f32.mrf.mxu1  ;;  %v14144_v35 = vld [vmem:[#allocation73_spill] sm:$0xff] }
 0x339   : > { %14135 = vst [vmem:[#allocation30_spill] sm:$0xff] %v13281_v8  ;;  %v13288_v44 = vadd.f32 %v4790_v54, %v14137_v61  ;;  %v13290_v28 = vpop.f32.mrf.mxu0 }
 0x33a   : > { %14139 = vst [vmem:[#allocation53_spill] sm:$0xff] %v13290_v28  ;;  %v9453_v4 = vpop.f32.mrf.mxu1  ;;  %9836 = vmatmul.mubr.msk.f32.gmra.mxu1 %vm455_vm0, %v14140_v18 }
 0x33b   : > { %14138 = vst [vmem:[#allocation23_spill] sm:$0xff] %v13288_v44  ;;  %v13295_v59 = vadd.f32 %v9453_v4, %v14141_v52  ;;  %v13297_v33 = vpop.f32.mrf.mxu0  ;;  %9838 = vmatprep.mubr.msk.f32.mxu1 %vm455_vm0, %v6579_v19 }
 0x33c   : > { %14143 = vst [vmem:[#allocation82_spill] sm:$0xff] %v13297_v33  ;;  %v4800_v55 = vpop.f32.mrf.mxu1 }
 0x33d   : > { %14142 = vst [vmem:[#allocation78_spill] sm:$0xff] %v13295_v59  ;;  %v13301_v8 = vadd.f32 %v4800_v55, %v14144_v35  ;;  %v13303_v61 = vpop.f32.mrf.mxu0 }
 0x33e   : > { %14146 = vst [vmem:[#allocation80_spill] sm:$0xff] %v13303_v61  ;;  %v9456_v54 = vpop.f32.mrf.mxu1  ;;  %9839 = vmatmul.mubr.msk.f32.gmra.mxu1 %vm455_vm0, %v6580_v23  ;;  %v14149_v23 = vld [vmem:[#allocation99_spill] sm:$0xff] }
 0x33f   : > { %14145 = vst [vmem:[#allocation31_spill] sm:$0xff] %v13301_v8  ;;  %v13307_v28 = vadd.f32 %v9456_v54, %v13085_v2  ;;  %v9603_v18 = vpop.f32.mrf.mxu0  ;;  %v4851_v2 = vmul.f32 %v14149_v23, %v13106_v47 }
 0x340   : > { %v4810_v4 = vpop.f32.mrf.mxu1 }
 0x341   : > { %14147 = vst [vmem:[#allocation85_spill] sm:$0xff] %v13307_v28  ;;  %v13310_v52 = vadd.f32 %v4810_v4, %v13093_v20  ;;  %v5722_v33 = vpop.f32.mrf.mxu0 }
 0x342   : > { %v9539_v19 = vpop.f32.mrf.mxu1 }
 0x343   : > { %14148 = vst [vmem:[#allocation81_spill] sm:$0xff] %v13310_v52  ;;  %v5366_v59 = vadd.f32 %v9539_v19, %v13087_v24  ;;  %v9606_v44 = vpop.f32.mrf.mxu0 }
 0x344   : > { %v5360_v35 = vpop.f32.mrf.mxu1 }
 0x345   : > { %v5882_v55 = vadd.f32 %v9603_v18, %v5366_v59  ;;  %v5361_v61 = vadd.f32 %v5360_v35, %v13095_v38  ;;  %v5732_v8 = vpop.f32.mrf.mxu0  ;;  %v14150_v18 = vld [vmem:[#allocation101_spill] sm:$0xff] }
 0x346   : > { %v9542_v6 = vpop.f32.mrf.mxu1  ;;  %v4853_v35 = vmul.f32 %v14150_v18, %v13120_v27 }
 0x347   : > { %v13317_v54 = vadd.f32 %v5882_v55, %v13099_v50  ;;  %v5881_v28 = vadd.f32 %v5722_v33, %v5361_v61  ;;  %v5376_v20 = vadd.f32 %v9542_v6, %v13101_v43  ;;  %v9609_v4 = vpop.f32.mrf.mxu0 }
 0x348   : > { %v5370_v52 = vpop.f32.mrf.mxu1 }
 0x349   : > { %v5884_v22 = vadd.f32 %v9606_v44, %v5376_v20  ;;  %v5371_v24 = vadd.f32 %v5370_v52, %v13108_v31  ;;  %v5742_v19 = vpop.f32.mrf.mxu0  ;;  %v13321_v59 = vadd.f32 %v5881_v28, %v4851_v2  ;;  %v14151_v52 = vld [vmem:[#allocation102_spill] sm:$0xff] }
 0x34a   : > { %v9545_v38 = vpop.f32.mrf.mxu1  ;;  %v4855_v23 = vmul.f32 %v14151_v52, %v13134_v3 }
 0x34b   : > { %v13326_v47 = vadd.f32 %v5884_v22, %v13113_v40  ;;  %v5883_v50 = vadd.f32 %v5732_v8, %v5371_v24  ;;  %v5386_v33 = vadd.f32 %v9545_v38, %v13115_v25  ;;  %v9612_v61 = vpop.f32.mrf.mxu0  ;;  %v14152_v38 = vld [vmem:[#allocation103_spill] sm:$0xff] }
 0x34c   : > { %v5380_v43 = vpop.f32.mrf.mxu1  ;;  %v4857_v18 = vmul.f32 %v14152_v38, %v13148_v37 }
 0x34d   : > { %v5886_v6 = vadd.f32 %v9609_v4, %v5386_v33  ;;  %v5381_v44 = vadd.f32 %v5380_v43, %v13122_v53  ;;  %v5752_v55 = vpop.f32.mrf.mxu0  ;;  %v13330_v31 = vadd.f32 %v5883_v50, %v4853_v35 }
 0x34e   : > { %v9548_v28 = vpop.f32.mrf.mxu1 }
 0x34f   : > { %v13335_v27 = vadd.f32 %v5886_v6, %v13127_v5  ;;  %v5885_v40 = vadd.f32 %v5742_v19, %v5381_v44  ;;  %v5396_v22 = vadd.f32 %v9548_v28, %v13129_v36  ;;  %v9615_v8 = vpop.f32.mrf.mxu0  ;;  %v14153_v6 = vld [vmem:[#allocation106_spill] sm:$0xff] }
 0x350   : > { %v5390_v25 = vpop.f32.mrf.mxu1  ;;  %v4859_v44 = vmul.f32 %v14153_v6, %v13162_v12  ;;  %v14156_v6 = vld [vmem:[#allocation110_spill] sm:$0xff] }
 0x351   : > { %v5888_v2 = vadd.f32 %v9612_v61, %v5396_v22  ;;  %v5391_v20 = vadd.f32 %v5390_v25, %v13136_v45  ;;  %v5762_v4 = vpop.f32.mrf.mxu0  ;;  %v13339_v53 = vadd.f32 %v5885_v40, %v4855_v23 }
 0x352   : > { %v9551_v24 = vpop.f32.mrf.mxu1 }
 0x353   : > { %v13344_v3 = vadd.f32 %v5888_v2, %v13141_v63  ;;  %v5887_v5 = vadd.f32 %v5752_v55, %v5391_v20  ;;  %v5406_v19 = vadd.f32 %v9551_v24, %v13143_v11  ;;  %v9618_v35 = vpop.f32.mrf.mxu0 }
 0x354   : > { %v5400_v36 = vpop.f32.mrf.mxu1 }
 0x355   : > { %v5890_v50 = vadd.f32 %v9615_v8, %v5406_v19  ;;  %v5401_v33 = vadd.f32 %v5400_v36, %v13150_v14  ;;  %v5772_v61 = vpop.f32.mrf.mxu0  ;;  %v13348_v45 = vadd.f32 %v5887_v5, %v4857_v18  ;;  %v14154_v8 = vld [vmem:[#allocation108_spill] sm:$0xff]  ;;  %v14155_v5 = vld [vmem:[#allocation109_spill] sm:$0xff] }
 0x356   : > { %v9554_v43 = vpop.f32.mrf.mxu1  ;;  %v4861_v25 = vmul.f32 %v14154_v8, %v13176_v42  ;;  %v4863_v19 = vmul.f32 %v14155_v5, %v13190_v0 }
 0x357   : > { %v13353_v37 = vadd.f32 %v5890_v50, %v13155_v16  ;;  %v5889_v63 = vadd.f32 %v5762_v4, %v5401_v33  ;;  %v5416_v55 = vadd.f32 %v9554_v43, %v13157_v15  ;;  %v9621_v28 = vpop.f32.mrf.mxu0 }
 0x358   : > { %v5410_v11 = vpop.f32.mrf.mxu1 }
 0x359   : > { %v5892_v52 = vadd.f32 %v9618_v35, %v5416_v55  ;;  %v5411_v23 = vadd.f32 %v5410_v11, %v13164_v46  ;;  %v5782_v40 = vpop.f32.mrf.mxu0  ;;  %v13357_v14 = vadd.f32 %v5889_v63, %v4859_v44  ;;  %v4865_v44 = vmul.f32 %v14156_v6, %v13204_v57 }
 0x35a   : > { %v9557_v22 = vpop.f32.mrf.mxu1 }
 0x35b   : > { %v13362_v12 = vadd.f32 %v5892_v52, %v13169_v30  ;;  %v5891_v16 = vadd.f32 %v5772_v61, %v5411_v23  ;;  %v5426_v2 = vadd.f32 %v9557_v22, %v13171_v26  ;;  %v9624_v20 = vpop.f32.mrf.mxu0 }
 0x35c   : > { %v5420_v15 = vpop.f32.mrf.mxu1 }
 0x35d   : > { %v5894_v4 = vadd.f32 %v9621_v28, %v5426_v2  ;;  %v5421_v24 = vadd.f32 %v5420_v15, %v13178_v39  ;;  %v5792_v38 = vpop.f32.mrf.mxu0  ;;  %v13366_v46 = vadd.f32 %v5891_v16, %v4861_v25 }
 0x35e   : > { %v9560_v18 = vpop.f32.mrf.mxu1 }
 0x35f   : > { %v13371_v42 = vadd.f32 %v5894_v4, %v13183_v7  ;;  %v5893_v30 = vadd.f32 %v5782_v40, %v5421_v24  ;;  %v5436_v35 = vadd.f32 %v9560_v18, %v13185_v34  ;;  %v9627_v36 = vpop.f32.mrf.mxu0  ;;  %v14157_v40 = vld [vmem:[#allocation111_spill] sm:$0xff]  ;;  %v14160_v4 = vld [vmem:[#allocation113_spill] sm:$0xff] }
 0x360   : > { %v5430_v26 = vpop.f32.mrf.mxu1  ;;  %v4867_v22 = vmul.f32 %v14157_v40, %v13218_v29  ;;  %v4869_v24 = vmul.f32 %v14160_v4, %v13232_v58  ;;  %v14171_v40 = vld [vmem:[#allocation50_spill] sm:$0xff]  ;;  %v14177_v4 = vld [vmem:[#allocation76_spill] sm:$0xff] }
 0x361   : > { %v5896_v50 = vadd.f32 %v9624_v20, %v5436_v35  ;;  %v5431_v33 = vadd.f32 %v5430_v26, %v13192_v21  ;;  %v5802_v61 = vpop.f32.mrf.mxu0  ;;  %v13375_v39 = vadd.f32 %v5893_v30, %v4863_v19 }
 0x362   : > { %v9563_v43 = vpop.f32.mrf.mxu1 }
 0x363   : > { %v13380_v0 = vadd.f32 %v5896_v50, %v13197_v13  ;;  %v5895_v7 = vadd.f32 %v5792_v38, %v5431_v33  ;;  %v5446_v63 = vadd.f32 %v9563_v43, %v13199_v41  ;;  %v9630_v55 = vpop.f32.mrf.mxu0 }
 0x364   : > { %v5440_v34 = vpop.f32.mrf.mxu1 }
 0x365   : > { %v5898_v28 = vadd.f32 %v9627_v36, %v5446_v63  ;;  %v5441_v11 = vadd.f32 %v5440_v34, %v13206_v56  ;;  %v5812_v52 = vpop.f32.mrf.mxu0  ;;  %v13384_v21 = vadd.f32 %v5895_v7, %v4865_v44  ;;  %v14163_v36 = vld [vmem:[#allocation114_spill] sm:$0xff]  ;;  %v14167_v63 = vld [vmem:[#allocation115_spill] sm:$0xff]  ;;  %v14168_v34 = vld [vmem:[#allocation44_spill] sm:$0xff] }
 0x366   : > { %v9566_v23 = vpop.f32.mrf.mxu1  ;;  %v4871_v26 = vmul.f32 %v14163_v36, %v13246_v48  ;;  %v14166_v7 = vld [vmem:[#allocation22_spill] sm:$0xff]  ;;  %v14180_v36 = vld [vmem:[#allocation23_spill] sm:$0xff] }
 0x367   : > { %v13389_v57 = vadd.f32 %v5898_v28, %v13211_v32  ;;  %v5897_v13 = vadd.f32 %v5802_v61, %v5441_v11  ;;  %v5456_v8 = vadd.f32 %v9566_v23, %v13213_v17  ;;  %v9633_v25 = vpop.f32.mrf.mxu0  ;;  %v14170_v28 = vld [vmem:[#allocation47_spill] sm:$0xff] }
 0x368   : > { %v5450_v41 = vpop.f32.mrf.mxu1 }
 0x369   : > { %14158 = vst [vmem:[#allocation88_spill] sm:$0xff] %v13389_v57  ;;  %v5900_v16 = vadd.f32 %v9630_v55, %v5456_v8  ;;  %v5451_v2 = vadd.f32 %v5450_v41, %v13220_v10  ;;  %v5822_v20 = vpop.f32.mrf.mxu0  ;;  %v13393_v56 = vadd.f32 %v5897_v13, %v4867_v22  ;;  %v4873_v55 = vmul.f32 %v14167_v63, %v14166_v7  ;;  %v14174_v41 = vld [vmem:[#allocation116_spill] sm:$0xff]  ;;  %v14185_v63 = vld [vmem:[#allocation53_spill] sm:$0xff] }
 0x36a   : > { %v9569_v15 = vpop.f32.mrf.mxu1 }
 0x36b   : > { %14159 = vst [vmem:[#allocation54_spill] sm:$0xff] %v13393_v56  ;;  %v13398_v29 = vadd.f32 %v5900_v16, %v13225_v62  ;;  %v5899_v32 = vadd.f32 %v5812_v52, %v5451_v2  ;;  %v5466_v38 = vadd.f32 %v9569_v15, %v13227_v9  ;;  %v9636_v18 = vpop.f32.mrf.mxu0  ;;  %v14175_v2 = vld [vmem:[#allocation75_spill] sm:$0xff] }
 0x36c   : > { %v5460_v17 = vpop.f32.mrf.mxu1 }
 0x36d   : > { %14161 = vst [vmem:[#allocation83_spill] sm:$0xff] %v13398_v29  ;;  %v5902_v5 = vadd.f32 %v9633_v25, %v5466_v38  ;;  %v5461_v19 = vadd.f32 %v5460_v17, %v13234_v51  ;;  %v5832_v30 = vpop.f32.mrf.mxu0  ;;  %v13402_v10 = vadd.f32 %v5899_v32, %v4869_v24  ;;  %v14173_v25 = vld [vmem:[#allocation77_spill] sm:$0xff]  ;;  %v14178_v17 = vld [vmem:[#allocation79_spill] sm:$0xff] }
 0x36e   : > { %v9572_v35 = vpop.f32.mrf.mxu1  ;;  %v4875_v16 = vmul.f32 %v14174_v41, %v14173_v25 }
 0x36f   : > { %14162 = vst [vmem:[#allocation91_spill] sm:$0xff] %v13402_v10  ;;  %v13407_v58 = vadd.f32 %v5902_v5, %v13239_v60  ;;  %v5901_v62 = vadd.f32 %v5822_v20, %v5461_v19  ;;  %v5476_v50 = vadd.f32 %v9572_v35, %v13241_v1  ;;  %v9639_v33 = vpop.f32.mrf.mxu0 }
 0x370   : > { %v5470_v9 = vpop.f32.mrf.mxu1 }
 0x371   : > { %14164 = vst [vmem:[#allocation84_spill] sm:$0xff] %v13407_v58  ;;  %v5904_v61 = vadd.f32 %v9636_v18, %v5476_v50  ;;  %v5471_v43 = vadd.f32 %v5470_v9, %v13248_v49  ;;  %v5842_v6 = vpop.f32.mrf.mxu0  ;;  %v13411_v51 = vadd.f32 %v5901_v62, %v4871_v26  ;;  %v14181_v26 = vld [vmem:[#allocation3_spill] sm:$0xff]  ;;  %v14182_v50 = vld [vmem:[#allocation30_spill] sm:$0xff] }
 0x372   : > { %v9575_v44 = vpop.f32.mrf.mxu1  ;;  %v4877_v62 = vmul.f32 %v14181_v26, %v14180_v36 }
 0x373   : > { %14165 = vst [vmem:[#allocation94_spill] sm:$0xff] %v13411_v51  ;;  %v13416_v48 = vadd.f32 %v5904_v61, %v14168_v34  ;;  %v5903_v60 = vadd.f32 %v5832_v30, %v5471_v43  ;;  %v5486_v11 = vadd.f32 %v9575_v44, %v14170_v28  ;;  %v9642_v52 = vpop.f32.mrf.mxu0  ;;  %v14184_v61 = vld [vmem:[#allocation51_spill] sm:$0xff] }
 0x374   : > { %v5480_v1 = vpop.f32.mrf.mxu1 }
 0x375   : > { %14169 = vst [vmem:[#allocation32_spill] sm:$0xff] %v13416_v48  ;;  %v5906_v23 = vadd.f32 %v9639_v33, %v5486_v11  ;;  %v5481_v22 = vadd.f32 %v5480_v1, %v14171_v40  ;;  %v5852_v13 = vpop.f32.mrf.mxu0  ;;  %v13420_v49 = vadd.f32 %v5903_v60, %v4873_v55  ;;  %v14187_v11 = vld [vmem:[#allocation31_spill] sm:$0xff] }
 0x376   : > { %v9578_v8 = vpop.f32.mrf.mxu1 }
 0x377   : > { %14172 = vst [vmem:[#allocation86_spill] sm:$0xff] %v13420_v49  ;;  %v13425_v20 = vadd.f32 %v5906_v23, %v14175_v2  ;;  %v5905_v15 = vadd.f32 %v5842_v6, %v5481_v22  ;;  %v5496_v24 = vadd.f32 %v9578_v8, %v14177_v4  ;;  %v9645_v32 = vpop.f32.mrf.mxu0  ;;  %v14189_v23 = vld [vmem:[#allocation78_spill] sm:$0xff] }
 0x378   : > { %v5490_v38 = vpop.f32.mrf.mxu1  ;;  %v14191_v8 = vld [vmem:[#allocation82_spill] sm:$0xff] }
 0x379   : > { %14176 = vst [vmem:[#allocation97_spill] sm:$0xff] %v13425_v20  ;;  %v5908_v18 = vadd.f32 %v9642_v52, %v5496_v24  ;;  %v5491_v5 = vadd.f32 %v5490_v38, %v14178_v17  ;;  %v5862_v19 = vpop.f32.mrf.mxu0  ;;  %v13429_v30 = vadd.f32 %v5905_v15, %v4875_v16  ;;  %v14188_v52 = vld [vmem:[#allocation118_spill] sm:$0xff]  ;;  %v14192_v16 = vld [vmem:[#allocation80_spill] sm:$0xff]  ;;  %v14195_v38 = vld [vmem:[#allocation119_spill] sm:$0xff] }
 0x37a   : > { %v9581_v35 = vpop.f32.mrf.mxu1  ;;  %v4879_v1 = vmul.f32 %v14188_v52, %v14187_v11  ;;  %v14196_v17 = vld [vmem:[#allocation85_spill] sm:$0xff] }
 0x37b   : > { %14179 = vst [vmem:[#allocation34_spill] sm:$0xff] %v13429_v30  ;;  %v13434_v33 = vadd.f32 %v5908_v18, %v14182_v50  ;;  %v5907_v9 = vadd.f32 %v5852_v13, %v5491_v5  ;;  %v5506_v43 = vadd.f32 %v9581_v35, %v14184_v61  ;;  %v9648_v6 = vpop.f32.mrf.mxu0 }
 0x37c   : > { %v5500_v44 = vpop.f32.mrf.mxu1 }
 0x37d   : > { %14183 = vst [vmem:[#allocation24_spill] sm:$0xff] %v13434_v33  ;;  %v5910_v7 = vadd.f32 %v9645_v32, %v5506_v43  ;;  %v5501_v55 = vadd.f32 %v5500_v44, %v14185_v63  ;;  %v13438_v34 = vadd.f32 %v5907_v9, %v4877_v62  ;;  %v5872_v60 = vpop.f32.mrf.mxu0  ;;  %v14194_v32 = vld [vmem:[#allocation81_spill] sm:$0xff] }
 0x37e   : > { %v9584_v28 = vpop.f32.mrf.mxu1  ;;  %v4881_v18 = vmul.f32 %v14195_v38, %v14194_v32 }
 0x37f   : > { %14186 = vst [vmem:[#allocation56_spill] sm:$0xff] %v13438_v34  ;;  %v13443_v40 = vadd.f32 %v5910_v7, %v14189_v23  ;;  %v5909_v22 = vadd.f32 %v5862_v19, %v5501_v55  ;;  %v5516_v13 = vadd.f32 %v9584_v28, %v14191_v8  ;;  %v9731_v4 = vpop.f32.mrf.mxu0 }
 0x380   : > { %v5510_v25 = vpop.f32.mrf.mxu1 }
 0x381   : > { %14190 = vst [vmem:[#allocation25_spill] sm:$0xff] %v13443_v40  ;;  %v5912_v41 = vadd.f32 %v9648_v6, %v5516_v13  ;;  %v5511_v2 = vadd.f32 %v5510_v25, %v14192_v16  ;;  %v13447_v15 = vadd.f32 %v5909_v22, %v4879_v1  ;;  %v6390_v19 = vpop.f32.mrf.mxu0 }
 0x382   : > { %v9667_v24 = vpop.f32.mrf.mxu1 }
 0x383   : > { %14193 = vst [vmem:[#allocation59_spill] sm:$0xff] %v13447_v15  ;;  %v13452_v5 = vadd.f32 %v5912_v41, %v14196_v17  ;;  %v5911_v35 = vadd.f32 %v5872_v60, %v5511_v2  ;;  %v9734_v9 = vpop.f32.mrf.mxu0 }
 0x384   : > { %v6159_v36 = vpop.f32.mrf.mxu1 }
 0x385   : > { %14197 = vst [vmem:[#allocation87_spill] sm:$0xff] %v13452_v5  ;;  %v13454_v26 = vadd.f32 %v5911_v35, %v4881_v18  ;;  %v6400_v6 = vpop.f32.mrf.mxu0  ;;  %v6391_v56 = vadd.f32 %v6390_v19, %v6159_v36 }
 0x386   : > { %v9670_v62 = vpop.f32.mrf.mxu1 }
 0x387   : > { %14198 = vst [vmem:[#allocation104_spill] sm:$0xff] %v13454_v26  ;;  %v9737_v63 = vpop.f32.mrf.mxu0 }
 0x388   : > { %v6169_v50 = vpop.f32.mrf.mxu1 }
 0x389   : > { %v6410_v28 = vpop.f32.mrf.mxu0 }
 0x38a   : > { %v13456_v61 = vpop.f32.mrf.mxu1 }
 0x38b   : > { %v9740_v1 = vpop.f32.mrf.mxu0 }
 0x38c   : > { %v13458_v43 = vpop.f32.mrf.mxu1 }
 0x38d   : > { %v13476_v8 = vpop.f32.mrf.mxu0 }
 0x38e   : > { %v13460_v44 = vpop.f32.mrf.mxu1 }
 0x38f   : > { %v13482_v41 = vpop.f32.mrf.mxu0 }
 0x390   : > { %v13462_v7 = vpop.f32.mrf.mxu1 }
 0x391   : > { %v13488_v32 = vpop.f32.mrf.mxu0 }
 0x392   : > { %v13464_v55 = vpop.f32.mrf.mxu1 }
 0x393   : > { %v13494_v17 = vpop.f32.mrf.mxu0 }
 0x394   : > { %v13466_v60 = vpop.f32.mrf.mxu1 }
 0x395   : > { %v13500_v5 = vpop.f32.mrf.mxu0 }
 0x396   : > { %v13468_v11 = vpop.f32.mrf.mxu1 }
 0x397   : > { %v13506_v34 = vpop.f32.mrf.mxu0 }
 0x398   : > { %v13470_v52 = vpop.f32.mrf.mxu1 }
 0x399   : > { %v13512_v20 = vpop.f32.mrf.mxu0 }
 0x39a   : > { %v13472_v23 = vpop.f32.mrf.mxu1 }
 0x39b   : > { %v13518_v51 = vpop.f32.mrf.mxu0 }
 0x39c   : > { %v13474_v22 = vpop.f32.mrf.mxu1 }
 0x39e   : > { %v13478_v13 = vpop.f32.mrf.mxu1 }
 0x3a0   : > { %v13480_v25 = vpop.f32.mrf.mxu1 }
 0x3a2   : > { %v13484_v16 = vpop.f32.mrf.mxu1 }
 0x3a4   : > { %v13486_v2 = vpop.f32.mrf.mxu1 }
 0x3a6   : > { %v13490_v38 = vpop.f32.mrf.mxu1 }
 0x3a7   : > { %14199 = vst [vmem:[#allocation36_spill] sm:$0xff] %v13490_v38 }
 0x3a8   : > { %v13492_v18 = vpop.f32.mrf.mxu1 }
 0x3a9   : > { %14200 = vst [vmem:[#allocation89_spill] sm:$0xff] %v13492_v18 }
 0x3aa   : > { %v13496_v35 = vpop.f32.mrf.mxu1 }
 0x3ab   : > { %14201 = vst [vmem:[#allocation112_spill] sm:$0xff] %v13496_v35  ;;  %v14213_v35 = vld [vmem:[#allocation7_spill] sm:$0xff] }
 0x3ac   : > { %v13498_v26 = vpop.f32.mrf.mxu1 }
 0x3ad   : > { %14202 = vst [vmem:[#allocation90_spill] sm:$0xff] %v13498_v26 }
 0x3ae   : > { %v13502_v15 = vpop.f32.mrf.mxu1 }
 0x3af   : > { %14203 = vst [vmem:[#allocation48_spill] sm:$0xff] %v13502_v15  ;;  %v13524_v15 = vpop.f32.mrf.mxu0 }
 0x3b0   : > { %v13504_v40 = vpop.f32.mrf.mxu1 }
 0x3b1   : > { %14204 = vst [vmem:[#allocation57_spill] sm:$0xff] %v13504_v40 }
 0x3b2   : > { %v13508_v33 = vpop.f32.mrf.mxu1 }
 0x3b3   : > { %14205 = vst [vmem:[#allocation92_spill] sm:$0xff] %v13508_v33  ;;  %v6396_v33 = vadd.f32 %v9731_v4, %v9667_v24 }
 0x3b4   : > { %v13510_v30 = vpop.f32.mrf.mxu1 }
 0x3b5   : > { %14206 = vst [vmem:[#allocation60_spill] sm:$0xff] %v13510_v30  ;;  %v13530_v30 = vpop.f32.mrf.mxu0 }
 0x3b6   : > { %v13514_v49 = vpop.f32.mrf.mxu1 }
 0x3b7   : > { %14207 = vst [vmem:[#allocation93_spill] sm:$0xff] %v13514_v49 }
 0x3b8   : > { %v13516_v48 = vpop.f32.mrf.mxu1 }
 0x3b9   : > { %14208 = vst [vmem:[#allocation39_spill] sm:$0xff] %v13516_v48  ;;  %v6406_v48 = vadd.f32 %v9734_v9, %v9670_v62 }
 0x3ba   : > { %v13520_v58 = vpop.f32.mrf.mxu1 }
 0x3bb   : > { %14209 = vst [vmem:[#allocation95_spill] sm:$0xff] %v13520_v58  ;;  %v13533_v58 = vpop.f32.mrf.mxu0 }
 0x3bc   : > { %v13522_v10 = vpop.f32.mrf.mxu1 }
 0x3bd   : > { %14210 = vst [vmem:[#allocation42_spill] sm:$0xff] %v13522_v10  ;;  %v13538_v10 = vld [vmem:[%s13792_s2 + $0x1] ss:$0 sm:$0xff] }
 0x3be   : > { %v13526_v40 = vpop.f32.mrf.mxu1 }
 0x3bf   : > { %14211 = vst [vmem:[#allocation26_spill] sm:$0xff] %v13526_v40 }
 0x3c0   : > { %v13528_v29 = vpop.f32.mrf.mxu1 }
 0x3c1   : > { %14212 = vst [vmem:[#allocation62_spill] sm:$0xff] %v13528_v29  ;;  %v6401_v29 = vadd.f32 %v6400_v6, %v6169_v50  ;;  %v6416_v50 = vadd.f32 %v9737_v63, %v13456_v61 }
 0x3c2   : > { %v9795_v26 = vpop.f32.mrf.mxu1 }
 0x3c3   : > { %v6912_v49 = vadd.f32 %v9795_v26, %v6396_v33  ;;  %v14214_v26 = vld [vmem:[#allocation9_spill] sm:$0xff] }
 0x3c4   : > { %v6752_v57 = vpop.f32.mrf.mxu1 }
 0x3c5   : > { %v6944_v18 = vmul.f32 %v14213_v35, %v6912_v49  ;;  %v6911_v38 = vadd.f32 %v6752_v57, %v6391_v56  ;;  %v13545_v49 = vld [vmem:[%s13793_s3 + $0x1] ss:$0 sm:$0xff] }
 0x3c6   : > { %v9798_v40 = vpop.f32.mrf.mxu1 }
 0x3c7   : > { %v6976_v4 = vadd.f32 %v6944_v18, %v13317_v54  ;;  %v6975_v24 = vadd.f32 %v6911_v38, %v13321_v59  ;;  %v6914_v36 = vadd.f32 %v9798_v40, %v6406_v48  ;;  %v13551_v54 = vpop.f32.mrf.mxu0  ;;  %v6411_v38 = vadd.f32 %v6410_v28, %v13458_v43  ;;  %v14215_v43 = vld [vmem:[#allocation10_spill] sm:$0xff] }
 0x3c8   : > { %v6762_v57 = vpop.f32.mrf.mxu1  ;;  %v6426_v18 = vadd.f32 %v9740_v1, %v13460_v44 }
 0x3c9   : > { %v7016_v56 = vmul.f32 %v13538_v10, %v6976_v4  ;;  %v7015_v33 = vmul.f32 %v13538_v10, %v6975_v24  ;;  %v6946_v19 = vmul.f32 %v14214_v26, %v6914_v36  ;;  %v6913_v62 = vadd.f32 %v6762_v57, %v6401_v29  ;;  %v13568_v4 = vpop.f32.mrf.mxu0 }
 0x3ca   : > { %v9801_v59 = vpop.f32.mrf.mxu1  ;;  %v6421_v24 = vadd.f32 %v13476_v8, %v13462_v7 }
 0x3cb   : > { %v7056_v48 = vadd.f32 %v13545_v49, %v7016_v56  ;;  %v7055_v40 = vadd.f32 %v13545_v49, %v7015_v33  ;;  %v6978_v9 = vadd.f32 %v6946_v19, %v13326_v47  ;;  %v6977_v6 = vadd.f32 %v6913_v62, %v13330_v31 }
 0x3cc   : > { %v6916_v29 = vadd.f32 %v9801_v59, %v6416_v50  ;;  %v6772_v61 = vpop.f32.mrf.mxu1  ;;  %v6436_v33 = vadd.f32 %v13482_v41, %v13464_v55  ;;  %v14216_v50 = vld [vmem:[#allocation13_spill] sm:$0xff]  ;;  %v6431_v55 = vadd.f32 %v13488_v32, %v13466_v60  ;;  %v14217_v32 = vld [vmem:[#allocation14_spill] sm:$0xff] }
 0x3cd   : > { %v7088_v63 = vmax.f32 %v7056_v48, 0.0  ;;  %v7087_v35 = vmax.f32 %v7055_v40, 0.0  ;;  %v7018_v47 = vmul.f32 %v13538_v10, %v6978_v9  ;;  %v7017_v31 = vmul.f32 %v13538_v10, %v6977_v6  ;;  %v13584_v40 = vpop.f32.mrf.mxu0 }
 0x3ce   : > { %v6948_v44 = vmul.f32 %v14215_v43, %v6916_v29  ;;  %v6915_v28 = vadd.f32 %v6772_v61, %v6411_v38  ;;  %v9804_v1 = vpop.f32.mrf.mxu1 }
 0x3cf   : > { %7120 = vst.msk [vmem:[%s13564_s21 + $0x8] sm:$0xff] %vm455_vm0, %v7088_v63  ;;  %7119 = vst.msk [vmem:[%s13564_s21] sm:$0xff] %vm455_vm0, %v7087_v35  ;;  %v7058_v36 = vadd.f32 %v13545_v49, %v7018_v47  ;;  %v7057_v57 = vadd.f32 %v13545_v49, %v7017_v31  ;;  %v6918_v56 = vadd.f32 %v9804_v1, %v6426_v18  ;;  %v13603_v31 = vpop.f32.mrf.mxu0 }
 0x3d0   : > { %v6980_v26 = vadd.f32 %v6948_v44, %v13335_v27  ;;  %v6979_v19 = vadd.f32 %v6915_v28, %v13339_v53  ;;  %v6782_v62 = vpop.f32.mrf.mxu1 }
 0x3d1   : > { %v7090_v7 = vmax.f32 %v7058_v36, 0.0  ;;  %v7089_v8 = vmax.f32 %v7057_v57, 0.0  ;;  %v6950_v59 = vmul.f32 %v14216_v50, %v6918_v56  ;;  %v6917_v48 = vadd.f32 %v6782_v62, %v6421_v24  ;;  %v14218_v62 = vld [vmem:[#allocation15_spill] sm:$0xff] }
 0x3d2   : > { %v7020_v9 = vmul.f32 %v13538_v10, %v6980_v26  ;;  %v7019_v6 = vmul.f32 %v13538_v10, %v6979_v19  ;;  %v9807_v38 = vpop.f32.mrf.mxu1  ;;  %v6441_v57 = vadd.f32 %v13500_v5, %v13470_v52  ;;  %v13619_v19 = vpop.f32.mrf.mxu0 }
 0x3d3   : > { %7122 = vst.msk [vmem:[%s13564_s21 + $0x18] sm:$0xff] %vm455_vm0, %v7090_v7  ;;  %7121 = vst.msk [vmem:[%s13564_s21 + $0x10] sm:$0xff] %vm455_vm0, %v7089_v8  ;;  %v6982_v27 = vadd.f32 %v6950_v59, %v13344_v3  ;;  %v6981_v53 = vadd.f32 %v6917_v48, %v13348_v45  ;;  %v6920_v41 = vadd.f32 %v9807_v38, %v6436_v33  ;;  %v14219_v38 = vld [vmem:[#allocation29_spill] sm:$0xff] }
 0x3d4   : > { %v7060_v18 = vadd.f32 %v13545_v49, %v7020_v9  ;;  %v7059_v29 = vadd.f32 %v13545_v49, %v7019_v6  ;;  %v6792_v61 = vpop.f32.mrf.mxu1  ;;  %v6446_v3 = vadd.f32 %v13494_v17, %v13468_v11  ;;  %v6456_v11 = vadd.f32 %v13506_v34, %v13472_v23 }
 0x3d5   : > { %v7022_v63 = vmul.f32 %v13538_v10, %v6982_v27  ;;  %v7021_v60 = vmul.f32 %v13538_v10, %v6981_v53  ;;  %v6952_v35 = vmul.f32 %v14217_v32, %v6920_v41  ;;  %v6919_v47 = vadd.f32 %v6792_v61, %v6431_v55  ;;  %v13635_v53 = vpop.f32.mrf.mxu0 }
 0x3d6   : > { %v7092_v45 = vmax.f32 %v7060_v18, 0.0  ;;  %v7091_v43 = vmax.f32 %v7059_v29, 0.0  ;;  %v9810_v44 = vpop.f32.mrf.mxu1  ;;  %v6451_v34 = vadd.f32 %v13512_v20, %v13474_v22  ;;  %v6466_v59 = vadd.f32 %v13518_v51, %v13478_v13 }
 0x3d7   : > { %v7062_v28 = vadd.f32 %v13545_v49, %v7022_v63  ;;  %v7061_v1 = vadd.f32 %v13545_v49, %v7021_v60  ;;  %v6984_v24 = vadd.f32 %v6952_v35, %v13353_v37  ;;  %v6983_v36 = vadd.f32 %v6919_v47, %v13357_v14 }
 0x3d8   : > { %7124 = vst.msk [vmem:[%s13564_s21 + $0x28] sm:$0xff] %vm455_vm0, %v7092_v45  ;;  %7123 = vst.msk [vmem:[%s13564_s21 + $0x20] sm:$0xff] %vm455_vm0, %v7091_v43  ;;  %v6922_v17 = vadd.f32 %v9810_v44, %v6446_v3  ;;  %v6802_v56 = vpop.f32.mrf.mxu1  ;;  %v6461_v51 = vadd.f32 %v13524_v15, %v13480_v25  ;;  %v14220_v25 = vld [vmem:[#allocation17_spill] sm:$0xff]  ;;  %v13654_v3 = vpop.f32.mrf.mxu0 }
 0x3d9   : > { %v7094_v33 = vmax.f32 %v7062_v28, 0.0  ;;  %v7093_v26 = vmax.f32 %v7061_v1, 0.0  ;;  %v7024_v37 = vmul.f32 %v13538_v10, %v6984_v24  ;;  %v7023_v14 = vmul.f32 %v13538_v10, %v6983_v36 }
 0x3da   : > { %v6954_v5 = vmul.f32 %v14218_v62, %v6922_v17  ;;  %v6921_v52 = vadd.f32 %v6802_v56, %v6441_v57  ;;  %v9813_v7 = vpop.f32.mrf.mxu1  ;;  %v6471_v36 = vadd.f32 %v13533_v58, %v13486_v2  ;;  %v14221_v57 = vld [vmem:[#allocation36_spill] sm:$0xff] }
 0x3db   : > { %7126 = vst.msk [vmem:[%s13564_s21 + $0x38] sm:$0xff] %vm455_vm0, %v7094_v33  ;;  %7125 = vst.msk [vmem:[%s13564_s21 + $0x30] sm:$0xff] %vm455_vm0, %v7093_v26  ;;  %v7064_v23 = vadd.f32 %v13545_v49, %v7024_v37  ;;  %v7063_v8 = vadd.f32 %v13545_v49, %v7023_v14  ;;  %v6924_v50 = vadd.f32 %v9813_v7, %v6456_v11  ;;  %v6510_v33 = vpop.f32.mrf.mxu0  ;;  %v14222_v26 = vld [vmem:[#allocation18_spill] sm:$0xff]  ;;  %v14223_v14 = vld [vmem:[#allocation89_spill] sm:$0xff] }
 0x3dc   : > { %v6986_v48 = vadd.f32 %v6954_v5, %v13362_v12  ;;  %v6985_v9 = vadd.f32 %v6921_v52, %v13366_v46  ;;  %v6812_v6 = vpop.f32.mrf.mxu1  ;;  %v14224_v7 = vld [vmem:[#allocation112_spill] sm:$0xff] }
 0x3dd   : > { %v7096_v20 = vmax.f32 %v7064_v23, 0.0  ;;  %v7095_v22 = vmax.f32 %v7063_v8, 0.0  ;;  %v6956_v55 = vmul.f32 %v14219_v38, %v6924_v50  ;;  %v6923_v27 = vadd.f32 %v6812_v6, %v6451_v34  ;;  %v14225_v23 = vld [vmem:[#allocation88_spill] sm:$0xff]  ;;  %v14226_v50 = vld [vmem:[#allocation54_spill] sm:$0xff]  ;;  %v14227_v6 = vld [vmem:[#allocation37_spill] sm:$0xff]  ;;  %v9770_v38 = vpop.f32.mrf.mxu0 }
 0x3de   : > { %v7026_v41 = vmul.f32 %v13538_v10, %v6986_v48  ;;  %v7025_v18 = vmul.f32 %v13538_v10, %v6985_v9  ;;  %v9816_v29 = vpop.f32.mrf.mxu1  ;;  %v6496_v34 = vadd.f32 %v13584_v40, %v14224_v7  ;;  %v14229_v40 = vld [vmem:[#allocation83_spill] sm:$0xff] }
 0x3df   : > { %7128 = vst.msk [vmem:[%s13564_s21 + $0x48] sm:$0xff] %vm455_vm0, %v7096_v20  ;;  %7127 = vst.msk [vmem:[%s13564_s21 + $0x40] sm:$0xff] %vm455_vm0, %v7095_v22  ;;  %v6988_v12 = vadd.f32 %v6956_v55, %v13371_v42  ;;  %v6987_v46 = vadd.f32 %v6923_v27, %v13375_v39  ;;  %v6926_v13 = vadd.f32 %v9816_v29, %v6466_v59 }
 0x3e0   : > { %v7066_v61 = vadd.f32 %v13545_v49, %v7026_v41  ;;  %v7065_v63 = vadd.f32 %v13545_v49, %v7025_v18  ;;  %v6822_v60 = vpop.f32.mrf.mxu1  ;;  %v6476_v42 = vadd.f32 %v13530_v30, %v13484_v16  ;;  %v6486_v30 = vadd.f32 %v13551_v54, %v14221_v57  ;;  %v14228_v18 = vld [vmem:[#allocation90_spill] sm:$0xff] }
 0x3e1   : > { %v7028_v32 = vmul.f32 %v13538_v10, %v6988_v12  ;;  %v7027_v15 = vmul.f32 %v13538_v10, %v6987_v46  ;;  %v6958_v35 = vmul.f32 %v14220_v25, %v6926_v13  ;;  %v6925_v47 = vadd.f32 %v6822_v60, %v6461_v51  ;;  %v14230_v12 = vld [vmem:[#allocation91_spill] sm:$0xff]  ;;  %v14234_v57 = vld [vmem:[#allocation94_spill] sm:$0xff] }
 0x3e2   : > { %v7098_v39 = vmax.f32 %v7066_v61, 0.0  ;;  %v7097_v45 = vmax.f32 %v7065_v63, 0.0  ;;  %v9819_v43 = vpop.f32.mrf.mxu1  ;;  %v6481_v54 = vadd.f32 %v13568_v4, %v14223_v14  ;;  %v6491_v29 = vadd.f32 %v13603_v31, %v14228_v18  ;;  %v14237_v14 = vld [vmem:[#allocation35_spill] sm:$0xff] }
 0x3e3   : > { %v7068_v44 = vadd.f32 %v13545_v49, %v7028_v32  ;;  %v7067_v28 = vadd.f32 %v13545_v49, %v7027_v15  ;;  %v6990_v1 = vadd.f32 %v6958_v35, %v13380_v0  ;;  %v6989_v24 = vadd.f32 %v6925_v47, %v13384_v21  ;;  %v14231_v15 = vld [vmem:[#allocation33_spill] sm:$0xff]  ;;  %v14232_v47 = vld [vmem:[#allocation48_spill] sm:$0xff] }
 0x3e4   : > { %7130 = vst.msk [vmem:[%s13564_s21 + $0x58] sm:$0xff] %vm455_vm0, %v7098_v39  ;;  %7129 = vst.msk [vmem:[%s13564_s21 + $0x50] sm:$0xff] %vm455_vm0, %v7097_v45  ;;  %v6928_v16 = vadd.f32 %v9819_v43, %v6476_v42  ;;  %v6832_v11 = vpop.f32.mrf.mxu1  ;;  %v6506_v42 = vadd.f32 %v13619_v19, %v14232_v47  ;;  %v6520_v39 = vpop.f32.mrf.mxu0 }
 0x3e5   : > { %v7100_v17 = vmax.f32 %v7068_v44, 0.0  ;;  %v7099_v56 = vmax.f32 %v7067_v28, 0.0  ;;  %v7030_v0 = vmul.f32 %v13538_v10, %v6990_v1  ;;  %v7029_v21 = vmul.f32 %v13538_v10, %v6989_v24  ;;  %v14233_v24 = vld [vmem:[#allocation84_spill] sm:$0xff] }
 0x3e6   : > { %v6960_v37 = vmul.f32 %v14222_v26, %v6928_v16  ;;  %v6927_v58 = vadd.f32 %v6832_v11, %v6471_v36  ;;  %v9822_v2 = vpop.f32.mrf.mxu1  ;;  %v14235_v16 = vld [vmem:[#allocation57_spill] sm:$0xff] }
 0x3e7   : > { %7132 = vst.msk [vmem:[%s13564_s21 + $0x68] sm:$0xff] %vm455_vm0, %v7100_v17  ;;  %7131 = vst.msk [vmem:[%s13564_s21 + $0x60] sm:$0xff] %vm455_vm0, %v7099_v56  ;;  %v7070_v62 = vadd.f32 %v13545_v49, %v7030_v0  ;;  %v7069_v5 = vadd.f32 %v13545_v49, %v7029_v21  ;;  %v6930_v52 = vadd.f32 %v9822_v2, %v6486_v30  ;;  %v14236_v17 = vld [vmem:[#allocation92_spill] sm:$0xff]  ;;  %v9773_v2 = vpop.f32.mrf.mxu0 }
 0x3e8   : > { %v6992_v8 = vadd.f32 %v6960_v37, %v14225_v23  ;;  %v6991_v59 = vadd.f32 %v6927_v58, %v14226_v50  ;;  %v6842_v48 = vpop.f32.mrf.mxu1  ;;  %v6501_v11 = vadd.f32 %v13635_v53, %v14235_v16  ;;  %v6516_v19 = vadd.f32 %v13654_v3, %v14236_v17  ;;  %v14239_v23 = vld [vmem:[#allocation93_spill] sm:$0xff]  ;;  %v14240_v50 = vld [vmem:[#allocation32_spill] sm:$0xff] }
 0x3e9   : > { %v7102_v4 = vmax.f32 %v7070_v62, 0.0  ;;  %v7101_v9 = vmax.f32 %v7069_v5, 0.0  ;;  %v6962_v20 = vmul.f32 %v14227_v6, %v6930_v52  ;;  %v6929_v22 = vadd.f32 %v6842_v48, %v6481_v54  ;;  %v14238_v5 = vld [vmem:[#allocation60_spill] sm:$0xff]  ;;  %v14241_v48 = vld [vmem:[#allocation86_spill] sm:$0xff] }
 0x3ea   : > { %v7032_v55 = vmul.f32 %v13538_v10, %v6992_v8  ;;  %v7031_v27 = vmul.f32 %v13538_v10, %v6991_v59  ;;  %v9825_v41 = vpop.f32.mrf.mxu1  ;;  %v6511_v52 = vadd.f32 %v6510_v33, %v14238_v5  ;;  %v6526_v8 = vadd.f32 %v9770_v38, %v14239_v23  ;;  %v14244_v38 = vld [vmem:[#allocation97_spill] sm:$0xff] }
 0x3eb   : > { %7134 = vst.msk [vmem:[%s13564_s21 + $0x78] sm:$0xff] %vm455_vm0, %v7102_v4  ;;  %7133 = vst.msk [vmem:[%s13564_s21 + $0x70] sm:$0xff] %vm455_vm0, %v7101_v9  ;;  %v6994_v51 = vadd.f32 %v6962_v20, %v14229_v40  ;;  %v6993_v46 = vadd.f32 %v6929_v22, %v14230_v12  ;;  %v6932_v13 = vadd.f32 %v9825_v41, %v6496_v34  ;;  %v14242_v20 = vld [vmem:[#allocation19_spill] sm:$0xff] }
 0x3ec   : > { %v7072_v61 = vadd.f32 %v13545_v49, %v7032_v55  ;;  %v7071_v63 = vadd.f32 %v13545_v49, %v7031_v27  ;;  %v6852_v60 = vpop.f32.mrf.mxu1  ;;  %v6530_v27 = vpop.f32.mrf.mxu0  ;;  %v14243_v40 = vld [vmem:[#allocation39_spill] sm:$0xff] }
 0x3ed   : > { %v7034_v32 = vmul.f32 %v13538_v10, %v6994_v51  ;;  %v7033_v31 = vmul.f32 %v13538_v10, %v6993_v46  ;;  %v6964_v25 = vmul.f32 %v14231_v15, %v6932_v13  ;;  %v6931_v35 = vadd.f32 %v6852_v60, %v6491_v29  ;;  %v14245_v46 = vld [vmem:[#allocation34_spill] sm:$0xff] }
 0x3ee   : > { %v7104_v45 = vmax.f32 %v7072_v61, 0.0  ;;  %v7103_v43 = vmax.f32 %v7071_v63, 0.0  ;;  %v9828_v44 = vpop.f32.mrf.mxu1  ;;  %v6521_v51 = vadd.f32 %v6520_v39, %v14243_v40 }
 0x3ef   : > { %v7074_v28 = vadd.f32 %v13545_v49, %v7034_v32  ;;  %v7073_v1 = vadd.f32 %v13545_v49, %v7033_v31  ;;  %v6996_v36 = vadd.f32 %v6964_v25, %v14233_v24  ;;  %v6995_v30 = vadd.f32 %v6931_v35, %v14234_v57  ;;  %v14246_v25 = vld [vmem:[#allocation40_spill] sm:$0xff] }
 0x3f0   : > { %7136 = vst.msk [vmem:[%s13564_s21 + $0x88] sm:$0xff] %vm455_vm0, %v7104_v45  ;;  %7135 = vst.msk [vmem:[%s13564_s21 + $0x80] sm:$0xff] %vm455_vm0, %v7103_v43  ;;  %v6934_v56 = vadd.f32 %v9828_v44, %v6506_v42  ;;  %v6862_v0 = vpop.f32.mrf.mxu1  ;;  %v14247_v42 = vld [vmem:[#allocation95_spill] sm:$0xff]  ;;  %v9776_v45 = vpop.f32.mrf.mxu0 }
 0x3f1   : > { %v7106_v21 = vmax.f32 %v7074_v28, 0.0  ;;  %v7105_v26 = vmax.f32 %v7073_v1, 0.0  ;;  %v7036_v37 = vmul.f32 %v13538_v10, %v6996_v36  ;;  %v7035_v58 = vmul.f32 %v13538_v10, %v6995_v30  ;;  %v14248_v36 = vld [vmem:[#allocation24_spill] sm:$0xff] }
 0x3f2   : > { %v6966_v54 = vmul.f32 %v14237_v14, %v6934_v56  ;;  %v6933_v53 = vadd.f32 %v6862_v0, %v6501_v11  ;;  %v9831_v62 = vpop.f32.mrf.mxu1  ;;  %v6536_v39 = vadd.f32 %v9773_v2, %v14247_v42  ;;  %v14249_v30 = vld [vmem:[#allocation56_spill] sm:$0xff]  ;;  %v14250_v11 = vld [vmem:[#allocation42_spill] sm:$0xff]  ;;  %v6540_v14 = vpop.f32.mrf.mxu0 }
 0x3f3   : > { %7138 = vst.msk [vmem:[%s13564_s21 + $0x98] sm:$0xff] %vm455_vm0, %v7106_v21  ;;  %7137 = vst.msk [vmem:[%s13564_s21 + $0x90] sm:$0xff] %vm455_vm0, %v7105_v26  ;;  %v7076_v3 = vadd.f32 %v13545_v49, %v7036_v37  ;;  %v7075_v7 = vadd.f32 %v13545_v49, %v7035_v58  ;;  %v6936_v34 = vadd.f32 %v9831_v62, %v6516_v19  ;;  %v14251_v19 = vld [vmem:[#allocation26_spill] sm:$0xff] }
 0x3f4   : > { %v6998_v59 = vadd.f32 %v6966_v54, %v14240_v50  ;;  %v6997_v4 = vadd.f32 %v6933_v53, %v14241_v48  ;;  %v6872_v9 = vpop.f32.mrf.mxu1  ;;  %v6531_v17 = vadd.f32 %v6530_v27, %v14250_v11  ;;  %v6546_v56 = vadd.f32 %v9776_v45, %v14251_v19  ;;  %v14252_v54 = vld [vmem:[#allocation38_spill] sm:$0xff] }
 0x3f5   : > { %v7108_v6 = vmax.f32 %v7076_v3, 0.0  ;;  %v7107_v33 = vmax.f32 %v7075_v7, 0.0  ;;  %v6968_v22 = vmul.f32 %v14242_v20, %v6936_v34  ;;  %v6935_v55 = vadd.f32 %v6872_v9, %v6511_v52  ;;  %v14253_v52 = vld [vmem:[#allocation62_spill] sm:$0xff] }
 0x3f6   : > { %v7038_v41 = vmul.f32 %v13538_v10, %v6998_v59  ;;  %v7037_v18 = vmul.f32 %v13538_v10, %v6997_v4  ;;  %v9834_v29 = vpop.f32.mrf.mxu1  ;;  %v6541_v3 = vadd.f32 %v6540_v14, %v14253_v52  ;;  %v14255_v59 = vld [vmem:[#allocation59_spill] sm:$0xff] }
 0x3f7   : > { %7140 = vst.msk [vmem:[%s13564_s21 + $0xa8] sm:$0xff] %vm455_vm0, %v7108_v6  ;;  %7139 = vst.msk [vmem:[%s13564_s21 + $0xa0] sm:$0xff] %vm455_vm0, %v7107_v33  ;;  %v7000_v12 = vadd.f32 %v6968_v22, %v14244_v38  ;;  %v6999_v13 = vadd.f32 %v6935_v55, %v14245_v46  ;;  %v6938_v61 = vadd.f32 %v9834_v29, %v6526_v8  ;;  %v14254_v8 = vld [vmem:[#allocation25_spill] sm:$0xff]  ;;  %v14256_v33 = vld [vmem:[#allocation20_spill] sm:$0xff] }
 0x3f8   : > { %v7078_v63 = vadd.f32 %v13545_v49, %v7038_v41  ;;  %v7077_v60 = vadd.f32 %v13545_v49, %v7037_v18  ;;  %v6882_v32 = vpop.f32.mrf.mxu1  ;;  %v14257_v41 = vld [vmem:[#allocation87_spill] sm:$0xff]  ;;  %v14258_v29 = vld [vmem:[#allocation104_spill] sm:$0xff] }
 0x3f9   : > { %v7040_v31 = vmul.f32 %v13538_v10, %v7000_v12  ;;  %v7039_v15 = vmul.f32 %v13538_v10, %v6999_v13  ;;  %v6970_v35 = vmul.f32 %v14246_v25, %v6938_v61  ;;  %v6937_v47 = vadd.f32 %v6882_v32, %v6521_v51 }
 0x3fa   : > { %v7110_v43 = vmax.f32 %v7078_v63, 0.0  ;;  %v7109_v44 = vmax.f32 %v7077_v60, 0.0  ;;  %v9837_v28 = vpop.f32.mrf.mxu1 }
 0x3fb   : > { %v7080_v1 = vadd.f32 %v13545_v49, %v7040_v31  ;;  %v7079_v24 = vadd.f32 %v13545_v49, %v7039_v15  ;;  %v7002_v57 = vadd.f32 %v6970_v35, %v14248_v36  ;;  %v7001_v16 = vadd.f32 %v6937_v47, %v14249_v30 }
 0x3fc   : > { %7142 = vst.msk [vmem:[%s13564_s21 + $0xb8] sm:$0xff] %vm455_vm0, %v7110_v43  ;;  %7141 = vst.msk [vmem:[%s13564_s21 + $0xb0] sm:$0xff] %vm455_vm0, %v7109_v44  ;;  %v6940_v0 = vadd.f32 %v9837_v28, %v6536_v39  ;;  %v6892_v21 = vpop.f32.mrf.mxu1 }
 0x3fd   : > { %v7112_v26 = vmax.f32 %v7080_v1, 0.0  ;;  %v7111_v37 = vmax.f32 %v7079_v24, 0.0  ;;  %v7042_v58 = vmul.f32 %v13538_v10, %v7002_v57  ;;  %v7041_v2 = vmul.f32 %v13538_v10, %v7001_v16 }
 0x3fe   : > { %v6972_v53 = vmul.f32 %v14252_v54, %v6940_v0  ;;  %v6939_v62 = vadd.f32 %v6892_v21, %v6531_v17  ;;  %v9840_v5 = vpop.f32.mrf.mxu1 }
 0x3ff   : > { %7144 = vst.msk [vmem:[%s13564_s21 + $0xc8] sm:$0xff] %vm455_vm0, %v7112_v26  ;;  %7143 = vst.msk [vmem:[%s13564_s21 + $0xc0] sm:$0xff] %vm455_vm0, %v7111_v37  ;;  %v7082_v7 = vadd.f32 %v13545_v49, %v7042_v58  ;;  %v7081_v34 = vadd.f32 %v13545_v49, %v7041_v2  ;;  %v6942_v23 = vadd.f32 %v9840_v5, %v6546_v56 }
 0x400   : > { %v7004_v50 = vadd.f32 %v6972_v53, %v14254_v8  ;;  %v7003_v48 = vadd.f32 %v6939_v62, %v14255_v59  ;;  %v6902_v4 = vpop.f32.mrf.mxu1 }
 0x401   : > { %v7114_v9 = vmax.f32 %v7082_v7, 0.0  ;;  %v7113_v6 = vmax.f32 %v7081_v34, 0.0  ;;  %v6974_v20 = vmul.f32 %v14256_v33, %v6942_v23  ;;  %v6941_v22 = vadd.f32 %v6902_v4, %v6541_v3 }
 0x402   : > { %v7044_v55 = vmul.f32 %v13538_v10, %v7004_v50  ;;  %v7043_v27 = vmul.f32 %v13538_v10, %v7003_v48 }
 0x403   : > { %7146 = vst.msk [vmem:[%s13564_s21 + $0xd8] sm:$0xff] %vm455_vm0, %v7114_v9  ;;  %7145 = vst.msk [vmem:[%s13564_s21 + $0xd0] sm:$0xff] %vm455_vm0, %v7113_v6  ;;  %v7006_v18 = vadd.f32 %v6974_v20, %v14257_v41  ;;  %v7005_v40 = vadd.f32 %v6941_v22, %v14258_v29 }
 0x404   : > { %v7084_v51 = vadd.f32 %v13545_v49, %v7044_v55  ;;  %v7083_v38 = vadd.f32 %v13545_v49, %v7043_v27 }
 0x405   : > { %v7046_v12 = vmul.f32 %v13538_v10, %v7006_v18  ;;  %v7045_v46 = vmul.f32 %v13538_v10, %v7005_v40 }
 0x406   : > { %v7116_v13 = vmax.f32 %v7084_v51, 0.0  ;;  %v7115_v61 = vmax.f32 %v7083_v38, 0.0 }
 0x407   : > { %v7086_v63 = vadd.f32 %v13545_v49, %v7046_v12  ;;  %v7085_v60 = vadd.f32 %v13545_v49, %v7045_v46 }
 0x408   : > { %7148 = vst.msk [vmem:[%s13564_s21 + $0xe8] sm:$0xff] %vm455_vm0, %v7116_v13  ;;  %7147 = vst.msk [vmem:[%s13564_s21 + $0xe0] sm:$0xff] %vm455_vm0, %v7115_v61 }
 0x409   : > { %v7118_v32 = vmax.f32 %v7086_v63, 0.0  ;;  %v7117_v31 = vmax.f32 %v7085_v60, 0.0 }
 0x40b   : > { %7150 = vst.msk [vmem:[%s13564_s21 + $0xf8] sm:$0xff] %vm455_vm0, %v7118_v32  ;;  %7149 = vst.msk [vmem:[%s13564_s21 + $0xf0] sm:$0xff] %vm455_vm0, %v7117_v31 }
 0x40c PF: > { %s14_s15 = sadd.s32 1, %s9856_s15  }
 0x40d   : > { %p11_p4 = scmp.ge.s32.totalorder %s14_s15, 4  }
 0x40f   :  { %13 = sbr.rel (!%p11_p4) target bundleno = 1 (0x1), region = 85 }

</bundles_post_ra>
